<compile_context>
chip_gen: v7x
topology: tpu7x:2x2x1
jax: 0.10.0
libtpu: 0.0.40
codegen_flags: <defaults>
</compile_context>

<pallas_src>
import functools

import jax
import jax.numpy as jnp
from jax import lax
from jax.experimental import pallas as pl
from jax.experimental.pallas import tpu as pltpu


_EPS = 1e-5                    # nn.BatchNorm2d default eps.
_MXU_DTYPE = jnp.bfloat16      # MXU input dtype (accumulation / BN stats stay f32).


def _fill_padded(p_ref, interior):
    """Write `interior` (N,H,W,C) into the (N,H+2,W+2,C) scratch with a zero halo.

    Only the two border rows are zero-stored; the left/right zero columns are
    concatenated onto the interior value so the big store is a single aligned
    full-width slab (no full-scratch zero fill, no unaligned W-offset-1 store).
    """
    N, Hp, Wp, C = p_ref.shape
    H, W = Hp - 2, Wp - 2
    zrow = jnp.zeros((N, 1, Wp, C), p_ref.dtype)
    zcol = jnp.zeros((N, H, 1, C), p_ref.dtype)
    p_ref[:, 0:1, :, :] = zrow
    p_ref[:, Hp - 1:Hp, :, :] = zrow
    p_ref[:, 1:Hp - 1, :, :] = jnp.concatenate(
        [zcol, interior.astype(p_ref.dtype), zcol], axis=2)


def _conv_bn_relu(xp_ref, w_ref, g_ref, b_ref, mxu_dtype):
    """3x3 'same' conv (9 accumulating MXU matmuls over shifted taps read
    straight from the halo-padded scratch) + training-mode BatchNorm folded to
    a per-channel scale/shift + ReLU.  Returns (N, H, W, Co) float32.

    xp_ref : (N, H+2, W+2, Ci)  zero-halo-padded activation (VMEM scratch)
    w_ref  : (9, Ci, Co)        conv weight, tap-major, pre-cast to mxu_dtype
    g_ref  : (1, Co)            BN gamma
    b_ref  : (1, Co)            BN beta
    """
    N, Hp, Wp, Ci = xp_ref.shape
    H, W = Hp - 2, Wp - 2
    Co = w_ref.shape[-1]
    M = N * H * W

    acc = jnp.zeros((M, Co), jnp.float32)
    for kh in range(3):
        for kw in range(3):
            # Shifted tap read directly from the padded scratch (no im2col
            # buffer).  kh is an untiled-dim offset (free); kw offsets 1/2 are
            # small unaligned sublane reads, accepted at these sizes.
            tap = xp_ref[:, kh:kh + H, kw:kw + W, :]            # (N,H,W,Ci)
            tap = tap.reshape(M, Ci).astype(mxu_dtype)
            # TODO(synk): at real channel widths (Ci >= 128) pair taps along
            # channels so each MXU push has K >= 256 on v6e/v7x (v5e: K=128).
            acc = acc + jnp.dot(tap, w_ref[kh * 3 + kw],
                                preferred_element_type=jnp.float32)

    # One-pass BatchNorm stats (training semantics, biased variance), folded
    # into a single scale/shift.  The conv bias is exactly cancelled by the
    # mean subtraction and is dropped entirely.
    inv_m = 1.0 / M
    mean = jnp.sum(acc, axis=0, keepdims=True) * inv_m                 # (1,Co)
    mean_sq = jnp.sum(acc * acc, axis=0, keepdims=True) * inv_m        # (1,Co)
    var = jnp.maximum(mean_sq - mean * mean, 0.0)
    scale = g_ref[...] * lax.rsqrt(var + _EPS)
    shift = b_ref[...] - mean * scale
    y = jnp.maximum(acc * scale + shift, 0.0)
    return y.reshape(N, H, W, Co)


def double_conv_kernel(x_ref, w1_ref, g1_ref, b1_ref, w2_ref, g2_ref, b2_ref,
                       o_ref, xp1_s, xp2_s, *, mxu_dtype):
    """Fused DoubleConv: both conv+BN+ReLU stages in one kernel; the stage-1
    activation never leaves VMEM."""
    # Stage 1: spatial zero-halo pad of the real-channel input into VMEM.
    _fill_padded(xp1_s, x_ref[...])
    y1 = _conv_bn_relu(xp1_s, w1_ref, g1_ref, b1_ref, mxu_dtype)

    # Stage 2: consume the stage-1 activation straight from VMEM.
    _fill_padded(xp2_s, y1)
    y2 = _conv_bn_relu(xp2_s, w2_ref, g2_ref, b2_ref, mxu_dtype)

    o_ref[...] = y2.astype(o_ref.dtype)


def double_conv(x_nchw, params, *, mxu_dtype=_MXU_DTYPE):
    """DoubleConv forward.  x_nchw: (N, Cin, H, W) -> (N, Cout, H, W)."""
    (w1, _b1, g1, be1), (w2, _b2, g2, be2) = params   # conv biases are no-ops
    N, Cin, H, W = x_nchw.shape
    Cout = w1.shape[-1]

    # HBM interface carries only real channels (no 128-lane padding at HBM).
    x = jnp.transpose(x_nchw, (0, 2, 3, 1))           # NHWC

    def prep_w(w):   # (3,3,Ci,Co) HWIO -> (9,Ci,Co), pre-cast to the MXU dtype
        return w.reshape(9, w.shape[2], w.shape[3]).astype(mxu_dtype)

    def prep_v(v):   # (C,) -> (1, C) f32
        return v.reshape(1, -1).astype(jnp.float32)

    vmem = pl.BlockSpec(memory_space=pltpu.MemorySpace.VMEM)
    kernel = functools.partial(double_conv_kernel, mxu_dtype=mxu_dtype)

    # TODO(synk): for real UNet shapes (e.g. 1x256x256x64) this single
    # fully-VMEM-resident invocation must become a grid over N / H row-tiles
    # with a 1-row halo (BlockSpec auto-pipelining, spatial axis marked
    # "parallel" for megacore) and a two-pass BatchNorm (per-channel sum/sumsq
    # accumulated in a resident scratch across an "arbitrary" axis), with
    # per-generation tile sizing (v7x: 64 MiB VMEM / 2 TCs, v5e/v6e: 128 MiB).
    out = pl.pallas_call(
        kernel,
        out_shape=jax.ShapeDtypeStruct((N, H, W, Cout), jnp.float32),
        in_specs=[vmem] * 7,
        out_specs=vmem,
        scratch_shapes=[
            pltpu.VMEM((N, H + 2, W + 2, Cin), jnp.float32),   # padded stage-1 in
            pltpu.VMEM((N, H + 2, W + 2, Cout), jnp.float32),  # padded stage-2 in
        ],
    )(x, prep_w(w1), prep_v(g1), prep_v(be1),
      prep_w(w2), prep_v(g2), prep_v(be2))

    return jnp.transpose(out, (0, 3, 1, 2))            # back to NCHW


# ---------------------------------------------------------------------------
# Pure-JAX f32 reference (conv bias included, to demonstrate that dropping it
# inside the kernel is exact under training-mode BatchNorm).
# ---------------------------------------------------------------------------
def _ref_stage(x_nhwc, w, b, gamma, beta):
    y = lax.conv_general_dilated(
        x_nhwc.astype(jnp.float32), w.astype(jnp.float32),
        window_strides=(1, 1), padding="SAME",
        dimension_numbers=("NHWC", "HWIO", "NHWC"))
    y = y + b
    mean = jnp.mean(y, axis=(0, 1, 2))
    var = jnp.mean((y - mean) ** 2, axis=(0, 1, 2))
    y = (y - mean) * lax.rsqrt(var + _EPS) * gamma + beta
    return jnp.maximum(y, 0.0)


def double_conv_ref(x_nchw, params):
    (w1, b1, g1, be1), (w2, b2, g2, be2) = params
    x = jnp.transpose(x_nchw, (0, 2, 3, 1))
    y = _ref_stage(x, w1, b1, g1, be1)
    y = _ref_stage(y, w2, b2, g2, be2)
    return jnp.transpose(y, (0, 3, 1, 2))


if __name__ == "__main__":
    # Small shapes consistent with the module: batch=2, in_ch=4, out_ch=8, 16x16
    N, Cin, Cout, H, W = 2, 4, 8, 16, 16

    key = jax.random.PRNGKey(0)
    kx, kw1, kb1, kw2, kb2, kg1, kbe1, kg2, kbe2 = jax.random.split(key, 9)

    x = jax.random.normal(kx, (N, Cin, H, W), jnp.float32)

    # Deterministic parameter init (HWIO conv weights; PyTorch OIHW weights
    # would simply be transposed (2,3,1,0) first).
    w1 = jax.random.normal(kw1, (3, 3, Cin, Cout), jnp.float32) * 0.1
    b1 = jax.random.normal(kb1, (Cout,), jnp.float32) * 0.1
    g1 = 1.0 + 0.1 * jax.random.normal(kg1, (Cout,), jnp.float32)
    be1 = 0.1 * jax.random.normal(kbe1, (Cout,), jnp.float32)

    w2 = jax.random.normal(kw2, (3, 3, Cout, Cout), jnp.float32) * 0.1
    b2 = jax.random.normal(kb2, (Cout,), jnp.float32) * 0.1
    g2 = 1.0 + 0.1 * jax.random.normal(kg2, (Cout,), jnp.float32)
    be2 = 0.1 * jax.random.normal(kbe2, (Cout,), jnp.float32)

    params = ((w1, b1, g1, be1), (w2, b2, g2, be2))

    ref = jax.block_until_ready(double_conv_ref(x, params))

    # f32 MXU path: tight agreement with the f32 reference.
    out_f32 = jax.block_until_ready(
        jax.jit(functools.partial(double_conv, mxu_dtype=jnp.float32))(x, params))
    assert out_f32.shape == (N, Cout, H, W)
    assert jnp.allclose(out_f32, ref, rtol=1e-3, atol=1e-3), (
        float(jnp.max(jnp.abs(out_f32 - ref))))

    # bf16 MXU path (default): f32 accumulation + f32 BN stats, so agreement
    # with the f32 reference is loose but bounded (tolerance widened per the
    # review note on the bf16 change).
    out_bf16 = jax.block_until_ready(jax.jit(double_conv)(x, params))
    assert out_bf16.shape == (N, Cout, H, W)
    assert jnp.allclose(out_bf16, ref, rtol=5e-2, atol=5e-2), (
        float(jnp.max(jnp.abs(out_bf16 - ref))))

    print("KERNEL_OK")
</pallas_src>

<mosaic_0001>
module attributes {stable_mosaic.version = 11 : i64} {
  func.func @double_conv_kernel(%arg0: memref<2x16x16x4xf32, #tpu.memory_space<vmem>>, %arg1: memref<9x4x8xf32, #tpu.memory_space<vmem>>, %arg2: memref<1x8xf32, #tpu.memory_space<vmem>>, %arg3: memref<1x8xf32, #tpu.memory_space<vmem>>, %arg4: memref<9x8x8xf32, #tpu.memory_space<vmem>>, %arg5: memref<1x8xf32, #tpu.memory_space<vmem>>, %arg6: memref<1x8xf32, #tpu.memory_space<vmem>>, %arg7: memref<2x16x16x8xf32, #tpu.memory_space<vmem>>, %arg8: memref<2x18x18x4xf32, #tpu.memory_space<vmem>>, %arg9: memref<2x18x18x8xf32, #tpu.memory_space<vmem>>) attributes {dimension_semantics = [], scalar_prefetch = 0 : i64, scratch_operands = 2 : i64, tpu.core_type = #tpu.core_type<tc>} {
    %c0 = arith.constant 0 : index
    %c0_0 = arith.constant 0 : index
    %c0_1 = arith.constant 0 : index
    %c0_2 = arith.constant 0 : index
    %0 = vector.load %arg0[%c0, %c0_0, %c0_1, %c0_2] : memref<2x16x16x4xf32, #tpu.memory_space<vmem>>, vector<2x16x16x4xf32>
    %cst = arith.constant 0.000000e+00 : f32
    %1 = vector.broadcast %cst : f32 to vector<2x1x18x4xf32>
    %cst_3 = arith.constant 0.000000e+00 : f32
    %2 = vector.broadcast %cst_3 : f32 to vector<2x16x1x4xf32>
    %c0_4 = arith.constant 0 : index
    %c0_5 = arith.constant 0 : index
    %c0_6 = arith.constant 0 : index
    %c0_7 = arith.constant 0 : index
    %3 = vector.load %arg8[%c0_4, %c0_5, %c0_6, %c0_7] : memref<2x18x18x4xf32, #tpu.memory_space<vmem>>, vector<2x1x18x4xf32>
    tpu.vector_store %arg8[%c0_4, %c0_5, %c0_6, %c0_7], %1 {strides = array<i32>} : memref<2x18x18x4xf32, #tpu.memory_space<vmem>>, vector<2x1x18x4xf32>,
    %c0_8 = arith.constant 0 : index
    %c17 = arith.constant 17 : index
    %c0_9 = arith.constant 0 : index
    %c0_10 = arith.constant 0 : index
    %4 = vector.load %arg8[%c0_8, %c17, %c0_9, %c0_10] : memref<2x18x18x4xf32, #tpu.memory_space<vmem>>, vector<2x1x18x4xf32>
    tpu.vector_store %arg8[%c0_8, %c17, %c0_9, %c0_10], %1 {strides = array<i32>} : memref<2x18x18x4xf32, #tpu.memory_space<vmem>>, vector<2x1x18x4xf32>,
    %5 = tpu.concatenate %2, %0, %2 in 2 : vector<2x16x1x4xf32>, vector<2x16x16x4xf32>, vector<2x16x1x4xf32> -> vector<2x16x18x4xf32>
    %c0_11 = arith.constant 0 : index
    %c1 = arith.constant 1 : index
    %c0_12 = arith.constant 0 : index
    %c0_13 = arith.constant 0 : index
    %6 = vector.load %arg8[%c0_11, %c1, %c0_12, %c0_13] : memref<2x18x18x4xf32, #tpu.memory_space<vmem>>, vector<2x16x18x4xf32>
    tpu.vector_store %arg8[%c0_11, %c1, %c0_12, %c0_13], %5 {strides = array<i32>} : memref<2x18x18x4xf32, #tpu.memory_space<vmem>>, vector<2x16x18x4xf32>,
    %cst_14 = arith.constant 0.000000e+00 : f32
    %7 = vector.broadcast %cst_14 : f32 to vector<512x8xf32>
    %c0_15 = arith.constant 0 : index
    %c0_16 = arith.constant 0 : index
    %c0_17 = arith.constant 0 : index
    %c0_18 = arith.constant 0 : index
    %8 = vector.load %arg8[%c0_15, %c0_16, %c0_17, %c0_18] : memref<2x18x18x4xf32, #tpu.memory_space<vmem>>, vector<2x16x16x4xf32>
    %9 = vector.shape_cast %8 : vector<2x16x16x4xf32> to vector<512x4xf32>
    %c0_19 = arith.constant 0 : index
    %c0_20 = arith.constant 0 : index
    %c0_21 = arith.constant 0 : index
    %10 = vector.load %arg1[%c0_19, %c0_20, %c0_21] : memref<9x4x8xf32, #tpu.memory_space<vmem>>, vector<1x4x8xf32>
    %11 = vector.shape_cast %10 : vector<1x4x8xf32> to vector<4x8xf32>
    %cst_22 = arith.constant dense<0.000000e+00> : vector<512x8xf32>
    %12 = tpu.matmul %9, %11, %cst_22 {dimension_numbers = #tpu.dot_dimension_numbers<[1], [0], [0], [1], [0, 0, 1, 1], [], []>} : vector<512x4xf32>, vector<4x8xf32>, vector<512x8xf32> -> vector<512x8xf32>
    %13 = arith.addf %7, %12 : vector<512x8xf32>
    %c0_23 = arith.constant 0 : index
    %c0_24 = arith.constant 0 : index
    %c1_25 = arith.constant 1 : index
    %c0_26 = arith.constant 0 : index
    %14 = vector.load %arg8[%c0_23, %c0_24, %c1_25, %c0_26] : memref<2x18x18x4xf32, #tpu.memory_space<vmem>>, vector<2x16x16x4xf32>
    %15 = vector.shape_cast %14 : vector<2x16x16x4xf32> to vector<512x4xf32>
    %c1_27 = arith.constant 1 : index
    %c0_28 = arith.constant 0 : index
    %c0_29 = arith.constant 0 : index
    %16 = vector.load %arg1[%c1_27, %c0_28, %c0_29] : memref<9x4x8xf32, #tpu.memory_space<vmem>>, vector<1x4x8xf32>
    %17 = vector.shape_cast %16 : vector<1x4x8xf32> to vector<4x8xf32>
    %cst_30 = arith.constant dense<0.000000e+00> : vector<512x8xf32>
    %18 = tpu.matmul %15, %17, %cst_30 {dimension_numbers = #tpu.dot_dimension_numbers<[1], [0], [0], [1], [0, 0, 1, 1], [], []>} : vector<512x4xf32>, vector<4x8xf32>, vector<512x8xf32> -> vector<512x8xf32>
    %19 = arith.addf %13, %18 : vector<512x8xf32>
    %c0_31 = arith.constant 0 : index
    %c0_32 = arith.constant 0 : index
    %c2 = arith.constant 2 : index
    %c0_33 = arith.constant 0 : index
    %20 = vector.load %arg8[%c0_31, %c0_32, %c2, %c0_33] : memref<2x18x18x4xf32, #tpu.memory_space<vmem>>, vector<2x16x16x4xf32>
    %21 = vector.shape_cast %20 : vector<2x16x16x4xf32> to vector<512x4xf32>
    %c2_34 = arith.constant 2 : index
    %c0_35 = arith.constant 0 : index
    %c0_36 = arith.constant 0 : index
    %22 = vector.load %arg1[%c2_34, %c0_35, %c0_36] : memref<9x4x8xf32, #tpu.memory_space<vmem>>, vector<1x4x8xf32>
    %23 = vector.shape_cast %22 : vector<1x4x8xf32> to vector<4x8xf32>
    %cst_37 = arith.constant dense<0.000000e+00> : vector<512x8xf32>
    %24 = tpu.matmul %21, %23, %cst_37 {dimension_numbers = #tpu.dot_dimension_numbers<[1], [0], [0], [1], [0, 0, 1, 1], [], []>} : vector<512x4xf32>, vector<4x8xf32>, vector<512x8xf32> -> vector<512x8xf32>
    %25 = arith.addf %19, %24 : vector<512x8xf32>
    %c0_38 = arith.constant 0 : index
    %c1_39 = arith.constant 1 : index
    %c0_40 = arith.constant 0 : index
    %c0_41 = arith.constant 0 : index
    %26 = vector.load %arg8[%c0_38, %c1_39, %c0_40, %c0_41] : memref<2x18x18x4xf32, #tpu.memory_space<vmem>>, vector<2x16x16x4xf32>
    %27 = vector.shape_cast %26 : vector<2x16x16x4xf32> to vector<512x4xf32>
    %c3 = arith.constant 3 : index
    %c0_42 = arith.constant 0 : index
    %c0_43 = arith.constant 0 : index
    %28 = vector.load %arg1[%c3, %c0_42, %c0_43] : memref<9x4x8xf32, #tpu.memory_space<vmem>>, vector<1x4x8xf32>
    %29 = vector.shape_cast %28 : vector<1x4x8xf32> to vector<4x8xf32>
    %cst_44 = arith.constant dense<0.000000e+00> : vector<512x8xf32>
    %30 = tpu.matmul %27, %29, %cst_44 {dimension_numbers = #tpu.dot_dimension_numbers<[1], [0], [0], [1], [0, 0, 1, 1], [], []>} : vector<512x4xf32>, vector<4x8xf32>, vector<512x8xf32> -> vector<512x8xf32>
    %31 = arith.addf %25, %30 : vector<512x8xf32>
    %c0_45 = arith.constant 0 : index
    %c1_46 = arith.constant 1 : index
    %c1_47 = arith.constant 1 : index
    %c0_48 = arith.constant 0 : index
    %32 = vector.load %arg8[%c0_45, %c1_46, %c1_47, %c0_48] : memref<2x18x18x4xf32, #tpu.memory_space<vmem>>, vector<2x16x16x4xf32>
    %33 = vector.shape_cast %32 : vector<2x16x16x4xf32> to vector<512x4xf32>
    %c4 = arith.constant 4 : index
    %c0_49 = arith.constant 0 : index
    %c0_50 = arith.constant 0 : index
    %34 = vector.load %arg1[%c4, %c0_49, %c0_50] : memref<9x4x8xf32, #tpu.memory_space<vmem>>, vector<1x4x8xf32>
    %35 = vector.shape_cast %34 : vector<1x4x8xf32> to vector<4x8xf32>
    %cst_51 = arith.constant dense<0.000000e+00> : vector<512x8xf32>
    %36 = tpu.matmul %33, %35, %cst_51 {dimension_numbers = #tpu.dot_dimension_numbers<[1], [0], [0], [1], [0, 0, 1, 1], [], []>} : vector<512x4xf32>, vector<4x8xf32>, vector<512x8xf32> -> vector<512x8xf32>
    %37 = arith.addf %31, %36 : vector<512x8xf32>
    %c0_52 = arith.constant 0 : index
    %c1_53 = arith.constant 1 : index
    %c2_54 = arith.constant 2 : index
    %c0_55 = arith.constant 0 : index
    %38 = vector.load %arg8[%c0_52, %c1_53, %c2_54, %c0_55] : memref<2x18x18x4xf32, #tpu.memory_space<vmem>>, vector<2x16x16x4xf32>
    %39 = vector.shape_cast %38 : vector<2x16x16x4xf32> to vector<512x4xf32>
    %c5 = arith.constant 5 : index
    %c0_56 = arith.constant 0 : index
    %c0_57 = arith.constant 0 : index
    %40 = vector.load %arg1[%c5, %c0_56, %c0_57] : memref<9x4x8xf32, #tpu.memory_space<vmem>>, vector<1x4x8xf32>
    %41 = vector.shape_cast %40 : vector<1x4x8xf32> to vector<4x8xf32>
    %cst_58 = arith.constant dense<0.000000e+00> : vector<512x8xf32>
    %42 = tpu.matmul %39, %41, %cst_58 {dimension_numbers = #tpu.dot_dimension_numbers<[1], [0], [0], [1], [0, 0, 1, 1], [], []>} : vector<512x4xf32>, vector<4x8xf32>, vector<512x8xf32> -> vector<512x8xf32>
    %43 = arith.addf %37, %42 : vector<512x8xf32>
    %c0_59 = arith.constant 0 : index
    %c2_60 = arith.constant 2 : index
    %c0_61 = arith.constant 0 : index
    %c0_62 = arith.constant 0 : index
    %44 = vector.load %arg8[%c0_59, %c2_60, %c0_61, %c0_62] : memref<2x18x18x4xf32, #tpu.memory_space<vmem>>, vector<2x16x16x4xf32>
    %45 = vector.shape_cast %44 : vector<2x16x16x4xf32> to vector<512x4xf32>
    %c6 = arith.constant 6 : index
    %c0_63 = arith.constant 0 : index
    %c0_64 = arith.constant 0 : index
    %46 = vector.load %arg1[%c6, %c0_63, %c0_64] : memref<9x4x8xf32, #tpu.memory_space<vmem>>, vector<1x4x8xf32>
    %47 = vector.shape_cast %46 : vector<1x4x8xf32> to vector<4x8xf32>
    %cst_65 = arith.constant dense<0.000000e+00> : vector<512x8xf32>
    %48 = tpu.matmul %45, %47, %cst_65 {dimension_numbers = #tpu.dot_dimension_numbers<[1], [0], [0], [1], [0, 0, 1, 1], [], []>} : vector<512x4xf32>, vector<4x8xf32>, vector<512x8xf32> -> vector<512x8xf32>
    %49 = arith.addf %43, %48 : vector<512x8xf32>
    %c0_66 = arith.constant 0 : index
    %c2_67 = arith.constant 2 : index
    %c1_68 = arith.constant 1 : index
    %c0_69 = arith.constant 0 : index
    %50 = vector.load %arg8[%c0_66, %c2_67, %c1_68, %c0_69] : memref<2x18x18x4xf32, #tpu.memory_space<vmem>>, vector<2x16x16x4xf32>
    %51 = vector.shape_cast %50 : vector<2x16x16x4xf32> to vector<512x4xf32>
    %c7 = arith.constant 7 : index
    %c0_70 = arith.constant 0 : index
    %c0_71 = arith.constant 0 : index
    %52 = vector.load %arg1[%c7, %c0_70, %c0_71] : memref<9x4x8xf32, #tpu.memory_space<vmem>>, vector<1x4x8xf32>
    %53 = vector.shape_cast %52 : vector<1x4x8xf32> to vector<4x8xf32>
    %cst_72 = arith.constant dense<0.000000e+00> : vector<512x8xf32>
    %54 = tpu.matmul %51, %53, %cst_72 {dimension_numbers = #tpu.dot_dimension_numbers<[1], [0], [0], [1], [0, 0, 1, 1], [], []>} : vector<512x4xf32>, vector<4x8xf32>, vector<512x8xf32> -> vector<512x8xf32>
    %55 = arith.addf %49, %54 : vector<512x8xf32>
    %c0_73 = arith.constant 0 : index
    %c2_74 = arith.constant 2 : index
    %c2_75 = arith.constant 2 : index
    %c0_76 = arith.constant 0 : index
    %56 = vector.load %arg8[%c0_73, %c2_74, %c2_75, %c0_76] : memref<2x18x18x4xf32, #tpu.memory_space<vmem>>, vector<2x16x16x4xf32>
    %57 = vector.shape_cast %56 : vector<2x16x16x4xf32> to vector<512x4xf32>
    %c8 = arith.constant 8 : index
    %c0_77 = arith.constant 0 : index
    %c0_78 = arith.constant 0 : index
    %58 = vector.load %arg1[%c8, %c0_77, %c0_78] : memref<9x4x8xf32, #tpu.memory_space<vmem>>, vector<1x4x8xf32>
    %59 = vector.shape_cast %58 : vector<1x4x8xf32> to vector<4x8xf32>
    %cst_79 = arith.constant dense<0.000000e+00> : vector<512x8xf32>
    %60 = tpu.matmul %57, %59, %cst_79 {dimension_numbers = #tpu.dot_dimension_numbers<[1], [0], [0], [1], [0, 0, 1, 1], [], []>} : vector<512x4xf32>, vector<4x8xf32>, vector<512x8xf32> -> vector<512x8xf32>
    %61 = arith.addf %55, %60 : vector<512x8xf32>
    %cst_80 = arith.constant dense<0.000000e+00> : vector<8xf32>
    %62 = vector.multi_reduction <add>, %61, %cst_80 [0] : vector<512x8xf32> to vector<8xf32>
    %63 = vector.shape_cast %62 : vector<8xf32> to vector<1x8xf32>
    %cst_81 = arith.constant 0.001953125 : f32
    %64 = vector.broadcast %cst_81 : f32 to vector<1x8xf32>
    %65 = arith.mulf %63, %64 : vector<1x8xf32>
    %66 = arith.mulf %61, %61 : vector<512x8xf32>
    %cst_82 = arith.constant dense<0.000000e+00> : vector<8xf32>
    %67 = vector.multi_reduction <add>, %66, %cst_82 [0] : vector<512x8xf32> to vector<8xf32>
    %68 = vector.shape_cast %67 : vector<8xf32> to vector<1x8xf32>
    %cst_83 = arith.constant 0.001953125 : f32
    %69 = vector.broadcast %cst_83 : f32 to vector<1x8xf32>
    %70 = arith.mulf %68, %69 : vector<1x8xf32>
    %71 = arith.mulf %65, %65 : vector<1x8xf32>
    %72 = arith.subf %70, %71 : vector<1x8xf32>
    %cst_84 = arith.constant 0.000000e+00 : f32
    %73 = vector.broadcast %cst_84 : f32 to vector<1x8xf32>
    %74 = arith.maximumf %72, %73 : vector<1x8xf32>
    %c0_85 = arith.constant 0 : index
    %c0_86 = arith.constant 0 : index
    %75 = vector.load %arg2[%c0_85, %c0_86] : memref<1x8xf32, #tpu.memory_space<vmem>>, vector<1x8xf32>
    %cst_87 = arith.constant 9.99999974E-6 : f32
    %76 = vector.broadcast %cst_87 : f32 to vector<1x8xf32>
    %77 = arith.addf %74, %76 : vector<1x8xf32>
    %78 = math.rsqrt %77 : vector<1x8xf32>
    %79 = arith.mulf %75, %78 : vector<1x8xf32>
    %c0_88 = arith.constant 0 : index
    %c0_89 = arith.constant 0 : index
    %80 = vector.load %arg3[%c0_88, %c0_89] : memref<1x8xf32, #tpu.memory_space<vmem>>, vector<1x8xf32>
    %81 = arith.mulf %65, %79 : vector<1x8xf32>
    %82 = arith.subf %80, %81 : vector<1x8xf32>
    %83 = vector.broadcast %79 : vector<1x8xf32> to vector<512x8xf32>
    %84 = arith.mulf %61, %83 : vector<512x8xf32>
    %85 = vector.broadcast %82 : vector<1x8xf32> to vector<512x8xf32>
    %86 = arith.addf %84, %85 : vector<512x8xf32>
    %cst_90 = arith.constant 0.000000e+00 : f32
    %87 = vector.broadcast %cst_90 : f32 to vector<512x8xf32>
    %88 = arith.maximumf %86, %87 : vector<512x8xf32>
    %89 = vector.shape_cast %88 : vector<512x8xf32> to vector<2x16x16x8xf32>
    %cst_91 = arith.constant 0.000000e+00 : f32
    %90 = vector.broadcast %cst_91 : f32 to vector<2x1x18x8xf32>
    %cst_92 = arith.constant 0.000000e+00 : f32
    %91 = vector.broadcast %cst_92 : f32 to vector<2x16x1x8xf32>
    %c0_93 = arith.constant 0 : index
    %c0_94 = arith.constant 0 : index
    %c0_95 = arith.constant 0 : index
    %c0_96 = arith.constant 0 : index
    %92 = vector.load %arg9[%c0_93, %c0_94, %c0_95, %c0_96] : memref<2x18x18x8xf32, #tpu.memory_space<vmem>>, vector<2x1x18x8xf32>
    tpu.vector_store %arg9[%c0_93, %c0_94, %c0_95, %c0_96], %90 {strides = array<i32>} : memref<2x18x18x8xf32, #tpu.memory_space<vmem>>, vector<2x1x18x8xf32>,
    %c0_97 = arith.constant 0 : index
    %c17_98 = arith.constant 17 : index
    %c0_99 = arith.constant 0 : index
    %c0_100 = arith.constant 0 : index
    %93 = vector.load %arg9[%c0_97, %c17_98, %c0_99, %c0_100] : memref<2x18x18x8xf32, #tpu.memory_space<vmem>>, vector<2x1x18x8xf32>
    tpu.vector_store %arg9[%c0_97, %c17_98, %c0_99, %c0_100], %90 {strides = array<i32>} : memref<2x18x18x8xf32, #tpu.memory_space<vmem>>, vector<2x1x18x8xf32>,
    %94 = tpu.concatenate %91, %89, %91 in 2 : vector<2x16x1x8xf32>, vector<2x16x16x8xf32>, vector<2x16x1x8xf32> -> vector<2x16x18x8xf32>
    %c0_101 = arith.constant 0 : index
    %c1_102 = arith.constant 1 : index
    %c0_103 = arith.constant 0 : index
    %c0_104 = arith.constant 0 : index
    %95 = vector.load %arg9[%c0_101, %c1_102, %c0_103, %c0_104] : memref<2x18x18x8xf32, #tpu.memory_space<vmem>>, vector<2x16x18x8xf32>
    tpu.vector_store %arg9[%c0_101, %c1_102, %c0_103, %c0_104], %94 {strides = array<i32>} : memref<2x18x18x8xf32, #tpu.memory_space<vmem>>, vector<2x16x18x8xf32>,
    %cst_105 = arith.constant 0.000000e+00 : f32
    %96 = vector.broadcast %cst_105 : f32 to vector<512x8xf32>
    %c0_106 = arith.constant 0 : index
    %c0_107 = arith.constant 0 : index
    %c0_108 = arith.constant 0 : index
    %c0_109 = arith.constant 0 : index
    %97 = vector.load %arg9[%c0_106, %c0_107, %c0_108, %c0_109] : memref<2x18x18x8xf32, #tpu.memory_space<vmem>>, vector<2x16x16x8xf32>
    %98 = vector.shape_cast %97 : vector<2x16x16x8xf32> to vector<512x8xf32>
    %c0_110 = arith.constant 0 : index
    %c0_111 = arith.constant 0 : index
    %c0_112 = arith.constant 0 : index
    %99 = vector.load %arg4[%c0_110, %c0_111, %c0_112] : memref<9x8x8xf32, #tpu.memory_space<vmem>>, vector<1x8x8xf32>
    %100 = vector.shape_cast %99 : vector<1x8x8xf32> to vector<8x8xf32>
    %cst_113 = arith.constant dense<0.000000e+00> : vector<512x8xf32>
    %101 = tpu.matmul %98, %100, %cst_113 {dimension_numbers = #tpu.dot_dimension_numbers<[1], [0], [0], [1], [0, 0, 1, 1], [], []>} : vector<512x8xf32>, vector<8x8xf32>, vector<512x8xf32> -> vector<512x8xf32>
    %102 = arith.addf %96, %101 : vector<512x8xf32>
    %c0_114 = arith.constant 0 : index
    %c0_115 = arith.constant 0 : index
    %c1_116 = arith.constant 1 : index
    %c0_117 = arith.constant 0 : index
    %103 = vector.load %arg9[%c0_114, %c0_115, %c1_116, %c0_117] : memref<2x18x18x8xf32, #tpu.memory_space<vmem>>, vector<2x16x16x8xf32>
    %104 = vector.shape_cast %103 : vector<2x16x16x8xf32> to vector<512x8xf32>
    %c1_118 = arith.constant 1 : index
    %c0_119 = arith.constant 0 : index
    %c0_120 = arith.constant 0 : index
    %105 = vector.load %arg4[%c1_118, %c0_119, %c0_120] : memref<9x8x8xf32, #tpu.memory_space<vmem>>, vector<1x8x8xf32>
    %106 = vector.shape_cast %105 : vector<1x8x8xf32> to vector<8x8xf32>
    %cst_121 = arith.constant dense<0.000000e+00> : vector<512x8xf32>
    %107 = tpu.matmul %104, %106, %cst_121 {dimension_numbers = #tpu.dot_dimension_numbers<[1], [0], [0], [1], [0, 0, 1, 1], [], []>} : vector<512x8xf32>, vector<8x8xf32>, vector<512x8xf32> -> vector<512x8xf32>
    %108 = arith.addf %102, %107 : vector<512x8xf32>
    %c0_122 = arith.constant 0 : index
    %c0_123 = arith.constant 0 : index
    %c2_124 = arith.constant 2 : index
    %c0_125 = arith.constant 0 : index
    %109 = vector.load %arg9[%c0_122, %c0_123, %c2_124, %c0_125] : memref<2x18x18x8xf32, #tpu.memory_space<vmem>>, vector<2x16x16x8xf32>
    %110 = vector.shape_cast %109 : vector<2x16x16x8xf32> to vector<512x8xf32>
    %c2_126 = arith.constant 2 : index
    %c0_127 = arith.constant 0 : index
    %c0_128 = arith.constant 0 : index
    %111 = vector.load %arg4[%c2_126, %c0_127, %c0_128] : memref<9x8x8xf32, #tpu.memory_space<vmem>>, vector<1x8x8xf32>
    %112 = vector.shape_cast %111 : vector<1x8x8xf32> to vector<8x8xf32>
    %cst_129 = arith.constant dense<0.000000e+00> : vector<512x8xf32>
    %113 = tpu.matmul %110, %112, %cst_129 {dimension_numbers = #tpu.dot_dimension_numbers<[1], [0], [0], [1], [0, 0, 1, 1], [], []>} : vector<512x8xf32>, vector<8x8xf32>, vector<512x8xf32> -> vector<512x8xf32>
    %114 = arith.addf %108, %113 : vector<512x8xf32>
    %c0_130 = arith.constant 0 : index
    %c1_131 = arith.constant 1 : index
    %c0_132 = arith.constant 0 : index
    %c0_133 = arith.constant 0 : index
    %115 = vector.load %arg9[%c0_130, %c1_131, %c0_132, %c0_133] : memref<2x18x18x8xf32, #tpu.memory_space<vmem>>, vector<2x16x16x8xf32>
    %116 = vector.shape_cast %115 : vector<2x16x16x8xf32> to vector<512x8xf32>
    %c3_134 = arith.constant 3 : index
    %c0_135 = arith.constant 0 : index
    %c0_136 = arith.constant 0 : index
    %117 = vector.load %arg4[%c3_134, %c0_135, %c0_136] : memref<9x8x8xf32, #tpu.memory_space<vmem>>, vector<1x8x8xf32>
    %118 = vector.shape_cast %117 : vector<1x8x8xf32> to vector<8x8xf32>
    %cst_137 = arith.constant dense<0.000000e+00> : vector<512x8xf32>
    %119 = tpu.matmul %116, %118, %cst_137 {dimension_numbers = #tpu.dot_dimension_numbers<[1], [0], [0], [1], [0, 0, 1, 1], [], []>} : vector<512x8xf32>, vector<8x8xf32>, vector<512x8xf32> -> vector<512x8xf32>
    %120 = arith.addf %114, %119 : vector<512x8xf32>
    %c0_138 = arith.constant 0 : index
    %c1_139 = arith.constant 1 : index
    %c1_140 = arith.constant 1 : index
    %c0_141 = arith.constant 0 : index
    %121 = vector.load %arg9[%c0_138, %c1_139, %c1_140, %c0_141] : memref<2x18x18x8xf32, #tpu.memory_space<vmem>>, vector<2x16x16x8xf32>
    %122 = vector.shape_cast %121 : vector<2x16x16x8xf32> to vector<512x8xf32>
    %c4_142 = arith.constant 4 : index
    %c0_143 = arith.constant 0 : index
    %c0_144 = arith.constant 0 : index
    %123 = vector.load %arg4[%c4_142, %c0_143, %c0_144] : memref<9x8x8xf32, #tpu.memory_space<vmem>>, vector<1x8x8xf32>
    %124 = vector.shape_cast %123 : vector<1x8x8xf32> to vector<8x8xf32>
    %cst_145 = arith.constant dense<0.000000e+00> : vector<512x8xf32>
    %125 = tpu.matmul %122, %124, %cst_145 {dimension_numbers = #tpu.dot_dimension_numbers<[1], [0], [0], [1], [0, 0, 1, 1], [], []>} : vector<512x8xf32>, vector<8x8xf32>, vector<512x8xf32> -> vector<512x8xf32>
    %126 = arith.addf %120, %125 : vector<512x8xf32>
    %c0_146 = arith.constant 0 : index
    %c1_147 = arith.constant 1 : index
    %c2_148 = arith.constant 2 : index
    %c0_149 = arith.constant 0 : index
    %127 = vector.load %arg9[%c0_146, %c1_147, %c2_148, %c0_149] : memref<2x18x18x8xf32, #tpu.memory_space<vmem>>, vector<2x16x16x8xf32>
    %128 = vector.shape_cast %127 : vector<2x16x16x8xf32> to vector<512x8xf32>
    %c5_150 = arith.constant 5 : index
    %c0_151 = arith.constant 0 : index
    %c0_152 = arith.constant 0 : index
    %129 = vector.load %arg4[%c5_150, %c0_151, %c0_152] : memref<9x8x8xf32, #tpu.memory_space<vmem>>, vector<1x8x8xf32>
    %130 = vector.shape_cast %129 : vector<1x8x8xf32> to vector<8x8xf32>
    %cst_153 = arith.constant dense<0.000000e+00> : vector<512x8xf32>
    %131 = tpu.matmul %128, %130, %cst_153 {dimension_numbers = #tpu.dot_dimension_numbers<[1], [0], [0], [1], [0, 0, 1, 1], [], []>} : vector<512x8xf32>, vector<8x8xf32>, vector<512x8xf32> -> vector<512x8xf32>
    %132 = arith.addf %126, %131 : vector<512x8xf32>
    %c0_154 = arith.constant 0 : index
    %c2_155 = arith.constant 2 : index
    %c0_156 = arith.constant 0 : index
    %c0_157 = arith.constant 0 : index
    %133 = vector.load %arg9[%c0_154, %c2_155, %c0_156, %c0_157] : memref<2x18x18x8xf32, #tpu.memory_space<vmem>>, vector<2x16x16x8xf32>
    %134 = vector.shape_cast %133 : vector<2x16x16x8xf32> to vector<512x8xf32>
    %c6_158 = arith.constant 6 : index
    %c0_159 = arith.constant 0 : index
    %c0_160 = arith.constant 0 : index
    %135 = vector.load %arg4[%c6_158, %c0_159, %c0_160] : memref<9x8x8xf32, #tpu.memory_space<vmem>>, vector<1x8x8xf32>
    %136 = vector.shape_cast %135 : vector<1x8x8xf32> to vector<8x8xf32>
    %cst_161 = arith.constant dense<0.000000e+00> : vector<512x8xf32>
    %137 = tpu.matmul %134, %136, %cst_161 {dimension_numbers = #tpu.dot_dimension_numbers<[1], [0], [0], [1], [0, 0, 1, 1], [], []>} : vector<512x8xf32>, vector<8x8xf32>, vector<512x8xf32> -> vector<512x8xf32>
    %138 = arith.addf %132, %137 : vector<512x8xf32>
    %c0_162 = arith.constant 0 : index
    %c2_163 = arith.constant 2 : index
    %c1_164 = arith.constant 1 : index
    %c0_165 = arith.constant 0 : index
    %139 = vector.load %arg9[%c0_162, %c2_163, %c1_164, %c0_165] : memref<2x18x18x8xf32, #tpu.memory_space<vmem>>, vector<2x16x16x8xf32>
    %140 = vector.shape_cast %139 : vector<2x16x16x8xf32> to vector<512x8xf32>
    %c7_166 = arith.constant 7 : index
    %c0_167 = arith.constant 0 : index
    %c0_168 = arith.constant 0 : index
    %141 = vector.load %arg4[%c7_166, %c0_167, %c0_168] : memref<9x8x8xf32, #tpu.memory_space<vmem>>, vector<1x8x8xf32>
    %142 = vector.shape_cast %141 : vector<1x8x8xf32> to vector<8x8xf32>
    %cst_169 = arith.constant dense<0.000000e+00> : vector<512x8xf32>
    %143 = tpu.matmul %140, %142, %cst_169 {dimension_numbers = #tpu.dot_dimension_numbers<[1], [0], [0], [1], [0, 0, 1, 1], [], []>} : vector<512x8xf32>, vector<8x8xf32>, vector<512x8xf32> -> vector<512x8xf32>
    %144 = arith.addf %138, %143 : vector<512x8xf32>
    %c0_170 = arith.constant 0 : index
    %c2_171 = arith.constant 2 : index
    %c2_172 = arith.constant 2 : index
    %c0_173 = arith.constant 0 : index
    %145 = vector.load %arg9[%c0_170, %c2_171, %c2_172, %c0_173] : memref<2x18x18x8xf32, #tpu.memory_space<vmem>>, vector<2x16x16x8xf32>
    %146 = vector.shape_cast %145 : vector<2x16x16x8xf32> to vector<512x8xf32>
    %c8_174 = arith.constant 8 : index
    %c0_175 = arith.constant 0 : index
    %c0_176 = arith.constant 0 : index
    %147 = vector.load %arg4[%c8_174, %c0_175, %c0_176] : memref<9x8x8xf32, #tpu.memory_space<vmem>>, vector<1x8x8xf32>
    %148 = vector.shape_cast %147 : vector<1x8x8xf32> to vector<8x8xf32>
    %cst_177 = arith.constant dense<0.000000e+00> : vector<512x8xf32>
    %149 = tpu.matmul %146, %148, %cst_177 {dimension_numbers = #tpu.dot_dimension_numbers<[1], [0], [0], [1], [0, 0, 1, 1], [], []>} : vector<512x8xf32>, vector<8x8xf32>, vector<512x8xf32> -> vector<512x8xf32>
    %150 = arith.addf %144, %149 : vector<512x8xf32>
    %cst_178 = arith.constant dense<0.000000e+00> : vector<8xf32>
    %151 = vector.multi_reduction <add>, %150, %cst_178 [0] : vector<512x8xf32> to vector<8xf32>
    %152 = vector.shape_cast %151 : vector<8xf32> to vector<1x8xf32>
    %cst_179 = arith.constant 0.001953125 : f32
    %153 = vector.broadcast %cst_179 : f32 to vector<1x8xf32>
    %154 = arith.mulf %152, %153 : vector<1x8xf32>
    %155 = arith.mulf %150, %150 : vector<512x8xf32>
    %cst_180 = arith.constant dense<0.000000e+00> : vector<8xf32>
    %156 = vector.multi_reduction <add>, %155, %cst_180 [0] : vector<512x8xf32> to vector<8xf32>
    %157 = vector.shape_cast %156 : vector<8xf32> to vector<1x8xf32>
    %cst_181 = arith.constant 0.001953125 : f32
    %158 = vector.broadcast %cst_181 : f32 to vector<1x8xf32>
    %159 = arith.mulf %157, %158 : vector<1x8xf32>
    %160 = arith.mulf %154, %154 : vector<1x8xf32>
    %161 = arith.subf %159, %160 : vector<1x8xf32>
    %cst_182 = arith.constant 0.000000e+00 : f32
    %162 = vector.broadcast %cst_182 : f32 to vector<1x8xf32>
    %163 = arith.maximumf %161, %162 : vector<1x8xf32>
    %c0_183 = arith.constant 0 : index
    %c0_184 = arith.constant 0 : index
    %164 = vector.load %arg5[%c0_183, %c0_184] : memref<1x8xf32, #tpu.memory_space<vmem>>, vector<1x8xf32>
    %cst_185 = arith.constant 9.99999974E-6 : f32
    %165 = vector.broadcast %cst_185 : f32 to vector<1x8xf32>
    %166 = arith.addf %163, %165 : vector<1x8xf32>
    %167 = math.rsqrt %166 : vector<1x8xf32>
    %168 = arith.mulf %164, %167 : vector<1x8xf32>
    %c0_186 = arith.constant 0 : index
    %c0_187 = arith.constant 0 : index
    %169 = vector.load %arg6[%c0_186, %c0_187] : memref<1x8xf32, #tpu.memory_space<vmem>>, vector<1x8xf32>
    %170 = arith.mulf %154, %168 : vector<1x8xf32>
    %171 = arith.subf %169, %170 : vector<1x8xf32>
    %172 = vector.broadcast %168 : vector<1x8xf32> to vector<512x8xf32>
    %173 = arith.mulf %150, %172 : vector<512x8xf32>
    %174 = vector.broadcast %171 : vector<1x8xf32> to vector<512x8xf32>
    %175 = arith.addf %173, %174 : vector<512x8xf32>
    %cst_188 = arith.constant 0.000000e+00 : f32
    %176 = vector.broadcast %cst_188 : f32 to vector<512x8xf32>
    %177 = arith.maximumf %175, %176 : vector<512x8xf32>
    %178 = vector.shape_cast %177 : vector<512x8xf32> to vector<2x16x16x8xf32>
    %c0_189 = arith.constant 0 : index
    %c0_190 = arith.constant 0 : index
    %c0_191 = arith.constant 0 : index
    %c0_192 = arith.constant 0 : index
    %179 = vector.load %arg7[%c0_189, %c0_190, %c0_191, %c0_192] : memref<2x16x16x8xf32, #tpu.memory_space<vmem>>, vector<2x16x16x8xf32>
    tpu.vector_store %arg7[%c0_189, %c0_190, %c0_191, %c0_192], %178 {strides = array<i32>} : memref<2x16x16x8xf32, #tpu.memory_space<vmem>>, vector<2x16x16x8xf32>,
    return
  }
}

</mosaic_0001>

<bundles_post_ra>
// kernel: double_conv.1
= control target key start
LH: loop header
LB: loop body
LE: loop exit
PB: predicated region body
PF: predicated region fallthrough
CT: control target
= control target key end

     0   :  { %vm846_vm0 = vcmask 1043456   ;;  %vm90_vm1 = vcmask 31744   ;;  %vm93_vm2 = vcmask 25600   ;;  %v25903_v1 = vmov 0.0   ;;  %s25895_s1 = inlined_call_operand.vmem [shape: f32[9,4,8], index: 1, kind: input, shape index: {}]   ;;  %s25896_s0 = inlined_call_operand.vmem [shape: f32[2,16,16,4], index: 0, kind: input, shape index: {}]   ;;  %s25897_s4 = inlined_call_operand.vmem [shape: f32[9,8,8], index: 4, kind: input, shape index: {}]   ;;  %s25898_s2 = inlined_call_operand.vmem [shape: f32[1,8], index: 2, kind: input, shape index: {}]   ;;  %s25899_s3 = inlined_call_operand.vmem [shape: f32[1,8], index: 3, kind: input, shape index: {}]   ;;  %s25900_s5 = inlined_call_operand.vmem [shape: f32[1,8], index: 5, kind: input, shape index: {}]   ;;  %s25901_s6 = inlined_call_operand.vmem [shape: f32[1,8], index: 6, kind: input, shape index: {}]   ;;  %s25902_s7 = inlined_call_operand.vmem [shape: f32[2,16,16,8], index: 7, kind: output, shape index: {}]  }
   0x1   :  { %v14613_v0 = vld [vmem:[%s25895_s1 + $0x4] sm:$0xf]  ;;  %91 = vst.msk [vmem:[#allocation2] sm:$0xff] %vm90_vm1, %v25903_v1  ;;  %92 = vst.msk [vmem:[#allocation2 + $0x8] sm:$0xff] %vm90_vm1, %v25903_v1  ;;  %v19816_v2 = vld [vmem:[%s25895_s1] sm:$0xf] }
   0x2   :  { %95 = vst.msk [vmem:[#allocation2 + $0x1b0] sm:$0xff] %vm90_vm1, %v25903_v1  ;;  %96 = vst.msk [vmem:[#allocation2 + $0x1b8] sm:$0xff] %vm90_vm1, %v25903_v1  ;;  %v26_v3 = vld [vmem:[%s25896_s0] sm:$0xff]  ;;  %vm169_vm3 = vcmask 1040384   ;;  %16960 = vmatprep.subr.msk.mxu0 %vm846_vm0, %v14613_v0  ;;  %v27_v4 = vld [vmem:[%s25896_s0 + $0x8] sm:$0xff]  ;;  %vm6786_vm4 = vcmask 64512  }
   0x3   :  { %99 = vst.msk [vmem:[#allocation2 + $0x198] sm:$0xff] %vm90_vm1, %v25903_v1  ;;  %100 = vst.msk [vmem:[#allocation2 + $0x1a0] sm:$0xff] %vm90_vm1, %v25903_v1  ;;  %v170_v5 = vrot.slane %v26_v3, 7  ;;  %v28_v6 = vld [vmem:[%s25896_s0 + $0x10] sm:$0xff]  ;;  %v29_v7 = vld [vmem:[%s25896_s0 + $0x18] sm:$0xff]  ;;  %16961 = vmatpush3.msk.msra.mxu0 %vm846_vm0, %v14613_v0  ;;  %v171_v8 = vrot.slane %v27_v4, 7 }
   0x4   :  { %102 = vst.msk [vmem:[#allocation2 + $0x348] sm:$0xff] %vm90_vm1, %v25903_v1  ;;  %103 = vst.msk [vmem:[#allocation2 + $0x350] sm:$0xff] %vm90_vm1, %v25903_v1  ;;  %v173_v9 = vrot.slane %v28_v6, 7  ;;  %v174_v10 = vrot.slane %v29_v7, 7  ;;  %v30_v11 = vld [vmem:[%s25896_s0 + $0x20] sm:$0xff]  ;;  %v31_v12 = vld [vmem:[%s25896_s0 + $0x28] sm:$0xff]  ;;  %17058 = vmatprep.subr.msk.mxu0 %vm846_vm0, %v19816_v2 }
   0x5   :  { %94 = vst.msk [vmem:[#allocation2 + $0x10] sm:$0x3] %vm93_vm2, %v25903_v1  ;;  %97 = vst.msk [vmem:[#allocation2 + $0x1c0] sm:$0x3] %vm93_vm2, %v25903_v1  ;;  %v32_v13 = vld [vmem:[%s25896_s0 + $0x30] sm:$0xff]  ;;  %v362_v14 = vsel %vm169_vm3, 0.0, %v170_v5  ;;  %v172_v20 = vsel %vm169_vm3, %v170_v5, %v171_v8 }
   0x6   :  { %101 = vst.msk [vmem:[#allocation2 + $0x1a8] sm:$0x3] %vm93_vm2, %v25903_v1  ;;  %104 = vst.msk [vmem:[#allocation2 + $0x358] sm:$0x3] %vm93_vm2, %v25903_v1  ;;  %v176_v15 = vrot.slane %v30_v11, 7  ;;  %v177_v16 = vrot.slane %v31_v12, 7  ;;  %v175_v22 = vsel %vm169_vm3, %v173_v9, %v174_v10 }
   0x7   :  { %v33_v17 = vld [vmem:[%s25896_s0 + $0x38] sm:$0xff]  ;;  %v179_v18 = vrot.slane %v32_v13, 7  ;;  %v34_v19 = vld [vmem:[%s25896_s0 + $0x40] sm:$0xff]  ;;  %427 = vst.msk [vmem:[#allocation2 + $0x18] sm:$0xff] %vm90_vm1, %v362_v14  ;;  %v394_v21 = vsel %vm169_vm3, %v171_v8, 0.0  ;;  %v363_v23 = vsel %vm169_vm3, 0.0, %v173_v9 }
   0x8   :  { %v35_v24 = vld [vmem:[%s25896_s0 + $0x48] sm:$0xff]  ;;  %v36_v25 = vld [vmem:[%s25896_s0 + $0x50] sm:$0xff]  ;;  %v37_v26 = vld [vmem:[%s25896_s0 + $0x58] sm:$0xff]  ;;  %428 = vst.msk [vmem:[#allocation2 + $0x20] sm:$0xff] %vm90_vm1, %v172_v20  ;;  %v395_v27 = vsel %vm169_vm3, %v174_v10, 0.0  ;;  %v178_v28 = vsel %vm169_vm3, %v176_v15, %v177_v16  ;;  %v364_v29 = vsel %vm169_vm3, 0.0, %v176_v15 }
   0x9   :  { %429 = vst.msk [vmem:[#allocation2 + $0x28] sm:$0x3] %vm93_vm2, %v394_v21  ;;  %v396_v30 = vsel %vm169_vm3, %v177_v16, 0.0  ;;  %v38_v31 = vld [vmem:[%s25896_s0 + $0x60] sm:$0xff]  ;;  %v39_v32 = vld [vmem:[%s25896_s0 + $0x68] sm:$0xff]  ;;  %v180_v33 = vrot.slane %v33_v17, 7 }
   0xa   :  { %430 = vst.msk [vmem:[#allocation2 + $0x30] sm:$0xff] %vm90_vm1, %v363_v23  ;;  %431 = vst.msk [vmem:[#allocation2 + $0x38] sm:$0xff] %vm90_vm1, %v175_v22  ;;  %v365_v34 = vsel %vm169_vm3, 0.0, %v179_v18  ;;  %v182_v35 = vrot.slane %v34_v19, 7  ;;  %v183_v36 = vrot.slane %v35_v24, 7  ;;  %v40_v37 = vld [vmem:[%s25896_s0 + $0x70] sm:$0xff] }
   0xb   :  { %432 = vst.msk [vmem:[#allocation2 + $0x40] sm:$0x3] %vm93_vm2, %v395_v27  ;;  %435 = vst.msk [vmem:[#allocation2 + $0x58] sm:$0x3] %vm93_vm2, %v396_v30  ;;  %v41_v38 = vld [vmem:[%s25896_s0 + $0x78] sm:$0xff]  ;;  %v588_v39 = vld [vmem:[#allocation2 + $0x1] sm:$0xff]  ;;  %v181_v45 = vsel %vm169_vm3, %v179_v18, %v180_v33 }
   0xc   :  { %433 = vst.msk [vmem:[#allocation2 + $0x48] sm:$0xff] %vm90_vm1, %v364_v29  ;;  %434 = vst.msk [vmem:[#allocation2 + $0x50] sm:$0xff] %vm90_vm1, %v178_v28  ;;  %v589_v40 = vld [vmem:[#allocation2 + $0x9] sm:$0xff]  ;;  %v185_v41 = vrot.slane %v36_v25, 7  ;;  %v186_v42 = vrot.slane %v37_v26, 7  ;;  %v188_v43 = vrot.slane %v38_v31, 7  ;;  %16962 = vmatprep.mubr.msk.f32.mxu0 %vm90_vm1, %v588_v39  ;;  %v184_v47 = vsel %vm169_vm3, %v182_v35, %v183_v36 }
   0xd   :  { %436 = vst.msk [vmem:[#allocation2 + $0x60] sm:$0xff] %vm90_vm1, %v365_v34  ;;  %v189_v44 = vrot.slane %v39_v32, 7  ;;  %v397_v46 = vsel %vm169_vm3, %v180_v33, 0.0  ;;  %v366_v48 = vsel %vm169_vm3, 0.0, %v182_v35  ;;  %v42_v49 = vld [vmem:[%s25896_s0 + $0x80] sm:$0xff]  ;;  %v43_v50 = vld [vmem:[%s25896_s0 + $0x88] sm:$0xff]  ;;  %16963 = vmatmul.mubr.msk.f32.vlgmr.msra.gmra.mrb[0].mxu0 %vm90_vm1, %v589_v40 }
   0xe   :  { %v44_v51 = vld [vmem:[%s25896_s0 + $0x90] sm:$0xff]  ;;  %437 = vst.msk [vmem:[#allocation2 + $0x68] sm:$0xff] %vm90_vm1, %v181_v45  ;;  %439 = vst.msk [vmem:[#allocation2 + $0x78] sm:$0xff] %vm90_vm1, %v366_v48  ;;  %v398_v52 = vsel %vm169_vm3, %v183_v36, 0.0  ;;  %v187_v53 = vsel %vm169_vm3, %v185_v41, %v186_v42  ;;  %v367_v54 = vsel %vm169_vm3, 0.0, %v185_v41  ;;  %v399_v55 = vsel %vm169_vm3, %v186_v42, 0.0  ;;  %17059 = vmatpush3.msk.msra.mxu0 %vm846_vm0, %v19816_v2 }
   0xf   :  { %438 = vst.msk [vmem:[#allocation2 + $0x70] sm:$0x3] %vm93_vm2, %v397_v46  ;;  %v45_v56 = vld [vmem:[%s25896_s0 + $0x98] sm:$0xff]  ;;  %v19927_v57 = vld [vmem:[%s25896_s0 + $0xa0] sm:$0xff]  ;;  %441 = vst.msk [vmem:[#allocation2 + $0x88] sm:$0x3] %vm93_vm2, %v398_v52  ;;  %v190_v58 = vsel %vm169_vm3, %v188_v43, %v189_v44 }
  0x10   :  { %440 = vst.msk [vmem:[#allocation2 + $0x80] sm:$0xff] %vm90_vm1, %v184_v47  ;;  %442 = vst.msk [vmem:[#allocation2 + $0x90] sm:$0xff] %vm90_vm1, %v367_v54  ;;  %v368_v59 = vsel %vm169_vm3, 0.0, %v188_v43  ;;  %v400_v60 = vsel %vm169_vm3, %v189_v44, 0.0  ;;  %v191_v61 = vrot.slane %v40_v37, 7  ;;  %v47_v62 = vld [vmem:[%s25896_s0 + $0xa8] sm:$0xff] }
  0x11   :  { %443 = vst.msk [vmem:[#allocation2 + $0x98] sm:$0xff] %vm90_vm1, %v187_v53  ;;  %445 = vst.msk [vmem:[#allocation2 + $0xa8] sm:$0xff] %vm90_vm1, %v368_v59  ;;  %v192_v63 = vrot.slane %v41_v38, 7  ;;  %v194_v0 = vrot.slane %v42_v49, 7  ;;  %v195_v2 = vrot.slane %v43_v50, 7  ;;  %v197_v3 = vrot.slane %v44_v51, 7 }
  0x12   :  { %444 = vst.msk [vmem:[#allocation2 + $0xa0] sm:$0x3] %vm93_vm2, %v399_v55  ;;  %447 = vst.msk [vmem:[#allocation2 + $0xb8] sm:$0x3] %vm93_vm2, %v400_v60  ;;  %v48_v4 = vld [vmem:[%s25896_s0 + $0xb0] sm:$0xff]  ;;  %v49_v5 = vld [vmem:[%s25896_s0 + $0xb8] sm:$0xff] }
  0x13   :  { %446 = vst.msk [vmem:[#allocation2 + $0xb0] sm:$0xff] %vm90_vm1, %v190_v58  ;;  %v590_v6 = vld [vmem:[#allocation2 + $0x19] sm:$0xff]  ;;  %v591_v7 = vld [vmem:[#allocation2 + $0x21] sm:$0xff]  ;;  %v592_v8 = vld [vmem:[#allocation2 + $0x31] sm:$0xff]  ;;  %v369_v9 = vsel %vm169_vm3, 0.0, %v191_v61  ;;  %v198_v10 = vrot.slane %v45_v56, 7  ;;  %v193_v12 = vsel %vm169_vm3, %v191_v61, %v192_v63  ;;  %v196_v14 = vsel %vm169_vm3, %v194_v0, %v195_v2 }
  0x14   :  { %v200_v11 = vrot.slane %v19927_v57, 7  ;;  %16965 = vmatprep.mubr.msk.f32.mxu0 %vm90_vm1, %v590_v6  ;;  %448 = vst.msk [vmem:[#allocation2 + $0xc0] sm:$0xff] %vm90_vm1, %v369_v9  ;;  %v401_v13 = vsel %vm169_vm3, %v192_v63, 0.0  ;;  %v370_v15 = vsel %vm169_vm3, 0.0, %v194_v0  ;;  %v50_v16 = vld [vmem:[%s25896_s0 + $0xc0] sm:$0xff]  ;;  %v51_v17 = vld [vmem:[%s25896_s0 + $0xc8] sm:$0xff] }
  0x15   :  { %v19967_v18 = vld [vmem:[%s25896_s0 + $0xd0] sm:$0xff]  ;;  %16966 = vmatmul.mubr.msk.f32.gmra.mrb[2].mxu0 %vm90_vm1, %v591_v7  ;;  %449 = vst.msk [vmem:[#allocation2 + $0xc8] sm:$0xff] %vm90_vm1, %v193_v12  ;;  %451 = vst.msk [vmem:[#allocation2 + $0xd8] sm:$0xff] %vm90_vm1, %v370_v15  ;;  %v402_v19 = vsel %vm169_vm3, %v195_v2, 0.0  ;;  %v199_v20 = vsel %vm169_vm3, %v197_v3, %v198_v10  ;;  %v371_v21 = vsel %vm169_vm3, 0.0, %v197_v3  ;;  %v403_v22 = vsel %vm169_vm3, %v198_v10, 0.0 }
  0x16   :  { %450 = vst.msk [vmem:[#allocation2 + $0xd0] sm:$0x3] %vm93_vm2, %v401_v13  ;;  %16968 = vmatprep.mubr.msk.f32.mxu0 %vm90_vm1, %v592_v8  ;;  %v593_v23 = vld [vmem:[#allocation2 + $0x39] sm:$0xff]  ;;  %453 = vst.msk [vmem:[#allocation2 + $0xe8] sm:$0x3] %vm93_vm2, %v402_v19  ;;  %v201_v24 = vrot.slane %v47_v62, 7 }
  0x17   :  { %452 = vst.msk [vmem:[#allocation2 + $0xe0] sm:$0xff] %vm90_vm1, %v196_v14  ;;  %454 = vst.msk [vmem:[#allocation2 + $0xf0] sm:$0xff] %vm90_vm1, %v371_v21  ;;  %v372_v25 = vsel %vm169_vm3, 0.0, %v200_v11  ;;  %v203_v26 = vrot.slane %v48_v4, 7  ;;  %v204_v27 = vrot.slane %v49_v5, 7  ;;  %v53_v28 = vld [vmem:[%s25896_s0 + $0xd8] sm:$0xff] }
  0x18   :  { %455 = vst.msk [vmem:[#allocation2 + $0xf8] sm:$0xff] %vm90_vm1, %v199_v20  ;;  %v594_v29 = vld [vmem:[#allocation2 + $0x49] sm:$0xff]  ;;  %457 = vst.msk [vmem:[#allocation2 + $0x108] sm:$0xff] %vm90_vm1, %v372_v25  ;;  %v206_v30 = vrot.slane %v50_v16, 7  ;;  %v207_v31 = vrot.slane %v51_v17, 7  ;;  %v209_v32 = vrot.slane %v19967_v18, 7  ;;  %v202_v35 = vsel %vm169_vm3, %v200_v11, %v201_v24 }
  0x19   :  { %456 = vst.msk [vmem:[#allocation2 + $0x100] sm:$0x3] %vm93_vm2, %v403_v22  ;;  %v54_v33 = vld [vmem:[%s25896_s0 + $0xe0] sm:$0xff]  ;;  %v55_v34 = vld [vmem:[%s25896_s0 + $0xe8] sm:$0xff]  ;;  %v404_v36 = vsel %vm169_vm3, %v201_v24, 0.0  ;;  %v205_v37 = vsel %vm169_vm3, %v203_v26, %v204_v27  ;;  %v373_v38 = vsel %vm169_vm3, 0.0, %v203_v26  ;;  %16969 = vmatmul.mubr.msk.f32.gmra.mrb[4].mxu0 %vm90_vm1, %v593_v23 }
  0x1a   :  { %v58_v39 = vld [vmem:[%s25896_s0 + $0x100] sm:$0xff]  ;;  %v595_v40 = vld [vmem:[#allocation2 + $0x51] sm:$0xff]  ;;  %458 = vst.msk [vmem:[#allocation2 + $0x110] sm:$0xff] %vm90_vm1, %v202_v35  ;;  %460 = vst.msk [vmem:[#allocation2 + $0x120] sm:$0xff] %vm90_vm1, %v373_v38  ;;  %v405_v41 = vsel %vm169_vm3, %v204_v27, 0.0  ;;  %v208_v42 = vsel %vm169_vm3, %v206_v30, %v207_v31  ;;  %v374_v43 = vsel %vm169_vm3, 0.0, %v206_v30  ;;  %16971 = vmatprep.mubr.msk.f32.mxu0 %vm90_vm1, %v594_v29 }
  0x1b   :  { %459 = vst.msk [vmem:[#allocation2 + $0x118] sm:$0x3] %vm93_vm2, %v404_v36  ;;  %v406_v44 = vsel %vm169_vm3, %v207_v31, 0.0  ;;  %v59_v45 = vld [vmem:[%s25896_s0 + $0x108] sm:$0xff]  ;;  %462 = vst.msk [vmem:[#allocation2 + $0x130] sm:$0x3] %vm93_vm2, %v405_v41 }
  0x1c   :  { %461 = vst.msk [vmem:[#allocation2 + $0x128] sm:$0xff] %vm90_vm1, %v205_v37  ;;  %463 = vst.msk [vmem:[#allocation2 + $0x138] sm:$0xff] %vm90_vm1, %v374_v43  ;;  %v210_v46 = vrot.slane %v53_v28, 7  ;;  %v375_v47 = vsel %vm169_vm3, 0.0, %v209_v32  ;;  %v212_v48 = vrot.slane %v54_v33, 7  ;;  %v213_v49 = vrot.slane %v55_v34, 7 }
  0x1d   :  { %464 = vst.msk [vmem:[#allocation2 + $0x140] sm:$0xff] %vm90_vm1, %v208_v42  ;;  %v60_v50 = vld [vmem:[%s25896_s0 + $0x110] sm:$0xff]  ;;  %v61_v51 = vld [vmem:[%s25896_s0 + $0x118] sm:$0xff]  ;;  %v596_v52 = vld [vmem:[#allocation2 + $0x61] sm:$0xff]  ;;  %v218_v53 = vrot.slane %v58_v39, 7  ;;  %v219_v54 = vrot.slane %v59_v45, 7  ;;  %16972 = vmatmul.mubr.msk.f32.gmra.mrb[6].mxu0 %vm90_vm1, %v595_v40 }
  0x1e   :  { %465 = vst.msk [vmem:[#allocation2 + $0x148] sm:$0x3] %vm93_vm2, %v406_v44  ;;  %v221_v55 = vrot.slane %v60_v50, 7  ;;  %v222_v56 = vrot.slane %v61_v51, 7  ;;  %v62_v57 = vld [vmem:[%s25896_s0 + $0x120] sm:$0xff]  ;;  %v211_v58 = vsel %vm169_vm3, %v209_v32, %v210_v46  ;;  %v407_v59 = vsel %vm169_vm3, %v210_v46, 0.0  ;;  %16974 = vmatprep.mubr.msk.f32.mxu0 %vm90_vm1, %v596_v52 }
  0x1f   :  { %466 = vst.msk [vmem:[#allocation2 + $0x150] sm:$0xff] %vm90_vm1, %v375_v47  ;;  %v214_v60 = vsel %vm169_vm3, %v212_v48, %v213_v49  ;;  %v376_v61 = vsel %vm169_vm3, 0.0, %v212_v48  ;;  %v63_v62 = vld [vmem:[%s25896_s0 + $0x128] sm:$0xff]  ;;  %v598_v0 = vld [vmem:[#allocation2 + $0x79] sm:$0xff]  ;;  %467 = vst.msk [vmem:[#allocation2 + $0x158] sm:$0xff] %vm90_vm1, %v211_v58  ;;  %v408_v2 = vsel %vm169_vm3, %v213_v49, 0.0  ;;  %v220_v3 = vsel %vm169_vm3, %v218_v53, %v219_v54 }
  0x20   :  { %v597_v63 = vld [vmem:[#allocation2 + $0x69] sm:$0xff]  ;;  %468 = vst.msk [vmem:[#allocation2 + $0x160] sm:$0x3] %vm93_vm2, %v407_v59  ;;  %v378_v4 = vsel %vm169_vm3, 0.0, %v218_v53  ;;  %v410_v5 = vsel %vm169_vm3, %v219_v54, 0.0  ;;  %v223_v6 = vsel %vm169_vm3, %v221_v55, %v222_v56  ;;  %v379_v7 = vsel %vm169_vm3, 0.0, %v221_v55 }
  0x21   :  { %469 = vst.msk [vmem:[#allocation2 + $0x168] sm:$0xff] %vm90_vm1, %v376_v61  ;;  %470 = vst.msk [vmem:[#allocation2 + $0x170] sm:$0xff] %vm90_vm1, %v214_v60  ;;  %v411_v8 = vsel %vm169_vm3, %v222_v56, 0.0  ;;  %v224_v9 = vrot.slane %v62_v57, 7  ;;  %v64_v10 = vld [vmem:[%s25896_s0 + $0x130] sm:$0xff]  ;;  %v65_v11 = vld [vmem:[%s25896_s0 + $0x138] sm:$0xff]  ;;  %16975 = vmatmul.mubr.msk.f32.gmra.mrb[8].mxu0 %vm90_vm1, %v597_v63 }
  0x22   :  { %471 = vst.msk [vmem:[#allocation2 + $0x178] sm:$0x3] %vm93_vm2, %v408_v2  ;;  %477 = vst.msk [vmem:[#allocation2 + $0x1d8] sm:$0x3] %vm93_vm2, %v410_v5  ;;  %v66_v12 = vld [vmem:[%s25896_s0 + $0x140] sm:$0xff]  ;;  %v225_v13 = vrot.slane %v63_v62, 7  ;;  %16977 = vmatprep.mubr.msk.f32.mxu0 %vm90_vm1, %v598_v0 }
  0x23   :  { %475 = vst.msk [vmem:[#allocation2 + $0x1c8] sm:$0xff] %vm90_vm1, %v378_v4  ;;  %476 = vst.msk [vmem:[#allocation2 + $0x1d0] sm:$0xff] %vm90_vm1, %v220_v3  ;;  %v227_v14 = vrot.slane %v64_v10, 7  ;;  %v228_v15 = vrot.slane %v65_v11, 7  ;;  %v67_v16 = vld [vmem:[%s25896_s0 + $0x148] sm:$0xff]  ;;  %v230_v17 = vrot.slane %v66_v12, 7 }
  0x24   :  { %478 = vst.msk [vmem:[#allocation2 + $0x1e0] sm:$0xff] %vm90_vm1, %v379_v7  ;;  %479 = vst.msk [vmem:[#allocation2 + $0x1e8] sm:$0xff] %vm90_vm1, %v223_v6  ;;  %v68_v18 = vld [vmem:[%s25896_s0 + $0x150] sm:$0xff]  ;;  %v380_v19 = vsel %vm169_vm3, 0.0, %v224_v9  ;;  %v231_v20 = vrot.slane %v67_v16, 7  ;;  %v599_v22 = vld [vmem:[#allocation2 + $0x81] sm:$0xff]  ;;  %v226_v24 = vsel %vm169_vm3, %v224_v9, %v225_v13 }
  0x25   :  { %480 = vst.msk [vmem:[#allocation2 + $0x1f0] sm:$0x3] %vm93_vm2, %v411_v8  ;;  %v233_v21 = vrot.slane %v68_v18, 7  ;;  %v600_v23 = vld [vmem:[#allocation2 + $0x91] sm:$0xff]  ;;  %v412_v25 = vsel %vm169_vm3, %v225_v13, 0.0  ;;  %v229_v26 = vsel %vm169_vm3, %v227_v14, %v228_v15  ;;  %v381_v27 = vsel %vm169_vm3, 0.0, %v227_v14  ;;  %16978 = vmatmul.mubr.msk.f32.gmra.mrb[10].mxu0 %vm90_vm1, %v599_v22 }
  0x26   :  { %481 = vst.msk [vmem:[#allocation2 + $0x1f8] sm:$0xff] %vm90_vm1, %v380_v19  ;;  %482 = vst.msk [vmem:[#allocation2 + $0x200] sm:$0xff] %vm90_vm1, %v226_v24  ;;  %v413_v28 = vsel %vm169_vm3, %v228_v15, 0.0  ;;  %v232_v29 = vsel %vm169_vm3, %v230_v17, %v231_v20  ;;  %v382_v30 = vsel %vm169_vm3, 0.0, %v230_v17  ;;  %v414_v31 = vsel %vm169_vm3, %v231_v20, 0.0  ;;  %v69_v32 = vld [vmem:[%s25896_s0 + $0x158] sm:$0xff]  ;;  %16980 = vmatprep.mubr.msk.f32.mxu0 %vm90_vm1, %v600_v23 }
  0x27   :  { %483 = vst.msk [vmem:[#allocation2 + $0x208] sm:$0x3] %vm93_vm2, %v412_v25  ;;  %v70_v33 = vld [vmem:[%s25896_s0 + $0x160] sm:$0xff]  ;;  %v71_v34 = vld [vmem:[%s25896_s0 + $0x168] sm:$0xff]  ;;  %486 = vst.msk [vmem:[#allocation2 + $0x220] sm:$0x3] %vm93_vm2, %v413_v28 }
  0x28   :  { %484 = vst.msk [vmem:[#allocation2 + $0x210] sm:$0xff] %vm90_vm1, %v381_v27  ;;  %485 = vst.msk [vmem:[#allocation2 + $0x218] sm:$0xff] %vm90_vm1, %v229_v26  ;;  %v234_v35 = vrot.slane %v69_v32, 7  ;;  %v383_v36 = vsel %vm169_vm3, 0.0, %v233_v21  ;;  %v236_v37 = vrot.slane %v70_v33, 7  ;;  %v237_v38 = vrot.slane %v71_v34, 7 }
  0x29   :  { %487 = vst.msk [vmem:[#allocation2 + $0x228] sm:$0xff] %vm90_vm1, %v382_v30  ;;  %488 = vst.msk [vmem:[#allocation2 + $0x230] sm:$0xff] %vm90_vm1, %v232_v29  ;;  %v72_v39 = vld [vmem:[%s25896_s0 + $0x170] sm:$0xff]  ;;  %v73_v40 = vld [vmem:[%s25896_s0 + $0x178] sm:$0xff]  ;;  %vm7335_vm5 = vcmask 58368  }
  0x2a   :  { %489 = vst.msk [vmem:[#allocation2 + $0x238] sm:$0x3] %vm93_vm2, %v414_v31  ;;  %v239_v41 = vrot.slane %v72_v39, 7  ;;  %v240_v42 = vrot.slane %v73_v40, 7  ;;  %v235_v43 = vsel %vm169_vm3, %v233_v21, %v234_v35  ;;  %v415_v44 = vsel %vm169_vm3, %v234_v35, 0.0  ;;  %v601_v47 = vld [vmem:[#allocation2 + $0x99] sm:$0xff] }
  0x2b   :  { %490 = vst.msk [vmem:[#allocation2 + $0x240] sm:$0xff] %vm90_vm1, %v383_v36  ;;  %v238_v45 = vsel %vm169_vm3, %v236_v37, %v237_v38  ;;  %v384_v46 = vsel %vm169_vm3, 0.0, %v236_v37  ;;  %v602_v48 = vld [vmem:[#allocation2 + $0xa9] sm:$0xff]  ;;  %491 = vst.msk [vmem:[#allocation2 + $0x248] sm:$0xff] %vm90_vm1, %v235_v43  ;;  %v416_v49 = vsel %vm169_vm3, %v237_v38, 0.0  ;;  %v74_v53 = vld [vmem:[%s25896_s0 + $0x180] sm:$0xff]  ;;  %16981 = vmatmul.mubr.msk.f32.gmra.mrb[12].mxu0 %vm90_vm1, %v601_v47 }
  0x2c   :  { %492 = vst.msk [vmem:[#allocation2 + $0x250] sm:$0x3] %vm93_vm2, %v415_v44  ;;  %v241_v50 = vsel %vm169_vm3, %v239_v41, %v240_v42  ;;  %v385_v51 = vsel %vm169_vm3, 0.0, %v239_v41  ;;  %v417_v52 = vsel %vm169_vm3, %v240_v42, 0.0  ;;  %495 = vst.msk [vmem:[#allocation2 + $0x268] sm:$0x3] %vm93_vm2, %v416_v49  ;;  %16983 = vmatprep.mubr.msk.f32.mxu0 %vm90_vm1, %v602_v48 }
  0x2d   :  { %493 = vst.msk [vmem:[#allocation2 + $0x258] sm:$0xff] %vm90_vm1, %v384_v46  ;;  %494 = vst.msk [vmem:[#allocation2 + $0x260] sm:$0xff] %vm90_vm1, %v238_v45  ;;  %v75_v54 = vld [vmem:[%s25896_s0 + $0x188] sm:$0xff]  ;;  %v242_v55 = vrot.slane %v74_v53, 7  ;;  %v76_v56 = vld [vmem:[%s25896_s0 + $0x190] sm:$0xff] }
  0x2e   :  { %496 = vst.msk [vmem:[#allocation2 + $0x270] sm:$0xff] %vm90_vm1, %v385_v51  ;;  %497 = vst.msk [vmem:[#allocation2 + $0x278] sm:$0xff] %vm90_vm1, %v241_v50  ;;  %v77_v57 = vld [vmem:[%s25896_s0 + $0x198] sm:$0xff]  ;;  %v243_v58 = vrot.slane %v75_v54, 7  ;;  %v245_v59 = vrot.slane %v76_v56, 7  ;;  %v78_v61 = vld [vmem:[%s25896_s0 + $0x1a0] sm:$0xff] }
  0x2f   :  { %498 = vst.msk [vmem:[#allocation2 + $0x280] sm:$0x3] %vm93_vm2, %v417_v52  ;;  %v246_v60 = vrot.slane %v77_v57, 7  ;;  %v79_v62 = vld [vmem:[%s25896_s0 + $0x1a8] sm:$0xff]  ;;  %v386_v63 = vsel %vm169_vm3, 0.0, %v242_v55  ;;  %v248_v0 = vrot.slane %v78_v61, 7 }
  0x30   :  { %v249_v2 = vrot.slane %v79_v62, 7  ;;  %v80_v3 = vld [vmem:[%s25896_s0 + $0x1b0] sm:$0xff]  ;;  %v604_v5 = vld [vmem:[#allocation2 + $0xc1] sm:$0xff]  ;;  %v244_v6 = vsel %vm169_vm3, %v242_v55, %v243_v58  ;;  %499 = vst.msk [vmem:[#allocation2 + $0x288] sm:$0xff] %vm90_vm1, %v386_v63  ;;  %v418_v7 = vsel %vm169_vm3, %v243_v58, 0.0  ;;  %v387_v9 = vsel %vm169_vm3, 0.0, %v245_v59 }
  0x31   :  { %v603_v4 = vld [vmem:[#allocation2 + $0xb1] sm:$0xff]  ;;  %v247_v8 = vsel %vm169_vm3, %v245_v59, %v246_v60  ;;  %500 = vst.msk [vmem:[#allocation2 + $0x290] sm:$0xff] %vm90_vm1, %v244_v6  ;;  %502 = vst.msk [vmem:[#allocation2 + $0x2a0] sm:$0xff] %vm90_vm1, %v387_v9  ;;  %v419_v10 = vsel %vm169_vm3, %v246_v60, 0.0  ;;  %v388_v12 = vsel %vm169_vm3, 0.0, %v248_v0  ;;  %v82_v15 = vld [vmem:[%s25896_s0 + $0x1c0] sm:$0xff] }
  0x32   :  { %501 = vst.msk [vmem:[#allocation2 + $0x298] sm:$0x3] %vm93_vm2, %v418_v7  ;;  %v250_v11 = vsel %vm169_vm3, %v248_v0, %v249_v2  ;;  %v420_v13 = vsel %vm169_vm3, %v249_v2, 0.0  ;;  %v81_v14 = vld [vmem:[%s25896_s0 + $0x1b8] sm:$0xff]  ;;  %v83_v16 = vld [vmem:[%s25896_s0 + $0x1c8] sm:$0xff]  ;;  %v251_v17 = vrot.slane %v80_v3, 7  ;;  %16984 = vmatmul.mubr.msk.f32.gmra.mrb[14].mxu0 %vm90_vm1, %v603_v4 }
  0x33   :  { %503 = vst.msk [vmem:[#allocation2 + $0x2a8] sm:$0xff] %vm90_vm1, %v247_v8  ;;  %505 = vst.msk [vmem:[#allocation2 + $0x2b8] sm:$0xff] %vm90_vm1, %v388_v12  ;;  %v252_v18 = vrot.slane %v81_v14, 7  ;;  %v254_v19 = vrot.slane %v82_v15, 7  ;;  %v255_v20 = vrot.slane %v83_v16, 7  ;;  %v84_v21 = vld [vmem:[%s25896_s0 + $0x1d0] sm:$0xff]  ;;  %16986 = vmatprep.mubr.msk.f32.mxu0 %vm90_vm1, %v604_v5 }
  0x34   :  { %504 = vst.msk [vmem:[#allocation2 + $0x2b0] sm:$0x3] %vm93_vm2, %v419_v10  ;;  %507 = vst.msk [vmem:[#allocation2 + $0x2c8] sm:$0x3] %vm93_vm2, %v420_v13  ;;  %v85_v22 = vld [vmem:[%s25896_s0 + $0x1d8] sm:$0xff]  ;;  %v257_v23 = vrot.slane %v84_v21, 7 }
  0x35   :  { %506 = vst.msk [vmem:[#allocation2 + $0x2c0] sm:$0xff] %vm90_vm1, %v250_v11  ;;  %v258_v24 = vrot.slane %v85_v22, 7  ;;  %v605_v25 = vld [vmem:[#allocation2 + $0xc9] sm:$0xff]  ;;  %v253_v26 = vsel %vm169_vm3, %v251_v17, %v252_v18  ;;  %v389_v27 = vsel %vm169_vm3, 0.0, %v251_v17  ;;  %v421_v28 = vsel %vm169_vm3, %v252_v18, 0.0  ;;  %v606_v30 = vld [vmem:[#allocation2 + $0xd9] sm:$0xff] }
  0x36   :  { %v256_v29 = vsel %vm169_vm3, %v254_v19, %v255_v20  ;;  %508 = vst.msk [vmem:[#allocation2 + $0x2d0] sm:$0xff] %vm90_vm1, %v389_v27  ;;  %509 = vst.msk [vmem:[#allocation2 + $0x2d8] sm:$0xff] %vm90_vm1, %v253_v26  ;;  %v390_v31 = vsel %vm169_vm3, 0.0, %v254_v19  ;;  %v422_v32 = vsel %vm169_vm3, %v255_v20, 0.0  ;;  %v391_v34 = vsel %vm169_vm3, 0.0, %v257_v23  ;;  %v86_v35 = vld [vmem:[%s25896_s0 + $0x1e0] sm:$0xff]  ;;  %16987 = vmatmul.mubr.msk.f32.gmra.mrb[16].mxu0 %vm90_vm1, %v605_v25 }
  0x37   :  { %510 = vst.msk [vmem:[#allocation2 + $0x2e0] sm:$0x3] %vm93_vm2, %v421_v28  ;;  %v259_v33 = vsel %vm169_vm3, %v257_v23, %v258_v24  ;;  %v87_v36 = vld [vmem:[%s25896_s0 + $0x1e8] sm:$0xff]  ;;  %513 = vst.msk [vmem:[#allocation2 + $0x2f8] sm:$0x3] %vm93_vm2, %v422_v32  ;;  %v423_v37 = vsel %vm169_vm3, %v258_v24, 0.0  ;;  %16989 = vmatprep.mubr.msk.f32.mxu0 %vm90_vm1, %v606_v30 }
  0x38   :  { %512 = vst.msk [vmem:[#allocation2 + $0x2f0] sm:$0xff] %vm90_vm1, %v256_v29  ;;  %511 = vst.msk [vmem:[#allocation2 + $0x2e8] sm:$0xff] %vm90_vm1, %v390_v31  ;;  %v260_v38 = vrot.slane %v86_v35, 7  ;;  %v261_v39 = vrot.slane %v87_v36, 7  ;;  %v20211_v40 = vld [vmem:[%s25895_s1 + $0x8] sm:$0xf] }
  0x39   :  { %514 = vst.msk [vmem:[#allocation2 + $0x300] sm:$0xff] %vm90_vm1, %v391_v34  ;;  %515 = vst.msk [vmem:[#allocation2 + $0x308] sm:$0xff] %vm90_vm1, %v259_v33  ;;  %17156 = vmatprep.subr.msk.mxu0 %vm846_vm0, %v20211_v40  ;;  %v607_v41 = vld [vmem:[#allocation2 + $0xe1] sm:$0xff]  ;;  %v608_v45 = vld [vmem:[#allocation2 + $0xf1] sm:$0xff] }
  0x3a   :  { %516 = vst.msk [vmem:[#allocation2 + $0x310] sm:$0x3] %vm93_vm2, %v423_v37  ;;  %v262_v42 = vsel %vm169_vm3, %v260_v38, %v261_v39  ;;  %v392_v43 = vsel %vm169_vm3, 0.0, %v260_v38  ;;  %v424_v44 = vsel %vm169_vm3, %v261_v39, 0.0  ;;  %16990 = vmatmul.mubr.msk.f32.gmra.mrb[18].mxu0 %vm90_vm1, %v607_v41  ;;  %v609_v46 = vld [vmem:[#allocation2 + $0xf9] sm:$0xff]  ;;  %v610_v47 = vld [vmem:[#allocation2 + $0x109] sm:$0xff] }
  0x3b   :  { %517 = vst.msk [vmem:[#allocation2 + $0x318] sm:$0xff] %vm90_vm1, %v392_v43  ;;  %518 = vst.msk [vmem:[#allocation2 + $0x320] sm:$0xff] %vm90_vm1, %v262_v42  ;;  %16992 = vmatprep.mubr.msk.f32.mxu0 %vm90_vm1, %v608_v45  ;;  %v611_v48 = vld [vmem:[#allocation2 + $0x111] sm:$0xff]  ;;  %v612_v49 = vld [vmem:[#allocation2 + $0x121] sm:$0xff] }
  0x3c   :  { %519 = vst.msk [vmem:[#allocation2 + $0x328] sm:$0x3] %vm93_vm2, %v424_v44  ;;  %v613_v50 = vld [vmem:[#allocation2 + $0x129] sm:$0xff]  ;;  %v614_v51 = vld [vmem:[#allocation2 + $0x139] sm:$0xff]  ;;  %v615_v52 = vld [vmem:[#allocation2 + $0x141] sm:$0xff] }
  0x3d   :  { %v616_v53 = vld [vmem:[#allocation2 + $0x151] sm:$0xff]  ;;  %v617_v54 = vld [vmem:[#allocation2 + $0x159] sm:$0xff]  ;;  %v618_v55 = vld [vmem:[#allocation2 + $0x169] sm:$0xff] }
  0x3e   :  { %16993 = vmatmul.mubr.msk.f32.gmra.mrb[20].mxu0 %vm90_vm1, %v609_v46  ;;  %v619_v56 = vld [vmem:[#allocation2 + $0x171] sm:$0xff]  ;;  %v621_v58 = vld [vmem:[#allocation2 + $0x1b9] sm:$0xff]  ;;  %v622_v59 = vld [vmem:[#allocation2 + $0x1c9] sm:$0xff] }
  0x3f   :  { %16995 = vmatprep.mubr.msk.f32.mxu0 %vm90_vm1, %v610_v47  ;;  %v620_v57 = vld [vmem:[#allocation2 + $0x1b1] sm:$0xff]  ;;  %v624_v61 = vld [vmem:[#allocation2 + $0x1e1] sm:$0xff]  ;;  %v625_v62 = vld [vmem:[#allocation2 + $0x1e9] sm:$0xff] }
  0x40   :  { %v623_v60 = vld [vmem:[#allocation2 + $0x1d1] sm:$0xff]  ;;  %v626_v63 = vld [vmem:[#allocation2 + $0x1f9] sm:$0xff]  ;;  %v627_v0 = vld [vmem:[#allocation2 + $0x201] sm:$0xff] }
  0x41   :  { %v628_v2 = vld [vmem:[#allocation2 + $0x211] sm:$0xff]  ;;  %v629_v3 = vld [vmem:[#allocation2 + $0x219] sm:$0xff]  ;;  %v630_v4 = vld [vmem:[#allocation2 + $0x229] sm:$0xff] }
  0x42   :  { %16996 = vmatmul.mubr.msk.f32.gmra.mrb[22].mxu0 %vm90_vm1, %v611_v48  ;;  %v631_v5 = vld [vmem:[#allocation2 + $0x231] sm:$0xff]  ;;  %v632_v6 = vld [vmem:[#allocation2 + $0x241] sm:$0xff]  ;;  %v633_v7 = vld [vmem:[#allocation2 + $0x249] sm:$0xff] }
  0x43   :  { %16998 = vmatprep.mubr.msk.f32.mxu0 %vm90_vm1, %v612_v49  ;;  %v634_v8 = vld [vmem:[#allocation2 + $0x259] sm:$0xff]  ;;  %v635_v9 = vld [vmem:[#allocation2 + $0x261] sm:$0xff]  ;;  %v636_v10 = vld [vmem:[#allocation2 + $0x271] sm:$0xff] }
  0x44   :  { %v637_v11 = vld [vmem:[#allocation2 + $0x279] sm:$0xff]  ;;  %v638_v12 = vld [vmem:[#allocation2 + $0x289] sm:$0xff]  ;;  %v639_v13 = vld [vmem:[#allocation2 + $0x291] sm:$0xff] }
  0x45   :  { %v640_v14 = vld [vmem:[#allocation2 + $0x2a1] sm:$0xff]  ;;  %v641_v15 = vld [vmem:[#allocation2 + $0x2a9] sm:$0xff]  ;;  %v642_v16 = vld [vmem:[#allocation2 + $0x2b9] sm:$0xff] }
  0x46   :  { %16999 = vmatmul.mubr.msk.f32.gmra.mrb[24].mxu0 %vm90_vm1, %v613_v50  ;;  %v643_v17 = vld [vmem:[#allocation2 + $0x2c1] sm:$0xff]  ;;  %v644_v18 = vld [vmem:[#allocation2 + $0x2d1] sm:$0xff]  ;;  %v645_v19 = vld [vmem:[#allocation2 + $0x2d9] sm:$0xff] }
  0x47   :  { %17001 = vmatprep.mubr.msk.f32.mxu0 %vm90_vm1, %v614_v51  ;;  %v646_v20 = vld [vmem:[#allocation2 + $0x2e9] sm:$0xff]  ;;  %v647_v21 = vld [vmem:[#allocation2 + $0x2f1] sm:$0xff]  ;;  %v648_v22 = vld [vmem:[#allocation2 + $0x301] sm:$0xff] }
  0x48   :  { %v649_v23 = vld [vmem:[#allocation2 + $0x309] sm:$0xff]  ;;  %v650_v24 = vld [vmem:[#allocation2 + $0x319] sm:$0xff]  ;;  %v651_v25 = vld [vmem:[#allocation2 + $0x321] sm:$0xff] }
  0x49   :  { %v523_v26 = vld [vmem:[#allocation2] sm:$0xff]  ;;  %v524_v27 = vld [vmem:[#allocation2 + $0x8] sm:$0xff]  ;;  %v20270_v28 = vld [vmem:[#allocation2 + $0x18] sm:$0xff] }
  0x4a   :  { %17002 = vmatmul.mubr.msk.f32.gmra.mrb[26].mxu0 %vm90_vm1, %v615_v52  ;;  %v20275_v29 = vld [vmem:[%s25895_s1 + $0xc] sm:$0xf]  ;;  %v20282_v30 = vld [vmem:[#allocation2 + $0x20] sm:$0xff]  ;;  %v20284_v31 = vld [vmem:[#allocation2 + $0x30] sm:$0xff] }
  0x4b   :  { %17004 = vmatprep.mubr.msk.f32.mxu0 %vm90_vm1, %v616_v53  ;;  %v20292_v32 = vld [vmem:[#allocation2 + $0x38] sm:$0xff]  ;;  %v20294_v33 = vld [vmem:[#allocation2 + $0x48] sm:$0xff]  ;;  %v20300_v34 = vld [vmem:[#allocation2 + $0x50] sm:$0xff] }
  0x4c   :  { %v20302_v35 = vld [vmem:[#allocation2 + $0x60] sm:$0xff]  ;;  %v20308_v36 = vld [vmem:[#allocation2 + $0x68] sm:$0xff]  ;;  %v20310_v37 = vld [vmem:[#allocation2 + $0x78] sm:$0xff] }
  0x4d   :  { %v20316_v38 = vld [vmem:[#allocation2 + $0x80] sm:$0xff]  ;;  %v20318_v39 = vld [vmem:[#allocation2 + $0x90] sm:$0xff]  ;;  %v20326_v41 = vld [vmem:[#allocation2 + $0xa8] sm:$0xff] }
  0x4e   :  { %17005 = vmatmul.mubr.msk.f32.gmra.mrb[28].mxu0 %vm90_vm1, %v617_v54  ;;  %v20332_v42 = vld [vmem:[#allocation2 + $0xb0] sm:$0xff]  ;;  %v20334_v43 = vld [vmem:[#allocation2 + $0xc0] sm:$0xff]  ;;  %v20340_v44 = vld [vmem:[#allocation2 + $0xc8] sm:$0xff] }
  0x4f   :  { %17007 = vmatprep.mubr.msk.f32.mxu0 %vm90_vm1, %v618_v55  ;;  %v20342_v45 = vld [vmem:[#allocation2 + $0xd8] sm:$0xff]  ;;  %v20348_v46 = vld [vmem:[#allocation2 + $0xe0] sm:$0xff]  ;;  %v20350_v47 = vld [vmem:[#allocation2 + $0xf0] sm:$0xff] }
  0x50   :  { %v20356_v48 = vld [vmem:[#allocation2 + $0xf8] sm:$0xff]  ;;  %v20358_v49 = vld [vmem:[#allocation2 + $0x108] sm:$0xff]  ;;  %v20364_v50 = vld [vmem:[#allocation2 + $0x110] sm:$0xff] }
  0x51   :  { %v20366_v51 = vld [vmem:[#allocation2 + $0x120] sm:$0xff]  ;;  %v20372_v52 = vld [vmem:[#allocation2 + $0x128] sm:$0xff]  ;;  %v20374_v53 = vld [vmem:[#allocation2 + $0x138] sm:$0xff] }
  0x52   :  { %17008 = vmatmul.mubr.msk.f32.gmra.mrb[30].mxu0 %vm90_vm1, %v619_v56  ;;  %v20380_v54 = vld [vmem:[#allocation2 + $0x140] sm:$0xff]  ;;  %v20382_v55 = vld [vmem:[#allocation2 + $0x150] sm:$0xff]  ;;  %v20388_v56 = vld [vmem:[#allocation2 + $0x158] sm:$0xff] }
  0x53   :  { %17010 = vmatprep.mubr.msk.f32.mxu0 %vm90_vm1, %v620_v57  ;;  %v20390_v57 = vld [vmem:[#allocation2 + $0x168] sm:$0xff]  ;;  %v20523_v1 = vld [vmem:[#allocation2 + $0x1a] sm:$0xff] }
  0x54   :  { %26137 = vst [vmem:[#allocation11_spill] sm:$0xff] %v20523_v1 }
  0x56   :  { %17011 = vmatmul.mubr.msk.f32.gmra.mrb[32].mxu0 %vm90_vm1, %v621_v58  ;;  %v20396_v58 = vld [vmem:[#allocation2 + $0x170] sm:$0xff] }
  0x57   :  { %17013 = vmatprep.mubr.msk.f32.mxu0 %vm90_vm1, %v622_v59  ;;  %v555_v59 = vld [vmem:[#allocation2 + $0x1b0] sm:$0xff] }
  0x5a   :  { %17014 = vmatmul.mubr.msk.f32.gmra.mrb[34].mxu0 %vm90_vm1, %v623_v60  ;;  %v556_v60 = vld [vmem:[#allocation2 + $0x1b8] sm:$0xff] }
  0x5b   :  { %17016 = vmatprep.mubr.msk.f32.mxu0 %vm90_vm1, %v624_v61  ;;  %v20401_v61 = vld [vmem:[#allocation2 + $0x1c8] sm:$0xff] }
  0x5e   :  { %17017 = vmatmul.mubr.msk.f32.gmra.mrb[36].mxu0 %vm90_vm1, %v625_v62  ;;  %v20406_v62 = vld [vmem:[#allocation2 + $0x1d0] sm:$0xff] }
  0x5f   :  { %17019 = vmatprep.mubr.msk.f32.mxu0 %vm90_vm1, %v626_v63  ;;  %v20408_v63 = vld [vmem:[#allocation2 + $0x1e0] sm:$0xff] }
  0x62   :  { %17020 = vmatmul.mubr.msk.f32.gmra.mrb[38].mxu0 %vm90_vm1, %v627_v0  ;;  %v20414_v0 = vld [vmem:[#allocation2 + $0x1e8] sm:$0xff] }
  0x63   :  { %17022 = vmatprep.mubr.msk.f32.mxu0 %vm90_vm1, %v628_v2  ;;  %v20416_v2 = vld [vmem:[#allocation2 + $0x1f8] sm:$0xff] }
  0x66   :  { %17023 = vmatmul.mubr.msk.f32.gmra.mrb[40].mxu0 %vm90_vm1, %v629_v3  ;;  %v20422_v3 = vld [vmem:[#allocation2 + $0x200] sm:$0xff] }
  0x67   :  { %17025 = vmatprep.mubr.msk.f32.mxu0 %vm90_vm1, %v630_v4  ;;  %v20424_v4 = vld [vmem:[#allocation2 + $0x210] sm:$0xff] }
  0x6a   :  { %17026 = vmatmul.mubr.msk.f32.gmra.mrb[42].mxu0 %vm90_vm1, %v631_v5  ;;  %v20430_v5 = vld [vmem:[#allocation2 + $0x218] sm:$0xff] }
  0x6b   :  { %17028 = vmatprep.mubr.msk.f32.mxu0 %vm90_vm1, %v632_v6  ;;  %v20432_v6 = vld [vmem:[#allocation2 + $0x228] sm:$0xff] }
  0x6e   :  { %17029 = vmatmul.mubr.msk.f32.gmra.mrb[44].mxu0 %vm90_vm1, %v633_v7  ;;  %v20438_v7 = vld [vmem:[#allocation2 + $0x230] sm:$0xff] }
  0x6f   :  { %17031 = vmatprep.mubr.msk.f32.mxu0 %vm90_vm1, %v634_v8  ;;  %v20440_v8 = vld [vmem:[#allocation2 + $0x240] sm:$0xff] }
  0x72   :  { %17032 = vmatmul.mubr.msk.f32.gmra.mrb[46].mxu0 %vm90_vm1, %v635_v9  ;;  %v20446_v9 = vld [vmem:[#allocation2 + $0x248] sm:$0xff] }
  0x73   :  { %17034 = vmatprep.mubr.msk.f32.mxu0 %vm90_vm1, %v636_v10  ;;  %v20448_v10 = vld [vmem:[#allocation2 + $0x258] sm:$0xff] }
  0x76   :  { %17035 = vmatmul.mubr.msk.f32.gmra.mrb[48].mxu0 %vm90_vm1, %v637_v11  ;;  %v20454_v11 = vld [vmem:[#allocation2 + $0x260] sm:$0xff] }
  0x77   :  { %17037 = vmatprep.mubr.msk.f32.mxu0 %vm90_vm1, %v638_v12  ;;  %v20456_v12 = vld [vmem:[#allocation2 + $0x270] sm:$0xff] }
  0x7a   :  { %17038 = vmatmul.mubr.msk.f32.gmra.mrb[50].mxu0 %vm90_vm1, %v639_v13  ;;  %v20462_v13 = vld [vmem:[#allocation2 + $0x278] sm:$0xff] }
  0x7b   :  { %17040 = vmatprep.mubr.msk.f32.mxu0 %vm90_vm1, %v640_v14  ;;  %v20464_v14 = vld [vmem:[#allocation2 + $0x288] sm:$0xff] }
  0x7e   :  { %17041 = vmatmul.mubr.msk.f32.gmra.mrb[52].mxu0 %vm90_vm1, %v641_v15  ;;  %v20470_v15 = vld [vmem:[#allocation2 + $0x290] sm:$0xff] }
  0x7f   :  { %17043 = vmatprep.mubr.msk.f32.mxu0 %vm90_vm1, %v642_v16  ;;  %v20472_v16 = vld [vmem:[#allocation2 + $0x2a0] sm:$0xff] }
  0x82   :  { %17044 = vmatmul.mubr.msk.f32.gmra.mrb[54].mxu0 %vm90_vm1, %v643_v17  ;;  %v20478_v17 = vld [vmem:[#allocation2 + $0x2a8] sm:$0xff] }
  0x83   :  { %17046 = vmatprep.mubr.msk.f32.mxu0 %vm90_vm1, %v644_v18  ;;  %v20480_v18 = vld [vmem:[#allocation2 + $0x2b8] sm:$0xff] }
  0x86   :  { %17047 = vmatmul.mubr.msk.f32.gmra.mrb[56].mxu0 %vm90_vm1, %v645_v19  ;;  %v20486_v19 = vld [vmem:[#allocation2 + $0x2c0] sm:$0xff] }
  0x87   :  { %17049 = vmatprep.mubr.msk.f32.mxu0 %vm90_vm1, %v646_v20  ;;  %v20488_v20 = vld [vmem:[#allocation2 + $0x2d0] sm:$0xff] }
  0x8a   :  { %17050 = vmatmul.mubr.msk.f32.gmra.mrb[58].mxu0 %vm90_vm1, %v647_v21  ;;  %v20494_v21 = vld [vmem:[#allocation2 + $0x2d8] sm:$0xff] }
  0x8b   :  { %17052 = vmatprep.mubr.msk.f32.mxu0 %vm90_vm1, %v648_v22  ;;  %26130 = vst [vmem:[#allocation4_spill] sm:$0xff] %v20494_v21  ;;  %v20496_v22 = vld [vmem:[#allocation2 + $0x2e8] sm:$0xff] }
  0x8c   :  { %26131 = vst [vmem:[#allocation5_spill] sm:$0xff] %v20496_v22 }
  0x8e   :  { %17053 = vmatmul.mubr.msk.f32.gmra.mrb[60].mxu0 %vm90_vm1, %v649_v23  ;;  %v20502_v23 = vld [vmem:[#allocation2 + $0x2f0] sm:$0xff] }
  0x8f   :  { %17055 = vmatprep.mubr.msk.f32.mxu0 %vm90_vm1, %v650_v24  ;;  %26132 = vst [vmem:[#allocation6_spill] sm:$0xff] %v20502_v23  ;;  %v20504_v24 = vld [vmem:[#allocation2 + $0x300] sm:$0xff] }
  0x90   :  { %26133 = vst [vmem:[#allocation7_spill] sm:$0xff] %v20504_v24 }
  0x92   :  { %17056 = vmatmul.mubr.msk.f32.gmra.mrb[62].mxu0 %vm90_vm1, %v651_v25  ;;  %v20510_v25 = vld [vmem:[#allocation2 + $0x308] sm:$0xff] }
  0x93   :  { %17060 = vmatprep.mubr.msk.f32.mxu0 %vm90_vm1, %v523_v26  ;;  %26134 = vst [vmem:[#allocation8_spill] sm:$0xff] %v20510_v25  ;;  %v20512_v26 = vld [vmem:[#allocation2 + $0x318] sm:$0xff] }
  0x94   :  { %26135 = vst [vmem:[#allocation9_spill] sm:$0xff] %v20512_v26 }
  0x96   :  { %17061 = vmatmul.mubr.msk.f32.vlgmr.msra.gmra.mrb[0].mxu0 %vm90_vm1, %v524_v27  ;;  %v20518_v27 = vld [vmem:[#allocation2 + $0x320] sm:$0xff] }
  0x97   :  { %17157 = vmatpush3.msk.msra.mxu0 %vm846_vm0, %v20211_v40  ;;  %17063 = vmatprep.mubr.msk.f32.mxu0 %vm90_vm1, %v20270_v28  ;;  %v20324_v40 = vld [vmem:[#allocation2 + $0x98] sm:$0xff]  ;;  %26136 = vst [vmem:[#allocation10_spill] sm:$0xff] %v20518_v27 }
  0x98   :  { %17254 = vmatprep.subr.msk.mxu0 %vm846_vm0, %v20275_v29 }
  0x9a   :  { %17064 = vmatmul.mubr.msk.f32.gmra.mrb[2].mxu0 %vm90_vm1, %v20282_v30 }
  0x9b   :  { %17066 = vmatprep.mubr.msk.f32.mxu0 %vm90_vm1, %v20284_v31 }
  0x9e   :  { %17067 = vmatmul.mubr.msk.f32.gmra.mrb[4].mxu0 %vm90_vm1, %v20292_v32 }
  0x9f   :  { %17069 = vmatprep.mubr.msk.f32.mxu0 %vm90_vm1, %v20294_v33 }
  0xa2   :  { %17070 = vmatmul.mubr.msk.f32.gmra.mrb[6].mxu0 %vm90_vm1, %v20300_v34 }
  0xa3   :  { %17072 = vmatprep.mubr.msk.f32.mxu0 %vm90_vm1, %v20302_v35 }
  0xa6   :  { %17073 = vmatmul.mubr.msk.f32.gmra.mrb[8].mxu0 %vm90_vm1, %v20308_v36 }
  0xa7   :  { %17075 = vmatprep.mubr.msk.f32.mxu0 %vm90_vm1, %v20310_v37 }
  0xaa   :  { %17076 = vmatmul.mubr.msk.f32.gmra.mrb[10].mxu0 %vm90_vm1, %v20316_v38 }
  0xab   :  { %17078 = vmatprep.mubr.msk.f32.mxu0 %vm90_vm1, %v20318_v39 }
  0xae   :  { %17079 = vmatmul.mubr.msk.f32.gmra.mrb[12].mxu0 %vm90_vm1, %v20324_v40 }
  0xaf   :  { %17081 = vmatprep.mubr.msk.f32.mxu0 %vm90_vm1, %v20326_v41 }
  0xb2   :  { %17082 = vmatmul.mubr.msk.f32.gmra.mrb[14].mxu0 %vm90_vm1, %v20332_v42 }
  0xb3   :  { %17084 = vmatprep.mubr.msk.f32.mxu0 %vm90_vm1, %v20334_v43 }
  0xb6   :  { %17085 = vmatmul.mubr.msk.f32.gmra.mrb[16].mxu0 %vm90_vm1, %v20340_v44 }
  0xb7   :  { %17087 = vmatprep.mubr.msk.f32.mxu0 %vm90_vm1, %v20342_v45 }
  0xba   :  { %17088 = vmatmul.mubr.msk.f32.gmra.mrb[18].mxu0 %vm90_vm1, %v20348_v46 }
  0xbb   :  { %17090 = vmatprep.mubr.msk.f32.mxu0 %vm90_vm1, %v20350_v47 }
  0xbe   :  { %17091 = vmatmul.mubr.msk.f32.gmra.mrb[20].mxu0 %vm90_vm1, %v20356_v48 }
  0xbf   :  { %17093 = vmatprep.mubr.msk.f32.mxu0 %vm90_vm1, %v20358_v49 }
  0xc2   :  { %17094 = vmatmul.mubr.msk.f32.gmra.mrb[22].mxu0 %vm90_vm1, %v20364_v50 }
  0xc3   :  { %17096 = vmatprep.mubr.msk.f32.mxu0 %vm90_vm1, %v20366_v51 }
  0xc6   :  { %17097 = vmatmul.mubr.msk.f32.gmra.mrb[24].mxu0 %vm90_vm1, %v20372_v52 }
  0xc7   :  { %17099 = vmatprep.mubr.msk.f32.mxu0 %vm90_vm1, %v20374_v53 }
  0xca   :  { %17100 = vmatmul.mubr.msk.f32.gmra.mrb[26].mxu0 %vm90_vm1, %v20380_v54 }
  0xcb   :  { %17102 = vmatprep.mubr.msk.f32.mxu0 %vm90_vm1, %v20382_v55 }
  0xce   :  { %17103 = vmatmul.mubr.msk.f32.gmra.mrb[28].mxu0 %vm90_vm1, %v20388_v56 }
  0xcf   :  { %17105 = vmatprep.mubr.msk.f32.mxu0 %vm90_vm1, %v20390_v57 }
  0xd2   :  { %17106 = vmatmul.mubr.msk.f32.gmra.mrb[30].mxu0 %vm90_vm1, %v20396_v58 }
  0xd3   :  { %17108 = vmatprep.mubr.msk.f32.mxu0 %vm90_vm1, %v555_v59  ;;  %v1815_v59 = vld [vmem:[#allocation2 + $0x2] sm:$0xff] }
  0xd6   :  { %17109 = vmatmul.mubr.msk.f32.gmra.mrb[32].mxu0 %vm90_vm1, %v556_v60  ;;  %v1816_v60 = vld [vmem:[#allocation2 + $0xa] sm:$0xff] }
  0xd7   :  { %17111 = vmatprep.mubr.msk.f32.mxu0 %vm90_vm1, %v20401_v61 }
  0xda   :  { %17112 = vmatmul.mubr.msk.f32.gmra.mrb[34].mxu0 %vm90_vm1, %v20406_v62 }
  0xdb   :  { %17114 = vmatprep.mubr.msk.f32.mxu0 %vm90_vm1, %v20408_v63 }
  0xde   :  { %17115 = vmatmul.mubr.msk.f32.gmra.mrb[36].mxu0 %vm90_vm1, %v20414_v0 }
  0xdf   :  { %17117 = vmatprep.mubr.msk.f32.mxu0 %vm90_vm1, %v20416_v2 }
  0xe2   :  { %17118 = vmatmul.mubr.msk.f32.gmra.mrb[38].mxu0 %vm90_vm1, %v20422_v3 }
  0xe3   :  { %17120 = vmatprep.mubr.msk.f32.mxu0 %vm90_vm1, %v20424_v4 }
  0xe6   :  { %17121 = vmatmul.mubr.msk.f32.gmra.mrb[40].mxu0 %vm90_vm1, %v20430_v5 }
  0xe7   :  { %17123 = vmatprep.mubr.msk.f32.mxu0 %vm90_vm1, %v20432_v6 }
  0xea   :  { %17124 = vmatmul.mubr.msk.f32.gmra.mrb[42].mxu0 %vm90_vm1, %v20438_v7 }
  0xeb   :  { %17126 = vmatprep.mubr.msk.f32.mxu0 %vm90_vm1, %v20440_v8 }
  0xee   :  { %17127 = vmatmul.mubr.msk.f32.gmra.mrb[44].mxu0 %vm90_vm1, %v20446_v9 }
  0xef   :  { %17129 = vmatprep.mubr.msk.f32.mxu0 %vm90_vm1, %v20448_v10 }
  0xf2   :  { %17130 = vmatmul.mubr.msk.f32.gmra.mrb[46].mxu0 %vm90_vm1, %v20454_v11 }
  0xf3   :  { %17132 = vmatprep.mubr.msk.f32.mxu0 %vm90_vm1, %v20456_v12 }
  0xf6   :  { %17133 = vmatmul.mubr.msk.f32.gmra.mrb[48].mxu0 %vm90_vm1, %v20462_v13 }
  0xf7   :  { %17135 = vmatprep.mubr.msk.f32.mxu0 %vm90_vm1, %v20464_v14 }
  0xfa   :  { %17136 = vmatmul.mubr.msk.f32.gmra.mrb[50].mxu0 %vm90_vm1, %v20470_v15 }
  0xfb   :  { %17138 = vmatprep.mubr.msk.f32.mxu0 %vm90_vm1, %v20472_v16 }
  0xfe   :  { %17139 = vmatmul.mubr.msk.f32.gmra.mrb[52].mxu0 %vm90_vm1, %v20478_v17 }
  0xff   :  { %17141 = vmatprep.mubr.msk.f32.mxu0 %vm90_vm1, %v20480_v18 }
 0x102   :  { %17142 = vmatmul.mubr.msk.f32.gmra.mrb[54].mxu0 %vm90_vm1, %v20486_v19 }
 0x103   :  { %17144 = vmatprep.mubr.msk.f32.mxu0 %vm90_vm1, %v20488_v20 }
 0x106   :  { %17145 = vmatmul.mubr.msk.f32.gmra.mrb[56].mxu0 %vm90_vm1, %v20494_v21 }
 0x107   :  { %17147 = vmatprep.mubr.msk.f32.mxu0 %vm90_vm1, %v20496_v22 }
 0x10a   :  { %17148 = vmatmul.mubr.msk.f32.gmra.mrb[58].mxu0 %vm90_vm1, %v20502_v23  ;;  %v20644_v23 = vld [vmem:[#allocation2 + $0x152] sm:$0xff] }
 0x10b   :  { %17150 = vmatprep.mubr.msk.f32.mxu0 %vm90_vm1, %v20504_v24  ;;  %v20528_v24 = vld [vmem:[%s25895_s1 + $0x10] sm:$0xf]  ;;  %26163 = vst [vmem:[#allocation37_spill] sm:$0xff] %v20644_v23 }
 0x10e   :  { %17151 = vmatmul.mubr.msk.f32.gmra.mrb[60].mxu0 %vm90_vm1, %v20510_v25  ;;  %v20637_v25 = vld [vmem:[%s25896_s0 + $0xf8] sm:$0xff] }
 0x10f   :  { %17153 = vmatprep.mubr.msk.f32.mxu0 %vm90_vm1, %v20512_v26  ;;  %v20535_v26 = vld [vmem:[#allocation2 + $0x22] sm:$0xff] }
 0x110   :  { %26138 = vst [vmem:[#allocation12_spill] sm:$0xff] %v20535_v26 }
 0x112   :  { %17154 = vmatmul.mubr.msk.f32.gmra.mrb[62].mxu0 %vm90_vm1, %v20518_v27  ;;  %v20537_v27 = vld [vmem:[#allocation2 + $0x32] sm:$0xff] }
 0x113   :  { %17158 = vmatprep.mubr.msk.f32.mxu0 %vm90_vm1, %v1815_v59  ;;  %26139 = vst [vmem:[#allocation13_spill] sm:$0xff] %v20537_v27  ;;  %v20545_v59 = vld [vmem:[#allocation2 + $0x3a] sm:$0xff] }
 0x114   :  { %26140 = vst [vmem:[#allocation14_spill] sm:$0xff] %v20545_v59 }
 0x116   :  { %17159 = vmatmul.mubr.msk.f32.vlgmr.msra.gmra.mrb[0].mxu0 %vm90_vm1, %v1816_v60  ;;  %v20547_v60 = vld [vmem:[#allocation2 + $0x4a] sm:$0xff] }
 0x117   :  { %17255 = vmatpush3.msk.msra.mxu0 %vm846_vm0, %v20275_v29  ;;  %17161 = vmatprep.mubr.msk.f32.mxu0 %vm90_vm1, %v20523_v1  ;;  %26141 = vst [vmem:[#allocation15_spill] sm:$0xff] %v20547_v60  ;;  %v20553_v29 = vld [vmem:[#allocation2 + $0x52] sm:$0xff]  ;;  %v20555_v1 = vld [vmem:[#allocation2 + $0x62] sm:$0xff] }
 0x118   :  { %17352 = vmatprep.subr.msk.mxu0 %vm846_vm0, %v20528_v24  ;;  %26142 = vst [vmem:[#allocation16_spill] sm:$0xff] %v20553_v29  ;;  %26143 = vst [vmem:[#allocation17_spill] sm:$0xff] %v20555_v1 }
 0x11a   :  { %17162 = vmatmul.mubr.msk.f32.gmra.mrb[2].mxu0 %vm90_vm1, %v20535_v26  ;;  %v20563_v26 = vld [vmem:[#allocation2 + $0x7a] sm:$0xff] }
 0x11b   :  { %17164 = vmatprep.mubr.msk.f32.mxu0 %vm90_vm1, %v20537_v27  ;;  %v20561_v27 = vld [vmem:[#allocation2 + $0x6a] sm:$0xff]  ;;  %26145 = vst [vmem:[#allocation19_spill] sm:$0xff] %v20563_v26 }
 0x11c   :  { %26144 = vst [vmem:[#allocation18_spill] sm:$0xff] %v20561_v27 }
 0x11e   :  { %17165 = vmatmul.mubr.msk.f32.gmra.mrb[4].mxu0 %vm90_vm1, %v20545_v59  ;;  %v20571_v59 = vld [vmem:[#allocation2 + $0x92] sm:$0xff] }
 0x11f   :  { %17167 = vmatprep.mubr.msk.f32.mxu0 %vm90_vm1, %v20547_v60  ;;  %v20569_v60 = vld [vmem:[#allocation2 + $0x82] sm:$0xff]  ;;  %26147 = vst [vmem:[#allocation21_spill] sm:$0xff] %v20571_v59 }
 0x120   :  { %26146 = vst [vmem:[#allocation20_spill] sm:$0xff] %v20569_v60 }
 0x122   :  { %17168 = vmatmul.mubr.msk.f32.gmra.mrb[6].mxu0 %vm90_vm1, %v20553_v29  ;;  %v20579_v29 = vld [vmem:[#allocation2 + $0xaa] sm:$0xff] }
 0x123   :  { %17170 = vmatprep.mubr.msk.f32.mxu0 %vm90_vm1, %v20555_v1  ;;  %v20577_v1 = vld [vmem:[#allocation2 + $0x9a] sm:$0xff]  ;;  %26149 = vst [vmem:[#allocation23_spill] sm:$0xff] %v20579_v29 }
 0x124   :  { %26148 = vst [vmem:[#allocation22_spill] sm:$0xff] %v20577_v1 }
 0x126   :  { %17171 = vmatmul.mubr.msk.f32.gmra.mrb[8].mxu0 %vm90_vm1, %v20561_v27  ;;  %v20587_v27 = vld [vmem:[#allocation2 + $0xc2] sm:$0xff] }
 0x127   :  { %17173 = vmatprep.mubr.msk.f32.mxu0 %vm90_vm1, %v20563_v26  ;;  %v20585_v26 = vld [vmem:[#allocation2 + $0xb2] sm:$0xff]  ;;  %26151 = vst [vmem:[#allocation25_spill] sm:$0xff] %v20587_v27 }
 0x128   :  { %26150 = vst [vmem:[#allocation24_spill] sm:$0xff] %v20585_v26 }
 0x12a   :  { %17174 = vmatmul.mubr.msk.f32.gmra.mrb[10].mxu0 %vm90_vm1, %v20569_v60  ;;  %v20595_v60 = vld [vmem:[#allocation2 + $0xda] sm:$0xff] }
 0x12b   :  { %17176 = vmatprep.mubr.msk.f32.mxu0 %vm90_vm1, %v20571_v59  ;;  %v20593_v59 = vld [vmem:[#allocation2 + $0xca] sm:$0xff]  ;;  %26153 = vst [vmem:[#allocation27_spill] sm:$0xff] %v20595_v60 }
 0x12c   :  { %26152 = vst [vmem:[#allocation26_spill] sm:$0xff] %v20593_v59 }
 0x12e   :  { %17177 = vmatmul.mubr.msk.f32.gmra.mrb[12].mxu0 %vm90_vm1, %v20577_v1  ;;  %v20603_v1 = vld [vmem:[#allocation2 + $0xf2] sm:$0xff] }
 0x12f   :  { %17179 = vmatprep.mubr.msk.f32.mxu0 %vm90_vm1, %v20579_v29  ;;  %v20601_v29 = vld [vmem:[#allocation2 + $0xe2] sm:$0xff]  ;;  %26155 = vst [vmem:[#allocation29_spill] sm:$0xff] %v20603_v1 }
 0x130   :  { %26154 = vst [vmem:[#allocation28_spill] sm:$0xff] %v20601_v29 }
 0x132   :  { %17180 = vmatmul.mubr.msk.f32.gmra.mrb[14].mxu0 %vm90_vm1, %v20585_v26  ;;  %v20611_v26 = vld [vmem:[#allocation2 + $0x10a] sm:$0xff] }
 0x133   :  { %17182 = vmatprep.mubr.msk.f32.mxu0 %vm90_vm1, %v20587_v27  ;;  %v20609_v27 = vld [vmem:[#allocation2 + $0xfa] sm:$0xff]  ;;  %26157 = vst [vmem:[#allocation31_spill] sm:$0xff] %v20611_v26 }
 0x134   :  { %26156 = vst [vmem:[#allocation30_spill] sm:$0xff] %v20609_v27 }
 0x136   :  { %17183 = vmatmul.mubr.msk.f32.gmra.mrb[16].mxu0 %vm90_vm1, %v20593_v59  ;;  %v20619_v59 = vld [vmem:[#allocation2 + $0x122] sm:$0xff] }
 0x137   :  { %17185 = vmatprep.mubr.msk.f32.mxu0 %vm90_vm1, %v20595_v60  ;;  %v20617_v60 = vld [vmem:[#allocation2 + $0x112] sm:$0xff]  ;;  %26159 = vst [vmem:[#allocation33_spill] sm:$0xff] %v20619_v59 }
 0x138   :  { %26158 = vst [vmem:[#allocation32_spill] sm:$0xff] %v20617_v60 }
 0x13a   :  { %17186 = vmatmul.mubr.msk.f32.gmra.mrb[18].mxu0 %vm90_vm1, %v20601_v29  ;;  %v20627_v29 = vld [vmem:[#allocation2 + $0x13a] sm:$0xff] }
 0x13b   :  { %17188 = vmatprep.mubr.msk.f32.mxu0 %vm90_vm1, %v20603_v1  ;;  %v20625_v1 = vld [vmem:[#allocation2 + $0x12a] sm:$0xff]  ;;  %26161 = vst [vmem:[#allocation35_spill] sm:$0xff] %v20627_v29 }
 0x13c   :  { %26160 = vst [vmem:[#allocation34_spill] sm:$0xff] %v20625_v1 }
 0x13e   :  { %17189 = vmatmul.mubr.msk.f32.gmra.mrb[20].mxu0 %vm90_vm1, %v20609_v27  ;;  %v56_v27 = vld [vmem:[%s25896_s0 + $0xf0] sm:$0xff] }
 0x13f   :  { %17191 = vmatprep.mubr.msk.f32.mxu0 %vm90_vm1, %v20611_v26  ;;  %v215_v26 = vrot.slane %v56_v27, 7 }
 0x141   :  { %v377_v22 = vsel %vm169_vm3, 0.0, %v215_v26 }
 0x142   :  { %17192 = vmatmul.mubr.msk.f32.gmra.mrb[22].mxu0 %vm90_vm1, %v20617_v60  ;;  %v25936_v60 = vrot.slane %v20637_v25, 7  ;;  %472 = vst.msk [vmem:[#allocation2 + $0x180] sm:$0xff] %vm90_vm1, %v377_v22  ;;  %v20664_v22 = vld [vmem:[#allocation2 + $0x172] sm:$0xff] }
 0x143   :  { %17194 = vmatprep.mubr.msk.f32.mxu0 %vm90_vm1, %v20619_v59  ;;  %v20641_v59 = vld [vmem:[#allocation2 + $0x142] sm:$0xff]  ;;  %26166 = vst [vmem:[#allocation40_spill] sm:$0xff] %v20664_v22 }
 0x144   :  { %26162 = vst [vmem:[#allocation36_spill] sm:$0xff] %v20641_v59  ;;  %v217_v27 = vsel %vm169_vm3, %v215_v26, %v25936_v60  ;;  %v1847_v26 = vld [vmem:[#allocation2 + $0x1b2] sm:$0xff]  ;;  %v20669_v60 = vld [vmem:[#allocation2 + $0x1ca] sm:$0xff] }
 0x145   :  { %473 = vst.msk [vmem:[#allocation2 + $0x188] sm:$0xff] %vm90_vm1, %v217_v27  ;;  %v1848_v27 = vld [vmem:[#allocation2 + $0x1ba] sm:$0xff]  ;;  %26167 = vst [vmem:[#allocation41_spill] sm:$0xff] %v20669_v60 }
 0x146   :  { %17195 = vmatmul.mubr.msk.f32.gmra.mrb[24].mxu0 %vm90_vm1, %v20625_v1  ;;  %v20658_v1 = vld [vmem:[#allocation2 + $0x16a] sm:$0xff] }
 0x147   :  { %17197 = vmatprep.mubr.msk.f32.mxu0 %vm90_vm1, %v20627_v29  ;;  %v20656_v29 = vld [vmem:[#allocation2 + $0x15a] sm:$0xff]  ;;  %26165 = vst [vmem:[#allocation39_spill] sm:$0xff] %v20658_v1 }
 0x148   :  { %26164 = vst [vmem:[#allocation38_spill] sm:$0xff] %v20656_v29 }
 0x14a   :  { %17198 = vmatmul.mubr.msk.f32.gmra.mrb[26].mxu0 %vm90_vm1, %v20641_v59  ;;  %v20781_v59 = vld [vmem:[#allocation2 + $0x302] sm:$0xff] }
 0x14b   :  { %17200 = vmatprep.mubr.msk.f32.mxu0 %vm90_vm1, %v20644_v23  ;;  %v20676_v23 = vld [vmem:[#allocation2 + $0x1e2] sm:$0xff] }
 0x14c   :  { %26169 = vst [vmem:[#allocation43_spill] sm:$0xff] %v20676_v23 }
 0x14e   :  { %17201 = vmatmul.mubr.msk.f32.gmra.mrb[28].mxu0 %vm90_vm1, %v20656_v29  ;;  %v20674_v29 = vld [vmem:[#allocation2 + $0x1d2] sm:$0xff] }
 0x14f   :  { %17203 = vmatprep.mubr.msk.f32.mxu0 %vm90_vm1, %v20658_v1  ;;  %26168 = vst [vmem:[#allocation42_spill] sm:$0xff] %v20674_v29  ;;  %v20774_v1 = vld [vmem:[%s25896_s0 + $0x1f8] sm:$0xff] }
 0x152   :  { %17204 = vmatmul.mubr.msk.f32.gmra.mrb[30].mxu0 %vm90_vm1, %v20664_v22  ;;  %v20682_v22 = vld [vmem:[#allocation2 + $0x1ea] sm:$0xff] }
 0x153   :  { %17206 = vmatprep.mubr.msk.f32.mxu0 %vm90_vm1, %v1847_v26  ;;  %26170 = vst [vmem:[#allocation44_spill] sm:$0xff] %v20682_v22  ;;  %v20684_v26 = vld [vmem:[#allocation2 + $0x1fa] sm:$0xff] }
 0x154   :  { %26171 = vst [vmem:[#allocation45_spill] sm:$0xff] %v20684_v26 }
 0x156   :  { %17207 = vmatmul.mubr.msk.f32.gmra.mrb[32].mxu0 %vm90_vm1, %v1848_v27  ;;  %v20690_v27 = vld [vmem:[#allocation2 + $0x202] sm:$0xff] }
 0x157   :  { %17209 = vmatprep.mubr.msk.f32.mxu0 %vm90_vm1, %v20669_v60  ;;  %26172 = vst [vmem:[#allocation46_spill] sm:$0xff] %v20690_v27  ;;  %v20692_v60 = vld [vmem:[#allocation2 + $0x212] sm:$0xff] }
 0x158   :  { %26173 = vst [vmem:[#allocation47_spill] sm:$0xff] %v20692_v60 }
 0x15a   :  { %17210 = vmatmul.mubr.msk.f32.gmra.mrb[34].mxu0 %vm90_vm1, %v20674_v29  ;;  %v20700_v29 = vld [vmem:[#allocation2 + $0x22a] sm:$0xff] }
 0x15b   :  { %17212 = vmatprep.mubr.msk.f32.mxu0 %vm90_vm1, %v20676_v23  ;;  %v20698_v23 = vld [vmem:[#allocation2 + $0x21a] sm:$0xff]  ;;  %26175 = vst [vmem:[#allocation49_spill] sm:$0xff] %v20700_v29 }
 0x15c   :  { %26174 = vst [vmem:[#allocation48_spill] sm:$0xff] %v20698_v23 }
 0x15e   :  { %17213 = vmatmul.mubr.msk.f32.gmra.mrb[36].mxu0 %vm90_vm1, %v20682_v22  ;;  %v20708_v22 = vld [vmem:[#allocation2 + $0x242] sm:$0xff] }
 0x15f   :  { %17215 = vmatprep.mubr.msk.f32.mxu0 %vm90_vm1, %v20684_v26  ;;  %v20706_v26 = vld [vmem:[#allocation2 + $0x232] sm:$0xff]  ;;  %26177 = vst [vmem:[#allocation51_spill] sm:$0xff] %v20708_v22 }
 0x160   :  { %26176 = vst [vmem:[#allocation50_spill] sm:$0xff] %v20706_v26 }
 0x162   :  { %17216 = vmatmul.mubr.msk.f32.gmra.mrb[38].mxu0 %vm90_vm1, %v20690_v27  ;;  %v20716_v27 = vld [vmem:[#allocation2 + $0x25a] sm:$0xff] }
 0x163   :  { %17218 = vmatprep.mubr.msk.f32.mxu0 %vm90_vm1, %v20692_v60  ;;  %v20714_v60 = vld [vmem:[#allocation2 + $0x24a] sm:$0xff]  ;;  %26179 = vst [vmem:[#allocation53_spill] sm:$0xff] %v20716_v27 }
 0x164   :  { %26178 = vst [vmem:[#allocation52_spill] sm:$0xff] %v20714_v60 }
 0x166   :  { %17219 = vmatmul.mubr.msk.f32.gmra.mrb[40].mxu0 %vm90_vm1, %v20698_v23  ;;  %v20724_v23 = vld [vmem:[#allocation2 + $0x272] sm:$0xff] }
 0x167   :  { %17221 = vmatprep.mubr.msk.f32.mxu0 %vm90_vm1, %v20700_v29  ;;  %v20722_v29 = vld [vmem:[#allocation2 + $0x262] sm:$0xff]  ;;  %26181 = vst [vmem:[#allocation55_spill] sm:$0xff] %v20724_v23 }
 0x168   :  { %26180 = vst [vmem:[#allocation54_spill] sm:$0xff] %v20722_v29 }
 0x16a   :  { %17222 = vmatmul.mubr.msk.f32.gmra.mrb[42].mxu0 %vm90_vm1, %v20706_v26  ;;  %v20732_v26 = vld [vmem:[#allocation2 + $0x28a] sm:$0xff] }
 0x16b   :  { %17224 = vmatprep.mubr.msk.f32.mxu0 %vm90_vm1, %v20708_v22  ;;  %v20730_v22 = vld [vmem:[#allocation2 + $0x27a] sm:$0xff]  ;;  %26183 = vst [vmem:[#allocation57_spill] sm:$0xff] %v20732_v26 }
 0x16c   :  { %26182 = vst [vmem:[#allocation56_spill] sm:$0xff] %v20730_v22 }
 0x16e   :  { %17225 = vmatmul.mubr.msk.f32.gmra.mrb[44].mxu0 %vm90_vm1, %v20714_v60  ;;  %v20740_v60 = vld [vmem:[#allocation2 + $0x2a2] sm:$0xff] }
 0x16f   :  { %17227 = vmatprep.mubr.msk.f32.mxu0 %vm90_vm1, %v20716_v27  ;;  %v20738_v27 = vld [vmem:[#allocation2 + $0x292] sm:$0xff]  ;;  %26185 = vst [vmem:[#allocation59_spill] sm:$0xff] %v20740_v60 }
 0x170   :  { %26184 = vst [vmem:[#allocation58_spill] sm:$0xff] %v20738_v27 }
 0x172   :  { %17228 = vmatmul.mubr.msk.f32.gmra.mrb[46].mxu0 %vm90_vm1, %v20722_v29  ;;  %v20748_v29 = vld [vmem:[#allocation2 + $0x2ba] sm:$0xff] }
 0x173   :  { %17230 = vmatprep.mubr.msk.f32.mxu0 %vm90_vm1, %v20724_v23  ;;  %v20746_v23 = vld [vmem:[#allocation2 + $0x2aa] sm:$0xff]  ;;  %26187 = vst [vmem:[#allocation61_spill] sm:$0xff] %v20748_v29 }
 0x174   :  { %26186 = vst [vmem:[#allocation60_spill] sm:$0xff] %v20746_v23 }
 0x176   :  { %17231 = vmatmul.mubr.msk.f32.gmra.mrb[48].mxu0 %vm90_vm1, %v20730_v22  ;;  %v20756_v22 = vld [vmem:[#allocation2 + $0x2d2] sm:$0xff] }
 0x177   :  { %17233 = vmatprep.mubr.msk.f32.mxu0 %vm90_vm1, %v20732_v26  ;;  %v20754_v26 = vld [vmem:[#allocation2 + $0x2c2] sm:$0xff]  ;;  %26189 = vst [vmem:[#allocation63_spill] sm:$0xff] %v20756_v22 }
 0x178   :  { %26188 = vst [vmem:[#allocation62_spill] sm:$0xff] %v20754_v26 }
 0x17a   :  { %17234 = vmatmul.mubr.msk.f32.gmra.mrb[50].mxu0 %vm90_vm1, %v20738_v27  ;;  %v20764_v27 = vld [vmem:[#allocation2 + $0x2ea] sm:$0xff] }
 0x17b   :  { %17236 = vmatprep.mubr.msk.f32.mxu0 %vm90_vm1, %v20740_v60  ;;  %v20762_v60 = vld [vmem:[#allocation2 + $0x2da] sm:$0xff]  ;;  %26191 = vst [vmem:[#allocation65_spill] sm:$0xff] %v20764_v27 }
 0x17c   :  { %26190 = vst [vmem:[#allocation64_spill] sm:$0xff] %v20762_v60 }
 0x17e   :  { %17237 = vmatmul.mubr.msk.f32.gmra.mrb[52].mxu0 %vm90_vm1, %v20746_v23  ;;  %v88_v23 = vld [vmem:[%s25896_s0 + $0x1f0] sm:$0xff] }
 0x17f   :  { %17239 = vmatprep.mubr.msk.f32.mxu0 %vm90_vm1, %v20748_v29  ;;  %v263_v29 = vrot.slane %v88_v23, 7 }
 0x181   :  { %v393_v21 = vsel %vm169_vm3, 0.0, %v263_v29 }
 0x182   :  { %17240 = vmatmul.mubr.msk.f32.gmra.mrb[54].mxu0 %vm90_vm1, %v20754_v26  ;;  %v264_v26 = vrot.slane %v20774_v1, 7  ;;  %520 = vst.msk [vmem:[#allocation2 + $0x330] sm:$0xff] %vm90_vm1, %v393_v21  ;;  %v20801_v21 = vld [vmem:[#allocation2 + $0x322] sm:$0xff]  ;;  %v3235_v1 = vld [vmem:[#allocation2 + $0x19] sm:$0xff] }
 0x183   :  { %17242 = vmatprep.mubr.msk.f32.mxu0 %vm90_vm1, %v20756_v22  ;;  %v20778_v22 = vld [vmem:[#allocation2 + $0x2f2] sm:$0xff] }
 0x184   :  { %v265_v23 = vsel %vm169_vm3, %v263_v29, %v264_v26  ;;  %v20810_v29 = vld [vmem:[%s25895_s1 + $0x14] sm:$0xf] }
 0x185   :  { %521 = vst.msk [vmem:[#allocation2 + $0x338] sm:$0xff] %vm90_vm1, %v265_v23  ;;  %v21121_v23 = vld [vmem:[#allocation2 + $0x241] sm:$0xff] }
 0x186   :  { %17243 = vmatmul.mubr.msk.f32.gmra.mrb[56].mxu0 %vm90_vm1, %v20762_v60  ;;  %v20795_v60 = vld [vmem:[#allocation2 + $0x31a] sm:$0xff] }
 0x187   :  { %17245 = vmatprep.mubr.msk.f32.mxu0 %vm90_vm1, %v20764_v27  ;;  %v20793_v27 = vld [vmem:[#allocation2 + $0x30a] sm:$0xff] }
 0x18a   :  { %17246 = vmatmul.mubr.msk.f32.gmra.mrb[58].mxu0 %vm90_vm1, %v20778_v22 }
 0x18b   :  { %17248 = vmatprep.mubr.msk.f32.mxu0 %vm90_vm1, %v20781_v59 }
 0x18e   :  { %17249 = vmatmul.mubr.msk.f32.gmra.mrb[60].mxu0 %vm90_vm1, %v20793_v27 }
 0x18f   :  { %17251 = vmatprep.mubr.msk.f32.mxu0 %vm90_vm1, %v20795_v60 }
 0x192   :  { %17252 = vmatmul.mubr.msk.f32.gmra.mrb[62].mxu0 %vm90_vm1, %v20801_v21 }
 0x193   :  { %17256 = vmatprep.mubr.msk.f32.mxu0 %vm90_vm1, %v20270_v28  ;;  %v26192_v28 = vrot.slane %v20637_v25, 7  ;;  %v21113_v25 = vld [vmem:[#allocation2 + $0x229] sm:$0xff] }
 0x196   :  { %17257 = vmatmul.mubr.msk.f32.vlgmr.msra.gmra.mrb[0].mxu0 %vm90_vm1, %v20282_v30  ;;  %v409_v30 = vsel %vm169_vm3, %v26192_v28, 0.0  ;;  %v21129_v28 = vld [vmem:[#allocation2 + $0x259] sm:$0xff] }
 0x197   :  { %17353 = vmatpush3.msk.msra.mxu0 %vm846_vm0, %v20528_v24  ;;  %17259 = vmatprep.mubr.msk.f32.mxu0 %vm90_vm1, %v20284_v31  ;;  %474 = vst.msk [vmem:[#allocation2 + $0x190] sm:$0x3] %vm93_vm2, %v409_v30  ;;  %v20876_v31 = vld [vmem:[#allocation2 + $0x180] sm:$0xff] }
 0x198   :  { %17450 = vmatprep.subr.msk.mxu0 %vm846_vm0, %v20810_v29  ;;  %v21111_v24 = vld [vmem:[#allocation2 + $0x219] sm:$0xff]  ;;  %v21135_v30 = vld [vmem:[#allocation2 + $0x261] sm:$0xff] }
 0x19a   :  { %17260 = vmatmul.mubr.msk.f32.gmra.mrb[2].mxu0 %vm90_vm1, %v20292_v32  ;;  %v20882_v32 = vld [vmem:[#allocation2 + $0x188] sm:$0xff] }
 0x19b   :  { %17262 = vmatprep.mubr.msk.f32.mxu0 %vm90_vm1, %v20294_v33  ;;  %v26193_v33 = vld [vmem:[#allocation4_spill] sm:$0xff] }
 0x19e   :  { %17263 = vmatmul.mubr.msk.f32.gmra.mrb[4].mxu0 %vm90_vm1, %v20300_v34  ;;  %v26194_v34 = vld [vmem:[#allocation5_spill] sm:$0xff] }
 0x19f   :  { %17265 = vmatprep.mubr.msk.f32.mxu0 %vm90_vm1, %v20302_v35  ;;  %v26195_v35 = vld [vmem:[#allocation6_spill] sm:$0xff] }
 0x1a2   :  { %17266 = vmatmul.mubr.msk.f32.gmra.mrb[6].mxu0 %vm90_vm1, %v20308_v36  ;;  %v26196_v36 = vld [vmem:[#allocation7_spill] sm:$0xff] }
 0x1a3   :  { %17268 = vmatprep.mubr.msk.f32.mxu0 %vm90_vm1, %v20310_v37  ;;  %v425_v37 = vsel %vm169_vm3, %v264_v26, 0.0  ;;  %v21119_v26 = vld [vmem:[#allocation2 + $0x231] sm:$0xff] }
 0x1a4   :  { %522 = vst.msk [vmem:[#allocation2 + $0x340] sm:$0x3] %vm93_vm2, %v425_v37  ;;  %v21153_v37 = vld [vmem:[#allocation2 + $0x2a1] sm:$0xff] }
 0x1a5   :  { %26200 = vst [vmem:[#allocation4_spill] sm:$0xff] %v21153_v37 }
 0x1a6   :  { %17269 = vmatmul.mubr.msk.f32.gmra.mrb[8].mxu0 %vm90_vm1, %v20316_v38  ;;  %v26197_v38 = vld [vmem:[#allocation8_spill] sm:$0xff] }
 0x1a7   :  { %17271 = vmatprep.mubr.msk.f32.mxu0 %vm90_vm1, %v20318_v39  ;;  %v26198_v39 = vld [vmem:[#allocation9_spill] sm:$0xff] }
 0x1aa   :  { %17272 = vmatmul.mubr.msk.f32.gmra.mrb[10].mxu0 %vm90_vm1, %v20324_v40  ;;  %v20948_v40 = vld [vmem:[#allocation2 + $0x330] sm:$0xff] }
 0x1ab   :  { %17274 = vmatprep.mubr.msk.f32.mxu0 %vm90_vm1, %v20326_v41  ;;  %v26199_v41 = vld [vmem:[#allocation10_spill] sm:$0xff] }
 0x1ae   :  { %17275 = vmatmul.mubr.msk.f32.gmra.mrb[12].mxu0 %vm90_vm1, %v20332_v42  ;;  %v20954_v42 = vld [vmem:[#allocation2 + $0x338] sm:$0xff] }
 0x1af   :  { %17277 = vmatprep.mubr.msk.f32.mxu0 %vm90_vm1, %v20334_v43  ;;  %v3236_v43 = vld [vmem:[#allocation2 + $0x21] sm:$0xff] }
 0x1b2   :  { %17278 = vmatmul.mubr.msk.f32.gmra.mrb[14].mxu0 %vm90_vm1, %v20340_v44  ;;  %v20959_v44 = vld [vmem:[#allocation2 + $0x31] sm:$0xff] }
 0x1b3   :  { %17280 = vmatprep.mubr.msk.f32.mxu0 %vm90_vm1, %v20342_v45  ;;  %v20964_v45 = vld [vmem:[%s25895_s1 + $0x18] sm:$0xf] }
 0x1b6   :  { %17281 = vmatmul.mubr.msk.f32.gmra.mrb[16].mxu0 %vm90_vm1, %v20348_v46  ;;  %v20971_v46 = vld [vmem:[#allocation2 + $0x39] sm:$0xff] }
 0x1b7   :  { %17283 = vmatprep.mubr.msk.f32.mxu0 %vm90_vm1, %v20350_v47  ;;  %v20973_v47 = vld [vmem:[#allocation2 + $0x49] sm:$0xff] }
 0x1ba   :  { %17284 = vmatmul.mubr.msk.f32.gmra.mrb[18].mxu0 %vm90_vm1, %v20356_v48  ;;  %v20981_v48 = vld [vmem:[#allocation2 + $0x51] sm:$0xff] }
 0x1bb   :  { %17286 = vmatprep.mubr.msk.f32.mxu0 %vm90_vm1, %v20358_v49  ;;  %v20983_v49 = vld [vmem:[#allocation2 + $0x61] sm:$0xff] }
 0x1be   :  { %17287 = vmatmul.mubr.msk.f32.gmra.mrb[20].mxu0 %vm90_vm1, %v20364_v50  ;;  %v20989_v50 = vld [vmem:[#allocation2 + $0x69] sm:$0xff] }
 0x1bf   :  { %17289 = vmatprep.mubr.msk.f32.mxu0 %vm90_vm1, %v20366_v51  ;;  %v20991_v51 = vld [vmem:[#allocation2 + $0x79] sm:$0xff] }
 0x1c2   :  { %17290 = vmatmul.mubr.msk.f32.gmra.mrb[22].mxu0 %vm90_vm1, %v20372_v52  ;;  %v20997_v52 = vld [vmem:[#allocation2 + $0x81] sm:$0xff] }
 0x1c3   :  { %17292 = vmatprep.mubr.msk.f32.mxu0 %vm90_vm1, %v20374_v53  ;;  %v20999_v53 = vld [vmem:[#allocation2 + $0x91] sm:$0xff] }
 0x1c6   :  { %17293 = vmatmul.mubr.msk.f32.gmra.mrb[24].mxu0 %vm90_vm1, %v20380_v54  ;;  %v21005_v54 = vld [vmem:[#allocation2 + $0x99] sm:$0xff] }
 0x1c7   :  { %17295 = vmatprep.mubr.msk.f32.mxu0 %vm90_vm1, %v20382_v55  ;;  %v21007_v55 = vld [vmem:[#allocation2 + $0xa9] sm:$0xff] }
 0x1ca   :  { %17296 = vmatmul.mubr.msk.f32.gmra.mrb[26].mxu0 %vm90_vm1, %v20388_v56  ;;  %v21013_v56 = vld [vmem:[#allocation2 + $0xb1] sm:$0xff] }
 0x1cb   :  { %17298 = vmatprep.mubr.msk.f32.mxu0 %vm90_vm1, %v20390_v57  ;;  %v21015_v57 = vld [vmem:[#allocation2 + $0xc1] sm:$0xff] }
 0x1ce   :  { %17299 = vmatmul.mubr.msk.f32.gmra.mrb[28].mxu0 %vm90_vm1, %v20396_v58  ;;  %v21021_v58 = vld [vmem:[#allocation2 + $0xc9] sm:$0xff] }
 0x1cf   :  { %17301 = vmatprep.mubr.msk.f32.mxu0 %vm90_vm1, %v20876_v31 }
 0x1d2   :  { %17302 = vmatmul.mubr.msk.f32.gmra.mrb[30].mxu0 %vm90_vm1, %v20882_v32 }
 0x1d3   :  { %17304 = vmatprep.mubr.msk.f32.mxu0 %vm90_vm1, %v20401_v61  ;;  %v21023_v61 = vld [vmem:[#allocation2 + $0xd9] sm:$0xff] }
 0x1d6   :  { %17305 = vmatmul.mubr.msk.f32.gmra.mrb[32].mxu0 %vm90_vm1, %v20406_v62  ;;  %v21029_v62 = vld [vmem:[#allocation2 + $0xe1] sm:$0xff] }
 0x1d7   :  { %17307 = vmatprep.mubr.msk.f32.mxu0 %vm90_vm1, %v20408_v63  ;;  %v21031_v63 = vld [vmem:[#allocation2 + $0xf1] sm:$0xff] }
 0x1da   :  { %17308 = vmatmul.mubr.msk.f32.gmra.mrb[34].mxu0 %vm90_vm1, %v20414_v0  ;;  %v21037_v0 = vld [vmem:[#allocation2 + $0xf9] sm:$0xff] }
 0x1db   :  { %17310 = vmatprep.mubr.msk.f32.mxu0 %vm90_vm1, %v20416_v2  ;;  %v21039_v2 = vld [vmem:[#allocation2 + $0x109] sm:$0xff] }
 0x1de   :  { %17311 = vmatmul.mubr.msk.f32.gmra.mrb[36].mxu0 %vm90_vm1, %v20422_v3  ;;  %v21045_v3 = vld [vmem:[#allocation2 + $0x111] sm:$0xff] }
 0x1df   :  { %17313 = vmatprep.mubr.msk.f32.mxu0 %vm90_vm1, %v20424_v4  ;;  %v21047_v4 = vld [vmem:[#allocation2 + $0x121] sm:$0xff] }
 0x1e2   :  { %17314 = vmatmul.mubr.msk.f32.gmra.mrb[38].mxu0 %vm90_vm1, %v20430_v5  ;;  %v21053_v5 = vld [vmem:[#allocation2 + $0x129] sm:$0xff] }
 0x1e3   :  { %17316 = vmatprep.mubr.msk.f32.mxu0 %vm90_vm1, %v20432_v6  ;;  %v21055_v6 = vld [vmem:[#allocation2 + $0x139] sm:$0xff] }
 0x1e6   :  { %17317 = vmatmul.mubr.msk.f32.gmra.mrb[40].mxu0 %vm90_vm1, %v20438_v7  ;;  %v21061_v7 = vld [vmem:[#allocation2 + $0x141] sm:$0xff] }
 0x1e7   :  { %17319 = vmatprep.mubr.msk.f32.mxu0 %vm90_vm1, %v20440_v8  ;;  %v21063_v8 = vld [vmem:[#allocation2 + $0x151] sm:$0xff] }
 0x1ea   :  { %17320 = vmatmul.mubr.msk.f32.gmra.mrb[42].mxu0 %vm90_vm1, %v20446_v9  ;;  %v21069_v9 = vld [vmem:[#allocation2 + $0x159] sm:$0xff] }
 0x1eb   :  { %17322 = vmatprep.mubr.msk.f32.mxu0 %vm90_vm1, %v20448_v10  ;;  %v21071_v10 = vld [vmem:[#allocation2 + $0x169] sm:$0xff] }
 0x1ee   :  { %17323 = vmatmul.mubr.msk.f32.gmra.mrb[44].mxu0 %vm90_vm1, %v20454_v11  ;;  %v21077_v11 = vld [vmem:[#allocation2 + $0x171] sm:$0xff] }
 0x1ef   :  { %17325 = vmatprep.mubr.msk.f32.mxu0 %vm90_vm1, %v20456_v12  ;;  %v21079_v12 = vld [vmem:[#allocation2 + $0x181] sm:$0xff] }
 0x1f2   :  { %17326 = vmatmul.mubr.msk.f32.gmra.mrb[46].mxu0 %vm90_vm1, %v20462_v13  ;;  %v21085_v13 = vld [vmem:[#allocation2 + $0x189] sm:$0xff] }
 0x1f3   :  { %17328 = vmatprep.mubr.msk.f32.mxu0 %vm90_vm1, %v20464_v14  ;;  %v3267_v14 = vld [vmem:[#allocation2 + $0x1c9] sm:$0xff] }
 0x1f6   :  { %17329 = vmatmul.mubr.msk.f32.gmra.mrb[48].mxu0 %vm90_vm1, %v20470_v15  ;;  %v3268_v15 = vld [vmem:[#allocation2 + $0x1d1] sm:$0xff] }
 0x1f7   :  { %17331 = vmatprep.mubr.msk.f32.mxu0 %vm90_vm1, %v20472_v16  ;;  %v21090_v16 = vld [vmem:[#allocation2 + $0x1e1] sm:$0xff] }
 0x1fa   :  { %17332 = vmatmul.mubr.msk.f32.gmra.mrb[50].mxu0 %vm90_vm1, %v20478_v17  ;;  %v21095_v17 = vld [vmem:[#allocation2 + $0x1e9] sm:$0xff] }
 0x1fb   :  { %17334 = vmatprep.mubr.msk.f32.mxu0 %vm90_vm1, %v20480_v18  ;;  %v21097_v18 = vld [vmem:[#allocation2 + $0x1f9] sm:$0xff] }
 0x1fe   :  { %17335 = vmatmul.mubr.msk.f32.gmra.mrb[52].mxu0 %vm90_vm1, %v20486_v19  ;;  %v21103_v19 = vld [vmem:[#allocation2 + $0x201] sm:$0xff] }
 0x1ff   :  { %17337 = vmatprep.mubr.msk.f32.mxu0 %vm90_vm1, %v20488_v20  ;;  %v21105_v20 = vld [vmem:[#allocation2 + $0x211] sm:$0xff] }
 0x202   :  { %17338 = vmatmul.mubr.msk.f32.gmra.mrb[54].mxu0 %vm90_vm1, %v26193_v33  ;;  %v21137_v33 = vld [vmem:[#allocation2 + $0x271] sm:$0xff] }
 0x203   :  { %17340 = vmatprep.mubr.msk.f32.mxu0 %vm90_vm1, %v26194_v34  ;;  %v21143_v34 = vld [vmem:[#allocation2 + $0x279] sm:$0xff] }
 0x206   :  { %17341 = vmatmul.mubr.msk.f32.gmra.mrb[56].mxu0 %vm90_vm1, %v26195_v35  ;;  %v21145_v35 = vld [vmem:[#allocation2 + $0x289] sm:$0xff] }
 0x207   :  { %17343 = vmatprep.mubr.msk.f32.mxu0 %vm90_vm1, %v26196_v36  ;;  %v21151_v36 = vld [vmem:[#allocation2 + $0x291] sm:$0xff] }
 0x20a   :  { %17344 = vmatmul.mubr.msk.f32.gmra.mrb[58].mxu0 %vm90_vm1, %v26197_v38  ;;  %v21159_v38 = vld [vmem:[#allocation2 + $0x2a9] sm:$0xff] }
 0x20b   :  { %17346 = vmatprep.mubr.msk.f32.mxu0 %vm90_vm1, %v26198_v39  ;;  %26201 = vst [vmem:[#allocation5_spill] sm:$0xff] %v21159_v38  ;;  %v21161_v39 = vld [vmem:[#allocation2 + $0x2b9] sm:$0xff] }
 0x20c   :  { %26202 = vst [vmem:[#allocation6_spill] sm:$0xff] %v21161_v39 }
 0x20e   :  { %17347 = vmatmul.mubr.msk.f32.gmra.mrb[60].mxu0 %vm90_vm1, %v26199_v41  ;;  %v21167_v41 = vld [vmem:[#allocation2 + $0x2c1] sm:$0xff] }
 0x20f   :  { %17349 = vmatprep.mubr.msk.f32.mxu0 %vm90_vm1, %v20948_v40  ;;  %26203 = vst [vmem:[#allocation7_spill] sm:$0xff] %v21167_v41 }
 0x212   :  { %17350 = vmatmul.mubr.msk.f32.gmra.mrb[62].mxu0 %vm90_vm1, %v20954_v42 }
 0x213   :  { %17354 = vmatprep.mubr.msk.f32.mxu0 %vm90_vm1, %v3235_v1  ;;  %v21169_v1 = vld [vmem:[#allocation2 + $0x2d1] sm:$0xff] }
 0x214   :  { %26204 = vst [vmem:[#allocation8_spill] sm:$0xff] %v21169_v1 }
 0x216   :  { %17355 = vmatmul.mubr.msk.f32.vlgmr.msra.gmra.mrb[0].mxu0 %vm90_vm1, %v3236_v43  ;;  %v21175_v43 = vld [vmem:[#allocation2 + $0x2d9] sm:$0xff] }
 0x217   :  { %17451 = vmatpush3.msk.msra.mxu0 %vm846_vm0, %v20810_v29  ;;  %17357 = vmatprep.mubr.msk.f32.mxu0 %vm90_vm1, %v20959_v44  ;;  %v21127_v29 = vld [vmem:[#allocation2 + $0x249] sm:$0xff]  ;;  %26205 = vst [vmem:[#allocation9_spill] sm:$0xff] %v21175_v43 }
 0x218   :  { %17548 = vmatprep.subr.msk.mxu0 %vm846_vm0, %v20964_v45 }
 0x21a   :  { %17358 = vmatmul.mubr.msk.f32.gmra.mrb[2].mxu0 %vm90_vm1, %v20971_v46 }
 0x21b   :  { %17360 = vmatprep.mubr.msk.f32.mxu0 %vm90_vm1, %v20973_v47 }
 0x21e   :  { %17361 = vmatmul.mubr.msk.f32.gmra.mrb[4].mxu0 %vm90_vm1, %v20981_v48 }
 0x21f   :  { %17363 = vmatprep.mubr.msk.f32.mxu0 %vm90_vm1, %v20983_v49 }
 0x222   :  { %17364 = vmatmul.mubr.msk.f32.gmra.mrb[6].mxu0 %vm90_vm1, %v20989_v50 }
 0x223   :  { %17366 = vmatprep.mubr.msk.f32.mxu0 %vm90_vm1, %v20991_v51 }
 0x226   :  { %17367 = vmatmul.mubr.msk.f32.gmra.mrb[8].mxu0 %vm90_vm1, %v20997_v52 }
 0x227   :  { %17369 = vmatprep.mubr.msk.f32.mxu0 %vm90_vm1, %v20999_v53 }
 0x22a   :  { %17370 = vmatmul.mubr.msk.f32.gmra.mrb[10].mxu0 %vm90_vm1, %v21005_v54 }
 0x22b   :  { %17372 = vmatprep.mubr.msk.f32.mxu0 %vm90_vm1, %v21007_v55 }
 0x22e   :  { %17373 = vmatmul.mubr.msk.f32.gmra.mrb[12].mxu0 %vm90_vm1, %v21013_v56 }
 0x22f   :  { %17375 = vmatprep.mubr.msk.f32.mxu0 %vm90_vm1, %v21015_v57 }
 0x232   :  { %17376 = vmatmul.mubr.msk.f32.gmra.mrb[14].mxu0 %vm90_vm1, %v21021_v58 }
 0x233   :  { %17378 = vmatprep.mubr.msk.f32.mxu0 %vm90_vm1, %v21023_v61 }
 0x236   :  { %17379 = vmatmul.mubr.msk.f32.gmra.mrb[16].mxu0 %vm90_vm1, %v21029_v62 }
 0x237   :  { %17381 = vmatprep.mubr.msk.f32.mxu0 %vm90_vm1, %v21031_v63 }
 0x23a   :  { %17382 = vmatmul.mubr.msk.f32.gmra.mrb[18].mxu0 %vm90_vm1, %v21037_v0 }
 0x23b   :  { %17384 = vmatprep.mubr.msk.f32.mxu0 %vm90_vm1, %v21039_v2 }
 0x23e   :  { %17385 = vmatmul.mubr.msk.f32.gmra.mrb[20].mxu0 %vm90_vm1, %v21045_v3 }
 0x23f   :  { %17387 = vmatprep.mubr.msk.f32.mxu0 %vm90_vm1, %v21047_v4 }
 0x242   :  { %17388 = vmatmul.mubr.msk.f32.gmra.mrb[22].mxu0 %vm90_vm1, %v21053_v5 }
 0x243   :  { %17390 = vmatprep.mubr.msk.f32.mxu0 %vm90_vm1, %v21055_v6 }
 0x246   :  { %17391 = vmatmul.mubr.msk.f32.gmra.mrb[24].mxu0 %vm90_vm1, %v21061_v7 }
 0x247   :  { %17393 = vmatprep.mubr.msk.f32.mxu0 %vm90_vm1, %v21063_v8 }
 0x24a   :  { %17394 = vmatmul.mubr.msk.f32.gmra.mrb[26].mxu0 %vm90_vm1, %v21069_v9 }
 0x24b   :  { %17396 = vmatprep.mubr.msk.f32.mxu0 %vm90_vm1, %v21071_v10 }
 0x24e   :  { %17397 = vmatmul.mubr.msk.f32.gmra.mrb[28].mxu0 %vm90_vm1, %v21077_v11 }
 0x24f   :  { %17399 = vmatprep.mubr.msk.f32.mxu0 %vm90_vm1, %v21079_v12 }
 0x252   :  { %17400 = vmatmul.mubr.msk.f32.gmra.mrb[30].mxu0 %vm90_vm1, %v21085_v13 }
 0x253   :  { %17402 = vmatprep.mubr.msk.f32.mxu0 %vm90_vm1, %v3267_v14  ;;  %v21177_v14 = vld [vmem:[#allocation2 + $0x2e9] sm:$0xff] }
 0x254   :  { %26206 = vst [vmem:[#allocation10_spill] sm:$0xff] %v21177_v14 }
 0x256   :  { %17403 = vmatmul.mubr.msk.f32.gmra.mrb[32].mxu0 %vm90_vm1, %v3268_v15  ;;  %v21183_v15 = vld [vmem:[#allocation2 + $0x2f1] sm:$0xff] }
 0x257   :  { %17405 = vmatprep.mubr.msk.f32.mxu0 %vm90_vm1, %v21090_v16  ;;  %26207 = vst [vmem:[#allocation66_spill] sm:$0xff] %v21183_v15 }
 0x25a   :  { %17406 = vmatmul.mubr.msk.f32.gmra.mrb[34].mxu0 %vm90_vm1, %v21095_v17 }
 0x25b   :  { %17408 = vmatprep.mubr.msk.f32.mxu0 %vm90_vm1, %v21097_v18 }
 0x25e   :  { %17409 = vmatmul.mubr.msk.f32.gmra.mrb[36].mxu0 %vm90_vm1, %v21103_v19 }
 0x25f   :  { %17411 = vmatprep.mubr.msk.f32.mxu0 %vm90_vm1, %v21105_v20 }
 0x262   :  { %17412 = vmatmul.mubr.msk.f32.gmra.mrb[38].mxu0 %vm90_vm1, %v21111_v24 }
 0x263   :  { %17414 = vmatprep.mubr.msk.f32.mxu0 %vm90_vm1, %v21113_v25 }
 0x266   :  { %17415 = vmatmul.mubr.msk.f32.gmra.mrb[40].mxu0 %vm90_vm1, %v21119_v26 }
 0x267   :  { %17417 = vmatprep.mubr.msk.f32.mxu0 %vm90_vm1, %v21121_v23 }
 0x26a   :  { %17418 = vmatmul.mubr.msk.f32.gmra.mrb[42].mxu0 %vm90_vm1, %v21127_v29 }
 0x26b   :  { %17420 = vmatprep.mubr.msk.f32.mxu0 %vm90_vm1, %v21129_v28 }
 0x26e   :  { %17421 = vmatmul.mubr.msk.f32.gmra.mrb[44].mxu0 %vm90_vm1, %v21135_v30 }
 0x26f   :  { %17423 = vmatprep.mubr.msk.f32.mxu0 %vm90_vm1, %v21137_v33 }
 0x272   :  { %17424 = vmatmul.mubr.msk.f32.gmra.mrb[46].mxu0 %vm90_vm1, %v21143_v34 }
 0x273   :  { %17426 = vmatprep.mubr.msk.f32.mxu0 %vm90_vm1, %v21145_v35 }
 0x276   :  { %17427 = vmatmul.mubr.msk.f32.gmra.mrb[48].mxu0 %vm90_vm1, %v21151_v36 }
 0x277   :  { %17429 = vmatprep.mubr.msk.f32.mxu0 %vm90_vm1, %v21153_v37  ;;  %v26224_v37 = vld [vmem:[#allocation21_spill] sm:$0xff] }
 0x27a   :  { %17430 = vmatmul.mubr.msk.f32.gmra.mrb[50].mxu0 %vm90_vm1, %v21159_v38  ;;  %v26220_v38 = vld [vmem:[#allocation17_spill] sm:$0xff] }
 0x27b   :  { %17432 = vmatprep.mubr.msk.f32.mxu0 %vm90_vm1, %v21161_v39  ;;  %v21185_v39 = vld [vmem:[#allocation2 + $0x301] sm:$0xff] }
 0x27c   :  { %26208 = vst [vmem:[#allocation67_spill] sm:$0xff] %v21185_v39 }
 0x27e   :  { %17433 = vmatmul.mubr.msk.f32.gmra.mrb[52].mxu0 %vm90_vm1, %v21167_v41  ;;  %v21193_v41 = vld [vmem:[#allocation2 + $0x319] sm:$0xff] }
 0x27f   :  { %17435 = vmatprep.mubr.msk.f32.mxu0 %vm90_vm1, %v21169_v1  ;;  %v21191_v1 = vld [vmem:[#allocation2 + $0x309] sm:$0xff]  ;;  %26210 = vst [vmem:[#allocation69_spill] sm:$0xff] %v21193_v41 }
 0x280   :  { %26209 = vst [vmem:[#allocation68_spill] sm:$0xff] %v21191_v1 }
 0x282   :  { %17436 = vmatmul.mubr.msk.f32.gmra.mrb[54].mxu0 %vm90_vm1, %v21175_v43  ;;  %v21201_v43 = vld [vmem:[#allocation2 + $0x331] sm:$0xff] }
 0x283   :  { %17438 = vmatprep.mubr.msk.f32.mxu0 %vm90_vm1, %v21177_v14  ;;  %v21199_v14 = vld [vmem:[#allocation2 + $0x321] sm:$0xff]  ;;  %26212 = vst [vmem:[#allocation71_spill] sm:$0xff] %v21201_v43 }
 0x284   :  { %26211 = vst [vmem:[#allocation70_spill] sm:$0xff] %v21199_v14 }
 0x286   :  { %17439 = vmatmul.mubr.msk.f32.gmra.mrb[56].mxu0 %vm90_vm1, %v21183_v15  ;;  %v26214_v15 = vld [vmem:[#allocation11_spill] sm:$0xff] }
 0x287   :  { %17441 = vmatprep.mubr.msk.f32.mxu0 %vm90_vm1, %v21185_v39  ;;  %v21207_v39 = vld [vmem:[#allocation2 + $0x339] sm:$0xff] }
 0x288   :  { %26213 = vst [vmem:[#allocation72_spill] sm:$0xff] %v21207_v39 }
 0x28a   :  { %17442 = vmatmul.mubr.msk.f32.gmra.mrb[58].mxu0 %vm90_vm1, %v21191_v1  ;;  %v26215_v1 = vld [vmem:[#allocation12_spill] sm:$0xff] }
 0x28b   :  { %17444 = vmatprep.mubr.msk.f32.mxu0 %vm90_vm1, %v21193_v41  ;;  %v21216_v41 = vld [vmem:[%s25895_s1 + $0x1c] sm:$0xf] }
 0x28e   :  { %17445 = vmatmul.mubr.msk.f32.gmra.mrb[60].mxu0 %vm90_vm1, %v21199_v14  ;;  %v26219_v14 = vld [vmem:[#allocation16_spill] sm:$0xff] }
 0x28f   :  { %17447 = vmatprep.mubr.msk.f32.mxu0 %vm90_vm1, %v21201_v43  ;;  %v26216_v43 = vld [vmem:[#allocation13_spill] sm:$0xff] }
 0x292   :  { %17448 = vmatmul.mubr.msk.f32.gmra.mrb[62].mxu0 %vm90_vm1, %v21207_v39  ;;  %v26217_v39 = vld [vmem:[#allocation14_spill] sm:$0xff] }
 0x293   :  { %17452 = vmatprep.mubr.msk.f32.mxu0 %vm90_vm1, %v26214_v15  ;;  %v26218_v15 = vld [vmem:[#allocation15_spill] sm:$0xff] }
 0x296   :  { %17453 = vmatmul.mubr.msk.f32.vlgmr.msra.gmra.mrb[0].mxu0 %vm90_vm1, %v26215_v1  ;;  %v26221_v1 = vld [vmem:[#allocation18_spill] sm:$0xff] }
 0x297   :  { %17549 = vmatpush3.msk.msra.mxu0 %vm846_vm0, %v20964_v45  ;;  %17455 = vmatprep.mubr.msk.f32.mxu0 %vm90_vm1, %v26216_v43  ;;  %v26222_v45 = vld [vmem:[#allocation19_spill] sm:$0xff]  ;;  %v26223_v43 = vld [vmem:[#allocation20_spill] sm:$0xff] }
 0x298   :  { %17646 = vmatprep.subr.msk.mxu0 %vm846_vm0, %v21216_v41 }
 0x29a   :  { %17456 = vmatmul.mubr.msk.f32.gmra.mrb[2].mxu0 %vm90_vm1, %v26217_v39  ;;  %v26225_v39 = vld [vmem:[#allocation22_spill] sm:$0xff] }
 0x29b   :  { %17458 = vmatprep.mubr.msk.f32.mxu0 %vm90_vm1, %v26218_v15  ;;  %v26226_v15 = vld [vmem:[#allocation23_spill] sm:$0xff] }
 0x29e   :  { %17459 = vmatmul.mubr.msk.f32.gmra.mrb[4].mxu0 %vm90_vm1, %v26219_v14  ;;  %v26227_v14 = vld [vmem:[#allocation24_spill] sm:$0xff] }
 0x29f   :  { %17461 = vmatprep.mubr.msk.f32.mxu0 %vm90_vm1, %v26220_v38  ;;  %v26228_v38 = vld [vmem:[#allocation25_spill] sm:$0xff] }
 0x2a2   :  { %17462 = vmatmul.mubr.msk.f32.gmra.mrb[6].mxu0 %vm90_vm1, %v26221_v1  ;;  %v26229_v1 = vld [vmem:[#allocation26_spill] sm:$0xff] }
 0x2a3   :  { %17464 = vmatprep.mubr.msk.f32.mxu0 %vm90_vm1, %v26222_v45  ;;  %v26230_v45 = vld [vmem:[#allocation27_spill] sm:$0xff] }
 0x2a6   :  { %17465 = vmatmul.mubr.msk.f32.gmra.mrb[8].mxu0 %vm90_vm1, %v26223_v43  ;;  %v26231_v43 = vld [vmem:[#allocation28_spill] sm:$0xff] }
 0x2a7   :  { %17467 = vmatprep.mubr.msk.f32.mxu0 %vm90_vm1, %v26224_v37  ;;  %v26232_v37 = vld [vmem:[#allocation29_spill] sm:$0xff] }
 0x2aa   :  { %17468 = vmatmul.mubr.msk.f32.gmra.mrb[10].mxu0 %vm90_vm1, %v26225_v39  ;;  %v26233_v39 = vld [vmem:[#allocation30_spill] sm:$0xff] }
 0x2ab   :  { %17470 = vmatprep.mubr.msk.f32.mxu0 %vm90_vm1, %v26226_v15  ;;  %v26234_v15 = vld [vmem:[#allocation31_spill] sm:$0xff] }
 0x2ae   :  { %17471 = vmatmul.mubr.msk.f32.gmra.mrb[12].mxu0 %vm90_vm1, %v26227_v14  ;;  %v26235_v14 = vld [vmem:[#allocation32_spill] sm:$0xff] }
 0x2af   :  { %17473 = vmatprep.mubr.msk.f32.mxu0 %vm90_vm1, %v26228_v38  ;;  %v26236_v38 = vld [vmem:[#allocation33_spill] sm:$0xff] }
 0x2b2   :  { %17474 = vmatmul.mubr.msk.f32.gmra.mrb[14].mxu0 %vm90_vm1, %v26229_v1  ;;  %v26237_v1 = vld [vmem:[#allocation34_spill] sm:$0xff] }
 0x2b3   :  { %17476 = vmatprep.mubr.msk.f32.mxu0 %vm90_vm1, %v26230_v45  ;;  %v26238_v45 = vld [vmem:[#allocation35_spill] sm:$0xff] }
 0x2b6   :  { %17477 = vmatmul.mubr.msk.f32.gmra.mrb[16].mxu0 %vm90_vm1, %v26231_v43  ;;  %v26239_v43 = vld [vmem:[#allocation36_spill] sm:$0xff] }
 0x2b7   :  { %17479 = vmatprep.mubr.msk.f32.mxu0 %vm90_vm1, %v26232_v37  ;;  %v26240_v37 = vld [vmem:[#allocation37_spill] sm:$0xff] }
 0x2ba   :  { %17480 = vmatmul.mubr.msk.f32.gmra.mrb[18].mxu0 %vm90_vm1, %v26233_v39  ;;  %v26241_v39 = vld [vmem:[#allocation38_spill] sm:$0xff] }
 0x2bb   :  { %17482 = vmatprep.mubr.msk.f32.mxu0 %vm90_vm1, %v26234_v15  ;;  %v26242_v15 = vld [vmem:[#allocation39_spill] sm:$0xff] }
 0x2be   :  { %17483 = vmatmul.mubr.msk.f32.gmra.mrb[20].mxu0 %vm90_vm1, %v26235_v14  ;;  %v21278_v14 = vld [vmem:[#allocation2 + $0x182] sm:$0xff] }
 0x2bf   :  { %17485 = vmatprep.mubr.msk.f32.mxu0 %vm90_vm1, %v26236_v38  ;;  %26243 = vst [vmem:[#allocation11_spill] sm:$0xff] %v21278_v14  ;;  %v26244_v38 = vld [vmem:[#allocation40_spill] sm:$0xff] }
 0x2c2   :  { %17486 = vmatmul.mubr.msk.f32.gmra.mrb[22].mxu0 %vm90_vm1, %v26237_v1  ;;  %v21284_v1 = vld [vmem:[#allocation2 + $0x18a] sm:$0xff] }
 0x2c3   :  { %17488 = vmatprep.mubr.msk.f32.mxu0 %vm90_vm1, %v26238_v45  ;;  %26245 = vst [vmem:[#allocation12_spill] sm:$0xff] %v21284_v1  ;;  %v26246_v45 = vld [vmem:[#allocation41_spill] sm:$0xff] }
 0x2c6   :  { %17489 = vmatmul.mubr.msk.f32.gmra.mrb[24].mxu0 %vm90_vm1, %v26239_v43  ;;  %v26247_v43 = vld [vmem:[#allocation42_spill] sm:$0xff] }
 0x2c7   :  { %17491 = vmatprep.mubr.msk.f32.mxu0 %vm90_vm1, %v26240_v37  ;;  %v26248_v37 = vld [vmem:[#allocation43_spill] sm:$0xff] }
 0x2ca   :  { %17492 = vmatmul.mubr.msk.f32.gmra.mrb[26].mxu0 %vm90_vm1, %v26241_v39  ;;  %v26249_v39 = vld [vmem:[#allocation44_spill] sm:$0xff] }
 0x2cb   :  { %17494 = vmatprep.mubr.msk.f32.mxu0 %vm90_vm1, %v26242_v15  ;;  %v26250_v15 = vld [vmem:[#allocation45_spill] sm:$0xff] }
 0x2ce   :  { %17495 = vmatmul.mubr.msk.f32.gmra.mrb[28].mxu0 %vm90_vm1, %v26244_v38  ;;  %v26251_v38 = vld [vmem:[#allocation46_spill] sm:$0xff] }
 0x2cf   :  { %17497 = vmatprep.mubr.msk.f32.mxu0 %vm90_vm1, %v21278_v14  ;;  %v26252_v14 = vld [vmem:[#allocation47_spill] sm:$0xff] }
 0x2d2   :  { %17498 = vmatmul.mubr.msk.f32.gmra.mrb[30].mxu0 %vm90_vm1, %v21284_v1  ;;  %v26253_v1 = vld [vmem:[#allocation48_spill] sm:$0xff] }
 0x2d3   :  { %17500 = vmatprep.mubr.msk.f32.mxu0 %vm90_vm1, %v26246_v45  ;;  %v26254_v45 = vld [vmem:[#allocation49_spill] sm:$0xff] }
 0x2d6   :  { %17501 = vmatmul.mubr.msk.f32.gmra.mrb[32].mxu0 %vm90_vm1, %v26247_v43  ;;  %v26255_v43 = vld [vmem:[#allocation50_spill] sm:$0xff] }
 0x2d7   :  { %17503 = vmatprep.mubr.msk.f32.mxu0 %vm90_vm1, %v26248_v37  ;;  %v26256_v37 = vld [vmem:[#allocation51_spill] sm:$0xff] }
 0x2da   :  { %17504 = vmatmul.mubr.msk.f32.gmra.mrb[34].mxu0 %vm90_vm1, %v26249_v39  ;;  %v26257_v39 = vld [vmem:[#allocation52_spill] sm:$0xff] }
 0x2db   :  { %17506 = vmatprep.mubr.msk.f32.mxu0 %vm90_vm1, %v26250_v15  ;;  %v26258_v15 = vld [vmem:[#allocation53_spill] sm:$0xff] }
 0x2de   :  { %17507 = vmatmul.mubr.msk.f32.gmra.mrb[36].mxu0 %vm90_vm1, %v26251_v38  ;;  %v26259_v38 = vld [vmem:[#allocation54_spill] sm:$0xff] }
 0x2df   :  { %17509 = vmatprep.mubr.msk.f32.mxu0 %vm90_vm1, %v26252_v14  ;;  %v26260_v14 = vld [vmem:[#allocation55_spill] sm:$0xff] }
 0x2e2   :  { %17510 = vmatmul.mubr.msk.f32.gmra.mrb[38].mxu0 %vm90_vm1, %v26253_v1  ;;  %v26261_v1 = vld [vmem:[#allocation56_spill] sm:$0xff] }
 0x2e3   :  { %17512 = vmatprep.mubr.msk.f32.mxu0 %vm90_vm1, %v26254_v45  ;;  %v26262_v45 = vld [vmem:[#allocation57_spill] sm:$0xff] }
 0x2e6   :  { %17513 = vmatmul.mubr.msk.f32.gmra.mrb[40].mxu0 %vm90_vm1, %v26255_v43  ;;  %v26263_v43 = vld [vmem:[#allocation58_spill] sm:$0xff] }
 0x2e7   :  { %17515 = vmatprep.mubr.msk.f32.mxu0 %vm90_vm1, %v26256_v37  ;;  %v26264_v37 = vld [vmem:[#allocation59_spill] sm:$0xff] }
 0x2ea   :  { %17516 = vmatmul.mubr.msk.f32.gmra.mrb[42].mxu0 %vm90_vm1, %v26257_v39  ;;  %v26265_v39 = vld [vmem:[#allocation60_spill] sm:$0xff] }
 0x2eb   :  { %17518 = vmatprep.mubr.msk.f32.mxu0 %vm90_vm1, %v26258_v15  ;;  %v26266_v15 = vld [vmem:[#allocation61_spill] sm:$0xff] }
 0x2ee   :  { %17519 = vmatmul.mubr.msk.f32.gmra.mrb[44].mxu0 %vm90_vm1, %v26259_v38  ;;  %v26267_v38 = vld [vmem:[#allocation62_spill] sm:$0xff] }
 0x2ef   :  { %17521 = vmatprep.mubr.msk.f32.mxu0 %vm90_vm1, %v26260_v14  ;;  %v26268_v14 = vld [vmem:[#allocation63_spill] sm:$0xff] }
 0x2f2   :  { %17522 = vmatmul.mubr.msk.f32.gmra.mrb[46].mxu0 %vm90_vm1, %v26261_v1  ;;  %v26269_v1 = vld [vmem:[#allocation64_spill] sm:$0xff] }
 0x2f3   :  { %17524 = vmatprep.mubr.msk.f32.mxu0 %vm90_vm1, %v26262_v45  ;;  %v26270_v45 = vld [vmem:[#allocation65_spill] sm:$0xff] }
 0x2f6   :  { %17525 = vmatmul.mubr.msk.f32.gmra.mrb[48].mxu0 %vm90_vm1, %v26263_v43  ;;  %v21346_v43 = vld [vmem:[#allocation2 + $0x332] sm:$0xff] }
 0x2f7   :  { %17527 = vmatprep.mubr.msk.f32.mxu0 %vm90_vm1, %v26264_v37  ;;  %v21352_v37 = vld [vmem:[#allocation2 + $0x33a] sm:$0xff] }
 0x2fa   :  { %17528 = vmatmul.mubr.msk.f32.gmra.mrb[50].mxu0 %vm90_vm1, %v26265_v39  ;;  %v4660_v39 = vld [vmem:[#allocation2 + $0x60] sm:$0xff] }
 0x2fb   :  { %17530 = vmatprep.mubr.msk.f32.mxu0 %vm90_vm1, %v26266_v15  ;;  %v4661_v15 = vld [vmem:[#allocation2 + $0x68] sm:$0xff] }
 0x2fe   :  { %17531 = vmatmul.mubr.msk.f32.gmra.mrb[52].mxu0 %vm90_vm1, %v26267_v38  ;;  %v4662_v38 = vld [vmem:[#allocation2 + $0x78] sm:$0xff] }
 0x2ff   :  { %17533 = vmatprep.mubr.msk.f32.mxu0 %vm90_vm1, %v26268_v14  ;;  %v4663_v14 = vld [vmem:[#allocation2 + $0x80] sm:$0xff] }
 0x302   :  { %17534 = vmatmul.mubr.msk.f32.gmra.mrb[54].mxu0 %vm90_vm1, %v26269_v1  ;;  %v4664_v1 = vld [vmem:[#allocation2 + $0x90] sm:$0xff] }
 0x303   :  { %17536 = vmatprep.mubr.msk.f32.mxu0 %vm90_vm1, %v26270_v45  ;;  %v4666_v45 = vld [vmem:[#allocation2 + $0xa8] sm:$0xff] }
 0x306   :  { %17537 = vmatmul.mubr.msk.f32.gmra.mrb[56].mxu0 %vm90_vm1, %v20778_v22  ;;  %v4656_v22 = vld [vmem:[#allocation2 + $0x30] sm:$0xff] }
 0x307   :  { %17539 = vmatprep.mubr.msk.f32.mxu0 %vm90_vm1, %v20781_v59  ;;  %v4657_v59 = vld [vmem:[#allocation2 + $0x38] sm:$0xff] }
 0x30a   :  { %17540 = vmatmul.mubr.msk.f32.gmra.mrb[58].mxu0 %vm90_vm1, %v20793_v27  ;;  %v4658_v27 = vld [vmem:[#allocation2 + $0x48] sm:$0xff] }
 0x30b   :  { %17542 = vmatprep.mubr.msk.f32.mxu0 %vm90_vm1, %v20795_v60  ;;  %v21360_v60 = vld [vmem:[%s25895_s1 + $0x20] sm:$0xf] }
 0x30e   :  { %17543 = vmatmul.mubr.msk.f32.gmra.mrb[60].mxu0 %vm90_vm1, %v20801_v21  ;;  %v4659_v21 = vld [vmem:[#allocation2 + $0x50] sm:$0xff] }
 0x30f   :  { %17545 = vmatprep.mubr.msk.f32.mxu0 %vm90_vm1, %v21346_v43 }
 0x312   :  { %17546 = vmatmul.mubr.msk.f32.gmra.mrb[62].mxu0 %vm90_vm1, %v21352_v37 }
 0x313   :  { %17550 = vmatprep.mubr.msk.f32.mxu0 %vm90_vm1, %v4656_v22  ;;  %v4667_v22 = vld [vmem:[#allocation2 + $0xb0] sm:$0xff] }
 0x316   :  { %17551 = vmatmul.mubr.msk.f32.vlgmr.msra.gmra.mrb[0].mxu0 %vm90_vm1, %v4657_v59  ;;  %v4668_v59 = vld [vmem:[#allocation2 + $0xc0] sm:$0xff] }
 0x317   :  { %17647 = vmatpush3.msk.msra.mxu0 %vm846_vm0, %v21216_v41  ;;  %17553 = vmatprep.mubr.msk.f32.mxu0 %vm90_vm1, %v4658_v27  ;;  %v4665_v41 = vld [vmem:[#allocation2 + $0x98] sm:$0xff]  ;;  %v4669_v27 = vld [vmem:[#allocation2 + $0xc8] sm:$0xff] }
 0x318   :  { %17744 = vmatprep.subr.msk.mxu0 %vm846_vm0, %v21360_v60 }
 0x31a   :  { %17554 = vmatmul.mubr.msk.f32.gmra.mrb[2].mxu0 %vm90_vm1, %v4659_v21  ;;  %v4670_v21 = vld [vmem:[#allocation2 + $0xd8] sm:$0xff] }
 0x31b   :  { %17556 = vmatprep.mubr.msk.f32.mxu0 %vm90_vm1, %v4660_v39  ;;  %v4671_v39 = vld [vmem:[#allocation2 + $0xe0] sm:$0xff] }
 0x31e   :  { %17557 = vmatmul.mubr.msk.f32.gmra.mrb[4].mxu0 %vm90_vm1, %v4661_v15  ;;  %v4672_v15 = vld [vmem:[#allocation2 + $0xf0] sm:$0xff] }
 0x31f   :  { %17559 = vmatprep.mubr.msk.f32.mxu0 %vm90_vm1, %v4662_v38  ;;  %v4673_v38 = vld [vmem:[#allocation2 + $0xf8] sm:$0xff] }
 0x322   :  { %17560 = vmatmul.mubr.msk.f32.gmra.mrb[6].mxu0 %vm90_vm1, %v4663_v14  ;;  %v4674_v14 = vld [vmem:[#allocation2 + $0x108] sm:$0xff] }
 0x323   :  { %17562 = vmatprep.mubr.msk.f32.mxu0 %vm90_vm1, %v4664_v1  ;;  %v4675_v1 = vld [vmem:[#allocation2 + $0x110] sm:$0xff] }
 0x326   :  { %17563 = vmatmul.mubr.msk.f32.gmra.mrb[8].mxu0 %vm90_vm1, %v4665_v41  ;;  %v4676_v41 = vld [vmem:[#allocation2 + $0x120] sm:$0xff] }
 0x327   :  { %17565 = vmatprep.mubr.msk.f32.mxu0 %vm90_vm1, %v4666_v45  ;;  %v4677_v45 = vld [vmem:[#allocation2 + $0x128] sm:$0xff] }
 0x32a   :  { %17566 = vmatmul.mubr.msk.f32.gmra.mrb[10].mxu0 %vm90_vm1, %v4667_v22  ;;  %v4678_v22 = vld [vmem:[#allocation2 + $0x138] sm:$0xff] }
 0x32b   :  { %17568 = vmatprep.mubr.msk.f32.mxu0 %vm90_vm1, %v4668_v59  ;;  %v4679_v59 = vld [vmem:[#allocation2 + $0x140] sm:$0xff] }
 0x32e   :  { %17569 = vmatmul.mubr.msk.f32.gmra.mrb[12].mxu0 %vm90_vm1, %v4669_v27  ;;  %v4680_v27 = vld [vmem:[#allocation2 + $0x150] sm:$0xff] }
 0x32f   :  { %17571 = vmatprep.mubr.msk.f32.mxu0 %vm90_vm1, %v4670_v21  ;;  %v4681_v21 = vld [vmem:[#allocation2 + $0x158] sm:$0xff] }
 0x332   :  { %17572 = vmatmul.mubr.msk.f32.gmra.mrb[14].mxu0 %vm90_vm1, %v4671_v39  ;;  %v4682_v39 = vld [vmem:[#allocation2 + $0x168] sm:$0xff] }
 0x333   :  { %17574 = vmatprep.mubr.msk.f32.mxu0 %vm90_vm1, %v4672_v15  ;;  %v4683_v15 = vld [vmem:[#allocation2 + $0x170] sm:$0xff] }
 0x336   :  { %17575 = vmatmul.mubr.msk.f32.gmra.mrb[16].mxu0 %vm90_vm1, %v4673_v38  ;;  %v4686_v38 = vld [vmem:[#allocation2 + $0x198] sm:$0xff] }
 0x337   :  { %17577 = vmatprep.mubr.msk.f32.mxu0 %vm90_vm1, %v4674_v14  ;;  %v4687_v14 = vld [vmem:[#allocation2 + $0x1a0] sm:$0xff] }
 0x33a   :  { %17578 = vmatmul.mubr.msk.f32.gmra.mrb[18].mxu0 %vm90_vm1, %v4675_v1  ;;  %v4688_v1 = vld [vmem:[#allocation2 + $0x1e0] sm:$0xff] }
 0x33b   :  { %17580 = vmatprep.mubr.msk.f32.mxu0 %vm90_vm1, %v4676_v41  ;;  %v4689_v41 = vld [vmem:[#allocation2 + $0x1e8] sm:$0xff] }
 0x33e   :  { %17581 = vmatmul.mubr.msk.f32.gmra.mrb[20].mxu0 %vm90_vm1, %v4677_v45  ;;  %v4690_v45 = vld [vmem:[#allocation2 + $0x1f8] sm:$0xff] }
 0x33f   :  { %17583 = vmatprep.mubr.msk.f32.mxu0 %vm90_vm1, %v4678_v22  ;;  %v4691_v22 = vld [vmem:[#allocation2 + $0x200] sm:$0xff] }
 0x342   :  { %17584 = vmatmul.mubr.msk.f32.gmra.mrb[22].mxu0 %vm90_vm1, %v4679_v59  ;;  %v4694_v59 = vld [vmem:[#allocation2 + $0x228] sm:$0xff] }
 0x343   :  { %17586 = vmatprep.mubr.msk.f32.mxu0 %vm90_vm1, %v4680_v27  ;;  %v4695_v27 = vld [vmem:[#allocation2 + $0x230] sm:$0xff] }
 0x346   :  { %17587 = vmatmul.mubr.msk.f32.gmra.mrb[24].mxu0 %vm90_vm1, %v4681_v21  ;;  %v4696_v21 = vld [vmem:[#allocation2 + $0x240] sm:$0xff] }
 0x347   :  { %17589 = vmatprep.mubr.msk.f32.mxu0 %vm90_vm1, %v4682_v39  ;;  %v4697_v39 = vld [vmem:[#allocation2 + $0x248] sm:$0xff] }
 0x34a   :  { %17590 = vmatmul.mubr.msk.f32.gmra.mrb[26].mxu0 %vm90_vm1, %v4683_v15  ;;  %v4698_v15 = vld [vmem:[#allocation2 + $0x258] sm:$0xff] }
 0x34b   :  { %17592 = vmatprep.mubr.msk.f32.mxu0 %vm90_vm1, %v20876_v31  ;;  %v4692_v31 = vld [vmem:[#allocation2 + $0x210] sm:$0xff] }
 0x34e   :  { %17593 = vmatmul.mubr.msk.f32.gmra.mrb[28].mxu0 %vm90_vm1, %v20882_v32  ;;  %v4693_v32 = vld [vmem:[#allocation2 + $0x218] sm:$0xff] }
 0x34f   :  { %17595 = vmatprep.mubr.msk.f32.mxu0 %vm90_vm1, %v4686_v38  ;;  %v4699_v38 = vld [vmem:[#allocation2 + $0x260] sm:$0xff] }
 0x352   :  { %17596 = vmatmul.mubr.msk.f32.gmra.mrb[30].mxu0 %vm90_vm1, %v4687_v14  ;;  %v4700_v14 = vld [vmem:[#allocation2 + $0x270] sm:$0xff] }
 0x353   :  { %17598 = vmatprep.mubr.msk.f32.mxu0 %vm90_vm1, %v4688_v1  ;;  %v4701_v1 = vld [vmem:[#allocation2 + $0x278] sm:$0xff] }
 0x356   :  { %17599 = vmatmul.mubr.msk.f32.gmra.mrb[32].mxu0 %vm90_vm1, %v4689_v41  ;;  %v4702_v41 = vld [vmem:[#allocation2 + $0x288] sm:$0xff] }
 0x357   :  { %17601 = vmatprep.mubr.msk.f32.mxu0 %vm90_vm1, %v4690_v45  ;;  %v4703_v45 = vld [vmem:[#allocation2 + $0x290] sm:$0xff] }
 0x35a   :  { %17602 = vmatmul.mubr.msk.f32.gmra.mrb[34].mxu0 %vm90_vm1, %v4691_v22  ;;  %v4704_v22 = vld [vmem:[#allocation2 + $0x2a0] sm:$0xff] }
 0x35b   :  { %17604 = vmatprep.mubr.msk.f32.mxu0 %vm90_vm1, %v4692_v31  ;;  %v4705_v31 = vld [vmem:[#allocation2 + $0x2a8] sm:$0xff] }
 0x35e   :  { %17605 = vmatmul.mubr.msk.f32.gmra.mrb[36].mxu0 %vm90_vm1, %v4693_v32  ;;  %v4706_v32 = vld [vmem:[#allocation2 + $0x2b8] sm:$0xff] }
 0x35f   :  { %17607 = vmatprep.mubr.msk.f32.mxu0 %vm90_vm1, %v4694_v59  ;;  %v4707_v59 = vld [vmem:[#allocation2 + $0x2c0] sm:$0xff] }
 0x362   :  { %17608 = vmatmul.mubr.msk.f32.gmra.mrb[38].mxu0 %vm90_vm1, %v4695_v27  ;;  %v4708_v27 = vld [vmem:[#allocation2 + $0x2d0] sm:$0xff] }
 0x363   :  { %17610 = vmatprep.mubr.msk.f32.mxu0 %vm90_vm1, %v4696_v21  ;;  %v4709_v21 = vld [vmem:[#allocation2 + $0x2d8] sm:$0xff] }
 0x366   :  { %17611 = vmatmul.mubr.msk.f32.gmra.mrb[40].mxu0 %vm90_vm1, %v4697_v39  ;;  %v4710_v39 = vld [vmem:[#allocation2 + $0x2e8] sm:$0xff] }
 0x367   :  { %17613 = vmatprep.mubr.msk.f32.mxu0 %vm90_vm1, %v4698_v15  ;;  %v4711_v15 = vld [vmem:[#allocation2 + $0x2f0] sm:$0xff] }
 0x36a   :  { %17614 = vmatmul.mubr.msk.f32.gmra.mrb[42].mxu0 %vm90_vm1, %v4699_v38  ;;  %v4712_v38 = vld [vmem:[#allocation2 + $0x300] sm:$0xff] }
 0x36b   :  { %17616 = vmatprep.mubr.msk.f32.mxu0 %vm90_vm1, %v4700_v14  ;;  %v4713_v14 = vld [vmem:[#allocation2 + $0x308] sm:$0xff] }
 0x36e   :  { %17617 = vmatmul.mubr.msk.f32.gmra.mrb[44].mxu0 %vm90_vm1, %v4701_v1  ;;  %v4714_v1 = vld [vmem:[#allocation2 + $0x318] sm:$0xff] }
 0x36f   :  { %17619 = vmatprep.mubr.msk.f32.mxu0 %vm90_vm1, %v4702_v41  ;;  %v4715_v41 = vld [vmem:[#allocation2 + $0x320] sm:$0xff] }
 0x372   :  { %17620 = vmatmul.mubr.msk.f32.gmra.mrb[46].mxu0 %vm90_vm1, %v4703_v45  ;;  %v4718_v45 = vld [vmem:[#allocation2 + $0x348] sm:$0xff] }
 0x373   :  { %17622 = vmatprep.mubr.msk.f32.mxu0 %vm90_vm1, %v4704_v22  ;;  %v4719_v22 = vld [vmem:[#allocation2 + $0x350] sm:$0xff] }
 0x376   :  { %17623 = vmatmul.mubr.msk.f32.gmra.mrb[48].mxu0 %vm90_vm1, %v4705_v31  ;;  %v6107_v31 = vld [vmem:[#allocation2 + $0x1a2] sm:$0xff] }
 0x377   :  { %17625 = vmatprep.mubr.msk.f32.mxu0 %vm90_vm1, %v4706_v32  ;;  %v6108_v32 = vld [vmem:[#allocation2 + $0x1e2] sm:$0xff] }
 0x37a   :  { %17626 = vmatmul.mubr.msk.f32.gmra.mrb[50].mxu0 %vm90_vm1, %v4707_v59  ;;  %v6109_v59 = vld [vmem:[#allocation2 + $0x1ea] sm:$0xff] }
 0x37b   :  { %17628 = vmatprep.mubr.msk.f32.mxu0 %vm90_vm1, %v4708_v27  ;;  %v6110_v27 = vld [vmem:[#allocation2 + $0x1fa] sm:$0xff] }
 0x37e   :  { %17629 = vmatmul.mubr.msk.f32.gmra.mrb[52].mxu0 %vm90_vm1, %v4709_v21  ;;  %v6111_v21 = vld [vmem:[#allocation2 + $0x202] sm:$0xff] }
 0x37f   :  { %17631 = vmatprep.mubr.msk.f32.mxu0 %vm90_vm1, %v4710_v39  ;;  %v6112_v39 = vld [vmem:[#allocation2 + $0x212] sm:$0xff] }
 0x382   :  { %17632 = vmatmul.mubr.msk.f32.gmra.mrb[54].mxu0 %vm90_vm1, %v4711_v15  ;;  %v6113_v15 = vld [vmem:[#allocation2 + $0x21a] sm:$0xff] }
 0x383   :  { %17634 = vmatprep.mubr.msk.f32.mxu0 %vm90_vm1, %v4712_v38  ;;  %v6114_v38 = vld [vmem:[#allocation2 + $0x22a] sm:$0xff] }
 0x386   :  { %17635 = vmatmul.mubr.msk.f32.gmra.mrb[56].mxu0 %vm90_vm1, %v4713_v14  ;;  %v6115_v14 = vld [vmem:[#allocation2 + $0x232] sm:$0xff] }
 0x387   :  { %17637 = vmatprep.mubr.msk.f32.mxu0 %vm90_vm1, %v4714_v1  ;;  %v6116_v1 = vld [vmem:[#allocation2 + $0x242] sm:$0xff] }
 0x38a   :  { %17638 = vmatmul.mubr.msk.f32.gmra.mrb[58].mxu0 %vm90_vm1, %v4715_v41  ;;  %v6117_v41 = vld [vmem:[#allocation2 + $0x24a] sm:$0xff] }
 0x38b   :  { %17640 = vmatprep.mubr.msk.f32.mxu0 %vm90_vm1, %v20948_v40  ;;  %v5396_v40 = vld [vmem:[#allocation2 + $0x199] sm:$0xff] }
 0x38e   :  { %17641 = vmatmul.mubr.msk.f32.gmra.mrb[60].mxu0 %vm90_vm1, %v20954_v42  ;;  %v5397_v42 = vld [vmem:[#allocation2 + $0x1a1] sm:$0xff] }
 0x38f   :  { %17643 = vmatprep.mubr.msk.f32.mxu0 %vm90_vm1, %v4718_v45  ;;  %v6118_v45 = vld [vmem:[#allocation2 + $0x25a] sm:$0xff] }
 0x392   :  { %17644 = vmatmul.mubr.msk.f32.gmra.mrb[62].mxu0 %vm90_vm1, %v4719_v22  ;;  %v6119_v22 = vld [vmem:[#allocation2 + $0x262] sm:$0xff] }
 0x393   :  { %17648 = vmatprep.mubr.msk.f32.mxu0 %vm90_vm1, %v20959_v44  ;;  %v26271_v44 = vld [vmem:[#allocation4_spill] sm:$0xff] }
 0x396   :  { %17649 = vmatmul.mubr.msk.f32.vlgmr.msra.gmra.mrb[0].mxu0 %vm90_vm1, %v20971_v46  ;;  %v26272_v46 = vld [vmem:[#allocation5_spill] sm:$0xff] }
 0x397   :  { %17745 = vmatpush3.msk.msra.mxu0 %vm846_vm0, %v21360_v60  ;;  %17651 = vmatprep.mubr.msk.f32.mxu0 %vm90_vm1, %v20973_v47  ;;  %v26273_v47 = vld [vmem:[#allocation6_spill] sm:$0xff]  ;;  %v26286_v60 = vld [vmem:[#allocation12_spill] sm:$0xff] }
 0x39a   :  { %17652 = vmatmul.mubr.msk.f32.gmra.mrb[2].mxu0 %vm90_vm1, %v20981_v48  ;;  %v26274_v48 = vld [vmem:[#allocation7_spill] sm:$0xff] }
 0x39b   :  { %17654 = vmatprep.mubr.msk.f32.mxu0 %vm90_vm1, %v20983_v49  ;;  %v26275_v49 = vld [vmem:[#allocation8_spill] sm:$0xff] }
 0x39e   :  { %17655 = vmatmul.mubr.msk.f32.gmra.mrb[4].mxu0 %vm90_vm1, %v20989_v50  ;;  %v26276_v50 = vld [vmem:[#allocation9_spill] sm:$0xff] }
 0x39f   :  { %17657 = vmatprep.mubr.msk.f32.mxu0 %vm90_vm1, %v20991_v51  ;;  %v26277_v51 = vld [vmem:[#allocation10_spill] sm:$0xff] }
 0x3a2   :  { %17658 = vmatmul.mubr.msk.f32.gmra.mrb[6].mxu0 %vm90_vm1, %v20997_v52  ;;  %v26278_v52 = vld [vmem:[#allocation66_spill] sm:$0xff] }
 0x3a3   :  { %17660 = vmatprep.mubr.msk.f32.mxu0 %vm90_vm1, %v20999_v53  ;;  %v26279_v53 = vld [vmem:[#allocation67_spill] sm:$0xff] }
 0x3a6   :  { %17661 = vmatmul.mubr.msk.f32.gmra.mrb[8].mxu0 %vm90_vm1, %v21005_v54  ;;  %v26280_v54 = vld [vmem:[#allocation68_spill] sm:$0xff] }
 0x3a7   :  { %17663 = vmatprep.mubr.msk.f32.mxu0 %vm90_vm1, %v21007_v55  ;;  %v26281_v55 = vld [vmem:[#allocation69_spill] sm:$0xff] }
 0x3aa   :  { %17664 = vmatmul.mubr.msk.f32.gmra.mrb[10].mxu0 %vm90_vm1, %v21013_v56  ;;  %v26282_v56 = vld [vmem:[#allocation70_spill] sm:$0xff] }
 0x3ab   :  { %17666 = vmatprep.mubr.msk.f32.mxu0 %vm90_vm1, %v21015_v57  ;;  %v26283_v57 = vld [vmem:[#allocation71_spill] sm:$0xff] }
 0x3ae   :  { %17667 = vmatmul.mubr.msk.f32.gmra.mrb[12].mxu0 %vm90_vm1, %v21021_v58  ;;  %v5428_v58 = vld [vmem:[#allocation2 + $0x349] sm:$0xff] }
 0x3af   :  { %17669 = vmatprep.mubr.msk.f32.mxu0 %vm90_vm1, %v21023_v61  ;;  %v26284_v61 = vld [vmem:[#allocation72_spill] sm:$0xff] }
 0x3b2   :  { %17670 = vmatmul.mubr.msk.f32.gmra.mrb[14].mxu0 %vm90_vm1, %v21029_v62  ;;  %v5429_v62 = vld [vmem:[#allocation2 + $0x351] sm:$0xff] }
 0x3b3   :  { %17672 = vmatprep.mubr.msk.f32.mxu0 %vm90_vm1, %v21031_v63  ;;  %v6076_v63 = vld [vmem:[#allocation2 + $0x32] sm:$0xff] }
 0x3b6   :  { %17673 = vmatmul.mubr.msk.f32.gmra.mrb[16].mxu0 %vm90_vm1, %v21037_v0  ;;  %v6077_v0 = vld [vmem:[#allocation2 + $0x3a] sm:$0xff] }
 0x3b7   :  { %17675 = vmatprep.mubr.msk.f32.mxu0 %vm90_vm1, %v21039_v2  ;;  %v6078_v2 = vld [vmem:[#allocation2 + $0x4a] sm:$0xff] }
 0x3ba   :  { %17676 = vmatmul.mubr.msk.f32.gmra.mrb[18].mxu0 %vm90_vm1, %v21045_v3  ;;  %v6079_v3 = vld [vmem:[#allocation2 + $0x52] sm:$0xff] }
 0x3bb   :  { %17678 = vmatprep.mubr.msk.f32.mxu0 %vm90_vm1, %v21047_v4  ;;  %v6080_v4 = vld [vmem:[#allocation2 + $0x62] sm:$0xff] }
 0x3be   :  { %17679 = vmatmul.mubr.msk.f32.gmra.mrb[20].mxu0 %vm90_vm1, %v21053_v5  ;;  %v6081_v5 = vld [vmem:[#allocation2 + $0x6a] sm:$0xff] }
 0x3bf   :  { %17681 = vmatprep.mubr.msk.f32.mxu0 %vm90_vm1, %v21055_v6  ;;  %v6082_v6 = vld [vmem:[#allocation2 + $0x7a] sm:$0xff] }
 0x3c2   :  { %17682 = vmatmul.mubr.msk.f32.gmra.mrb[22].mxu0 %vm90_vm1, %v21061_v7  ;;  %v6083_v7 = vld [vmem:[#allocation2 + $0x82] sm:$0xff] }
 0x3c3   :  { %17684 = vmatprep.mubr.msk.f32.mxu0 %vm90_vm1, %v21063_v8  ;;  %v6084_v8 = vld [vmem:[#allocation2 + $0x92] sm:$0xff] }
 0x3c6   :  { %17685 = vmatmul.mubr.msk.f32.gmra.mrb[24].mxu0 %vm90_vm1, %v21069_v9  ;;  %v6085_v9 = vld [vmem:[#allocation2 + $0x9a] sm:$0xff] }
 0x3c7   :  { %17687 = vmatprep.mubr.msk.f32.mxu0 %vm90_vm1, %v21071_v10  ;;  %v6086_v10 = vld [vmem:[#allocation2 + $0xaa] sm:$0xff] }
 0x3ca   :  { %17688 = vmatmul.mubr.msk.f32.gmra.mrb[26].mxu0 %vm90_vm1, %v21077_v11  ;;  %v6087_v11 = vld [vmem:[#allocation2 + $0xb2] sm:$0xff] }
 0x3cb   :  { %17690 = vmatprep.mubr.msk.f32.mxu0 %vm90_vm1, %v21079_v12  ;;  %v6088_v12 = vld [vmem:[#allocation2 + $0xc2] sm:$0xff] }
 0x3ce   :  { %17691 = vmatmul.mubr.msk.f32.gmra.mrb[28].mxu0 %vm90_vm1, %v21085_v13  ;;  %v6089_v13 = vld [vmem:[#allocation2 + $0xca] sm:$0xff] }
 0x3cf   :  { %17693 = vmatprep.mubr.msk.f32.mxu0 %vm90_vm1, %v5396_v40  ;;  %v6120_v40 = vld [vmem:[#allocation2 + $0x272] sm:$0xff] }
 0x3d2   :  { %17694 = vmatmul.mubr.msk.f32.gmra.mrb[30].mxu0 %vm90_vm1, %v5397_v42  ;;  %v26287_v42 = vmov 0.0  }
 0x3d3   :  { %17696 = vmatprep.mubr.msk.f32.mxu0 %vm90_vm1, %v21090_v16  ;;  %v6090_v16 = vld [vmem:[#allocation2 + $0xda] sm:$0xff]  ;;  %7333 = vst.msk [vmem:[#allocation3] sm:$0xff] %vm6786_vm4, %v26287_v42  ;;  %7334 = vst.msk [vmem:[#allocation3 + $0x8] sm:$0xff] %vm6786_vm4, %v26287_v42 }
 0x3d4   :  { %7337 = vst.msk [vmem:[#allocation3 + $0x1b0] sm:$0xff] %vm6786_vm4, %v26287_v42  ;;  %7338 = vst.msk [vmem:[#allocation3 + $0x1b8] sm:$0xff] %vm6786_vm4, %v26287_v42 }
 0x3d5   :  { %7341 = vst.msk [vmem:[#allocation3 + $0x198] sm:$0xff] %vm6786_vm4, %v26287_v42  ;;  %7342 = vst.msk [vmem:[#allocation3 + $0x1a0] sm:$0xff] %vm6786_vm4, %v26287_v42 }
 0x3d6   :  { %17697 = vmatmul.mubr.msk.f32.gmra.mrb[32].mxu0 %vm90_vm1, %v21095_v17  ;;  %v6091_v17 = vld [vmem:[#allocation2 + $0xe2] sm:$0xff]  ;;  %7344 = vst.msk [vmem:[#allocation3 + $0x348] sm:$0xff] %vm6786_vm4, %v26287_v42  ;;  %7345 = vst.msk [vmem:[#allocation3 + $0x350] sm:$0xff] %vm6786_vm4, %v26287_v42 }
 0x3d7   :  { %17699 = vmatprep.mubr.msk.f32.mxu0 %vm90_vm1, %v21097_v18  ;;  %v6092_v18 = vld [vmem:[#allocation2 + $0xf2] sm:$0xff]  ;;  %7336 = vst.msk [vmem:[#allocation3 + $0x10] sm:$0x3] %vm7335_vm5, %v26287_v42  ;;  %7339 = vst.msk [vmem:[#allocation3 + $0x1c0] sm:$0x3] %vm7335_vm5, %v26287_v42 }
 0x3d8   :  { %7343 = vst.msk [vmem:[#allocation3 + $0x1a8] sm:$0x3] %vm7335_vm5, %v26287_v42  ;;  %7346 = vst.msk [vmem:[#allocation3 + $0x358] sm:$0x3] %vm7335_vm5, %v26287_v42 }
 0x3da   :  { %17700 = vmatmul.mubr.msk.f32.gmra.mrb[34].mxu0 %vm90_vm1, %v21103_v19  ;;  %v6093_v19 = vld [vmem:[#allocation2 + $0xfa] sm:$0xff] }
 0x3db   :  { %17702 = vmatprep.mubr.msk.f32.mxu0 %vm90_vm1, %v21105_v20  ;;  %v6094_v20 = vld [vmem:[#allocation2 + $0x10a] sm:$0xff] }
 0x3de   :  { %17703 = vmatmul.mubr.msk.f32.gmra.mrb[36].mxu0 %vm90_vm1, %v21111_v24  ;;  %v6095_v24 = vld [vmem:[#allocation2 + $0x112] sm:$0xff] }
 0x3df   :  { %17705 = vmatprep.mubr.msk.f32.mxu0 %vm90_vm1, %v21113_v25  ;;  %v6096_v25 = vld [vmem:[#allocation2 + $0x122] sm:$0xff] }
 0x3e2   :  { %17706 = vmatmul.mubr.msk.f32.gmra.mrb[38].mxu0 %vm90_vm1, %v21119_v26  ;;  %v6097_v26 = vld [vmem:[#allocation2 + $0x12a] sm:$0xff] }
 0x3e3   :  { %17708 = vmatprep.mubr.msk.f32.mxu0 %vm90_vm1, %v21121_v23  ;;  %v6098_v23 = vld [vmem:[#allocation2 + $0x13a] sm:$0xff] }
 0x3e6   :  { %17709 = vmatmul.mubr.msk.f32.gmra.mrb[40].mxu0 %vm90_vm1, %v21127_v29  ;;  %v6099_v29 = vld [vmem:[#allocation2 + $0x142] sm:$0xff] }
 0x3e7   :  { %17711 = vmatprep.mubr.msk.f32.mxu0 %vm90_vm1, %v21129_v28  ;;  %v6100_v28 = vld [vmem:[#allocation2 + $0x152] sm:$0xff] }
 0x3ea   :  { %17712 = vmatmul.mubr.msk.f32.gmra.mrb[42].mxu0 %vm90_vm1, %v21135_v30  ;;  %v6101_v30 = vld [vmem:[#allocation2 + $0x15a] sm:$0xff] }
 0x3eb   :  { %17714 = vmatprep.mubr.msk.f32.mxu0 %vm90_vm1, %v21137_v33  ;;  %v6102_v33 = vld [vmem:[#allocation2 + $0x16a] sm:$0xff] }
 0x3ee   :  { %17715 = vmatmul.mubr.msk.f32.gmra.mrb[44].mxu0 %vm90_vm1, %v21143_v34  ;;  %v6103_v34 = vld [vmem:[#allocation2 + $0x172] sm:$0xff] }
 0x3ef   :  { %17717 = vmatprep.mubr.msk.f32.mxu0 %vm90_vm1, %v21145_v35  ;;  %v26285_v35 = vld [vmem:[#allocation11_spill] sm:$0xff] }
 0x3f2   :  { %17718 = vmatmul.mubr.msk.f32.gmra.mrb[46].mxu0 %vm90_vm1, %v21151_v36  ;;  %v6106_v36 = vld [vmem:[#allocation2 + $0x19a] sm:$0xff] }
 0x3f3   :  { %17720 = vmatprep.mubr.msk.f32.mxu0 %vm90_vm1, %v26271_v44  ;;  %v6121_v44 = vld [vmem:[#allocation2 + $0x27a] sm:$0xff] }
 0x3f6   :  { %17721 = vmatmul.mubr.msk.f32.gmra.mrb[48].mxu0 %vm90_vm1, %v26272_v46  ;;  %v6122_v46 = vld [vmem:[#allocation2 + $0x28a] sm:$0xff] }
 0x3f7   :  { %17723 = vmatprep.mubr.msk.f32.mxu0 %vm90_vm1, %v26273_v47  ;;  %v6123_v47 = vld [vmem:[#allocation2 + $0x292] sm:$0xff] }
 0x3fa   :  { %17724 = vmatmul.mubr.msk.f32.gmra.mrb[50].mxu0 %vm90_vm1, %v26274_v48  ;;  %v6124_v48 = vld [vmem:[#allocation2 + $0x2a2] sm:$0xff] }
 0x3fb   :  { %17726 = vmatprep.mubr.msk.f32.mxu0 %vm90_vm1, %v26275_v49  ;;  %v6125_v49 = vld [vmem:[#allocation2 + $0x2aa] sm:$0xff] }
 0x3fe   :  { %17727 = vmatmul.mubr.msk.f32.gmra.mrb[52].mxu0 %vm90_vm1, %v26276_v50  ;;  %v6126_v50 = vld [vmem:[#allocation2 + $0x2ba] sm:$0xff] }
 0x3ff   :  { %17729 = vmatprep.mubr.msk.f32.mxu0 %vm90_vm1, %v26277_v51  ;;  %v6127_v51 = vld [vmem:[#allocation2 + $0x2c2] sm:$0xff] }
 0x402   :  { %17730 = vmatmul.mubr.msk.f32.gmra.mrb[54].mxu0 %vm90_vm1, %v26278_v52  ;;  %v6128_v52 = vld [vmem:[#allocation2 + $0x2d2] sm:$0xff] }
 0x403   :  { %17732 = vmatprep.mubr.msk.f32.mxu0 %vm90_vm1, %v26279_v53  ;;  %v6129_v53 = vld [vmem:[#allocation2 + $0x2da] sm:$0xff] }
 0x406   :  { %17733 = vmatmul.mubr.msk.f32.gmra.mrb[56].mxu0 %vm90_vm1, %v26280_v54  ;;  %v6130_v54 = vld [vmem:[#allocation2 + $0x2ea] sm:$0xff] }
 0x407   :  { %17735 = vmatprep.mubr.msk.f32.mxu0 %vm90_vm1, %v26281_v55  ;;  %v6131_v55 = vld [vmem:[#allocation2 + $0x2f2] sm:$0xff] }
 0x40a   :  { %17736 = vmatmul.mubr.msk.f32.gmra.mrb[58].mxu0 %vm90_vm1, %v26282_v56  ;;  %v6132_v56 = vld [vmem:[#allocation2 + $0x302] sm:$0xff] }
 0x40b   :  { %17738 = vmatprep.mubr.msk.f32.mxu0 %vm90_vm1, %v26283_v57  ;;  %v6133_v57 = vld [vmem:[#allocation2 + $0x30a] sm:$0xff] }
 0x40e   :  { %17739 = vmatmul.mubr.msk.f32.gmra.mrb[60].mxu0 %vm90_vm1, %v26284_v61  ;;  %v6135_v61 = vld [vmem:[#allocation2 + $0x322] sm:$0xff] }
 0x40f   :  { %17741 = vmatprep.mubr.msk.f32.mxu0 %vm90_vm1, %v5428_v58  ;;  %v6134_v58 = vld [vmem:[#allocation2 + $0x31a] sm:$0xff] }
 0x412   :  { %17742 = vmatmul.mubr.msk.f32.gmra.mrb[62].mxu0 %vm90_vm1, %v5429_v62  ;;  %v6138_v62 = vld [vmem:[#allocation2 + $0x34a] sm:$0xff] }
 0x413   :  { %17746 = vmatprep.mubr.msk.f32.mxu0 %vm90_vm1, %v6076_v63  ;;  %v6139_v63 = vld [vmem:[#allocation2 + $0x352] sm:$0xff] }
 0x416   :  { %17747 = vmatmul.mubr.msk.f32.vlgmr.msra.gmra.mrb[0].mxu0 %vm90_vm1, %v6077_v0 }
 0x417   :  { %17749 = vmatprep.mubr.msk.f32.mxu0 %vm90_vm1, %v6078_v2 }
 0x41a   :  { %17750 = vmatmul.mubr.msk.f32.gmra.mrb[2].mxu0 %vm90_vm1, %v6079_v3 }
 0x41b   :  { %17752 = vmatprep.mubr.msk.f32.mxu0 %vm90_vm1, %v6080_v4 }
 0x41e   :  { %17753 = vmatmul.mubr.msk.f32.gmra.mrb[4].mxu0 %vm90_vm1, %v6081_v5 }
 0x41f   :  { %17755 = vmatprep.mubr.msk.f32.mxu0 %vm90_vm1, %v6082_v6 }
 0x422   :  { %17756 = vmatmul.mubr.msk.f32.gmra.mrb[6].mxu0 %vm90_vm1, %v6083_v7 }
 0x423   :  { %17758 = vmatprep.mubr.msk.f32.mxu0 %vm90_vm1, %v6084_v8 }
 0x426   :  { %17759 = vmatmul.mubr.msk.f32.gmra.mrb[8].mxu0 %vm90_vm1, %v6085_v9 }
 0x427   :  { %17761 = vmatprep.mubr.msk.f32.mxu0 %vm90_vm1, %v6086_v10 }
 0x42a   :  { %17762 = vmatmul.mubr.msk.f32.gmra.mrb[10].mxu0 %vm90_vm1, %v6087_v11 }
 0x42b   :  { %17764 = vmatprep.mubr.msk.f32.mxu0 %vm90_vm1, %v6088_v12 }
 0x42e   :  { %17765 = vmatmul.mubr.msk.f32.gmra.mrb[12].mxu0 %vm90_vm1, %v6089_v13 }
 0x42f   :  { %17767 = vmatprep.mubr.msk.f32.mxu0 %vm90_vm1, %v6090_v16 }
 0x432   :  { %17768 = vmatmul.mubr.msk.f32.gmra.mrb[14].mxu0 %vm90_vm1, %v6091_v17 }
 0x433   :  { %17770 = vmatprep.mubr.msk.f32.mxu0 %vm90_vm1, %v6092_v18 }
 0x436   :  { %17771 = vmatmul.mubr.msk.f32.gmra.mrb[16].mxu0 %vm90_vm1, %v6093_v19 }
 0x437   :  { %17773 = vmatprep.mubr.msk.f32.mxu0 %vm90_vm1, %v6094_v20 }
 0x43a   :  { %17774 = vmatmul.mubr.msk.f32.gmra.mrb[18].mxu0 %vm90_vm1, %v6095_v24 }
 0x43b   :  { %17776 = vmatprep.mubr.msk.f32.mxu0 %vm90_vm1, %v6096_v25 }
 0x43e   :  { %17777 = vmatmul.mubr.msk.f32.gmra.mrb[20].mxu0 %vm90_vm1, %v6097_v26 }
 0x43f   :  { %17779 = vmatprep.mubr.msk.f32.mxu0 %vm90_vm1, %v6098_v23 }
 0x442   :  { %17780 = vmatmul.mubr.msk.f32.gmra.mrb[22].mxu0 %vm90_vm1, %v6099_v29 }
 0x443   :  { %17782 = vmatprep.mubr.msk.f32.mxu0 %vm90_vm1, %v6100_v28 }
 0x446   :  { %17783 = vmatmul.mubr.msk.f32.gmra.mrb[24].mxu0 %vm90_vm1, %v6101_v30 }
 0x447   :  { %17785 = vmatprep.mubr.msk.f32.mxu0 %vm90_vm1, %v6102_v33 }
 0x44a   :  { %17786 = vmatmul.mubr.msk.f32.gmra.mrb[26].mxu0 %vm90_vm1, %v6103_v34 }
 0x44b   :  { %17788 = vmatprep.mubr.msk.f32.mxu0 %vm90_vm1, %v26285_v35 }
 0x44e   :  { %17789 = vmatmul.mubr.msk.f32.gmra.mrb[28].mxu0 %vm90_vm1, %v26286_v60 }
 0x44f   :  { %17791 = vmatprep.mubr.msk.f32.mxu0 %vm90_vm1, %v6106_v36 }
 0x452   :  { %17792 = vmatmul.mubr.msk.f32.gmra.mrb[30].mxu0 %vm90_vm1, %v6107_v31 }
 0x453   :  { %17794 = vmatprep.mubr.msk.f32.mxu0 %vm90_vm1, %v6108_v32 }
 0x456   :  { %17795 = vmatmul.mubr.msk.f32.gmra.mrb[32].mxu0 %vm90_vm1, %v6109_v59 }
 0x457   :  { %17797 = vmatprep.mubr.msk.f32.mxu0 %vm90_vm1, %v6110_v27 }
 0x45a   :  { %17798 = vmatmul.mubr.msk.f32.gmra.mrb[34].mxu0 %vm90_vm1, %v6111_v21 }
 0x45b   :  { %17800 = vmatprep.mubr.msk.f32.mxu0 %vm90_vm1, %v6112_v39 }
 0x45e   :  { %17801 = vmatmul.mubr.msk.f32.gmra.mrb[36].mxu0 %vm90_vm1, %v6113_v15 }
 0x45f   :  { %17803 = vmatprep.mubr.msk.f32.mxu0 %vm90_vm1, %v6114_v38 }
 0x462   :  { %17804 = vmatmul.mubr.msk.f32.gmra.mrb[38].mxu0 %vm90_vm1, %v6115_v14 }
 0x463   :  { %17806 = vmatprep.mubr.msk.f32.mxu0 %vm90_vm1, %v6116_v1 }
 0x466   :  { %17807 = vmatmul.mubr.msk.f32.gmra.mrb[40].mxu0 %vm90_vm1, %v6117_v41 }
 0x467   :  { %17809 = vmatprep.mubr.msk.f32.mxu0 %vm90_vm1, %v6118_v45 }
 0x46a   :  { %17810 = vmatmul.mubr.msk.f32.gmra.mrb[42].mxu0 %vm90_vm1, %v6119_v22 }
 0x46b   :  { %17812 = vmatprep.mubr.msk.f32.mxu0 %vm90_vm1, %v6120_v40 }
 0x46e   :  { %17813 = vmatmul.mubr.msk.f32.gmra.mrb[44].mxu0 %vm90_vm1, %v6121_v44 }
 0x46f   :  { %17815 = vmatprep.mubr.msk.f32.mxu0 %vm90_vm1, %v6122_v46 }
 0x472   :  { %17816 = vmatmul.mubr.msk.f32.gmra.mrb[46].mxu0 %vm90_vm1, %v6123_v47 }
 0x473   :  { %17818 = vmatprep.mubr.msk.f32.mxu0 %vm90_vm1, %v6124_v48 }
 0x476   :  { %17819 = vmatmul.mubr.msk.f32.gmra.mrb[48].mxu0 %vm90_vm1, %v6125_v49 }
 0x477   :  { %17821 = vmatprep.mubr.msk.f32.mxu0 %vm90_vm1, %v6126_v50 }
 0x47a   :  { %17822 = vmatmul.mubr.msk.f32.gmra.mrb[50].mxu0 %vm90_vm1, %v6127_v51 }
 0x47b   :  { %17824 = vmatprep.mubr.msk.f32.mxu0 %vm90_vm1, %v6128_v52 }
 0x47e   :  { %17825 = vmatmul.mubr.msk.f32.gmra.mrb[52].mxu0 %vm90_vm1, %v6129_v53 }
 0x47f   :  { %17827 = vmatprep.mubr.msk.f32.mxu0 %vm90_vm1, %v6130_v54 }
 0x482   :  { %17828 = vmatmul.mubr.msk.f32.gmra.mrb[54].mxu0 %vm90_vm1, %v6131_v55 }
 0x483   :  { %17830 = vmatprep.mubr.msk.f32.mxu0 %vm90_vm1, %v6132_v56 }
 0x486   :  { %17831 = vmatmul.mubr.msk.f32.gmra.mrb[56].mxu0 %vm90_vm1, %v6133_v57 }
 0x487   :  { %17833 = vmatprep.mubr.msk.f32.mxu0 %vm90_vm1, %v6134_v58 }
 0x48a   :  { %17834 = vmatmul.mubr.msk.f32.gmra.mrb[58].mxu0 %vm90_vm1, %v6135_v61 }
 0x48b   :  { %17836 = vmatprep.mubr.msk.f32.mxu0 %vm90_vm1, %v21346_v43 }
 0x48e   :  { %17837 = vmatmul.mubr.msk.f32.gmra.mrb[60].mxu0 %vm90_vm1, %v21352_v37 }
 0x48f   :  { %17839 = vmatprep.mubr.msk.f32.mxu0 %vm90_vm1, %v6138_v62 }
 0x492   :  { %17840 = vmatmul.mubr.msk.f32.gmra.mrb[62].mxu0 %vm90_vm1, %v6139_v63 }
 0x4e9   :  { %v21651_v0 = vpop.f32.mrb[0].mxu0 }
 0x4ea   :  { %v6788_v2 = vsel %vm6786_vm4, %v21651_v0, 0.0  ;;  %v6922_v3 = vmul.f32 %v21651_v0, %v21651_v0  ;;  %v21657_v4 = vpop.f32.mrb[1].mxu0 }
 0x4eb   :  { %v6787_v43 = vsel %vm6786_vm4, %v21657_v4, 0.0  ;;  %v6921_v37 = vmul.f32 %v21657_v4, %v21657_v4 }
 0x4ec   :  { %v6986_v5 = vsel %vm6786_vm4, %v6922_v3, 0.0  ;;  %v6789_v6 = vadd.f32 %v6788_v2, %v6787_v43 }
 0x4ed   :  { %v6985_v7 = vsel %vm6786_vm4, %v6921_v37, 0.0  ;;  %v21665_v8 = vpop.f32.mrb[2].mxu0 }
 0x4ee   :  { %v6987_v9 = vadd.f32 %v6986_v5, %v6985_v7  ;;  %v21667_v10 = vpop.f32.mrb[3].mxu0  ;;  %v6924_v11 = vmul.f32 %v21665_v8, %v21665_v8  ;;  %v6792_v17 = vsel %vm6786_vm4, %v21665_v8, 0.0 }
 0x4ef   :  { %v6790_v12 = vsel %vm6786_vm4, %v21667_v10, 0.0  ;;  %v6923_v13 = vmul.f32 %v21667_v10, %v21667_v10 }
 0x4f0   :  { %v6791_v16 = vadd.f32 %v6790_v12, %v6789_v6  ;;  %v6990_v26 = vsel %vm6786_vm4, %v6924_v11, 0.0 }
 0x4f1   :  { %v6988_v18 = vsel %vm6786_vm4, %v6923_v13, 0.0  ;;  %v21678_v19 = vpop.f32.mrb[4].mxu0 }
 0x4f2   :  { %v6793_v20 = vadd.f32 %v6792_v17, %v6791_v16  ;;  %v6989_v24 = vadd.f32 %v6988_v18, %v6987_v9  ;;  %v21680_v25 = vpop.f32.mrb[5].mxu0  ;;  %v6926_v23 = vmul.f32 %v21678_v19, %v21678_v19  ;;  %v6796_v34 = vsel %vm6786_vm4, %v21678_v19, 0.0 }
 0x4f3   :  { %v6794_v29 = vsel %vm6786_vm4, %v21680_v25, 0.0  ;;  %v6925_v28 = vmul.f32 %v21680_v25, %v21680_v25 }
 0x4f4   :  { %v6991_v30 = vadd.f32 %v6990_v26, %v6989_v24  ;;  %v6795_v33 = vadd.f32 %v6794_v29, %v6793_v20  ;;  %v6994_v59 = vsel %vm6786_vm4, %v6926_v23, 0.0 }
 0x4f5   :  { %v6992_v35 = vsel %vm6786_vm4, %v6925_v28, 0.0  ;;  %v21692_v36 = vpop.f32.mrb[6].mxu0 }
 0x4f6   :  { %v6993_v60 = vadd.f32 %v6992_v35, %v6991_v30  ;;  %v21694_v31 = vpop.f32.mrb[7].mxu0  ;;  %v6797_v32 = vadd.f32 %v6796_v34, %v6795_v33  ;;  %v6928_v27 = vmul.f32 %v21692_v36, %v21692_v36  ;;  %v6800_v14 = vsel %vm6786_vm4, %v21692_v36, 0.0 }
 0x4f7   :  { %v6798_v21 = vsel %vm6786_vm4, %v21694_v31, 0.0  ;;  %v6927_v39 = vmul.f32 %v21694_v31, %v21694_v31 }
 0x4f8   :  { %v6799_v15 = vadd.f32 %v6798_v21, %v6797_v32  ;;  %v6995_v38 = vadd.f32 %v6994_v59, %v6993_v60  ;;  %v6998_v42 = vsel %vm6786_vm4, %v6928_v27, 0.0 }
 0x4f9   :  { %v6996_v1 = vsel %vm6786_vm4, %v6927_v39, 0.0  ;;  %v21706_v41 = vpop.f32.mrb[8].mxu0 }
 0x4fa   :  { %v6997_v45 = vadd.f32 %v6996_v1, %v6995_v38  ;;  %v21708_v22 = vpop.f32.mrb[9].mxu0  ;;  %v6801_v40 = vadd.f32 %v6800_v14, %v6799_v15  ;;  %v6930_v44 = vmul.f32 %v21706_v41, %v21706_v41  ;;  %v6804_v50 = vsel %vm6786_vm4, %v21706_v41, 0.0 }
 0x4fb   :  { %v6802_v46 = vsel %vm6786_vm4, %v21708_v22, 0.0  ;;  %v6929_v47 = vmul.f32 %v21708_v22, %v21708_v22 }
 0x4fc   :  { %v6803_v48 = vadd.f32 %v6802_v46, %v6801_v40  ;;  %v6999_v49 = vadd.f32 %v6998_v42, %v6997_v45  ;;  %v7002_v56 = vsel %vm6786_vm4, %v6930_v44, 0.0 }
 0x4fd   :  { %v7000_v51 = vsel %vm6786_vm4, %v6929_v47, 0.0  ;;  %v21720_v52 = vpop.f32.mrb[10].mxu0 }
 0x4fe   :  { %v7001_v53 = vadd.f32 %v7000_v51, %v6999_v49  ;;  %v21722_v54 = vpop.f32.mrb[11].mxu0  ;;  %v6805_v55 = vadd.f32 %v6804_v50, %v6803_v48  ;;  %v6932_v57 = vmul.f32 %v21720_v52, %v21720_v52  ;;  %v6808_v2 = vsel %vm6786_vm4, %v21720_v52, 0.0 }
 0x4ff   :  { %v6806_v58 = vsel %vm6786_vm4, %v21722_v54, 0.0  ;;  %v6931_v61 = vmul.f32 %v21722_v54, %v21722_v54 }
 0x500   :  { %v6807_v62 = vadd.f32 %v6806_v58, %v6805_v55  ;;  %v7003_v63 = vadd.f32 %v7002_v56, %v7001_v53  ;;  %v7006_v7 = vsel %vm6786_vm4, %v6932_v57, 0.0 }
 0x501   :  { %v7004_v3 = vsel %vm6786_vm4, %v6931_v61, 0.0  ;;  %v21734_v43 = vpop.f32.mrb[12].mxu0 }
 0x502   :  { %v7005_v37 = vadd.f32 %v7004_v3, %v7003_v63  ;;  %v21736_v5 = vpop.f32.mrb[13].mxu0  ;;  %v6809_v6 = vadd.f32 %v6808_v2, %v6807_v62  ;;  %v6934_v9 = vmul.f32 %v21734_v43, %v21734_v43  ;;  %v6812_v17 = vsel %vm6786_vm4, %v21734_v43, 0.0 }
 0x503   :  { %v6810_v11 = vsel %vm6786_vm4, %v21736_v5, 0.0  ;;  %v6933_v12 = vmul.f32 %v21736_v5, %v21736_v5 }
 0x504   :  { %v6811_v13 = vadd.f32 %v6810_v11, %v6809_v6  ;;  %v7007_v16 = vadd.f32 %v7006_v7, %v7005_v37  ;;  %v7010_v29 = vsel %vm6786_vm4, %v6934_v9, 0.0 }
 0x505   :  { %v7008_v18 = vsel %vm6786_vm4, %v6933_v12, 0.0  ;;  %v21748_v20 = vpop.f32.mrb[14].mxu0 }
 0x506   :  { %v7009_v24 = vadd.f32 %v7008_v18, %v7007_v16  ;;  %v21750_v26 = vpop.f32.mrb[15].mxu0  ;;  %v6813_v23 = vadd.f32 %v6812_v17, %v6811_v13  ;;  %v6936_v28 = vmul.f32 %v21748_v20, %v21748_v20  ;;  %v6816_v60 = vsel %vm6786_vm4, %v21748_v20, 0.0 }
 0x507   :  { %v6814_v30 = vsel %vm6786_vm4, %v21750_v26, 0.0  ;;  %v6935_v33 = vmul.f32 %v21750_v26, %v21750_v26 }
 0x508   :  { %v6815_v34 = vadd.f32 %v6814_v30, %v6813_v23  ;;  %v7011_v35 = vadd.f32 %v7010_v29, %v7009_v24  ;;  %v7014_v15 = vsel %vm6786_vm4, %v6936_v28, 0.0 }
 0x509   :  { %v7012_v32 = vsel %vm6786_vm4, %v6935_v33, 0.0  ;;  %v21762_v59 = vpop.f32.mrb[16].mxu0 }
 0x50a   :  { %v7013_v27 = vadd.f32 %v7012_v32, %v7011_v35  ;;  %v21764_v21 = vpop.f32.mrb[17].mxu0  ;;  %v6817_v39 = vadd.f32 %v6816_v60, %v6815_v34  ;;  %v6938_v38 = vmul.f32 %v21762_v59, %v21762_v59  ;;  %v6820_v42 = vsel %vm6786_vm4, %v21762_v59, 0.0 }
 0x50b   :  { %v6818_v14 = vsel %vm6786_vm4, %v21764_v21, 0.0  ;;  %v6937_v1 = vmul.f32 %v21764_v21, %v21764_v21 }
 0x50c   :  { %v6819_v45 = vadd.f32 %v6818_v14, %v6817_v39  ;;  %v7015_v40 = vadd.f32 %v7014_v15, %v7013_v27  ;;  %v7018_v50 = vsel %vm6786_vm4, %v6938_v38, 0.0 }
 0x50d   :  { %v7016_v44 = vsel %vm6786_vm4, %v6937_v1, 0.0  ;;  %v21776_v46 = vpop.f32.mrb[18].mxu0 }
 0x50e   :  { %v7017_v47 = vadd.f32 %v7016_v44, %v7015_v40  ;;  %v21778_v48 = vpop.f32.mrb[19].mxu0  ;;  %v6821_v49 = vadd.f32 %v6820_v42, %v6819_v45  ;;  %v6940_v51 = vmul.f32 %v21776_v46, %v21776_v46  ;;  %v6824_v58 = vsel %vm6786_vm4, %v21776_v46, 0.0 }
 0x50f   :  { %v6822_v53 = vsel %vm6786_vm4, %v21778_v48, 0.0  ;;  %v6939_v55 = vmul.f32 %v21778_v48, %v21778_v48 }
 0x510   :  { %v6823_v56 = vadd.f32 %v6822_v53, %v6821_v49  ;;  %v7019_v57 = vadd.f32 %v7018_v50, %v7017_v47  ;;  %v7022_v37 = vsel %vm6786_vm4, %v6940_v51, 0.0 }
 0x511   :  { %v7020_v61 = vsel %vm6786_vm4, %v6939_v55, 0.0  ;;  %v21790_v62 = vpop.f32.mrb[20].mxu0 }
 0x512   :  { %v7021_v63 = vadd.f32 %v7020_v61, %v7019_v57  ;;  %v21792_v2 = vpop.f32.mrb[21].mxu0  ;;  %v6825_v3 = vadd.f32 %v6824_v58, %v6823_v56  ;;  %v6942_v6 = vmul.f32 %v21790_v62, %v21790_v62  ;;  %v6828_v13 = vsel %vm6786_vm4, %v21790_v62, 0.0 }
 0x513   :  { %v6826_v7 = vsel %vm6786_vm4, %v21792_v2, 0.0  ;;  %v6941_v9 = vmul.f32 %v21792_v2, %v21792_v2 }
 0x514   :  { %v6827_v11 = vadd.f32 %v6826_v7, %v6825_v3  ;;  %v7023_v12 = vadd.f32 %v7022_v37, %v7021_v63  ;;  %v7026_v29 = vsel %vm6786_vm4, %v6942_v6, 0.0 }
 0x515   :  { %v7024_v16 = vsel %vm6786_vm4, %v6941_v9, 0.0  ;;  %v21804_v17 = vpop.f32.mrb[22].mxu0 }
 0x516   :  { %v7025_v18 = vadd.f32 %v7024_v16, %v7023_v12  ;;  %v21806_v24 = vpop.f32.mrb[23].mxu0  ;;  %v6829_v23 = vadd.f32 %v6828_v13, %v6827_v11  ;;  %v6944_v28 = vmul.f32 %v21804_v17, %v21804_v17  ;;  %v6832_v60 = vsel %vm6786_vm4, %v21804_v17, 0.0 }
 0x517   :  { %v6830_v30 = vsel %vm6786_vm4, %v21806_v24, 0.0  ;;  %v6943_v33 = vmul.f32 %v21806_v24, %v21806_v24 }
 0x518   :  { %v6831_v34 = vadd.f32 %v6830_v30, %v6829_v23  ;;  %v7027_v35 = vadd.f32 %v7026_v29, %v7025_v18  ;;  %v7030_v14 = vsel %vm6786_vm4, %v6944_v28, 0.0 }
 0x519   :  { %v7028_v32 = vsel %vm6786_vm4, %v6943_v33, 0.0  ;;  %v21818_v27 = vpop.f32.mrb[24].mxu0 }
 0x51a   :  { %v7029_v39 = vadd.f32 %v7028_v32, %v7027_v35  ;;  %v21820_v15 = vpop.f32.mrb[25].mxu0  ;;  %v6833_v38 = vadd.f32 %v6832_v60, %v6831_v34  ;;  %v6946_v1 = vmul.f32 %v21818_v27, %v21818_v27  ;;  %v6836_v47 = vsel %vm6786_vm4, %v21818_v27, 0.0 }
 0x51b   :  { %v6834_v45 = vsel %vm6786_vm4, %v21820_v15, 0.0  ;;  %v6945_v40 = vmul.f32 %v21820_v15, %v21820_v15 }
 0x51c   :  { %v6835_v42 = vadd.f32 %v6834_v45, %v6833_v38  ;;  %v7031_v44 = vadd.f32 %v7030_v14, %v7029_v39  ;;  %v7034_v56 = vsel %vm6786_vm4, %v6946_v1, 0.0 }
 0x51d   :  { %v7032_v49 = vsel %vm6786_vm4, %v6945_v40, 0.0  ;;  %v21832_v50 = vpop.f32.mrb[26].mxu0 }
 0x51e   :  { %v7033_v51 = vadd.f32 %v7032_v49, %v7031_v44  ;;  %v21834_v53 = vpop.f32.mrb[27].mxu0  ;;  %v6837_v55 = vadd.f32 %v6836_v47, %v6835_v42  ;;  %v6948_v57 = vmul.f32 %v21832_v50, %v21832_v50  ;;  %v6840_v37 = vsel %vm6786_vm4, %v21832_v50, 0.0 }
 0x51f   :  { %v6838_v58 = vsel %vm6786_vm4, %v21834_v53, 0.0  ;;  %v6947_v61 = vmul.f32 %v21834_v53, %v21834_v53 }
 0x520   :  { %v6839_v63 = vadd.f32 %v6838_v58, %v6837_v55  ;;  %v7035_v3 = vadd.f32 %v7034_v56, %v7033_v51  ;;  %v7038_v13 = vsel %vm6786_vm4, %v6948_v57, 0.0 }
 0x521   :  { %v7036_v6 = vsel %vm6786_vm4, %v6947_v61, 0.0  ;;  %v21846_v7 = vpop.f32.mrb[28].mxu0 }
 0x522   :  { %v7037_v9 = vadd.f32 %v7036_v6, %v7035_v3  ;;  %v21848_v11 = vpop.f32.mrb[29].mxu0  ;;  %v6841_v12 = vadd.f32 %v6840_v37, %v6839_v63  ;;  %v6950_v16 = vmul.f32 %v21846_v7, %v21846_v7  ;;  %v6844_v30 = vsel %vm6786_vm4, %v21846_v7, 0.0 }
 0x523   :  { %v6842_v18 = vsel %vm6786_vm4, %v21848_v11, 0.0  ;;  %v6949_v23 = vmul.f32 %v21848_v11, %v21848_v11 }
 0x524   :  { %v6843_v29 = vadd.f32 %v6842_v18, %v6841_v12  ;;  %v7039_v28 = vadd.f32 %v7038_v13, %v7037_v9  ;;  %v7042_v39 = vsel %vm6786_vm4, %v6950_v16, 0.0 }
 0x525   :  { %v7040_v33 = vsel %vm6786_vm4, %v6949_v23, 0.0  ;;  %v21860_v34 = vpop.f32.mrb[30].mxu0 }
 0x526   :  { %v7041_v35 = vadd.f32 %v7040_v33, %v7039_v28  ;;  %v21862_v60 = vpop.f32.mrb[31].mxu0  ;;  %v6845_v32 = vadd.f32 %v6844_v30, %v6843_v29  ;;  %v6952_v38 = vmul.f32 %v21860_v34, %v21860_v34  ;;  %v6848_v42 = vsel %vm6786_vm4, %v21860_v34, 0.0 }
 0x527   :  { %v6846_v14 = vsel %vm6786_vm4, %v21862_v60, 0.0  ;;  %v6951_v1 = vmul.f32 %v21862_v60, %v21862_v60 }
 0x528   :  { %v6847_v45 = vadd.f32 %v6846_v14, %v6845_v32  ;;  %v7043_v40 = vadd.f32 %v7042_v39, %v7041_v35  ;;  %v7046_v56 = vsel %vm6786_vm4, %v6952_v38, 0.0 }
 0x529   :  { %v7044_v44 = vsel %vm6786_vm4, %v6951_v1, 0.0  ;;  %v21874_v47 = vpop.f32.mrb[32].mxu0 }
 0x52a   :  { %v7045_v49 = vadd.f32 %v7044_v44, %v7043_v40  ;;  %v21876_v51 = vpop.f32.mrb[33].mxu0  ;;  %v6849_v55 = vadd.f32 %v6848_v42, %v6847_v45  ;;  %v6954_v57 = vmul.f32 %v21874_v47, %v21874_v47  ;;  %v6852_v37 = vsel %vm6786_vm4, %v21874_v47, 0.0 }
 0x52b   :  { %v6850_v58 = vsel %vm6786_vm4, %v21876_v51, 0.0  ;;  %v6953_v61 = vmul.f32 %v21876_v51, %v21876_v51 }
 0x52c   :  { %v6851_v63 = vadd.f32 %v6850_v58, %v6849_v55  ;;  %v7047_v3 = vadd.f32 %v7046_v56, %v7045_v49  ;;  %v7050_v18 = vsel %vm6786_vm4, %v6954_v57, 0.0 }
 0x52d   :  { %v7048_v6 = vsel %vm6786_vm4, %v6953_v61, 0.0  ;;  %v21888_v9 = vpop.f32.mrb[34].mxu0 }
 0x52e   :  { %v7049_v12 = vadd.f32 %v7048_v6, %v7047_v3  ;;  %v21890_v13 = vpop.f32.mrb[35].mxu0  ;;  %v6853_v16 = vadd.f32 %v6852_v37, %v6851_v63  ;;  %v6956_v23 = vmul.f32 %v21888_v9, %v21888_v9  ;;  %v6856_v35 = vsel %vm6786_vm4, %v21888_v9, 0.0 }
 0x52f   :  { %v6854_v29 = vsel %vm6786_vm4, %v21890_v13, 0.0  ;;  %v6955_v28 = vmul.f32 %v21890_v13, %v21890_v13 }
 0x530   :  { %v6855_v30 = vadd.f32 %v6854_v29, %v6853_v16  ;;  %v7051_v33 = vadd.f32 %v7050_v18, %v7049_v12  ;;  %v7054_v45 = vsel %vm6786_vm4, %v6956_v23, 0.0 }
 0x531   :  { %v7052_v32 = vsel %vm6786_vm4, %v6955_v28, 0.0  ;;  %v21902_v39 = vpop.f32.mrb[36].mxu0 }
 0x532   :  { %v7053_v38 = vadd.f32 %v7052_v32, %v7051_v33  ;;  %v21904_v14 = vpop.f32.mrb[37].mxu0  ;;  %v6857_v1 = vadd.f32 %v6856_v35, %v6855_v30  ;;  %v6958_v40 = vmul.f32 %v21902_v39, %v21902_v39  ;;  %v6860_v56 = vsel %vm6786_vm4, %v21902_v39, 0.0 }
 0x533   :  { %v6858_v42 = vsel %vm6786_vm4, %v21904_v14, 0.0  ;;  %v6957_v44 = vmul.f32 %v21904_v14, %v21904_v14 }
 0x534   :  { %v6859_v49 = vadd.f32 %v6858_v42, %v6857_v1  ;;  %v7055_v55 = vadd.f32 %v7054_v45, %v7053_v38  ;;  %v7058_v37 = vsel %vm6786_vm4, %v6958_v40, 0.0 }
 0x535   :  { %v7056_v57 = vsel %vm6786_vm4, %v6957_v44, 0.0  ;;  %v21916_v58 = vpop.f32.mrb[38].mxu0 }
 0x536   :  { %v7057_v61 = vadd.f32 %v7056_v57, %v7055_v55  ;;  %v21918_v63 = vpop.f32.mrb[39].mxu0  ;;  %v6861_v3 = vadd.f32 %v6860_v56, %v6859_v49  ;;  %v6960_v6 = vmul.f32 %v21916_v58, %v21916_v58  ;;  %v6864_v29 = vsel %vm6786_vm4, %v21916_v58, 0.0 }
 0x537   :  { %v6862_v12 = vsel %vm6786_vm4, %v21918_v63, 0.0  ;;  %v6959_v16 = vmul.f32 %v21918_v63, %v21918_v63 }
 0x538   :  { %v6863_v18 = vadd.f32 %v6862_v12, %v6861_v3  ;;  %v7059_v23 = vadd.f32 %v7058_v37, %v7057_v61  ;;  %v7062_v38 = vsel %vm6786_vm4, %v6960_v6, 0.0 }
 0x539   :  { %v7060_v28 = vsel %vm6786_vm4, %v6959_v16, 0.0  ;;  %v21930_v30 = vpop.f32.mrb[40].mxu0 }
 0x53a   :  { %26288 = vst [vmem:[#allocation13_spill] sm:$0xff] %v21930_v30  ;;  %v7061_v33 = vadd.f32 %v7060_v28, %v7059_v23  ;;  %v21932_v35 = vpop.f32.mrb[41].mxu0  ;;  %v6865_v32 = vadd.f32 %v6864_v29, %v6863_v18  ;;  %v6962_v1 = vmul.f32 %v21930_v30, %v21930_v30  ;;  %v6868_v49 = vsel %vm6786_vm4, %v21930_v30, 0.0 }
 0x53b   :  { %26289 = vst [vmem:[#allocation14_spill] sm:$0xff] %v21932_v35  ;;  %v6866_v45 = vsel %vm6786_vm4, %v21932_v35, 0.0  ;;  %v6961_v40 = vmul.f32 %v21932_v35, %v21932_v35 }
 0x53c   :  { %v6867_v42 = vadd.f32 %v6866_v45, %v6865_v32  ;;  %v7063_v44 = vadd.f32 %v7062_v38, %v7061_v33  ;;  %v7066_v37 = vsel %vm6786_vm4, %v6962_v1, 0.0 }
 0x53d   :  { %v7064_v55 = vsel %vm6786_vm4, %v6961_v40, 0.0  ;;  %v21944_v56 = vpop.f32.mrb[42].mxu0 }
 0x53e   :  { %26290 = vst [vmem:[#allocation15_spill] sm:$0xff] %v21944_v56  ;;  %v7065_v57 = vadd.f32 %v7064_v55, %v7063_v44  ;;  %v21946_v61 = vpop.f32.mrb[43].mxu0  ;;  %v6869_v3 = vadd.f32 %v6868_v49, %v6867_v42  ;;  %v6964_v6 = vmul.f32 %v21944_v56, %v21944_v56  ;;  %v6872_v29 = vsel %vm6786_vm4, %v21944_v56, 0.0 }
 0x53f   :  { %26291 = vst [vmem:[#allocation16_spill] sm:$0xff] %v21946_v61  ;;  %v6870_v12 = vsel %vm6786_vm4, %v21946_v61, 0.0  ;;  %v6963_v16 = vmul.f32 %v21946_v61, %v21946_v61 }
 0x540   :  { %v6871_v18 = vadd.f32 %v6870_v12, %v6869_v3  ;;  %v7067_v23 = vadd.f32 %v7066_v37, %v7065_v57  ;;  %v7070_v45 = vsel %vm6786_vm4, %v6964_v6, 0.0 }
 0x541   :  { %v7068_v28 = vsel %vm6786_vm4, %v6963_v16, 0.0  ;;  %v21958_v33 = vpop.f32.mrb[44].mxu0 }
 0x542   :  { %26292 = vst [vmem:[#allocation17_spill] sm:$0xff] %v21958_v33  ;;  %v7069_v32 = vadd.f32 %v7068_v28, %v7067_v23  ;;  %v21960_v38 = vpop.f32.mrb[45].mxu0  ;;  %v6873_v1 = vadd.f32 %v6872_v29, %v6871_v18  ;;  %v6966_v40 = vmul.f32 %v21958_v33, %v21958_v33  ;;  %v6876_v57 = vsel %vm6786_vm4, %v21958_v33, 0.0 }
 0x543   :  { %26293 = vst [vmem:[#allocation18_spill] sm:$0xff] %v21960_v38  ;;  %v6874_v42 = vsel %vm6786_vm4, %v21960_v38, 0.0  ;;  %v6965_v44 = vmul.f32 %v21960_v38, %v21960_v38 }
 0x544   :  { %v6875_v49 = vadd.f32 %v6874_v42, %v6873_v1  ;;  %v7071_v55 = vadd.f32 %v7070_v45, %v7069_v32  ;;  %v7074_v18 = vsel %vm6786_vm4, %v6966_v40, 0.0 }
 0x545   :  { %v7072_v3 = vsel %vm6786_vm4, %v6965_v44, 0.0  ;;  %v21972_v37 = vpop.f32.mrb[46].mxu0 }
 0x546   :  { %26294 = vst [vmem:[#allocation19_spill] sm:$0xff] %v21972_v37  ;;  %v7073_v12 = vadd.f32 %v7072_v3, %v7071_v55  ;;  %v21974_v6 = vpop.f32.mrb[47].mxu0  ;;  %v6877_v16 = vadd.f32 %v6876_v57, %v6875_v49  ;;  %v6968_v23 = vmul.f32 %v21972_v37, %v21972_v37  ;;  %v6880_v45 = vsel %vm6786_vm4, %v21972_v37, 0.0 }
 0x547   :  { %26295 = vst [vmem:[#allocation20_spill] sm:$0xff] %v21974_v6  ;;  %v6878_v29 = vsel %vm6786_vm4, %v21974_v6, 0.0  ;;  %v6967_v28 = vmul.f32 %v21974_v6, %v21974_v6 }
 0x548   :  { %v6879_v32 = vadd.f32 %v6878_v29, %v6877_v16  ;;  %v7075_v1 = vadd.f32 %v7074_v18, %v7073_v12  ;;  %v7078_v57 = vsel %vm6786_vm4, %v6968_v23, 0.0 }
 0x549   :  { %v7076_v42 = vsel %vm6786_vm4, %v6967_v28, 0.0  ;;  %v21986_v44 = vpop.f32.mrb[48].mxu0 }
 0x54a   :  { %26296 = vst [vmem:[#allocation21_spill] sm:$0xff] %v21986_v44  ;;  %v7077_v49 = vadd.f32 %v7076_v42, %v7075_v1  ;;  %v21988_v40 = vpop.f32.mrb[49].mxu0  ;;  %v6881_v55 = vadd.f32 %v6880_v45, %v6879_v32  ;;  %v6970_v3 = vmul.f32 %v21986_v44, %v21986_v44  ;;  %v6884_v28 = vsel %vm6786_vm4, %v21986_v44, 0.0 }
 0x54b   :  { %26297 = vst [vmem:[#allocation22_spill] sm:$0xff] %v21988_v40  ;;  %v6882_v16 = vsel %vm6786_vm4, %v21988_v40, 0.0  ;;  %v6969_v12 = vmul.f32 %v21988_v40, %v21988_v40 }
 0x54c   :  { %v6883_v18 = vadd.f32 %v6882_v16, %v6881_v55  ;;  %v7079_v29 = vadd.f32 %v7078_v57, %v7077_v49  ;;  %v7082_v37 = vsel %vm6786_vm4, %v6970_v3, 0.0 }
 0x54d   :  { %v7080_v1 = vsel %vm6786_vm4, %v6969_v12, 0.0  ;;  %v22000_v42 = vpop.f32.mrb[50].mxu0 }
 0x54e   :  { %26298 = vst [vmem:[#allocation23_spill] sm:$0xff] %v22000_v42  ;;  %v7081_v32 = vadd.f32 %v7080_v1, %v7079_v29  ;;  %v22002_v23 = vpop.f32.mrb[51].mxu0  ;;  %v6885_v45 = vadd.f32 %v6884_v28, %v6883_v18  ;;  %v6972_v6 = vmul.f32 %v22000_v42, %v22000_v42  ;;  %v6888_v12 = vsel %vm6786_vm4, %v22000_v42, 0.0 }
 0x54f   :  { %26299 = vst [vmem:[#allocation24_spill] sm:$0xff] %v22002_v23  ;;  %v6886_v55 = vsel %vm6786_vm4, %v22002_v23, 0.0  ;;  %v6971_v49 = vmul.f32 %v22002_v23, %v22002_v23 }
 0x550   :  { %v6887_v57 = vadd.f32 %v6886_v55, %v6885_v45  ;;  %v7083_v16 = vadd.f32 %v7082_v37, %v7081_v32  ;;  %v7086_v44 = vsel %vm6786_vm4, %v6972_v6, 0.0 }
 0x551   :  { %v7084_v29 = vsel %vm6786_vm4, %v6971_v49, 0.0  ;;  %v22014_v1 = vpop.f32.mrb[52].mxu0 }
 0x552   :  { %26300 = vst [vmem:[#allocation25_spill] sm:$0xff] %v22014_v1  ;;  %v7085_v18 = vadd.f32 %v7084_v29, %v7083_v16  ;;  %v22016_v3 = vpop.f32.mrb[53].mxu0  ;;  %v6889_v28 = vadd.f32 %v6888_v12, %v6887_v57  ;;  %v6974_v40 = vmul.f32 %v22014_v1, %v22014_v1  ;;  %v6892_v49 = vsel %vm6786_vm4, %v22014_v1, 0.0 }
 0x553   :  { %26301 = vst [vmem:[#allocation26_spill] sm:$0xff] %v22016_v3  ;;  %v6890_v45 = vsel %vm6786_vm4, %v22016_v3, 0.0  ;;  %v6973_v37 = vmul.f32 %v22016_v3, %v22016_v3 }
 0x554   :  { %v6891_v32 = vadd.f32 %v6890_v45, %v6889_v28  ;;  %v7087_v55 = vadd.f32 %v7086_v44, %v7085_v18  ;;  %v7090_v42 = vsel %vm6786_vm4, %v6974_v40, 0.0 }
 0x555   :  { %v7088_v16 = vsel %vm6786_vm4, %v6973_v37, 0.0  ;;  %v22028_v29 = vpop.f32.mrb[54].mxu0 }
 0x556   :  { %26302 = vst [vmem:[#allocation27_spill] sm:$0xff] %v22028_v29  ;;  %v7089_v57 = vadd.f32 %v7088_v16, %v7087_v55  ;;  %v22030_v6 = vpop.f32.mrb[55].mxu0  ;;  %v6893_v12 = vadd.f32 %v6892_v49, %v6891_v32  ;;  %v6976_v23 = vmul.f32 %v22028_v29, %v22028_v29  ;;  %v6896_v37 = vsel %vm6786_vm4, %v22028_v29, 0.0 }
 0x557   :  { %26303 = vst [vmem:[#allocation28_spill] sm:$0xff] %v22030_v6  ;;  %v6894_v28 = vsel %vm6786_vm4, %v22030_v6, 0.0  ;;  %v6975_v44 = vmul.f32 %v22030_v6, %v22030_v6 }
 0x558   :  { %v6895_v18 = vadd.f32 %v6894_v28, %v6893_v12  ;;  %v7091_v45 = vadd.f32 %v7090_v42, %v7089_v57  ;;  %v7094_v1 = vsel %vm6786_vm4, %v6976_v23, 0.0 }
 0x559   :  { %v7092_v55 = vsel %vm6786_vm4, %v6975_v44, 0.0  ;;  %v22042_v16 = vpop.f32.mrb[56].mxu0 }
 0x55a   :  { %26304 = vst [vmem:[#allocation29_spill] sm:$0xff] %v22042_v16  ;;  %v7093_v32 = vadd.f32 %v7092_v55, %v7091_v45  ;;  %v22044_v40 = vpop.f32.mrb[57].mxu0  ;;  %v6897_v49 = vadd.f32 %v6896_v37, %v6895_v18  ;;  %v6978_v3 = vmul.f32 %v22042_v16, %v22042_v16  ;;  %v6900_v44 = vsel %vm6786_vm4, %v22042_v16, 0.0 }
 0x55b   :  { %26305 = vst [vmem:[#allocation30_spill] sm:$0xff] %v22044_v40  ;;  %v6898_v12 = vsel %vm6786_vm4, %v22044_v40, 0.0  ;;  %v6977_v42 = vmul.f32 %v22044_v40, %v22044_v40 }
 0x55c   :  { %v6899_v57 = vadd.f32 %v6898_v12, %v6897_v49  ;;  %v7095_v28 = vadd.f32 %v7094_v1, %v7093_v32  ;;  %v7098_v29 = vsel %vm6786_vm4, %v6978_v3, 0.0 }
 0x55d   :  { %v7096_v45 = vsel %vm6786_vm4, %v6977_v42, 0.0  ;;  %v22056_v55 = vpop.f32.mrb[58].mxu0 }
 0x55e   :  { %26306 = vst [vmem:[#allocation31_spill] sm:$0xff] %v22056_v55  ;;  %v7097_v18 = vadd.f32 %v7096_v45, %v7095_v28  ;;  %v22058_v23 = vpop.f32.mrb[59].mxu0  ;;  %v6901_v37 = vadd.f32 %v6900_v44, %v6899_v57  ;;  %v6980_v6 = vmul.f32 %v22056_v55, %v22056_v55  ;;  %v6904_v42 = vsel %vm6786_vm4, %v22056_v55, 0.0 }
 0x55f   :  { %26307 = vst [vmem:[#allocation32_spill] sm:$0xff] %v22058_v23  ;;  %v6902_v49 = vsel %vm6786_vm4, %v22058_v23, 0.0  ;;  %v6979_v1 = vmul.f32 %v22058_v23, %v22058_v23 }
 0x560   :  { %v6903_v32 = vadd.f32 %v6902_v49, %v6901_v37  ;;  %v7099_v12 = vadd.f32 %v7098_v29, %v7097_v18  ;;  %v7102_v16 = vsel %vm6786_vm4, %v6980_v6, 0.0 }
 0x561   :  { %v7100_v28 = vsel %vm6786_vm4, %v6979_v1, 0.0  ;;  %v22070_v45 = vpop.f32.mrb[60].mxu0 }
 0x562   :  { %26308 = vst [vmem:[#allocation33_spill] sm:$0xff] %v22070_v45  ;;  %v7101_v57 = vadd.f32 %v7100_v28, %v7099_v12  ;;  %v22072_v3 = vpop.f32.mrb[61].mxu0  ;;  %v6905_v44 = vadd.f32 %v6904_v42, %v6903_v32  ;;  %v6982_v40 = vmul.f32 %v22070_v45, %v22070_v45  ;;  %v6908_v1 = vsel %vm6786_vm4, %v22070_v45, 0.0 }
 0x563   :  { %26309 = vst [vmem:[#allocation34_spill] sm:$0xff] %v22072_v3  ;;  %v6906_v37 = vsel %vm6786_vm4, %v22072_v3, 0.0  ;;  %v6981_v29 = vmul.f32 %v22072_v3, %v22072_v3 }
 0x564   :  { %v6907_v18 = vadd.f32 %v6906_v37, %v6905_v44  ;;  %v7103_v49 = vadd.f32 %v7102_v16, %v7101_v57  ;;  %v7106_v55 = vsel %vm6786_vm4, %v6982_v40, 0.0  ;;  %v7828_v40 = vld [vmem:[%s25897_s4] sm:$0xff] }
 0x565   :  { %v7104_v12 = vsel %vm6786_vm4, %v6981_v29, 0.0  ;;  %v17841_v28 = vpop.f32.mrb[62].mxu0  ;;  %v15206_v29 = vld [vmem:[%s25897_s4 + $0x8] sm:$0xff] }
 0x566   :  { %v7105_v32 = vadd.f32 %v7104_v12, %v7103_v49  ;;  %v6713_v42 = vpop.f32.mrb[63].mxu0  ;;  %v6909_v6 = vadd.f32 %v6908_v1, %v6907_v18  ;;  %v6984_v23 = vmul.f32 %v17841_v28, %v17841_v28  ;;  %v6912_v44 = vsel %vm6786_vm4, %v17841_v28, 0.0  ;;  %v7829_v49 = vld [vmem:[#allocation3 + $0x1] sm:$0xff]  ;;  %17842 = vmatprep.subr.mxu1 %v15206_v29 }
 0x567   :  { %v6910_v33 = vsel %vm6786_vm4, %v6713_v42, 0.0  ;;  %v6983_v38 = vmul.f32 %v6713_v42, %v6713_v42  ;;  %17844 = vmatprep.mubr.msk.f32.mxu1 %vm6786_vm4, %v7829_v49  ;;  %17843 = vmatpush3.msra.mxu1 %v15206_v29 }
 0x568   :  { %v6911_v56 = vadd.f32 %v6910_v33, %v6909_v6  ;;  %v7107_v61 = vadd.f32 %v7106_v55, %v7105_v32  ;;  %v7110_v18 = vsel %vm6786_vm4, %v6984_v23, 0.0  ;;  %v7830_v33 = vld [vmem:[#allocation3 + $0x9] sm:$0xff]  ;;  %17940 = vmatprep.subr.mxu1 %v7828_v40 }
 0x569   :  { %v7108_v16 = vsel %vm6786_vm4, %v6983_v38, 0.0  ;;  %17845 = vmatmul.mubr.msk.f32.vlgmr.msra.gmra.mrb[0].mxu1 %vm6786_vm4, %v7830_v33  ;;  %v7130_v33 = vlaneseq }
 0x56a   :  { %v6913_v57 = vadd.f32 %v6912_v44, %v6911_v56  ;;  %v7109_v37 = vadd.f32 %v7108_v16, %v7107_v61  ;;  %17941 = vmatpush3.msra.mxu1 %v7828_v40  ;;  %v7122_v40 = vld [vmem:[%s25898_s2] sm:$0x1] }
 0x56c   :  { %v6914_v55 = vrot.slane %v6913_v57, 4  ;;  %v7111_v1 = vadd.f32 %v7110_v18, %v7109_v37 }
 0x56e   :  { %v6915_v56 = vadd.f32 %v6914_v55, %v6913_v57  ;;  %v7112_v61 = vrot.slane %v7111_v1, 4  ;;  %v7131_v57 = vshrl.u32 %v7130_v33, 7 }
 0x570   :  { %v6916_v38 = vrot.slane %v6915_v56, 2  ;;  %v7113_v12 = vadd.f32 %v7112_v61, %v7111_v1  ;;  %v22100_v55 = vsub.s32 0, %v7131_v57 }
 0x572   :  { %v6917_v32 = vadd.f32 %v6916_v38, %v6915_v56  ;;  %v7114_v6 = vrot.slane %v7113_v12, 2  ;;  %26310 = vst [vmem:[#allocation35_spill] sm:$0xff] %v22100_v55 }
 0x574   :  { %v6918_v44 = vrot.slane %v6917_v32, 1  ;;  %v7115_v16 = vadd.f32 %v7114_v6, %v7113_v12 }
 0x576   :  { %v6919_v23 = vadd.f32 %v6918_v44, %v6917_v32  ;;  %v7116_v45 = vrot.slane %v7115_v16, 1 }
 0x578   :  { %v6920_v3 = vmul.f32 0.001953125, %v6919_v23  ;;  %v7117_v49 = vadd.f32 %v7116_v45, %v7115_v16  ;;  %v7126_v45 = vld [vmem:[%s25899_s3] sm:$0x1] }
 0x57a   :  { %v7118_v30 = vmul.f32 0.001953125, %v7117_v49  ;;  %v7119_v35 = vmul.f32 %v6920_v3, %v6920_v3 }
 0x57c   :  { %v7120_v37 = vsub.f32 %v7118_v30, %v7119_v35 }
 0x57e   :  { %v7121_v29 = vmax.f32 %v7120_v37, 0.0 }
 0x580   :  { %v7123_v18 = vadd.f32 1e-05, %v7121_v29 }
 0x582   :  { %19749 = vrsqrt.f32 %v7123_v18 }
 0x58c   :  { %v19750_v1 = vpop.eup %19749 }
 0x58d   :  { %v7125_v56 = vmul.f32 %v19750_v1, %v7122_v40  ;;  %v26311_v40 = vld [vmem:[#allocation14_spill] sm:$0xff]  ;;  %v26312_v1 = vld [vmem:[#allocation13_spill] sm:$0xff] }
 0x58f   :  { %v7127_v61 = vmul.f32 %v7125_v56, %v6920_v3  ;;  %v22106_v30 = vrot.slane %v7125_v56, %v22100_v55  ;;  %v26313_v56 = vld [vmem:[#allocation16_spill] sm:$0xff] }
 0x591   :  { %v7128_v35 = vsub.f32 %v7126_v45, %v7127_v61  ;;  %v7197_v38 = vmul.f32 %v22106_v30, %v6713_v42  ;;  %v7198_v12 = vmul.f32 %v17841_v28, %v22106_v30  ;;  %v22112_v32 = vmul.f32 %v22106_v30, %v21657_v4  ;;  %v26314_v45 = vld [vmem:[#allocation15_spill] sm:$0xff]  ;;  %v26315_v61 = vld [vmem:[#allocation18_spill] sm:$0xff] }
 0x592   :  { %v22116_v6 = vmul.f32 %v21651_v0, %v22106_v30  ;;  %v22120_v44 = vmul.f32 %v22106_v30, %v21667_v10  ;;  %v22124_v3 = vmul.f32 %v21665_v8, %v22106_v30  ;;  %v22128_v42 = vmul.f32 %v22106_v30, %v21680_v25 }
 0x593   :  { %v22131_v28 = vrot.slane %v7128_v35, %v22100_v55  ;;  %v22135_v4 = vmul.f32 %v21678_v19, %v22106_v30  ;;  %v22139_v0 = vmul.f32 %v22106_v30, %v21694_v31  ;;  %v22143_v10 = vmul.f32 %v21692_v36, %v22106_v30  ;;  %v26316_v35 = vld [vmem:[#allocation17_spill] sm:$0xff]  ;;  %v26331_v55 = vld [vmem:[#allocation27_spill] sm:$0xff] }
 0x594   :  { %v22147_v8 = vmul.f32 %v22106_v30, %v21708_v22  ;;  %v22151_v25 = vmul.f32 %v21706_v41, %v22106_v30  ;;  %v22155_v19 = vmul.f32 %v22106_v30, %v21722_v54  ;;  %v22159_v31 = vmul.f32 %v21720_v52, %v22106_v30 }
 0x595   :  { %v7267_v16 = vadd.f32 %v22131_v28, %v7197_v38  ;;  %v7268_v36 = vadd.f32 %v22131_v28, %v7198_v12  ;;  %v22165_v22 = vmul.f32 %v22106_v30, %v21736_v5  ;;  %v22169_v41 = vmul.f32 %v21734_v43, %v22106_v30  ;;  %v26317_v12 = vld [vmem:[#allocation20_spill] sm:$0xff] }
 0x596   :  { %v22173_v54 = vmul.f32 %v22106_v30, %v21750_v26  ;;  %v22177_v52 = vmul.f32 %v21748_v20, %v22106_v30  ;;  %v22181_v23 = vmul.f32 %v22106_v30, %v21764_v21  ;;  %v22185_v5 = vmul.f32 %v21762_v59, %v22106_v30 }
 0x597   :  { %v7331_v49 = vmax.f32 %v7267_v16, 0.0  ;;  %v7332_v37 = vmax.f32 %v7268_v36, 0.0  ;;  %v22189_v43 = vmul.f32 %v22106_v30, %v21778_v48  ;;  %v22193_v26 = vmul.f32 %v21776_v46, %v22106_v30  ;;  %v26318_v36 = vld [vmem:[#allocation19_spill] sm:$0xff] }
 0x598   :  { %v22197_v20 = vmul.f32 %v22106_v30, %v21792_v2  ;;  %v22201_v21 = vmul.f32 %v21790_v62, %v22106_v30  ;;  %v22205_v59 = vmul.f32 %v22106_v30, %v21806_v24  ;;  %v22209_v48 = vmul.f32 %v21804_v17, %v22106_v30 }
 0x599   :  { %v7504_v29 = vrot.slane %v7331_v49, 7  ;;  %v7505_v18 = vrot.slane %v7332_v37, 7  ;;  %v22213_v46 = vmul.f32 %v22106_v30, %v21820_v15  ;;  %v22217_v2 = vmul.f32 %v21818_v27, %v22106_v30  ;;  %v26319_v37 = vld [vmem:[#allocation22_spill] sm:$0xff] }
 0x59a   :  { %v22221_v62 = vmul.f32 %v22106_v30, %v21834_v53  ;;  %v22225_v24 = vmul.f32 %v21832_v50, %v22106_v30  ;;  %v22229_v17 = vmul.f32 %v22106_v30, %v21848_v11  ;;  %v22233_v15 = vmul.f32 %v21846_v7, %v22106_v30 }
 0x59b   :  { %v7506_v33 = vsel %vm169_vm3, %v7504_v29, %v7505_v18  ;;  %v7634_v27 = vsel %vm169_vm3, 0.0, %v7504_v29  ;;  %v22239_v53 = vmul.f32 %v22106_v30, %v21862_v60  ;;  %v22243_v50 = vmul.f32 %v21860_v34, %v22106_v30 }
 0x59c   :  { %7761 = vst.msk [vmem:[#allocation3 + $0x330] sm:$0xff] %vm6786_vm4, %v7634_v27  ;;  %7762 = vst.msk [vmem:[#allocation3 + $0x338] sm:$0xff] %vm6786_vm4, %v7506_v33  ;;  %v22249_v7 = vmul.f32 %v22106_v30, %v21876_v51  ;;  %v22253_v11 = vmul.f32 %v21874_v47, %v22106_v30  ;;  %v22257_v60 = vmul.f32 %v22106_v30, %v21890_v13  ;;  %v26320_v33 = vld [vmem:[#allocation21_spill] sm:$0xff] }
 0x59d   :  { %v22261_v34 = vmul.f32 %v21888_v9, %v22106_v30  ;;  %v22265_v57 = vmul.f32 %v22106_v30, %v21904_v14  ;;  %v22269_v51 = vmul.f32 %v21902_v39, %v22106_v30  ;;  %v22273_v47 = vmul.f32 %v22106_v30, %v21918_v63 }
 0x59e   :  { %v22277_v13 = vmul.f32 %v21916_v58, %v22106_v30  ;;  %v22281_v9 = vmul.f32 %v22106_v30, %v26311_v40  ;;  %v22285_v14 = vmul.f32 %v26312_v1, %v22106_v30  ;;  %v22289_v39 = vmul.f32 %v22106_v30, %v26313_v56  ;;  %v26321_v40 = vld [vmem:[#allocation24_spill] sm:$0xff]  ;;  %v26323_v56 = vld [vmem:[#allocation23_spill] sm:$0xff] }
 0x59f   :  { %v22293_v63 = vmul.f32 %v26314_v45, %v22106_v30  ;;  %v22297_v58 = vmul.f32 %v22106_v30, %v26315_v61  ;;  %v22301_v38 = vmul.f32 %v26316_v35, %v22106_v30  ;;  %v22305_v16 = vmul.f32 %v22106_v30, %v26317_v12  ;;  %v26325_v61 = vld [vmem:[#allocation26_spill] sm:$0xff]  ;;  %v26327_v12 = vld [vmem:[#allocation25_spill] sm:$0xff] }
 0x5a0   :  { %v22309_v49 = vmul.f32 %v26318_v36, %v22106_v30  ;;  %v22313_v29 = vmul.f32 %v22106_v30, %v26319_v37  ;;  %v22317_v27 = vmul.f32 %v26320_v33, %v22106_v30  ;;  %v22321_v1 = vmul.f32 %v22106_v30, %v26321_v40  ;;  %v26329_v37 = vld [vmem:[#allocation28_spill] sm:$0xff] }
 0x5a1   :  { %v22325_v45 = vmul.f32 %v26323_v56, %v22106_v30  ;;  %v22329_v35 = vmul.f32 %v22106_v30, %v26325_v61  ;;  %v22333_v36 = vmul.f32 %v26327_v12, %v22106_v30  ;;  %v22337_v33 = vmul.f32 %v22106_v30, %v26329_v37 }
 0x5a2   :  { %26322 = vst [vmem:[#allocation36_spill] sm:$0xff] %v22321_v1  ;;  %v22341_v40 = vmul.f32 %v26331_v55, %v22106_v30  ;;  %v26333_v1 = vld [vmem:[#allocation30_spill] sm:$0xff] }
 0x5a3   :  { %26324 = vst [vmem:[#allocation37_spill] sm:$0xff] %v22325_v45  ;;  %26326 = vst [vmem:[#allocation38_spill] sm:$0xff] %v22329_v35  ;;  %v22345_v56 = vmul.f32 %v22106_v30, %v26333_v1  ;;  %v26335_v45 = vld [vmem:[#allocation29_spill] sm:$0xff]  ;;  %v26336_v35 = vld [vmem:[#allocation32_spill] sm:$0xff] }
 0x5a4   :  { %26328 = vst [vmem:[#allocation39_spill] sm:$0xff] %v22333_v36  ;;  %26330 = vst [vmem:[#allocation40_spill] sm:$0xff] %v22337_v33  ;;  %v22349_v61 = vmul.f32 %v26335_v45, %v22106_v30  ;;  %v22353_v12 = vmul.f32 %v22106_v30, %v26336_v35  ;;  %v26337_v36 = vld [vmem:[#allocation31_spill] sm:$0xff]  ;;  %v26338_v33 = vld [vmem:[#allocation34_spill] sm:$0xff]  ;;  %v22370_v45 = vadd.f32 %v22131_v28, %v22112_v32 }
 0x5a5   :  { %26332 = vst [vmem:[#allocation41_spill] sm:$0xff] %v22341_v40  ;;  %26334 = vst [vmem:[#allocation42_spill] sm:$0xff] %v22345_v56  ;;  %v22357_v37 = vmul.f32 %v26337_v36, %v22106_v30  ;;  %v22361_v55 = vmul.f32 %v22106_v30, %v26338_v33  ;;  %v26339_v40 = vld [vmem:[#allocation33_spill] sm:$0xff]  ;;  %v7666_v56 = vsel %vm169_vm3, %v7505_v18, 0.0  ;;  %v22374_v35 = vadd.f32 %v22131_v28, %v22116_v6 }
 0x5a6   :  { %v22365_v1 = vmul.f32 %v26339_v40, %v22106_v30  ;;  %v22378_v36 = vadd.f32 %v22131_v28, %v22120_v44  ;;  %v22382_v33 = vadd.f32 %v22131_v28, %v22124_v3  ;;  %v22386_v30 = vadd.f32 %v22131_v28, %v22128_v42  ;;  %7763 = vst.msk [vmem:[#allocation3 + $0x340] sm:$0x3] %vm7335_vm5, %v7666_v56 }
 0x5a7   :  { %v22391_v32 = vadd.f32 %v22131_v28, %v22135_v4  ;;  %v22395_v6 = vadd.f32 %v22131_v28, %v22139_v0  ;;  %v22399_v44 = vadd.f32 %v22131_v28, %v22143_v10  ;;  %v22403_v3 = vadd.f32 %v22131_v28, %v22147_v8 }
 0x5a8   :  { %v22407_v42 = vadd.f32 %v22131_v28, %v22151_v25  ;;  %v22411_v4 = vadd.f32 %v22131_v28, %v22155_v19  ;;  %v22415_v0 = vadd.f32 %v22131_v28, %v22159_v31  ;;  %v22419_v10 = vadd.f32 %v22131_v28, %v22165_v22 }
 0x5a9   :  { %v22423_v8 = vadd.f32 %v22131_v28, %v22169_v41  ;;  %v22427_v25 = vadd.f32 %v22131_v28, %v22173_v54  ;;  %v22431_v19 = vadd.f32 %v22131_v28, %v22177_v52  ;;  %v22435_v31 = vadd.f32 %v22131_v28, %v22181_v23 }
 0x5aa   :  { %v22439_v22 = vadd.f32 %v22131_v28, %v22185_v5  ;;  %v22443_v41 = vadd.f32 %v22131_v28, %v22189_v43  ;;  %v22447_v54 = vadd.f32 %v22131_v28, %v22193_v26  ;;  %v22451_v52 = vadd.f32 %v22131_v28, %v22197_v20  ;;  %v26350_v40 = vld [vmem:[#allocation37_spill] sm:$0xff]  ;;  %v26352_v56 = vld [vmem:[#allocation38_spill] sm:$0xff] }
 0x5ab   :  { %v22455_v23 = vadd.f32 %v22131_v28, %v22201_v21  ;;  %v22459_v5 = vadd.f32 %v22131_v28, %v22205_v59  ;;  %v22463_v43 = vadd.f32 %v22131_v28, %v22209_v48  ;;  %v22467_v26 = vadd.f32 %v22131_v28, %v22213_v46 }
 0x5ac   :  { %v22471_v20 = vadd.f32 %v22131_v28, %v22217_v2  ;;  %v22475_v21 = vadd.f32 %v22131_v28, %v22221_v62  ;;  %v22479_v59 = vadd.f32 %v22131_v28, %v22225_v24  ;;  %v22483_v48 = vadd.f32 %v22131_v28, %v22229_v17 }
 0x5ad   :  { %v22487_v18 = vadd.f32 %v22131_v28, %v22233_v15  ;;  %v22491_v46 = vadd.f32 %v22131_v28, %v22239_v53  ;;  %v22495_v2 = vadd.f32 %v22131_v28, %v22243_v50  ;;  %v22499_v62 = vadd.f32 %v22131_v28, %v22249_v7 }
 0x5ae   :  { %v22503_v24 = vadd.f32 %v22131_v28, %v22253_v11  ;;  %v22507_v17 = vadd.f32 %v22131_v28, %v22257_v60  ;;  %v22511_v15 = vadd.f32 %v22131_v28, %v22261_v34  ;;  %v22515_v53 = vadd.f32 %v22131_v28, %v22265_v57 }
 0x5af   :  { %v22519_v50 = vadd.f32 %v22131_v28, %v22269_v51  ;;  %v22523_v7 = vadd.f32 %v22131_v28, %v22273_v47  ;;  %v22527_v11 = vadd.f32 %v22131_v28, %v22277_v13  ;;  %v22531_v60 = vadd.f32 %v22131_v28, %v22281_v9 }
 0x5b0   :  { %v22535_v34 = vadd.f32 %v22131_v28, %v22285_v14  ;;  %v22539_v57 = vadd.f32 %v22131_v28, %v22289_v39  ;;  %v22543_v51 = vadd.f32 %v22131_v28, %v22293_v63  ;;  %v22547_v47 = vadd.f32 %v22131_v28, %v22297_v58  ;;  %v26348_v58 = vld [vmem:[#allocation36_spill] sm:$0xff] }
 0x5b1   :  { %26340 = vst [vmem:[#allocation43_spill] sm:$0xff] %v22519_v50  ;;  %26341 = vst [vmem:[#allocation44_spill] sm:$0xff] %v22523_v7  ;;  %v22551_v13 = vadd.f32 %v22131_v28, %v22301_v38  ;;  %v22555_v9 = vadd.f32 %v22131_v28, %v22305_v16  ;;  %v22559_v14 = vadd.f32 %v22131_v28, %v22309_v49 }
 0x5b2   :  { %26342 = vst [vmem:[#allocation45_spill] sm:$0xff] %v22527_v11  ;;  %v22563_v39 = vadd.f32 %v22131_v28, %v22313_v29  ;;  %v22567_v63 = vadd.f32 %v22131_v28, %v22317_v27  ;;  %v22571_v38 = vadd.f32 %v22131_v28, %v26348_v58  ;;  %v22575_v16 = vadd.f32 %v22131_v28, %v26350_v40 }
 0x5b3   :  { %26343 = vst [vmem:[#allocation46_spill] sm:$0xff] %v22551_v13  ;;  %26344 = vst [vmem:[#allocation47_spill] sm:$0xff] %v22555_v9  ;;  %v22579_v49 = vadd.f32 %v22131_v28, %v26352_v56  ;;  %v22599_v56 = vadd.f32 %v22131_v28, %v22349_v61  ;;  %v7270_v61 = vmax.f32 %v22374_v35, 0.0 }
 0x5b4   :  { %26345 = vst [vmem:[#allocation48_spill] sm:$0xff] %v22559_v14  ;;  %26346 = vst [vmem:[#allocation49_spill] sm:$0xff] %v22563_v39  ;;  %v26353_v14 = vld [vmem:[#allocation39_spill] sm:$0xff]  ;;  %v26354_v39 = vld [vmem:[#allocation40_spill] sm:$0xff] }
 0x5b5   :  { %26347 = vst [vmem:[#allocation50_spill] sm:$0xff] %v22567_v63  ;;  %26349 = vst [vmem:[#allocation51_spill] sm:$0xff] %v22571_v38  ;;  %v22583_v29 = vadd.f32 %v22131_v28, %v26353_v14  ;;  %v22587_v27 = vadd.f32 %v22131_v28, %v26354_v39  ;;  %v26355_v63 = vld [vmem:[#allocation41_spill] sm:$0xff]  ;;  %v26356_v38 = vld [vmem:[#allocation42_spill] sm:$0xff]  ;;  %v22603_v14 = vadd.f32 %v22131_v28, %v22353_v12  ;;  %v7272_v12 = vmax.f32 %v22382_v33, 0.0 }
 0x5b6   :  { %26351 = vst [vmem:[#allocation52_spill] sm:$0xff] %v22575_v16  ;;  %v22591_v58 = vadd.f32 %v22131_v28, %v26355_v63  ;;  %v22595_v40 = vadd.f32 %v22131_v28, %v26356_v38  ;;  %26358 = vst [vmem:[#allocation54_spill] sm:$0xff] %v22599_v56  ;;  %v22607_v39 = vadd.f32 %v22131_v28, %v22357_v37  ;;  %v7271_v56 = vmax.f32 %v22378_v36, 0.0 }
 0x5b7   :  { %26359 = vst [vmem:[#allocation55_spill] sm:$0xff] %v22603_v14  ;;  %v22611_v63 = vadd.f32 %v22131_v28, %v22361_v55  ;;  %v22615_v38 = vadd.f32 %v22131_v28, %v22365_v1  ;;  %v7273_v14 = vmax.f32 %v22386_v30, 0.0  ;;  %v7274_v37 = vmax.f32 %v22391_v32, 0.0 }
 0x5b8   :  { %26357 = vst [vmem:[#allocation53_spill] sm:$0xff] %v22595_v40  ;;  %26360 = vst [vmem:[#allocation56_spill] sm:$0xff] %v22607_v39  ;;  %v7269_v40 = vmax.f32 %v22370_v45, 0.0  ;;  %v7275_v39 = vmax.f32 %v22395_v6, 0.0  ;;  %v7276_v55 = vmax.f32 %v22399_v44, 0.0  ;;  %v22681_v35 = vrot.slane %v7270_v61, 7 }
 0x5b9   :  { %26361 = vst [vmem:[#allocation57_spill] sm:$0xff] %v22611_v63  ;;  %v7277_v63 = vmax.f32 %v22403_v3, 0.0  ;;  %v22683_v36 = vrot.slane %v7271_v56, 7  ;;  %v22685_v33 = vrot.slane %v7272_v12, 7  ;;  %v22687_v30 = vrot.slane %v7273_v14, 7 }
 0x5ba   :  { %v22679_v16 = vrot.slane %v7269_v40, 7  ;;  %v22689_v32 = vrot.slane %v7274_v37, 7  ;;  %v22691_v6 = vrot.slane %v7275_v39, 7  ;;  %v22693_v44 = vrot.slane %v7276_v55, 7 }
 0x5bb   :  { %v22695_v3 = vrot.slane %v7277_v63, 7  ;;  %v7416_v56 = vsel %vm169_vm3, %v22683_v36, %v22685_v33  ;;  %v26371_v61 = vmax.f32 %v22407_v42, 0.0  ;;  %v26372_v12 = vmax.f32 %v22411_v4, 0.0 }
 0x5bc   :  { %v26365_v11 = vld [vmem:[#allocation51_spill] sm:$0xff]  ;;  %v7413_v40 = vsel %vm169_vm3, %v22679_v16, %v22681_v35  ;;  %v7419_v63 = vsel %vm169_vm3, %v22687_v30, %v22689_v32  ;;  %v7422_v37 = vsel %vm169_vm3, %v22691_v6, %v22693_v44  ;;  %v26373_v55 = vmax.f32 %v22415_v0, 0.0  ;;  %7672 = vst.msk [vmem:[#allocation3 + $0x38] sm:$0xff] %vm6786_vm4, %v7416_v56 }
 0x5bd   :  { %v26367_v9 = vld [vmem:[#allocation54_spill] sm:$0xff]  ;;  %v22705_v14 = vrot.slane %v26371_v61, 7  ;;  %v22709_v39 = vrot.slane %v26372_v12, 7  ;;  %v26374_v42 = vmax.f32 %v22419_v10, 0.0  ;;  %7669 = vst.msk [vmem:[#allocation3 + $0x20] sm:$0xff] %vm6786_vm4, %v7413_v40  ;;  %v26375_v12 = vmax.f32 %v22423_v8, 0.0 }
 0x5be   :  { %v26368_v28 = vld [vmem:[#allocation55_spill] sm:$0xff]  ;;  %v22719_v45 = vrot.slane %v26373_v55, 7  ;;  %v26376_v0 = vmax.f32 %v22427_v25, 0.0  ;;  %v26377_v10 = vmax.f32 %v22431_v19, 0.0  ;;  %7675 = vst.msk [vmem:[#allocation3 + $0x50] sm:$0xff] %vm6786_vm4, %v7419_v63  ;;  %7678 = vst.msk [vmem:[#allocation3 + $0x68] sm:$0xff] %vm6786_vm4, %v7422_v37 }
 0x5bf   :  { %v26366_v13 = vld [vmem:[#allocation53_spill] sm:$0xff]  ;;  %v26369_v50 = vld [vmem:[#allocation56_spill] sm:$0xff]  ;;  %v22723_v61 = vrot.slane %v26374_v42, 7  ;;  %v7425_v4 = vsel %vm169_vm3, %v22695_v3, %v22705_v14  ;;  %v22732_v1 = vrot.slane %v26375_v12, 7  ;;  %v26379_v8 = vmax.f32 %v22435_v31, 0.0 }
 0x5c0   :  { %v26370_v7 = vld [vmem:[#allocation57_spill] sm:$0xff]  ;;  %v22736_v55 = vrot.slane %v26376_v0, 7  ;;  %v22740_v42 = vrot.slane %v26377_v10, 7  ;;  %v7428_v40 = vsel %vm169_vm3, %v22709_v39, %v22719_v45  ;;  %v26380_v25 = vmax.f32 %v22439_v22, 0.0  ;;  %7681 = vst.msk [vmem:[#allocation3 + $0x80] sm:$0xff] %vm6786_vm4, %v7425_v4 }
 0x5c1   :  { %v22749_v56 = vrot.slane %v26379_v8, 7  ;;  %v26381_v19 = vmax.f32 %v22443_v41, 0.0  ;;  %v7431_v63 = vsel %vm169_vm3, %v22723_v61, %v22732_v1  ;;  %v26382_v37 = vmax.f32 %v22447_v54, 0.0  ;;  %7684 = vst.msk [vmem:[#allocation3 + $0x98] sm:$0xff] %vm6786_vm4, %v7428_v40 }
 0x5c2   :  { %26378 = vst [vmem:[#allocation58_spill] sm:$0xff] %v22740_v42  ;;  %v22753_v12 = vrot.slane %v26380_v25, 7  ;;  %v7434_v31 = vsel %vm169_vm3, %v22736_v55, %v22740_v42  ;;  %v26383_v22 = vmax.f32 %v22451_v52, 0.0  ;;  %v26384_v4 = vmax.f32 %v22455_v23, 0.0  ;;  %7687 = vst.msk [vmem:[#allocation3 + $0xb0] sm:$0xff] %vm6786_vm4, %v7431_v63 }
 0x5c3   :  { %v22757_v0 = vrot.slane %v26381_v19, 7  ;;  %v22768_v10 = vrot.slane %v26382_v37, 7  ;;  %v26385_v19 = vmax.f32 %v22459_v5, 0.0  ;;  %v26386_v54 = vmax.f32 %v22463_v43, 0.0  ;;  %7690 = vst.msk [vmem:[#allocation3 + $0xc8] sm:$0xff] %vm6786_vm4, %v7434_v31 }
 0x5c4   :  { %v22772_v8 = vrot.slane %v26383_v22, 7  ;;  %v7437_v41 = vsel %vm169_vm3, %v22749_v56, %v22753_v12  ;;  %v22780_v25 = vrot.slane %v26384_v4, 7  ;;  %v26387_v23 = vmax.f32 %v22467_v26, 0.0 }
 0x5c5   :  { %v22784_v42 = vrot.slane %v26385_v19, 7  ;;  %v22788_v37 = vrot.slane %v26386_v54, 7  ;;  %v7440_v52 = vsel %vm169_vm3, %v22757_v0, %v22768_v10  ;;  %v26388_v5 = vmax.f32 %v22471_v20, 0.0  ;;  %7693 = vst.msk [vmem:[#allocation3 + $0xe0] sm:$0xff] %vm6786_vm4, %v7437_v41 }
 0x5c6   :  { %v22797_v40 = vrot.slane %v26387_v23, 7  ;;  %v26389_v43 = vmax.f32 %v22475_v21, 0.0  ;;  %v7443_v63 = vsel %vm169_vm3, %v22772_v8, %v22780_v25  ;;  %v26390_v31 = vmax.f32 %v22479_v59, 0.0  ;;  %7696 = vst.msk [vmem:[#allocation3 + $0xf8] sm:$0xff] %vm6786_vm4, %v7440_v52 }
 0x5c7   :  { %v22801_v22 = vrot.slane %v26388_v5, 7  ;;  %v7446_v26 = vsel %vm169_vm3, %v22784_v42, %v22788_v37  ;;  %v26392_v20 = vmax.f32 %v22483_v48, 0.0  ;;  %v26393_v41 = vmax.f32 %v22487_v18, 0.0  ;;  %7699 = vst.msk [vmem:[#allocation3 + $0x110] sm:$0xff] %vm6786_vm4, %v7443_v63 }
 0x5c8   :  { %v22805_v4 = vrot.slane %v26389_v43, 7  ;;  %v22816_v19 = vrot.slane %v26390_v31, 7  ;;  %v26395_v5 = vmax.f32 %v22491_v46, 0.0  ;;  %v26396_v59 = vmax.f32 %v22495_v2, 0.0  ;;  %7702 = vst.msk [vmem:[#allocation3 + $0x128] sm:$0xff] %vm6786_vm4, %v7446_v26 }
 0x5c9   :  { %v22820_v54 = vrot.slane %v26392_v20, 7  ;;  %v7449_v21 = vsel %vm169_vm3, %v22797_v40, %v22801_v22  ;;  %v22828_v23 = vrot.slane %v26393_v41, 7  ;;  %v26398_v18 = vmax.f32 %v22499_v62, 0.0 }
 0x5ca   :  { %26391 = vst [vmem:[#allocation59_spill] sm:$0xff] %v22816_v19  ;;  %v22832_v43 = vrot.slane %v26395_v5, 7  ;;  %v22836_v31 = vrot.slane %v26396_v59, 7  ;;  %v7452_v48 = vsel %vm169_vm3, %v22805_v4, %v22816_v19  ;;  %v26399_v46 = vmax.f32 %v22503_v24, 0.0  ;;  %7705 = vst.msk [vmem:[#allocation3 + $0x140] sm:$0xff] %vm6786_vm4, %v7449_v21  ;;  %v26404_v21 = vld [vmem:[#allocation43_spill] sm:$0xff] }
 0x5cb   :  { %26394 = vst [vmem:[#allocation60_spill] sm:$0xff] %v22828_v23  ;;  %v22845_v52 = vrot.slane %v26398_v18, 7  ;;  %v26400_v2 = vmax.f32 %v22507_v17, 0.0  ;;  %v7455_v63 = vsel %vm169_vm3, %v22820_v54, %v22828_v23  ;;  %v26401_v26 = vmax.f32 %v22511_v15, 0.0  ;;  %7708 = vst.msk [vmem:[#allocation3 + $0x158] sm:$0xff] %vm6786_vm4, %v7452_v48  ;;  %v26409_v15 = vld [vmem:[#allocation45_spill] sm:$0xff] }
 0x5cc   :  { %26397 = vst [vmem:[#allocation61_spill] sm:$0xff] %v22836_v31  ;;  %v22849_v20 = vrot.slane %v26399_v46, 7  ;;  %v7458_v62 = vsel %vm169_vm3, %v22832_v43, %v22836_v31  ;;  %v26403_v24 = vmax.f32 %v22515_v53, 0.0  ;;  %v26405_v18 = vmax.f32 %v26404_v21, 0.0  ;;  %7711 = vst.msk [vmem:[#allocation3 + $0x170] sm:$0xff] %vm6786_vm4, %v7455_v63 }
 0x5cd   :  { %v22853_v41 = vrot.slane %v26400_v2, 7  ;;  %v22864_v5 = vrot.slane %v26401_v26, 7  ;;  %v26407_v2 = vld [vmem:[#allocation44_spill] sm:$0xff]  ;;  %v26410_v26 = vmax.f32 %v26409_v15, 0.0  ;;  %7714 = vst.msk [vmem:[#allocation3 + $0x188] sm:$0xff] %vm6786_vm4, %v7458_v62  ;;  %v26412_v48 = vmax.f32 %v22531_v60, 0.0 }
 0x5ce   :  { %v22868_v59 = vrot.slane %v26403_v24, 7  ;;  %v7461_v17 = vsel %vm169_vm3, %v22845_v52, %v22849_v20  ;;  %v22876_v46 = vrot.slane %v26405_v18, 7  ;;  %v26408_v31 = vmax.f32 %v26407_v2, 0.0 }
 0x5cf   :  { %26402 = vst [vmem:[#allocation62_spill] sm:$0xff] %v22864_v5  ;;  %v22884_v19 = vrot.slane %v26410_v26, 7  ;;  %v7464_v53 = vsel %vm169_vm3, %v22853_v41, %v22864_v5  ;;  %v22893_v24 = vrot.slane %v26412_v48, 7  ;;  %v26413_v21 = vmax.f32 %v22535_v34, 0.0  ;;  %7717 = vst.msk [vmem:[#allocation3 + $0x1d0] sm:$0xff] %vm6786_vm4, %v7461_v17  ;;  %v26418_v17 = vld [vmem:[#allocation46_spill] sm:$0xff] }
 0x5d0   :  { %26406 = vst [vmem:[#allocation63_spill] sm:$0xff] %v22876_v46  ;;  %v22880_v23 = vrot.slane %v26408_v31, 7  ;;  %v26414_v18 = vmax.f32 %v22539_v57, 0.0  ;;  %v7467_v63 = vsel %vm169_vm3, %v22868_v59, %v22876_v46  ;;  %v26415_v62 = vmax.f32 %v22543_v51, 0.0  ;;  %7720 = vst.msk [vmem:[#allocation3 + $0x1e8] sm:$0xff] %vm6786_vm4, %v7464_v53  ;;  %v26423_v51 = vld [vmem:[#allocation48_spill] sm:$0xff] }
 0x5d1   :  { %26411 = vst [vmem:[#allocation64_spill] sm:$0xff] %v22884_v19  ;;  %v22897_v31 = vrot.slane %v26413_v21, 7  ;;  %v26417_v34 = vmax.f32 %v22547_v47, 0.0  ;;  %v26419_v48 = vmax.f32 %v26418_v17, 0.0  ;;  %7723 = vst.msk [vmem:[#allocation3 + $0x200] sm:$0xff] %vm6786_vm4, %v7467_v63  ;;  %v26426_v53 = vld [vmem:[#allocation49_spill] sm:$0xff] }
 0x5d2   :  { %v22901_v2 = vrot.slane %v26414_v18, 7  ;;  %v7470_v60 = vsel %vm169_vm3, %v22880_v23, %v22884_v19  ;;  %v22912_v15 = vrot.slane %v26415_v62, 7  ;;  %v26421_v18 = vld [vmem:[#allocation47_spill] sm:$0xff]  ;;  %v26424_v62 = vmax.f32 %v26423_v51, 0.0 }
 0x5d3   :  { %v22916_v26 = vrot.slane %v26417_v34, 7  ;;  %v7473_v57 = vsel %vm169_vm3, %v22893_v24, %v22897_v31  ;;  %v22924_v21 = vrot.slane %v26419_v48, 7  ;;  %v26422_v19 = vmax.f32 %v26421_v18, 0.0  ;;  %7726 = vst.msk [vmem:[#allocation3 + $0x218] sm:$0xff] %vm6786_vm4, %v7470_v60  ;;  %v26428_v48 = vld [vmem:[#allocation50_spill] sm:$0xff] }
 0x5d4   :  { %26416 = vst [vmem:[#allocation65_spill] sm:$0xff] %v22912_v15  ;;  %v22932_v5 = vrot.slane %v26424_v62, 7  ;;  %v7476_v47 = vsel %vm169_vm3, %v22901_v2, %v22912_v15  ;;  %v26427_v34 = vmax.f32 %v26426_v53, 0.0  ;;  %v26429_v18 = vmax.f32 %v26428_v48, 0.0  ;;  %7729 = vst.msk [vmem:[#allocation3 + $0x230] sm:$0xff] %vm6786_vm4, %v7473_v57  ;;  %v26431_v53 = vld [vmem:[#allocation52_spill] sm:$0xff] }
 0x5d5   :  { %26420 = vst [vmem:[#allocation4_spill] sm:$0xff] %v22924_v21  ;;  %v22928_v46 = vrot.slane %v26422_v19, 7  ;;  %v26430_v51 = vmax.f32 %v26365_v11, 0.0  ;;  %v7479_v63 = vsel %vm169_vm3, %v22916_v26, %v22924_v21  ;;  %v26433_v48 = vmax.f32 %v22579_v49, 0.0  ;;  %7732 = vst.msk [vmem:[#allocation3 + $0x248] sm:$0xff] %vm6786_vm4, %v7476_v47 }
 0x5d6   :  { %26425 = vst [vmem:[#allocation5_spill] sm:$0xff] %v22932_v5  ;;  %v22941_v17 = vrot.slane %v26427_v34, 7  ;;  %v22945_v19 = vrot.slane %v26429_v18, 7  ;;  %v26432_v34 = vmax.f32 %v26431_v53, 0.0  ;;  %v26434_v57 = vmax.f32 %v22583_v29, 0.0  ;;  %7735 = vst.msk [vmem:[#allocation3 + $0x260] sm:$0xff] %vm6786_vm4, %v7479_v63 }
 0x5d7   :  { %v22949_v62 = vrot.slane %v26430_v51, 7  ;;  %v7482_v60 = vsel %vm169_vm3, %v22928_v46, %v22932_v5  ;;  %v22964_v18 = vrot.slane %v26433_v48, 7  ;;  %v26435_v5 = vmax.f32 %v22587_v27, 0.0 }
 0x5d8   :  { %v22960_v15 = vrot.slane %v26432_v34, 7  ;;  %v7485_v11 = vsel %vm169_vm3, %v22941_v17, %v22945_v19  ;;  %v22972_v51 = vrot.slane %v26434_v57, 7  ;;  %v26436_v53 = vmax.f32 %v22591_v58, 0.0  ;;  %7738 = vst.msk [vmem:[#allocation3 + $0x278] sm:$0xff] %vm6786_vm4, %v7482_v60 }
 0x5d9   :  { %v22976_v21 = vrot.slane %v26435_v5, 7  ;;  %v26437_v29 = vmax.f32 %v26366_v13, 0.0  ;;  %v26438_v27 = vmax.f32 %v26367_v9, 0.0  ;;  %v26439_v58 = vmax.f32 %v26368_v28, 0.0  ;;  %7741 = vst.msk [vmem:[#allocation3 + $0x290] sm:$0xff] %vm6786_vm4, %v7485_v11 }
 0x5da   :  { %v22980_v34 = vrot.slane %v26436_v53, 7  ;;  %v7488_v49 = vsel %vm169_vm3, %v22949_v62, %v22960_v15  ;;  %v7491_v63 = vsel %vm169_vm3, %v22964_v18, %v22972_v51  ;;  %v26440_v60 = vmax.f32 %v26369_v50, 0.0 }
 0x5db   :  { %v22989_v47 = vrot.slane %v26437_v29, 7  ;;  %v22993_v5 = vrot.slane %v26438_v27, 7  ;;  %v22997_v48 = vrot.slane %v26439_v58, 7  ;;  %v26441_v9 = vmax.f32 %v26370_v7, 0.0  ;;  %7744 = vst.msk [vmem:[#allocation3 + $0x2a8] sm:$0xff] %vm6786_vm4, %v7488_v49  ;;  %7747 = vst.msk [vmem:[#allocation3 + $0x2c0] sm:$0xff] %vm6786_vm4, %v7491_v63 }
 0x5dc   :  { %v7494_v13 = vsel %vm169_vm3, %v22976_v21, %v22980_v34  ;;  %v23008_v57 = vrot.slane %v26440_v60, 7  ;;  %v26442_v11 = vmax.f32 %v22615_v38, 0.0  ;;  %v7603_v27 = vsel %vm169_vm3, 0.0, %v22679_v16 }
 0x5dd   :  { %v23012_v53 = vrot.slane %v26441_v9, 7  ;;  %v7497_v28 = vsel %vm169_vm3, %v22989_v47, %v22993_v5  ;;  %v7604_v50 = vsel %vm169_vm3, 0.0, %v22683_v36  ;;  %7750 = vst.msk [vmem:[#allocation3 + $0x2d8] sm:$0xff] %vm6786_vm4, %v7494_v13  ;;  %v7605_v49 = vsel %vm169_vm3, 0.0, %v22687_v30  ;;  %7668 = vst.msk [vmem:[#allocation3 + $0x18] sm:$0xff] %vm6786_vm4, %v7603_v27  ;;  %v26447_v27 = vld [vmem:[#allocation62_spill] sm:$0xff] }
 0x5de   :  { %v23020_v29 = vrot.slane %v26442_v11, 7  ;;  %v7500_v7 = vsel %vm169_vm3, %v22997_v48, %v23008_v57  ;;  %v7606_v38 = vsel %vm169_vm3, 0.0, %v22691_v6  ;;  %v7607_v16 = vsel %vm169_vm3, 0.0, %v22695_v3  ;;  %7671 = vst.msk [vmem:[#allocation3 + $0x30] sm:$0xff] %vm6786_vm4, %v7604_v50  ;;  %7753 = vst.msk [vmem:[#allocation3 + $0x2f0] sm:$0xff] %vm6786_vm4, %v7497_v28  ;;  %v26445_v28 = vld [vmem:[#allocation60_spill] sm:$0xff] }
 0x5df   :  { %v7608_v58 = vsel %vm169_vm3, 0.0, %v22709_v39  ;;  %v7609_v30 = vsel %vm169_vm3, 0.0, %v22723_v61  ;;  %v7610_v6 = vsel %vm169_vm3, 0.0, %v22736_v55  ;;  %7674 = vst.msk [vmem:[#allocation3 + $0x48] sm:$0xff] %vm6786_vm4, %v7605_v49  ;;  %7677 = vst.msk [vmem:[#allocation3 + $0x60] sm:$0xff] %vm6786_vm4, %v7606_v38  ;;  %v7611_v3 = vsel %vm169_vm3, 0.0, %v22749_v56 }
 0x5e0   :  { %v7503_v36 = vsel %vm169_vm3, %v23012_v53, %v23020_v29  ;;  %7680 = vst.msk [vmem:[#allocation3 + $0x78] sm:$0xff] %vm6786_vm4, %v7607_v16  ;;  %7756 = vst.msk [vmem:[#allocation3 + $0x308] sm:$0xff] %vm6786_vm4, %v7500_v7  ;;  %v7612_v39 = vsel %vm169_vm3, 0.0, %v22757_v0  ;;  %v7613_v61 = vsel %vm169_vm3, 0.0, %v22772_v8  ;;  %v7614_v55 = vsel %vm169_vm3, 0.0, %v22784_v42  ;;  %v26446_v11 = vld [vmem:[#allocation61_spill] sm:$0xff] }
 0x5e1   :  { %7683 = vst.msk [vmem:[#allocation3 + $0x90] sm:$0xff] %vm6786_vm4, %v7608_v58  ;;  %7686 = vst.msk [vmem:[#allocation3 + $0xa8] sm:$0xff] %vm6786_vm4, %v7609_v30  ;;  %v7615_v56 = vsel %vm169_vm3, 0.0, %v22797_v40  ;;  %v7616_v0 = vsel %vm169_vm3, 0.0, %v22805_v4  ;;  %v7617_v8 = vsel %vm169_vm3, 0.0, %v22820_v54  ;;  %v7618_v42 = vsel %vm169_vm3, 0.0, %v22832_v43 }
 0x5e2   :  { %7689 = vst.msk [vmem:[#allocation3 + $0xc0] sm:$0xff] %vm6786_vm4, %v7610_v6  ;;  %7759 = vst.msk [vmem:[#allocation3 + $0x320] sm:$0xff] %vm6786_vm4, %v7503_v36  ;;  %v7619_v40 = vsel %vm169_vm3, 0.0, %v22845_v52  ;;  %v7620_v4 = vsel %vm169_vm3, 0.0, %v22853_v41  ;;  %v7621_v54 = vsel %vm169_vm3, 0.0, %v22868_v59  ;;  %v7622_v43 = vsel %vm169_vm3, 0.0, %v22880_v23 }
 0x5e3   :  { %7692 = vst.msk [vmem:[#allocation3 + $0xd8] sm:$0xff] %vm6786_vm4, %v7611_v3  ;;  %7695 = vst.msk [vmem:[#allocation3 + $0xf0] sm:$0xff] %vm6786_vm4, %v7612_v39  ;;  %v7623_v52 = vsel %vm169_vm3, 0.0, %v22893_v24  ;;  %v7624_v41 = vsel %vm169_vm3, 0.0, %v22901_v2  ;;  %v7625_v59 = vsel %vm169_vm3, 0.0, %v22916_v26  ;;  %v7626_v23 = vsel %vm169_vm3, 0.0, %v22928_v46 }
 0x5e4   :  { %7698 = vst.msk [vmem:[#allocation3 + $0x108] sm:$0xff] %vm6786_vm4, %v7613_v61  ;;  %7701 = vst.msk [vmem:[#allocation3 + $0x120] sm:$0xff] %vm6786_vm4, %v7614_v55  ;;  %v7627_v24 = vsel %vm169_vm3, 0.0, %v22941_v17  ;;  %v7628_v2 = vsel %vm169_vm3, 0.0, %v22949_v62  ;;  %v7629_v26 = vsel %vm169_vm3, 0.0, %v22964_v18  ;;  %v7630_v46 = vsel %vm169_vm3, 0.0, %v22976_v21 }
 0x5e5   :  { %7704 = vst.msk [vmem:[#allocation3 + $0x138] sm:$0xff] %vm6786_vm4, %v7615_v56  ;;  %7707 = vst.msk [vmem:[#allocation3 + $0x150] sm:$0xff] %vm6786_vm4, %v7616_v0  ;;  %v7631_v17 = vsel %vm169_vm3, 0.0, %v22989_v47  ;;  %v7632_v62 = vsel %vm169_vm3, 0.0, %v22997_v48  ;;  %v7633_v18 = vsel %vm169_vm3, 0.0, %v23012_v53  ;;  %v7635_v21 = vsel %vm169_vm3, %v22681_v35, 0.0 }
 0x5e6   :  { %7710 = vst.msk [vmem:[#allocation3 + $0x168] sm:$0xff] %vm6786_vm4, %v7617_v8  ;;  %7713 = vst.msk [vmem:[#allocation3 + $0x180] sm:$0xff] %vm6786_vm4, %v7618_v42  ;;  %v7831_v63 = vld [vmem:[#allocation3 + $0x19] sm:$0xff]  ;;  %v7636_v47 = vsel %vm169_vm3, %v22685_v33, 0.0  ;;  %v7637_v48 = vsel %vm169_vm3, %v22689_v32, 0.0  ;;  %v7638_v13 = vsel %vm169_vm3, %v22693_v44, 0.0 }
 0x5e7   :  { %7716 = vst.msk [vmem:[#allocation3 + $0x1c8] sm:$0xff] %vm6786_vm4, %v7619_v40  ;;  %7719 = vst.msk [vmem:[#allocation3 + $0x1e0] sm:$0xff] %vm6786_vm4, %v7620_v4  ;;  %v7639_v35 = vsel %vm169_vm3, %v22705_v14, 0.0  ;;  %17847 = vmatprep.mubr.msk.f32.mxu1 %vm6786_vm4, %v7831_v63  ;;  %v7640_v33 = vsel %vm169_vm3, %v22719_v45, 0.0  ;;  %v7641_v32 = vsel %vm169_vm3, %v22732_v1, 0.0  ;;  %v26443_v44 = vld [vmem:[#allocation58_spill] sm:$0xff] }
 0x5e8   :  { %7722 = vst.msk [vmem:[#allocation3 + $0x1f8] sm:$0xff] %vm6786_vm4, %v7621_v54  ;;  %7725 = vst.msk [vmem:[#allocation3 + $0x210] sm:$0xff] %vm6786_vm4, %v7622_v43  ;;  %v7642_v60 = vsel %vm169_vm3, %v26443_v44, 0.0  ;;  %v7643_v14 = vsel %vm169_vm3, %v22753_v12, 0.0  ;;  %v7644_v45 = vsel %vm169_vm3, %v22768_v10, 0.0  ;;  %v7645_v1 = vsel %vm169_vm3, %v22780_v25, 0.0 }
 0x5e9   :  { %7728 = vst.msk [vmem:[#allocation3 + $0x228] sm:$0xff] %vm6786_vm4, %v7623_v52  ;;  %7731 = vst.msk [vmem:[#allocation3 + $0x240] sm:$0xff] %vm6786_vm4, %v7624_v41  ;;  %v7646_v9 = vsel %vm169_vm3, %v22788_v37, 0.0  ;;  %v7647_v12 = vsel %vm169_vm3, %v22801_v22, 0.0  ;;  %v26444_v53 = vld [vmem:[#allocation59_spill] sm:$0xff]  ;;  %v7649_v25 = vsel %vm169_vm3, %v26445_v28, 0.0 }
 0x5ea   :  { %7734 = vst.msk [vmem:[#allocation3 + $0x258] sm:$0xff] %vm6786_vm4, %v7625_v59  ;;  %7737 = vst.msk [vmem:[#allocation3 + $0x270] sm:$0xff] %vm6786_vm4, %v7626_v23  ;;  %v7648_v10 = vsel %vm169_vm3, %v26444_v53, 0.0  ;;  %v7650_v37 = vsel %vm169_vm3, %v26446_v11, 0.0  ;;  %v7651_v22 = vsel %vm169_vm3, %v22849_v20, 0.0  ;;  %v7652_v50 = vsel %vm169_vm3, %v26447_v27, 0.0 }
 0x5eb   :  { %7740 = vst.msk [vmem:[#allocation3 + $0x288] sm:$0xff] %vm6786_vm4, %v7627_v24  ;;  %7743 = vst.msk [vmem:[#allocation3 + $0x2a0] sm:$0xff] %vm6786_vm4, %v7628_v2  ;;  %v26448_v7 = vld [vmem:[#allocation63_spill] sm:$0xff]  ;;  %v26449_v38 = vld [vmem:[#allocation64_spill] sm:$0xff]  ;;  %v7655_v20 = vsel %vm169_vm3, %v22897_v31, 0.0  ;;  %v7659_v31 = vsel %vm169_vm3, %v22945_v19, 0.0 }
 0x5ec   :  { %7746 = vst.msk [vmem:[#allocation3 + $0x2b8] sm:$0xff] %vm6786_vm4, %v7629_v26  ;;  %7749 = vst.msk [vmem:[#allocation3 + $0x2d0] sm:$0xff] %vm6786_vm4, %v7630_v46  ;;  %v7653_v49 = vsel %vm169_vm3, %v26448_v7, 0.0  ;;  %v7654_v16 = vsel %vm169_vm3, %v26449_v38, 0.0  ;;  %v26450_v36 = vld [vmem:[#allocation65_spill] sm:$0xff]  ;;  %v26451_v30 = vld [vmem:[#allocation4_spill] sm:$0xff] }
 0x5ed   :  { %7670 = vst.msk [vmem:[#allocation3 + $0x28] sm:$0x3] %vm7335_vm5, %v7635_v21  ;;  %7673 = vst.msk [vmem:[#allocation3 + $0x40] sm:$0x3] %vm7335_vm5, %v7636_v47  ;;  %v7656_v58 = vsel %vm169_vm3, %v26450_v36, 0.0  ;;  %v7657_v6 = vsel %vm169_vm3, %v26451_v30, 0.0 }
 0x5ee   :  { %7752 = vst.msk [vmem:[#allocation3 + $0x2e8] sm:$0xff] %vm6786_vm4, %v7631_v17  ;;  %7755 = vst.msk [vmem:[#allocation3 + $0x300] sm:$0xff] %vm6786_vm4, %v7632_v62  ;;  %v26452_v3 = vld [vmem:[#allocation5_spill] sm:$0xff]  ;;  %v7660_v61 = vsel %vm169_vm3, %v22960_v15, 0.0  ;;  %v7661_v55 = vsel %vm169_vm3, %v22972_v51, 0.0  ;;  %v7662_v56 = vsel %vm169_vm3, %v22980_v34, 0.0 }
 0x5ef   :  { %7758 = vst.msk [vmem:[#allocation3 + $0x318] sm:$0xff] %vm6786_vm4, %v7633_v18  ;;  %v7658_v39 = vsel %vm169_vm3, %v26452_v3, 0.0  ;;  %v7663_v19 = vsel %vm169_vm3, %v22993_v5, 0.0  ;;  %v7664_v15 = vsel %vm169_vm3, %v23008_v57, 0.0  ;;  %v7665_v51 = vsel %vm169_vm3, %v23020_v29, 0.0  ;;  %v7833_v5 = vld [vmem:[#allocation3 + $0x31] sm:$0xff] }
 0x5f0   :  { %7676 = vst.msk [vmem:[#allocation3 + $0x58] sm:$0x3] %vm7335_vm5, %v7637_v48  ;;  %7679 = vst.msk [vmem:[#allocation3 + $0x70] sm:$0x3] %vm7335_vm5, %v7638_v13  ;;  %v7835_v29 = vld [vmem:[#allocation3 + $0x49] sm:$0xff]  ;;  %v7837_v8 = vld [vmem:[#allocation3 + $0x61] sm:$0xff] }
 0x5f1   :  { %7682 = vst.msk [vmem:[#allocation3 + $0x88] sm:$0x3] %vm7335_vm5, %v7639_v35  ;;  %7685 = vst.msk [vmem:[#allocation3 + $0xa0] sm:$0x3] %vm7335_vm5, %v7640_v33  ;;  %v7839_v40 = vld [vmem:[#allocation3 + $0x79] sm:$0xff]  ;;  %v23231_v4 = vld [vmem:[%s25897_s4 + $0x10] sm:$0xff] }
 0x5f2   :  { %7688 = vst.msk [vmem:[#allocation3 + $0xb8] sm:$0x3] %vm7335_vm5, %v7641_v32  ;;  %7691 = vst.msk [vmem:[#allocation3 + $0xd0] sm:$0x3] %vm7335_vm5, %v7642_v60  ;;  %18038 = vmatprep.subr.mxu1 %v23231_v4  ;;  %v7841_v43 = vld [vmem:[#allocation3 + $0x91] sm:$0xff]  ;;  %v7843_v41 = vld [vmem:[#allocation3 + $0xa9] sm:$0xff] }
 0x5f3   :  { %7694 = vst.msk [vmem:[#allocation3 + $0xe8] sm:$0x3] %vm7335_vm5, %v7643_v14  ;;  %7697 = vst.msk [vmem:[#allocation3 + $0x100] sm:$0x3] %vm7335_vm5, %v7644_v45  ;;  %v7845_v23 = vld [vmem:[#allocation3 + $0xc1] sm:$0xff]  ;;  %v7847_v2 = vld [vmem:[#allocation3 + $0xd9] sm:$0xff] }
 0x5f4   :  { %7700 = vst.msk [vmem:[#allocation3 + $0x118] sm:$0x3] %vm7335_vm5, %v7645_v1  ;;  %7703 = vst.msk [vmem:[#allocation3 + $0x130] sm:$0x3] %vm7335_vm5, %v7646_v9  ;;  %v7832_v34 = vld [vmem:[#allocation3 + $0x21] sm:$0xff]  ;;  %v7834_v57 = vld [vmem:[#allocation3 + $0x39] sm:$0xff] }
 0x5f5   :  { %7706 = vst.msk [vmem:[#allocation3 + $0x148] sm:$0x3] %vm7335_vm5, %v7647_v12  ;;  %7709 = vst.msk [vmem:[#allocation3 + $0x160] sm:$0x3] %vm7335_vm5, %v7648_v10  ;;  %17848 = vmatmul.mubr.msk.f32.gmra.mrb[2].mxu1 %vm6786_vm4, %v7832_v34  ;;  %v7849_v46 = vld [vmem:[#allocation3 + $0xf1] sm:$0xff]  ;;  %v7851_v62 = vld [vmem:[#allocation3 + $0x109] sm:$0xff] }
 0x5f6   :  { %7712 = vst.msk [vmem:[#allocation3 + $0x178] sm:$0x3] %vm7335_vm5, %v7649_v25  ;;  %7715 = vst.msk [vmem:[#allocation3 + $0x190] sm:$0x3] %vm7335_vm5, %v7650_v37  ;;  %17850 = vmatprep.mubr.msk.f32.mxu1 %vm6786_vm4, %v7833_v5  ;;  %v7853_v21 = vld [vmem:[#allocation3 + $0x121] sm:$0xff]  ;;  %v7855_v47 = vld [vmem:[#allocation3 + $0x139] sm:$0xff] }
 0x5f7   :  { %7718 = vst.msk [vmem:[#allocation3 + $0x1d8] sm:$0x3] %vm7335_vm5, %v7651_v22  ;;  %7721 = vst.msk [vmem:[#allocation3 + $0x1f0] sm:$0x3] %vm7335_vm5, %v7652_v50  ;;  %v7836_v0 = vld [vmem:[#allocation3 + $0x51] sm:$0xff]  ;;  %v7838_v42 = vld [vmem:[#allocation3 + $0x69] sm:$0xff] }
 0x5f8   :  { %7724 = vst.msk [vmem:[#allocation3 + $0x208] sm:$0x3] %vm7335_vm5, %v7653_v49  ;;  %7727 = vst.msk [vmem:[#allocation3 + $0x220] sm:$0x3] %vm7335_vm5, %v7654_v16  ;;  %v7840_v54 = vld [vmem:[#allocation3 + $0x81] sm:$0xff]  ;;  %v7842_v52 = vld [vmem:[#allocation3 + $0x99] sm:$0xff] }
 0x5f9   :  { %7730 = vst.msk [vmem:[#allocation3 + $0x238] sm:$0x3] %vm7335_vm5, %v7655_v20  ;;  %7733 = vst.msk [vmem:[#allocation3 + $0x250] sm:$0x3] %vm7335_vm5, %v7656_v58  ;;  %17851 = vmatmul.mubr.msk.f32.gmra.mrb[4].mxu1 %vm6786_vm4, %v7834_v57  ;;  %v7844_v59 = vld [vmem:[#allocation3 + $0xb1] sm:$0xff]  ;;  %v7846_v24 = vld [vmem:[#allocation3 + $0xc9] sm:$0xff] }
 0x5fa   :  { %7736 = vst.msk [vmem:[#allocation3 + $0x268] sm:$0x3] %vm7335_vm5, %v7657_v6  ;;  %7739 = vst.msk [vmem:[#allocation3 + $0x280] sm:$0x3] %vm7335_vm5, %v7658_v39  ;;  %17853 = vmatprep.mubr.msk.f32.mxu1 %vm6786_vm4, %v7835_v29  ;;  %v7848_v26 = vld [vmem:[#allocation3 + $0xe1] sm:$0xff]  ;;  %v7850_v17 = vld [vmem:[#allocation3 + $0xf9] sm:$0xff] }
 0x5fb   :  { %7742 = vst.msk [vmem:[#allocation3 + $0x298] sm:$0x3] %vm7335_vm5, %v7659_v31  ;;  %7745 = vst.msk [vmem:[#allocation3 + $0x2b0] sm:$0x3] %vm7335_vm5, %v7660_v61  ;;  %v7852_v18 = vld [vmem:[#allocation3 + $0x111] sm:$0xff]  ;;  %v7854_v63 = vld [vmem:[#allocation3 + $0x129] sm:$0xff] }
 0x5fc   :  { %7748 = vst.msk [vmem:[#allocation3 + $0x2c8] sm:$0x3] %vm7335_vm5, %v7661_v55  ;;  %7751 = vst.msk [vmem:[#allocation3 + $0x2e0] sm:$0x3] %vm7335_vm5, %v7662_v56  ;;  %v7856_v48 = vld [vmem:[#allocation3 + $0x141] sm:$0xff]  ;;  %v7857_v13 = vld [vmem:[#allocation3 + $0x151] sm:$0xff] }
 0x5fd   :  { %7754 = vst.msk [vmem:[#allocation3 + $0x2f8] sm:$0x3] %vm7335_vm5, %v7663_v19  ;;  %7757 = vst.msk [vmem:[#allocation3 + $0x310] sm:$0x3] %vm7335_vm5, %v7664_v15  ;;  %17854 = vmatmul.mubr.msk.f32.gmra.mrb[6].mxu1 %vm6786_vm4, %v7836_v0  ;;  %v7858_v35 = vld [vmem:[#allocation3 + $0x159] sm:$0xff]  ;;  %v7859_v33 = vld [vmem:[#allocation3 + $0x169] sm:$0xff] }
 0x5fe   :  { %7760 = vst.msk [vmem:[#allocation3 + $0x328] sm:$0x3] %vm7335_vm5, %v7665_v51  ;;  %17856 = vmatprep.mubr.msk.f32.mxu1 %vm6786_vm4, %v7837_v8  ;;  %v7861_v32 = vld [vmem:[#allocation3 + $0x1b1] sm:$0xff]  ;;  %v7862_v60 = vld [vmem:[#allocation3 + $0x1b9] sm:$0xff]  ;;  %v7863_v14 = vld [vmem:[#allocation3 + $0x1c9] sm:$0xff] }
 0x5ff   :  { %v7860_v44 = vld [vmem:[#allocation3 + $0x171] sm:$0xff]  ;;  %v7865_v1 = vld [vmem:[#allocation3 + $0x1e1] sm:$0xff]  ;;  %v7866_v9 = vld [vmem:[#allocation3 + $0x1e9] sm:$0xff] }
 0x600   :  { %v7864_v45 = vld [vmem:[#allocation3 + $0x1d1] sm:$0xff]  ;;  %v7867_v12 = vld [vmem:[#allocation3 + $0x1f9] sm:$0xff]  ;;  %v7868_v53 = vld [vmem:[#allocation3 + $0x201] sm:$0xff] }
 0x601   :  { %17857 = vmatmul.mubr.msk.f32.gmra.mrb[8].mxu1 %vm6786_vm4, %v7838_v42  ;;  %v7869_v10 = vld [vmem:[#allocation3 + $0x211] sm:$0xff]  ;;  %v7870_v28 = vld [vmem:[#allocation3 + $0x219] sm:$0xff]  ;;  %v7871_v25 = vld [vmem:[#allocation3 + $0x229] sm:$0xff] }
 0x602   :  { %17859 = vmatprep.mubr.msk.f32.mxu1 %vm6786_vm4, %v7839_v40  ;;  %v7872_v11 = vld [vmem:[#allocation3 + $0x231] sm:$0xff]  ;;  %v7873_v37 = vld [vmem:[#allocation3 + $0x241] sm:$0xff]  ;;  %v7874_v22 = vld [vmem:[#allocation3 + $0x249] sm:$0xff] }
 0x603   :  { %v7875_v27 = vld [vmem:[#allocation3 + $0x259] sm:$0xff]  ;;  %v7876_v50 = vld [vmem:[#allocation3 + $0x261] sm:$0xff]  ;;  %v7877_v7 = vld [vmem:[#allocation3 + $0x271] sm:$0xff] }
 0x604   :  { %v7878_v49 = vld [vmem:[#allocation3 + $0x279] sm:$0xff]  ;;  %v7879_v38 = vld [vmem:[#allocation3 + $0x289] sm:$0xff]  ;;  %v7880_v16 = vld [vmem:[#allocation3 + $0x291] sm:$0xff] }
 0x605   :  { %17860 = vmatmul.mubr.msk.f32.gmra.mrb[10].mxu1 %vm6786_vm4, %v7840_v54  ;;  %v7881_v20 = vld [vmem:[#allocation3 + $0x2a1] sm:$0xff]  ;;  %v7882_v36 = vld [vmem:[#allocation3 + $0x2a9] sm:$0xff]  ;;  %v7883_v58 = vld [vmem:[#allocation3 + $0x2b9] sm:$0xff] }
 0x606   :  { %17862 = vmatprep.mubr.msk.f32.mxu1 %vm6786_vm4, %v7841_v43  ;;  %v7884_v30 = vld [vmem:[#allocation3 + $0x2c1] sm:$0xff]  ;;  %v7885_v6 = vld [vmem:[#allocation3 + $0x2d1] sm:$0xff]  ;;  %v7886_v3 = vld [vmem:[#allocation3 + $0x2d9] sm:$0xff] }
 0x607   :  { %v7887_v39 = vld [vmem:[#allocation3 + $0x2e9] sm:$0xff]  ;;  %v7888_v31 = vld [vmem:[#allocation3 + $0x2f1] sm:$0xff]  ;;  %v7889_v61 = vld [vmem:[#allocation3 + $0x301] sm:$0xff] }
 0x608   :  { %v7890_v55 = vld [vmem:[#allocation3 + $0x309] sm:$0xff]  ;;  %v7891_v56 = vld [vmem:[#allocation3 + $0x319] sm:$0xff]  ;;  %v7892_v15 = vld [vmem:[#allocation3 + $0x321] sm:$0xff] }
 0x609   :  { %17863 = vmatmul.mubr.msk.f32.gmra.mrb[12].mxu1 %vm6786_vm4, %v7842_v52  ;;  %v7764_v19 = vld [vmem:[#allocation3] sm:$0xff]  ;;  %v7765_v51 = vld [vmem:[#allocation3 + $0x8] sm:$0xff]  ;;  %v23291_v34 = vld [vmem:[%s25897_s4 + $0x18] sm:$0xff] }
 0x60a   :  { %17865 = vmatprep.mubr.msk.f32.mxu1 %vm6786_vm4, %v7843_v41  ;;  %v23294_v5 = vld [vmem:[#allocation3 + $0x18] sm:$0xff]  ;;  %v23300_v57 = vld [vmem:[#allocation3 + $0x20] sm:$0xff]  ;;  %v23304_v29 = vld [vmem:[#allocation3 + $0x30] sm:$0xff] }
 0x60b   :  { %v23308_v0 = vld [vmem:[#allocation3 + $0x38] sm:$0xff]  ;;  %v23312_v8 = vld [vmem:[#allocation3 + $0x48] sm:$0xff]  ;;  %v23316_v42 = vld [vmem:[#allocation3 + $0x50] sm:$0xff] }
 0x60c   :  { %v23320_v40 = vld [vmem:[#allocation3 + $0x60] sm:$0xff]  ;;  %v23328_v54 = vld [vmem:[#allocation3 + $0x78] sm:$0xff]  ;;  %v23336_v52 = vld [vmem:[#allocation3 + $0x90] sm:$0xff] }
 0x60d   :  { %17866 = vmatmul.mubr.msk.f32.gmra.mrb[14].mxu1 %vm6786_vm4, %v7844_v59  ;;  %v23332_v43 = vld [vmem:[#allocation3 + $0x80] sm:$0xff]  ;;  %v23340_v41 = vld [vmem:[#allocation3 + $0x98] sm:$0xff]  ;;  %v23344_v59 = vld [vmem:[#allocation3 + $0xa8] sm:$0xff] }
 0x60e   :  { %17868 = vmatprep.mubr.msk.f32.mxu1 %vm6786_vm4, %v7845_v23  ;;  %v23348_v23 = vld [vmem:[#allocation3 + $0xb0] sm:$0xff] }
 0x611   :  { %17869 = vmatmul.mubr.msk.f32.gmra.mrb[16].mxu1 %vm6786_vm4, %v7846_v24  ;;  %v23352_v24 = vld [vmem:[#allocation3 + $0xc0] sm:$0xff] }
 0x612   :  { %17871 = vmatprep.mubr.msk.f32.mxu1 %vm6786_vm4, %v7847_v2  ;;  %v23356_v2 = vld [vmem:[#allocation3 + $0xc8] sm:$0xff] }
 0x615   :  { %17872 = vmatmul.mubr.msk.f32.gmra.mrb[18].mxu1 %vm6786_vm4, %v7848_v26  ;;  %v23360_v26 = vld [vmem:[#allocation3 + $0xd8] sm:$0xff] }
 0x616   :  { %17874 = vmatprep.mubr.msk.f32.mxu1 %vm6786_vm4, %v7849_v46  ;;  %v23364_v46 = vld [vmem:[#allocation3 + $0xe0] sm:$0xff] }
 0x619   :  { %17875 = vmatmul.mubr.msk.f32.gmra.mrb[20].mxu1 %vm6786_vm4, %v7850_v17  ;;  %v23368_v17 = vld [vmem:[#allocation3 + $0xf0] sm:$0xff] }
 0x61a   :  { %17877 = vmatprep.mubr.msk.f32.mxu1 %vm6786_vm4, %v7851_v62  ;;  %v23372_v62 = vld [vmem:[#allocation3 + $0xf8] sm:$0xff] }
 0x61d   :  { %17878 = vmatmul.mubr.msk.f32.gmra.mrb[22].mxu1 %vm6786_vm4, %v7852_v18  ;;  %v23376_v18 = vld [vmem:[#allocation3 + $0x108] sm:$0xff] }
 0x61e   :  { %17880 = vmatprep.mubr.msk.f32.mxu1 %vm6786_vm4, %v7853_v21  ;;  %v23380_v21 = vld [vmem:[#allocation3 + $0x110] sm:$0xff] }
 0x621   :  { %17881 = vmatmul.mubr.msk.f32.gmra.mrb[24].mxu1 %vm6786_vm4, %v7854_v63  ;;  %v23384_v63 = vld [vmem:[#allocation3 + $0x120] sm:$0xff] }
 0x622   :  { %17883 = vmatprep.mubr.msk.f32.mxu1 %vm6786_vm4, %v7855_v47  ;;  %v23388_v47 = vld [vmem:[#allocation3 + $0x128] sm:$0xff] }
 0x625   :  { %17884 = vmatmul.mubr.msk.f32.gmra.mrb[26].mxu1 %vm6786_vm4, %v7856_v48  ;;  %v23392_v48 = vld [vmem:[#allocation3 + $0x138] sm:$0xff] }
 0x626   :  { %17886 = vmatprep.mubr.msk.f32.mxu1 %vm6786_vm4, %v7857_v13  ;;  %v23396_v13 = vld [vmem:[#allocation3 + $0x140] sm:$0xff] }
 0x629   :  { %17887 = vmatmul.mubr.msk.f32.gmra.mrb[28].mxu1 %vm6786_vm4, %v7858_v35  ;;  %v23400_v35 = vld [vmem:[#allocation3 + $0x150] sm:$0xff] }
 0x62a   :  { %17889 = vmatprep.mubr.msk.f32.mxu1 %vm6786_vm4, %v7859_v33  ;;  %v23404_v33 = vld [vmem:[#allocation3 + $0x158] sm:$0xff] }
 0x62d   :  { %17890 = vmatmul.mubr.msk.f32.gmra.mrb[30].mxu1 %vm6786_vm4, %v7860_v44  ;;  %v7796_v44 = vld [vmem:[#allocation3 + $0x1b0] sm:$0xff] }
 0x62e   :  { %17892 = vmatprep.mubr.msk.f32.mxu1 %vm6786_vm4, %v7861_v32  ;;  %v23408_v32 = vld [vmem:[#allocation3 + $0x168] sm:$0xff] }
 0x631   :  { %17893 = vmatmul.mubr.msk.f32.gmra.mrb[32].mxu1 %vm6786_vm4, %v7862_v60  ;;  %v23412_v60 = vld [vmem:[#allocation3 + $0x170] sm:$0xff] }
 0x632   :  { %17895 = vmatprep.mubr.msk.f32.mxu1 %vm6786_vm4, %v7863_v14  ;;  %v7797_v14 = vld [vmem:[#allocation3 + $0x1b8] sm:$0xff] }
 0x635   :  { %17896 = vmatmul.mubr.msk.f32.gmra.mrb[34].mxu1 %vm6786_vm4, %v7864_v45  ;;  %v23418_v45 = vld [vmem:[#allocation3 + $0x1c8] sm:$0xff] }
 0x636   :  { %17898 = vmatprep.mubr.msk.f32.mxu1 %vm6786_vm4, %v7865_v1  ;;  %v23422_v1 = vld [vmem:[#allocation3 + $0x1d0] sm:$0xff] }
 0x639   :  { %17899 = vmatmul.mubr.msk.f32.gmra.mrb[36].mxu1 %vm6786_vm4, %v7866_v9  ;;  %v23426_v9 = vld [vmem:[#allocation3 + $0x1e0] sm:$0xff] }
 0x63a   :  { %17901 = vmatprep.mubr.msk.f32.mxu1 %vm6786_vm4, %v7867_v12  ;;  %v23430_v12 = vld [vmem:[#allocation3 + $0x1e8] sm:$0xff] }
 0x63d   :  { %17902 = vmatmul.mubr.msk.f32.gmra.mrb[38].mxu1 %vm6786_vm4, %v7868_v53  ;;  %v23434_v53 = vld [vmem:[#allocation3 + $0x1f8] sm:$0xff] }
 0x63e   :  { %17904 = vmatprep.mubr.msk.f32.mxu1 %vm6786_vm4, %v7869_v10  ;;  %v23438_v10 = vld [vmem:[#allocation3 + $0x200] sm:$0xff] }
 0x641   :  { %17905 = vmatmul.mubr.msk.f32.gmra.mrb[40].mxu1 %vm6786_vm4, %v7870_v28  ;;  %v23442_v28 = vld [vmem:[#allocation3 + $0x210] sm:$0xff] }
 0x642   :  { %17907 = vmatprep.mubr.msk.f32.mxu1 %vm6786_vm4, %v7871_v25  ;;  %v23446_v25 = vld [vmem:[#allocation3 + $0x218] sm:$0xff] }
 0x645   :  { %17908 = vmatmul.mubr.msk.f32.gmra.mrb[42].mxu1 %vm6786_vm4, %v7872_v11  ;;  %v23450_v11 = vld [vmem:[#allocation3 + $0x228] sm:$0xff] }
 0x646   :  { %17910 = vmatprep.mubr.msk.f32.mxu1 %vm6786_vm4, %v7873_v37  ;;  %v23454_v37 = vld [vmem:[#allocation3 + $0x230] sm:$0xff] }
 0x649   :  { %17911 = vmatmul.mubr.msk.f32.gmra.mrb[44].mxu1 %vm6786_vm4, %v7874_v22  ;;  %v23458_v22 = vld [vmem:[#allocation3 + $0x240] sm:$0xff] }
 0x64a   :  { %17913 = vmatprep.mubr.msk.f32.mxu1 %vm6786_vm4, %v7875_v27  ;;  %v23462_v27 = vld [vmem:[#allocation3 + $0x248] sm:$0xff] }
 0x64d   :  { %17914 = vmatmul.mubr.msk.f32.gmra.mrb[46].mxu1 %vm6786_vm4, %v7876_v50  ;;  %v23466_v50 = vld [vmem:[#allocation3 + $0x258] sm:$0xff] }
 0x64e   :  { %17916 = vmatprep.mubr.msk.f32.mxu1 %vm6786_vm4, %v7877_v7  ;;  %v23470_v7 = vld [vmem:[#allocation3 + $0x260] sm:$0xff] }
 0x651   :  { %17917 = vmatmul.mubr.msk.f32.gmra.mrb[48].mxu1 %vm6786_vm4, %v7878_v49  ;;  %v23474_v49 = vld [vmem:[#allocation3 + $0x270] sm:$0xff] }
 0x652   :  { %17919 = vmatprep.mubr.msk.f32.mxu1 %vm6786_vm4, %v7879_v38  ;;  %v23478_v38 = vld [vmem:[#allocation3 + $0x278] sm:$0xff] }
 0x655   :  { %17920 = vmatmul.mubr.msk.f32.gmra.mrb[50].mxu1 %vm6786_vm4, %v7880_v16  ;;  %v23482_v16 = vld [vmem:[#allocation3 + $0x288] sm:$0xff] }
 0x656   :  { %17922 = vmatprep.mubr.msk.f32.mxu1 %vm6786_vm4, %v7881_v20  ;;  %v23486_v20 = vld [vmem:[#allocation3 + $0x290] sm:$0xff] }
 0x659   :  { %17923 = vmatmul.mubr.msk.f32.gmra.mrb[52].mxu1 %vm6786_vm4, %v7882_v36  ;;  %v23490_v36 = vld [vmem:[#allocation3 + $0x2a0] sm:$0xff] }
 0x65a   :  { %17925 = vmatprep.mubr.msk.f32.mxu1 %vm6786_vm4, %v7883_v58  ;;  %v23494_v58 = vld [vmem:[#allocation3 + $0x2a8] sm:$0xff] }
 0x65d   :  { %17926 = vmatmul.mubr.msk.f32.gmra.mrb[54].mxu1 %vm6786_vm4, %v7884_v30  ;;  %v23498_v30 = vld [vmem:[#allocation3 + $0x2b8] sm:$0xff] }
 0x65e   :  { %17928 = vmatprep.mubr.msk.f32.mxu1 %vm6786_vm4, %v7885_v6  ;;  %v23502_v6 = vld [vmem:[#allocation3 + $0x2c0] sm:$0xff] }
 0x661   :  { %17929 = vmatmul.mubr.msk.f32.gmra.mrb[56].mxu1 %vm6786_vm4, %v7886_v3  ;;  %v23506_v3 = vld [vmem:[#allocation3 + $0x2d0] sm:$0xff] }
 0x662   :  { %17931 = vmatprep.mubr.msk.f32.mxu1 %vm6786_vm4, %v7887_v39  ;;  %v23510_v39 = vld [vmem:[#allocation3 + $0x2d8] sm:$0xff] }
 0x665   :  { %17932 = vmatmul.mubr.msk.f32.gmra.mrb[58].mxu1 %vm6786_vm4, %v7888_v31  ;;  %v23514_v31 = vld [vmem:[#allocation3 + $0x2e8] sm:$0xff] }
 0x666   :  { %17934 = vmatprep.mubr.msk.f32.mxu1 %vm6786_vm4, %v7889_v61  ;;  %v23518_v61 = vld [vmem:[#allocation3 + $0x2f0] sm:$0xff] }
 0x669   :  { %17935 = vmatmul.mubr.msk.f32.gmra.mrb[60].mxu1 %vm6786_vm4, %v7890_v55  ;;  %v23522_v55 = vld [vmem:[#allocation3 + $0x300] sm:$0xff] }
 0x66a   :  { %17937 = vmatprep.mubr.msk.f32.mxu1 %vm6786_vm4, %v7891_v56  ;;  %v23526_v56 = vld [vmem:[#allocation3 + $0x308] sm:$0xff] }
 0x66b   :  { %26453 = vst [vmem:[#allocation6_spill] sm:$0xff] %v23526_v56 }
 0x66d   :  { %17938 = vmatmul.mubr.msk.f32.gmra.mrb[62].mxu1 %vm6786_vm4, %v7892_v15  ;;  %v9049_v15 = vld [vmem:[#allocation3 + $0x2] sm:$0xff] }
 0x66e   :  { %17942 = vmatprep.mubr.msk.f32.mxu1 %vm6786_vm4, %v7764_v19  ;;  %v23530_v19 = vld [vmem:[#allocation3 + $0x318] sm:$0xff] }
 0x66f   :  { %26454 = vst [vmem:[#allocation7_spill] sm:$0xff] %v23530_v19 }
 0x671   :  { %17943 = vmatmul.mubr.msk.f32.vlgmr.msra.gmra.mrb[0].mxu1 %vm6786_vm4, %v7765_v51  ;;  %v23534_v51 = vld [vmem:[#allocation3 + $0x320] sm:$0xff] }
 0x672   :  { %18039 = vmatpush3.msra.mxu1 %v23231_v4  ;;  %17945 = vmatprep.mubr.msk.f32.mxu1 %vm6786_vm4, %v23294_v5  ;;  %v23324_v4 = vld [vmem:[#allocation3 + $0x68] sm:$0xff]  ;;  %26455 = vst [vmem:[#allocation8_spill] sm:$0xff] %v23534_v51 }
 0x673   :  { %18136 = vmatprep.subr.mxu1 %v23291_v34 }
 0x675   :  { %17946 = vmatmul.mubr.msk.f32.gmra.mrb[2].mxu1 %vm6786_vm4, %v23300_v57 }
 0x676   :  { %17948 = vmatprep.mubr.msk.f32.mxu1 %vm6786_vm4, %v23304_v29 }
 0x679   :  { %17949 = vmatmul.mubr.msk.f32.gmra.mrb[4].mxu1 %vm6786_vm4, %v23308_v0 }
 0x67a   :  { %17951 = vmatprep.mubr.msk.f32.mxu1 %vm6786_vm4, %v23312_v8 }
 0x67d   :  { %17952 = vmatmul.mubr.msk.f32.gmra.mrb[6].mxu1 %vm6786_vm4, %v23316_v42 }
 0x67e   :  { %17954 = vmatprep.mubr.msk.f32.mxu1 %vm6786_vm4, %v23320_v40 }
 0x681   :  { %17955 = vmatmul.mubr.msk.f32.gmra.mrb[8].mxu1 %vm6786_vm4, %v23324_v4 }
 0x682   :  { %17957 = vmatprep.mubr.msk.f32.mxu1 %vm6786_vm4, %v23328_v54 }
 0x685   :  { %17958 = vmatmul.mubr.msk.f32.gmra.mrb[10].mxu1 %vm6786_vm4, %v23332_v43 }
 0x686   :  { %17960 = vmatprep.mubr.msk.f32.mxu1 %vm6786_vm4, %v23336_v52 }
 0x689   :  { %17961 = vmatmul.mubr.msk.f32.gmra.mrb[12].mxu1 %vm6786_vm4, %v23340_v41 }
 0x68a   :  { %17963 = vmatprep.mubr.msk.f32.mxu1 %vm6786_vm4, %v23344_v59 }
 0x68d   :  { %17964 = vmatmul.mubr.msk.f32.gmra.mrb[14].mxu1 %vm6786_vm4, %v23348_v23 }
 0x68e   :  { %17966 = vmatprep.mubr.msk.f32.mxu1 %vm6786_vm4, %v23352_v24 }
 0x691   :  { %17967 = vmatmul.mubr.msk.f32.gmra.mrb[16].mxu1 %vm6786_vm4, %v23356_v2 }
 0x692   :  { %17969 = vmatprep.mubr.msk.f32.mxu1 %vm6786_vm4, %v23360_v26 }
 0x695   :  { %17970 = vmatmul.mubr.msk.f32.gmra.mrb[18].mxu1 %vm6786_vm4, %v23364_v46 }
 0x696   :  { %17972 = vmatprep.mubr.msk.f32.mxu1 %vm6786_vm4, %v23368_v17 }
 0x699   :  { %17973 = vmatmul.mubr.msk.f32.gmra.mrb[20].mxu1 %vm6786_vm4, %v23372_v62 }
 0x69a   :  { %17975 = vmatprep.mubr.msk.f32.mxu1 %vm6786_vm4, %v23376_v18 }
 0x69d   :  { %17976 = vmatmul.mubr.msk.f32.gmra.mrb[22].mxu1 %vm6786_vm4, %v23380_v21 }
 0x69e   :  { %17978 = vmatprep.mubr.msk.f32.mxu1 %vm6786_vm4, %v23384_v63 }
 0x6a1   :  { %17979 = vmatmul.mubr.msk.f32.gmra.mrb[24].mxu1 %vm6786_vm4, %v23388_v47 }
 0x6a2   :  { %17981 = vmatprep.mubr.msk.f32.mxu1 %vm6786_vm4, %v23392_v48 }
 0x6a5   :  { %17982 = vmatmul.mubr.msk.f32.gmra.mrb[26].mxu1 %vm6786_vm4, %v23396_v13 }
 0x6a6   :  { %17984 = vmatprep.mubr.msk.f32.mxu1 %vm6786_vm4, %v23400_v35 }
 0x6a9   :  { %17985 = vmatmul.mubr.msk.f32.gmra.mrb[28].mxu1 %vm6786_vm4, %v23404_v33 }
 0x6aa   :  { %17987 = vmatprep.mubr.msk.f32.mxu1 %vm6786_vm4, %v23408_v32 }
 0x6ad   :  { %17988 = vmatmul.mubr.msk.f32.gmra.mrb[30].mxu1 %vm6786_vm4, %v23412_v60 }
 0x6ae   :  { %17990 = vmatprep.mubr.msk.f32.mxu1 %vm6786_vm4, %v7796_v44  ;;  %v9050_v44 = vld [vmem:[#allocation3 + $0xa] sm:$0xff] }
 0x6b1   :  { %17991 = vmatmul.mubr.msk.f32.gmra.mrb[32].mxu1 %vm6786_vm4, %v7797_v14  ;;  %v23542_v14 = vld [vmem:[%s25897_s4 + $0x20] sm:$0xff] }
 0x6b2   :  { %17993 = vmatprep.mubr.msk.f32.mxu1 %vm6786_vm4, %v23418_v45 }
 0x6b5   :  { %17994 = vmatmul.mubr.msk.f32.gmra.mrb[34].mxu1 %vm6786_vm4, %v23422_v1 }
 0x6b6   :  { %17996 = vmatprep.mubr.msk.f32.mxu1 %vm6786_vm4, %v23426_v9 }
 0x6b9   :  { %17997 = vmatmul.mubr.msk.f32.gmra.mrb[36].mxu1 %vm6786_vm4, %v23430_v12 }
 0x6ba   :  { %17999 = vmatprep.mubr.msk.f32.mxu1 %vm6786_vm4, %v23434_v53 }
 0x6bd   :  { %18000 = vmatmul.mubr.msk.f32.gmra.mrb[38].mxu1 %vm6786_vm4, %v23438_v10 }
 0x6be   :  { %18002 = vmatprep.mubr.msk.f32.mxu1 %vm6786_vm4, %v23442_v28 }
 0x6c1   :  { %18003 = vmatmul.mubr.msk.f32.gmra.mrb[40].mxu1 %vm6786_vm4, %v23446_v25 }
 0x6c2   :  { %18005 = vmatprep.mubr.msk.f32.mxu1 %vm6786_vm4, %v23450_v11 }
 0x6c5   :  { %18006 = vmatmul.mubr.msk.f32.gmra.mrb[42].mxu1 %vm6786_vm4, %v23454_v37 }
 0x6c6   :  { %18008 = vmatprep.mubr.msk.f32.mxu1 %vm6786_vm4, %v23458_v22 }
 0x6c9   :  { %18009 = vmatmul.mubr.msk.f32.gmra.mrb[44].mxu1 %vm6786_vm4, %v23462_v27 }
 0x6ca   :  { %18011 = vmatprep.mubr.msk.f32.mxu1 %vm6786_vm4, %v23466_v50 }
 0x6cd   :  { %18012 = vmatmul.mubr.msk.f32.gmra.mrb[46].mxu1 %vm6786_vm4, %v23470_v7 }
 0x6ce   :  { %18014 = vmatprep.mubr.msk.f32.mxu1 %vm6786_vm4, %v23474_v49 }
 0x6d1   :  { %18015 = vmatmul.mubr.msk.f32.gmra.mrb[48].mxu1 %vm6786_vm4, %v23478_v38 }
 0x6d2   :  { %18017 = vmatprep.mubr.msk.f32.mxu1 %vm6786_vm4, %v23482_v16 }
 0x6d5   :  { %18018 = vmatmul.mubr.msk.f32.gmra.mrb[50].mxu1 %vm6786_vm4, %v23486_v20 }
 0x6d6   :  { %18020 = vmatprep.mubr.msk.f32.mxu1 %vm6786_vm4, %v23490_v36 }
 0x6d9   :  { %18021 = vmatmul.mubr.msk.f32.gmra.mrb[52].mxu1 %vm6786_vm4, %v23494_v58 }
 0x6da   :  { %18023 = vmatprep.mubr.msk.f32.mxu1 %vm6786_vm4, %v23498_v30 }
 0x6dd   :  { %18024 = vmatmul.mubr.msk.f32.gmra.mrb[54].mxu1 %vm6786_vm4, %v23502_v6 }
 0x6de   :  { %18026 = vmatprep.mubr.msk.f32.mxu1 %vm6786_vm4, %v23506_v3 }
 0x6e1   :  { %18027 = vmatmul.mubr.msk.f32.gmra.mrb[56].mxu1 %vm6786_vm4, %v23510_v39 }
 0x6e2   :  { %18029 = vmatprep.mubr.msk.f32.mxu1 %vm6786_vm4, %v23514_v31 }
 0x6e5   :  { %18030 = vmatmul.mubr.msk.f32.gmra.mrb[58].mxu1 %vm6786_vm4, %v23518_v61 }
 0x6e6   :  { %18032 = vmatprep.mubr.msk.f32.mxu1 %vm6786_vm4, %v23522_v55 }
 0x6e9   :  { %18033 = vmatmul.mubr.msk.f32.gmra.mrb[60].mxu1 %vm6786_vm4, %v23526_v56  ;;  %v23545_v56 = vld [vmem:[#allocation3 + $0x1a] sm:$0xff] }
 0x6ea   :  { %18035 = vmatprep.mubr.msk.f32.mxu1 %vm6786_vm4, %v23530_v19  ;;  %26456 = vst [vmem:[#allocation9_spill] sm:$0xff] %v23545_v56  ;;  %v23663_v19 = vld [vmem:[#allocation3 + $0x172] sm:$0xff] }
 0x6eb   :  { %26485 = vst [vmem:[#allocation32_spill] sm:$0xff] %v23663_v19 }
 0x6ed   :  { %18036 = vmatmul.mubr.msk.f32.gmra.mrb[62].mxu1 %vm6786_vm4, %v23534_v51  ;;  %v23551_v51 = vld [vmem:[#allocation3 + $0x22] sm:$0xff] }
 0x6ee   :  { %18040 = vmatprep.mubr.msk.f32.mxu1 %vm6786_vm4, %v9049_v15  ;;  %26457 = vst [vmem:[#allocation10_spill] sm:$0xff] %v23551_v51  ;;  %v23555_v15 = vld [vmem:[#allocation3 + $0x32] sm:$0xff] }
 0x6ef   :  { %26458 = vst [vmem:[#allocation66_spill] sm:$0xff] %v23555_v15 }
 0x6f1   :  { %18041 = vmatmul.mubr.msk.f32.vlgmr.msra.gmra.mrb[0].mxu1 %vm6786_vm4, %v9050_v44  ;;  %v23559_v44 = vld [vmem:[#allocation3 + $0x3a] sm:$0xff] }
 0x6f2   :  { %18137 = vmatpush3.msra.mxu1 %v23291_v34  ;;  %18043 = vmatprep.mubr.msk.f32.mxu1 %vm6786_vm4, %v23545_v56  ;;  %26459 = vst [vmem:[#allocation67_spill] sm:$0xff] %v23559_v44  ;;  %v23563_v34 = vld [vmem:[#allocation3 + $0x4a] sm:$0xff]  ;;  %v23567_v56 = vld [vmem:[#allocation3 + $0x52] sm:$0xff] }
 0x6f3   :  { %18234 = vmatprep.subr.mxu1 %v23542_v14  ;;  %26460 = vst [vmem:[#allocation68_spill] sm:$0xff] %v23563_v34  ;;  %26461 = vst [vmem:[#allocation69_spill] sm:$0xff] %v23567_v56 }
 0x6f5   :  { %18044 = vmatmul.mubr.msk.f32.gmra.mrb[2].mxu1 %vm6786_vm4, %v23551_v51  ;;  %v23571_v51 = vld [vmem:[#allocation3 + $0x62] sm:$0xff] }
 0x6f6   :  { %18046 = vmatprep.mubr.msk.f32.mxu1 %vm6786_vm4, %v23555_v15  ;;  %26462 = vst [vmem:[#allocation70_spill] sm:$0xff] %v23571_v51  ;;  %v23575_v15 = vld [vmem:[#allocation3 + $0x6a] sm:$0xff] }
 0x6f7   :  { %26463 = vst [vmem:[#allocation71_spill] sm:$0xff] %v23575_v15 }
 0x6f9   :  { %18047 = vmatmul.mubr.msk.f32.gmra.mrb[4].mxu1 %vm6786_vm4, %v23559_v44  ;;  %v23579_v44 = vld [vmem:[#allocation3 + $0x7a] sm:$0xff] }
 0x6fa   :  { %18049 = vmatprep.mubr.msk.f32.mxu1 %vm6786_vm4, %v23563_v34  ;;  %26464 = vst [vmem:[#allocation72_spill] sm:$0xff] %v23579_v44  ;;  %v23583_v34 = vld [vmem:[#allocation3 + $0x82] sm:$0xff] }
 0x6fb   :  { %26465 = vst [vmem:[#allocation11_spill] sm:$0xff] %v23583_v34 }
 0x6fd   :  { %18050 = vmatmul.mubr.msk.f32.gmra.mrb[6].mxu1 %vm6786_vm4, %v23567_v56  ;;  %v23587_v56 = vld [vmem:[#allocation3 + $0x92] sm:$0xff] }
 0x6fe   :  { %18052 = vmatprep.mubr.msk.f32.mxu1 %vm6786_vm4, %v23571_v51  ;;  %26466 = vst [vmem:[#allocation12_spill] sm:$0xff] %v23587_v56  ;;  %v23591_v51 = vld [vmem:[#allocation3 + $0x9a] sm:$0xff] }
 0x6ff   :  { %26467 = vst [vmem:[#allocation14_spill] sm:$0xff] %v23591_v51 }
 0x701   :  { %18053 = vmatmul.mubr.msk.f32.gmra.mrb[8].mxu1 %vm6786_vm4, %v23575_v15  ;;  %v23595_v15 = vld [vmem:[#allocation3 + $0xaa] sm:$0xff] }
 0x702   :  { %18055 = vmatprep.mubr.msk.f32.mxu1 %vm6786_vm4, %v23579_v44  ;;  %26468 = vst [vmem:[#allocation13_spill] sm:$0xff] %v23595_v15  ;;  %v23599_v44 = vld [vmem:[#allocation3 + $0xb2] sm:$0xff] }
 0x703   :  { %26469 = vst [vmem:[#allocation16_spill] sm:$0xff] %v23599_v44 }
 0x705   :  { %18056 = vmatmul.mubr.msk.f32.gmra.mrb[10].mxu1 %vm6786_vm4, %v23583_v34  ;;  %v23603_v34 = vld [vmem:[#allocation3 + $0xc2] sm:$0xff] }
 0x706   :  { %18058 = vmatprep.mubr.msk.f32.mxu1 %vm6786_vm4, %v23587_v56  ;;  %26470 = vst [vmem:[#allocation15_spill] sm:$0xff] %v23603_v34  ;;  %v23607_v56 = vld [vmem:[#allocation3 + $0xca] sm:$0xff] }
 0x707   :  { %26471 = vst [vmem:[#allocation18_spill] sm:$0xff] %v23607_v56 }
 0x709   :  { %18059 = vmatmul.mubr.msk.f32.gmra.mrb[12].mxu1 %vm6786_vm4, %v23591_v51  ;;  %v23611_v51 = vld [vmem:[#allocation3 + $0xda] sm:$0xff] }
 0x70a   :  { %18061 = vmatprep.mubr.msk.f32.mxu1 %vm6786_vm4, %v23595_v15  ;;  %26472 = vst [vmem:[#allocation17_spill] sm:$0xff] %v23611_v51  ;;  %v23615_v15 = vld [vmem:[#allocation3 + $0xe2] sm:$0xff] }
 0x70b   :  { %26473 = vst [vmem:[#allocation20_spill] sm:$0xff] %v23615_v15 }
 0x70d   :  { %18062 = vmatmul.mubr.msk.f32.gmra.mrb[14].mxu1 %vm6786_vm4, %v23599_v44  ;;  %v23619_v44 = vld [vmem:[#allocation3 + $0xf2] sm:$0xff] }
 0x70e   :  { %18064 = vmatprep.mubr.msk.f32.mxu1 %vm6786_vm4, %v23603_v34  ;;  %26474 = vst [vmem:[#allocation19_spill] sm:$0xff] %v23619_v44  ;;  %v23623_v34 = vld [vmem:[#allocation3 + $0xfa] sm:$0xff] }
 0x70f   :  { %26475 = vst [vmem:[#allocation22_spill] sm:$0xff] %v23623_v34 }
 0x711   :  { %18065 = vmatmul.mubr.msk.f32.gmra.mrb[16].mxu1 %vm6786_vm4, %v23607_v56  ;;  %v23627_v56 = vld [vmem:[#allocation3 + $0x10a] sm:$0xff] }
 0x712   :  { %18067 = vmatprep.mubr.msk.f32.mxu1 %vm6786_vm4, %v23611_v51  ;;  %26476 = vst [vmem:[#allocation21_spill] sm:$0xff] %v23627_v56  ;;  %v23631_v51 = vld [vmem:[#allocation3 + $0x112] sm:$0xff] }
 0x713   :  { %26477 = vst [vmem:[#allocation24_spill] sm:$0xff] %v23631_v51 }
 0x715   :  { %18068 = vmatmul.mubr.msk.f32.gmra.mrb[18].mxu1 %vm6786_vm4, %v23615_v15  ;;  %v23635_v15 = vld [vmem:[#allocation3 + $0x122] sm:$0xff] }
 0x716   :  { %18070 = vmatprep.mubr.msk.f32.mxu1 %vm6786_vm4, %v23619_v44  ;;  %26478 = vst [vmem:[#allocation23_spill] sm:$0xff] %v23635_v15  ;;  %v23639_v44 = vld [vmem:[#allocation3 + $0x12a] sm:$0xff] }
 0x717   :  { %26479 = vst [vmem:[#allocation26_spill] sm:$0xff] %v23639_v44 }
 0x719   :  { %18071 = vmatmul.mubr.msk.f32.gmra.mrb[20].mxu1 %vm6786_vm4, %v23623_v34  ;;  %v23643_v34 = vld [vmem:[#allocation3 + $0x13a] sm:$0xff] }
 0x71a   :  { %18073 = vmatprep.mubr.msk.f32.mxu1 %vm6786_vm4, %v23627_v56  ;;  %26480 = vst [vmem:[#allocation25_spill] sm:$0xff] %v23643_v34  ;;  %v23647_v56 = vld [vmem:[#allocation3 + $0x142] sm:$0xff] }
 0x71b   :  { %26481 = vst [vmem:[#allocation28_spill] sm:$0xff] %v23647_v56 }
 0x71d   :  { %18074 = vmatmul.mubr.msk.f32.gmra.mrb[22].mxu1 %vm6786_vm4, %v23631_v51  ;;  %v23651_v51 = vld [vmem:[#allocation3 + $0x152] sm:$0xff] }
 0x71e   :  { %18076 = vmatprep.mubr.msk.f32.mxu1 %vm6786_vm4, %v23635_v15  ;;  %26482 = vst [vmem:[#allocation27_spill] sm:$0xff] %v23651_v51  ;;  %v23655_v15 = vld [vmem:[#allocation3 + $0x15a] sm:$0xff] }
 0x71f   :  { %26483 = vst [vmem:[#allocation30_spill] sm:$0xff] %v23655_v15 }
 0x721   :  { %18077 = vmatmul.mubr.msk.f32.gmra.mrb[24].mxu1 %vm6786_vm4, %v23639_v44  ;;  %v23659_v44 = vld [vmem:[#allocation3 + $0x16a] sm:$0xff] }
 0x722   :  { %18079 = vmatprep.mubr.msk.f32.mxu1 %vm6786_vm4, %v23643_v34  ;;  %26484 = vst [vmem:[#allocation29_spill] sm:$0xff] %v23659_v44  ;;  %v9081_v34 = vld [vmem:[#allocation3 + $0x1b2] sm:$0xff] }
 0x725   :  { %18080 = vmatmul.mubr.msk.f32.gmra.mrb[26].mxu1 %vm6786_vm4, %v23647_v56  ;;  %v9082_v56 = vld [vmem:[#allocation3 + $0x1ba] sm:$0xff] }
 0x726   :  { %18082 = vmatprep.mubr.msk.f32.mxu1 %vm6786_vm4, %v23651_v51  ;;  %v23669_v51 = vld [vmem:[#allocation3 + $0x1ca] sm:$0xff] }
 0x729   :  { %18083 = vmatmul.mubr.msk.f32.gmra.mrb[28].mxu1 %vm6786_vm4, %v23655_v15  ;;  %v23673_v15 = vld [vmem:[#allocation3 + $0x1d2] sm:$0xff] }
 0x72a   :  { %18085 = vmatprep.mubr.msk.f32.mxu1 %vm6786_vm4, %v23659_v44  ;;  %26486 = vst [vmem:[#allocation31_spill] sm:$0xff] %v23673_v15  ;;  %v23677_v44 = vld [vmem:[#allocation3 + $0x1e2] sm:$0xff] }
 0x72b   :  { %26487 = vst [vmem:[#allocation34_spill] sm:$0xff] %v23677_v44 }
 0x72d   :  { %18086 = vmatmul.mubr.msk.f32.gmra.mrb[30].mxu1 %vm6786_vm4, %v23663_v19  ;;  %v23681_v19 = vld [vmem:[#allocation3 + $0x1ea] sm:$0xff] }
 0x72e   :  { %18088 = vmatprep.mubr.msk.f32.mxu1 %vm6786_vm4, %v9081_v34  ;;  %26488 = vst [vmem:[#allocation33_spill] sm:$0xff] %v23681_v19  ;;  %v23689_v34 = vld [vmem:[#allocation3 + $0x202] sm:$0xff] }
 0x72f   :  { %26490 = vst [vmem:[#allocation37_spill] sm:$0xff] %v23689_v34 }
 0x731   :  { %18089 = vmatmul.mubr.msk.f32.gmra.mrb[32].mxu1 %vm6786_vm4, %v9082_v56  ;;  %v23685_v56 = vld [vmem:[#allocation3 + $0x1fa] sm:$0xff] }
 0x732   :  { %18091 = vmatprep.mubr.msk.f32.mxu1 %vm6786_vm4, %v23669_v51  ;;  %26489 = vst [vmem:[#allocation36_spill] sm:$0xff] %v23685_v56 }
 0x735   :  { %18092 = vmatmul.mubr.msk.f32.gmra.mrb[34].mxu1 %vm6786_vm4, %v23673_v15  ;;  %v23693_v15 = vld [vmem:[#allocation3 + $0x212] sm:$0xff] }
 0x736   :  { %18094 = vmatprep.mubr.msk.f32.mxu1 %vm6786_vm4, %v23677_v44  ;;  %26491 = vst [vmem:[#allocation38_spill] sm:$0xff] %v23693_v15  ;;  %v23697_v44 = vld [vmem:[#allocation3 + $0x21a] sm:$0xff] }
 0x737   :  { %26492 = vst [vmem:[#allocation39_spill] sm:$0xff] %v23697_v44 }
 0x739   :  { %18095 = vmatmul.mubr.msk.f32.gmra.mrb[36].mxu1 %vm6786_vm4, %v23681_v19  ;;  %v23701_v19 = vld [vmem:[#allocation3 + $0x22a] sm:$0xff] }
 0x73a   :  { %18097 = vmatprep.mubr.msk.f32.mxu1 %vm6786_vm4, %v23685_v56  ;;  %26493 = vst [vmem:[#allocation40_spill] sm:$0xff] %v23701_v19  ;;  %v23705_v56 = vld [vmem:[#allocation3 + $0x232] sm:$0xff] }
 0x73b   :  { %26494 = vst [vmem:[#allocation41_spill] sm:$0xff] %v23705_v56 }
 0x73d   :  { %18098 = vmatmul.mubr.msk.f32.gmra.mrb[38].mxu1 %vm6786_vm4, %v23689_v34  ;;  %v23709_v34 = vld [vmem:[#allocation3 + $0x242] sm:$0xff] }
 0x73e   :  { %18100 = vmatprep.mubr.msk.f32.mxu1 %vm6786_vm4, %v23693_v15  ;;  %26495 = vst [vmem:[#allocation42_spill] sm:$0xff] %v23709_v34  ;;  %v23713_v15 = vld [vmem:[#allocation3 + $0x24a] sm:$0xff] }
 0x73f   :  { %26496 = vst [vmem:[#allocation51_spill] sm:$0xff] %v23713_v15 }
 0x741   :  { %18101 = vmatmul.mubr.msk.f32.gmra.mrb[40].mxu1 %vm6786_vm4, %v23697_v44  ;;  %v23717_v44 = vld [vmem:[#allocation3 + $0x25a] sm:$0xff] }
 0x742   :  { %18103 = vmatprep.mubr.msk.f32.mxu1 %vm6786_vm4, %v23701_v19  ;;  %26497 = vst [vmem:[#allocation53_spill] sm:$0xff] %v23717_v44  ;;  %v23721_v19 = vld [vmem:[#allocation3 + $0x262] sm:$0xff] }
 0x743   :  { %26498 = vst [vmem:[#allocation54_spill] sm:$0xff] %v23721_v19 }
 0x745   :  { %18104 = vmatmul.mubr.msk.f32.gmra.mrb[42].mxu1 %vm6786_vm4, %v23705_v56  ;;  %v23725_v56 = vld [vmem:[#allocation3 + $0x272] sm:$0xff] }
 0x746   :  { %18106 = vmatprep.mubr.msk.f32.mxu1 %vm6786_vm4, %v23709_v34  ;;  %26499 = vst [vmem:[#allocation55_spill] sm:$0xff] %v23725_v56  ;;  %v23729_v34 = vld [vmem:[#allocation3 + $0x27a] sm:$0xff] }
 0x747   :  { %26500 = vst [vmem:[#allocation56_spill] sm:$0xff] %v23729_v34 }
 0x749   :  { %18107 = vmatmul.mubr.msk.f32.gmra.mrb[44].mxu1 %vm6786_vm4, %v23713_v15  ;;  %v23733_v15 = vld [vmem:[#allocation3 + $0x28a] sm:$0xff] }
 0x74a   :  { %18109 = vmatprep.mubr.msk.f32.mxu1 %vm6786_vm4, %v23717_v44  ;;  %26501 = vst [vmem:[#allocation57_spill] sm:$0xff] %v23733_v15  ;;  %v23737_v44 = vld [vmem:[#allocation3 + $0x292] sm:$0xff] }
 0x74b   :  { %26502 = vst [vmem:[#allocation43_spill] sm:$0xff] %v23737_v44 }
 0x74d   :  { %18110 = vmatmul.mubr.msk.f32.gmra.mrb[46].mxu1 %vm6786_vm4, %v23721_v19  ;;  %v23741_v19 = vld [vmem:[#allocation3 + $0x2a2] sm:$0xff] }
 0x74e   :  { %18112 = vmatprep.mubr.msk.f32.mxu1 %vm6786_vm4, %v23725_v56  ;;  %26503 = vst [vmem:[#allocation44_spill] sm:$0xff] %v23741_v19  ;;  %v23745_v56 = vld [vmem:[#allocation3 + $0x2aa] sm:$0xff] }
 0x74f   :  { %26504 = vst [vmem:[#allocation45_spill] sm:$0xff] %v23745_v56 }
 0x751   :  { %18113 = vmatmul.mubr.msk.f32.gmra.mrb[48].mxu1 %vm6786_vm4, %v23729_v34  ;;  %v23749_v34 = vld [vmem:[#allocation3 + $0x2ba] sm:$0xff] }
 0x752   :  { %18115 = vmatprep.mubr.msk.f32.mxu1 %vm6786_vm4, %v23733_v15  ;;  %26505 = vst [vmem:[#allocation46_spill] sm:$0xff] %v23749_v34  ;;  %v23753_v15 = vld [vmem:[#allocation3 + $0x2c2] sm:$0xff] }
 0x753   :  { %26506 = vst [vmem:[#allocation47_spill] sm:$0xff] %v23753_v15 }
 0x755   :  { %18116 = vmatmul.mubr.msk.f32.gmra.mrb[50].mxu1 %vm6786_vm4, %v23737_v44  ;;  %v23757_v44 = vld [vmem:[#allocation3 + $0x2d2] sm:$0xff] }
 0x756   :  { %18118 = vmatprep.mubr.msk.f32.mxu1 %vm6786_vm4, %v23741_v19  ;;  %26507 = vst [vmem:[#allocation48_spill] sm:$0xff] %v23757_v44  ;;  %v23761_v19 = vld [vmem:[#allocation3 + $0x2da] sm:$0xff] }
 0x757   :  { %26508 = vst [vmem:[#allocation49_spill] sm:$0xff] %v23761_v19 }
 0x759   :  { %18119 = vmatmul.mubr.msk.f32.gmra.mrb[52].mxu1 %vm6786_vm4, %v23745_v56  ;;  %v23765_v56 = vld [vmem:[#allocation3 + $0x2ea] sm:$0xff] }
 0x75a   :  { %18121 = vmatprep.mubr.msk.f32.mxu1 %vm6786_vm4, %v23749_v34  ;;  %26509 = vst [vmem:[#allocation50_spill] sm:$0xff] %v23765_v56  ;;  %v23769_v34 = vld [vmem:[#allocation3 + $0x2f2] sm:$0xff] }
 0x75d   :  { %18122 = vmatmul.mubr.msk.f32.gmra.mrb[54].mxu1 %vm6786_vm4, %v23753_v15  ;;  %v23773_v15 = vld [vmem:[#allocation3 + $0x302] sm:$0xff] }
 0x75e   :  { %18124 = vmatprep.mubr.msk.f32.mxu1 %vm6786_vm4, %v23757_v44  ;;  %26510 = vst [vmem:[#allocation52_spill] sm:$0xff] %v23773_v15  ;;  %v23777_v44 = vld [vmem:[#allocation3 + $0x30a] sm:$0xff] }
 0x761   :  { %18125 = vmatmul.mubr.msk.f32.gmra.mrb[56].mxu1 %vm6786_vm4, %v23761_v19  ;;  %v23781_v19 = vld [vmem:[#allocation3 + $0x31a] sm:$0xff] }
 0x762   :  { %18127 = vmatprep.mubr.msk.f32.mxu1 %vm6786_vm4, %v23765_v56  ;;  %v23785_v56 = vld [vmem:[#allocation3 + $0x322] sm:$0xff] }
 0x765   :  { %18128 = vmatmul.mubr.msk.f32.gmra.mrb[58].mxu1 %vm6786_vm4, %v23769_v34 }
 0x766   :  { %18130 = vmatprep.mubr.msk.f32.mxu1 %vm6786_vm4, %v23773_v15  ;;  %v23794_v15 = vld [vmem:[%s25897_s4 + $0x28] sm:$0xff] }
 0x769   :  { %18131 = vmatmul.mubr.msk.f32.gmra.mrb[60].mxu1 %vm6786_vm4, %v23777_v44 }
 0x76a   :  { %18133 = vmatprep.mubr.msk.f32.mxu1 %vm6786_vm4, %v23781_v19 }
 0x76d   :  { %18134 = vmatmul.mubr.msk.f32.gmra.mrb[62].mxu1 %vm6786_vm4, %v23785_v56 }
 0x76e   :  { %18138 = vmatprep.mubr.msk.f32.mxu1 %vm6786_vm4, %v23294_v5  ;;  %v23856_v5 = vld [vmem:[#allocation3 + $0x180] sm:$0xff] }
 0x771   :  { %18139 = vmatmul.mubr.msk.f32.vlgmr.msra.gmra.mrb[0].mxu1 %vm6786_vm4, %v23300_v57  ;;  %v23860_v57 = vld [vmem:[#allocation3 + $0x188] sm:$0xff] }
 0x772   :  { %18235 = vmatpush3.msra.mxu1 %v23542_v14  ;;  %18141 = vmatprep.mubr.msk.f32.mxu1 %vm6786_vm4, %v23304_v29  ;;  %v26511_v29 = vld [vmem:[#allocation6_spill] sm:$0xff] }
 0x773   :  { %18332 = vmatprep.subr.mxu1 %v23794_v15  ;;  %v24123_v14 = vld [vmem:[#allocation3 + $0x291] sm:$0xff] }
 0x775   :  { %18142 = vmatmul.mubr.msk.f32.gmra.mrb[2].mxu1 %vm6786_vm4, %v23308_v0  ;;  %v26512_v0 = vld [vmem:[#allocation7_spill] sm:$0xff] }
 0x776   :  { %18144 = vmatprep.mubr.msk.f32.mxu1 %vm6786_vm4, %v23312_v8  ;;  %v26513_v8 = vld [vmem:[#allocation8_spill] sm:$0xff] }
 0x779   :  { %18145 = vmatmul.mubr.msk.f32.gmra.mrb[4].mxu1 %vm6786_vm4, %v23316_v42  ;;  %v23924_v42 = vld [vmem:[#allocation3 + $0x330] sm:$0xff] }
 0x77a   :  { %18147 = vmatprep.mubr.msk.f32.mxu1 %vm6786_vm4, %v23320_v40  ;;  %v23928_v40 = vld [vmem:[#allocation3 + $0x338] sm:$0xff] }
 0x77d   :  { %18148 = vmatmul.mubr.msk.f32.gmra.mrb[6].mxu1 %vm6786_vm4, %v23324_v4  ;;  %v10463_v4 = vld [vmem:[#allocation3 + $0x19] sm:$0xff] }
 0x77e   :  { %18150 = vmatprep.mubr.msk.f32.mxu1 %vm6786_vm4, %v23328_v54  ;;  %v10464_v54 = vld [vmem:[#allocation3 + $0x21] sm:$0xff] }
 0x781   :  { %18151 = vmatmul.mubr.msk.f32.gmra.mrb[8].mxu1 %vm6786_vm4, %v23332_v43  ;;  %v23936_v43 = vld [vmem:[%s25897_s4 + $0x30] sm:$0xff] }
 0x782   :  { %18153 = vmatprep.mubr.msk.f32.mxu1 %vm6786_vm4, %v23336_v52  ;;  %v23939_v52 = vld [vmem:[#allocation3 + $0x31] sm:$0xff] }
 0x785   :  { %18154 = vmatmul.mubr.msk.f32.gmra.mrb[10].mxu1 %vm6786_vm4, %v23340_v41  ;;  %v23945_v41 = vld [vmem:[#allocation3 + $0x39] sm:$0xff] }
 0x786   :  { %18156 = vmatprep.mubr.msk.f32.mxu1 %vm6786_vm4, %v23344_v59  ;;  %v23949_v59 = vld [vmem:[#allocation3 + $0x49] sm:$0xff] }
 0x789   :  { %18157 = vmatmul.mubr.msk.f32.gmra.mrb[12].mxu1 %vm6786_vm4, %v23348_v23  ;;  %v23953_v23 = vld [vmem:[#allocation3 + $0x51] sm:$0xff] }
 0x78a   :  { %18159 = vmatprep.mubr.msk.f32.mxu1 %vm6786_vm4, %v23352_v24  ;;  %v23957_v24 = vld [vmem:[#allocation3 + $0x61] sm:$0xff] }
 0x78d   :  { %18160 = vmatmul.mubr.msk.f32.gmra.mrb[14].mxu1 %vm6786_vm4, %v23356_v2  ;;  %v23961_v2 = vld [vmem:[#allocation3 + $0x69] sm:$0xff] }
 0x78e   :  { %18162 = vmatprep.mubr.msk.f32.mxu1 %vm6786_vm4, %v23360_v26  ;;  %v23965_v26 = vld [vmem:[#allocation3 + $0x79] sm:$0xff] }
 0x791   :  { %18163 = vmatmul.mubr.msk.f32.gmra.mrb[16].mxu1 %vm6786_vm4, %v23364_v46  ;;  %v23969_v46 = vld [vmem:[#allocation3 + $0x81] sm:$0xff] }
 0x792   :  { %18165 = vmatprep.mubr.msk.f32.mxu1 %vm6786_vm4, %v23368_v17  ;;  %v23973_v17 = vld [vmem:[#allocation3 + $0x91] sm:$0xff] }
 0x795   :  { %18166 = vmatmul.mubr.msk.f32.gmra.mrb[18].mxu1 %vm6786_vm4, %v23372_v62  ;;  %v23977_v62 = vld [vmem:[#allocation3 + $0x99] sm:$0xff] }
 0x796   :  { %18168 = vmatprep.mubr.msk.f32.mxu1 %vm6786_vm4, %v23376_v18  ;;  %v23981_v18 = vld [vmem:[#allocation3 + $0xa9] sm:$0xff] }
 0x799   :  { %18169 = vmatmul.mubr.msk.f32.gmra.mrb[20].mxu1 %vm6786_vm4, %v23380_v21  ;;  %v23985_v21 = vld [vmem:[#allocation3 + $0xb1] sm:$0xff] }
 0x79a   :  { %18171 = vmatprep.mubr.msk.f32.mxu1 %vm6786_vm4, %v23384_v63  ;;  %v23989_v63 = vld [vmem:[#allocation3 + $0xc1] sm:$0xff] }
 0x79d   :  { %18172 = vmatmul.mubr.msk.f32.gmra.mrb[22].mxu1 %vm6786_vm4, %v23388_v47  ;;  %v23993_v47 = vld [vmem:[#allocation3 + $0xc9] sm:$0xff] }
 0x79e   :  { %18174 = vmatprep.mubr.msk.f32.mxu1 %vm6786_vm4, %v23392_v48  ;;  %v23997_v48 = vld [vmem:[#allocation3 + $0xd9] sm:$0xff] }
 0x7a1   :  { %18175 = vmatmul.mubr.msk.f32.gmra.mrb[24].mxu1 %vm6786_vm4, %v23396_v13  ;;  %v24001_v13 = vld [vmem:[#allocation3 + $0xe1] sm:$0xff] }
 0x7a2   :  { %18177 = vmatprep.mubr.msk.f32.mxu1 %vm6786_vm4, %v23400_v35  ;;  %v24005_v35 = vld [vmem:[#allocation3 + $0xf1] sm:$0xff] }
 0x7a5   :  { %18178 = vmatmul.mubr.msk.f32.gmra.mrb[26].mxu1 %vm6786_vm4, %v23404_v33  ;;  %v24009_v33 = vld [vmem:[#allocation3 + $0xf9] sm:$0xff] }
 0x7a6   :  { %18180 = vmatprep.mubr.msk.f32.mxu1 %vm6786_vm4, %v23408_v32  ;;  %v24013_v32 = vld [vmem:[#allocation3 + $0x109] sm:$0xff] }
 0x7a9   :  { %18181 = vmatmul.mubr.msk.f32.gmra.mrb[28].mxu1 %vm6786_vm4, %v23412_v60  ;;  %v24017_v60 = vld [vmem:[#allocation3 + $0x111] sm:$0xff] }
 0x7aa   :  { %18183 = vmatprep.mubr.msk.f32.mxu1 %vm6786_vm4, %v23856_v5 }
 0x7ad   :  { %18184 = vmatmul.mubr.msk.f32.gmra.mrb[30].mxu1 %vm6786_vm4, %v23860_v57 }
 0x7ae   :  { %18186 = vmatprep.mubr.msk.f32.mxu1 %vm6786_vm4, %v23418_v45  ;;  %v24021_v45 = vld [vmem:[#allocation3 + $0x121] sm:$0xff] }
 0x7b1   :  { %18187 = vmatmul.mubr.msk.f32.gmra.mrb[32].mxu1 %vm6786_vm4, %v23422_v1  ;;  %v24025_v1 = vld [vmem:[#allocation3 + $0x129] sm:$0xff] }
 0x7b2   :  { %18189 = vmatprep.mubr.msk.f32.mxu1 %vm6786_vm4, %v23426_v9  ;;  %v24029_v9 = vld [vmem:[#allocation3 + $0x139] sm:$0xff] }
 0x7b5   :  { %18190 = vmatmul.mubr.msk.f32.gmra.mrb[34].mxu1 %vm6786_vm4, %v23430_v12  ;;  %v24033_v12 = vld [vmem:[#allocation3 + $0x141] sm:$0xff] }
 0x7b6   :  { %18192 = vmatprep.mubr.msk.f32.mxu1 %vm6786_vm4, %v23434_v53  ;;  %v24037_v53 = vld [vmem:[#allocation3 + $0x151] sm:$0xff] }
 0x7b9   :  { %18193 = vmatmul.mubr.msk.f32.gmra.mrb[36].mxu1 %vm6786_vm4, %v23438_v10  ;;  %v24041_v10 = vld [vmem:[#allocation3 + $0x159] sm:$0xff] }
 0x7ba   :  { %18195 = vmatprep.mubr.msk.f32.mxu1 %vm6786_vm4, %v23442_v28  ;;  %v24045_v28 = vld [vmem:[#allocation3 + $0x169] sm:$0xff] }
 0x7bd   :  { %18196 = vmatmul.mubr.msk.f32.gmra.mrb[38].mxu1 %vm6786_vm4, %v23446_v25  ;;  %v24049_v25 = vld [vmem:[#allocation3 + $0x171] sm:$0xff] }
 0x7be   :  { %18198 = vmatprep.mubr.msk.f32.mxu1 %vm6786_vm4, %v23450_v11  ;;  %v24053_v11 = vld [vmem:[#allocation3 + $0x181] sm:$0xff] }
 0x7c1   :  { %18199 = vmatmul.mubr.msk.f32.gmra.mrb[40].mxu1 %vm6786_vm4, %v23454_v37  ;;  %v24057_v37 = vld [vmem:[#allocation3 + $0x189] sm:$0xff] }
 0x7c2   :  { %18201 = vmatprep.mubr.msk.f32.mxu1 %vm6786_vm4, %v23458_v22  ;;  %v10495_v22 = vld [vmem:[#allocation3 + $0x1c9] sm:$0xff] }
 0x7c5   :  { %18202 = vmatmul.mubr.msk.f32.gmra.mrb[42].mxu1 %vm6786_vm4, %v23462_v27  ;;  %v10496_v27 = vld [vmem:[#allocation3 + $0x1d1] sm:$0xff] }
 0x7c6   :  { %18204 = vmatprep.mubr.msk.f32.mxu1 %vm6786_vm4, %v23466_v50  ;;  %v24063_v50 = vld [vmem:[#allocation3 + $0x1e1] sm:$0xff] }
 0x7c9   :  { %18205 = vmatmul.mubr.msk.f32.gmra.mrb[44].mxu1 %vm6786_vm4, %v23470_v7  ;;  %v24067_v7 = vld [vmem:[#allocation3 + $0x1e9] sm:$0xff] }
 0x7ca   :  { %18207 = vmatprep.mubr.msk.f32.mxu1 %vm6786_vm4, %v23474_v49  ;;  %v24071_v49 = vld [vmem:[#allocation3 + $0x1f9] sm:$0xff] }
 0x7cd   :  { %18208 = vmatmul.mubr.msk.f32.gmra.mrb[46].mxu1 %vm6786_vm4, %v23478_v38  ;;  %v24075_v38 = vld [vmem:[#allocation3 + $0x201] sm:$0xff] }
 0x7ce   :  { %18210 = vmatprep.mubr.msk.f32.mxu1 %vm6786_vm4, %v23482_v16  ;;  %v24079_v16 = vld [vmem:[#allocation3 + $0x211] sm:$0xff] }
 0x7d1   :  { %18211 = vmatmul.mubr.msk.f32.gmra.mrb[48].mxu1 %vm6786_vm4, %v23486_v20  ;;  %v24083_v20 = vld [vmem:[#allocation3 + $0x219] sm:$0xff] }
 0x7d2   :  { %18213 = vmatprep.mubr.msk.f32.mxu1 %vm6786_vm4, %v23490_v36  ;;  %v24087_v36 = vld [vmem:[#allocation3 + $0x229] sm:$0xff] }
 0x7d5   :  { %18214 = vmatmul.mubr.msk.f32.gmra.mrb[50].mxu1 %vm6786_vm4, %v23494_v58  ;;  %v24091_v58 = vld [vmem:[#allocation3 + $0x231] sm:$0xff] }
 0x7d6   :  { %18216 = vmatprep.mubr.msk.f32.mxu1 %vm6786_vm4, %v23498_v30  ;;  %v24095_v30 = vld [vmem:[#allocation3 + $0x241] sm:$0xff] }
 0x7d9   :  { %18217 = vmatmul.mubr.msk.f32.gmra.mrb[52].mxu1 %vm6786_vm4, %v23502_v6  ;;  %v24099_v6 = vld [vmem:[#allocation3 + $0x249] sm:$0xff] }
 0x7da   :  { %18219 = vmatprep.mubr.msk.f32.mxu1 %vm6786_vm4, %v23506_v3  ;;  %v24103_v3 = vld [vmem:[#allocation3 + $0x259] sm:$0xff] }
 0x7dd   :  { %18220 = vmatmul.mubr.msk.f32.gmra.mrb[54].mxu1 %vm6786_vm4, %v23510_v39  ;;  %v24107_v39 = vld [vmem:[#allocation3 + $0x261] sm:$0xff] }
 0x7de   :  { %18222 = vmatprep.mubr.msk.f32.mxu1 %vm6786_vm4, %v23514_v31  ;;  %v24111_v31 = vld [vmem:[#allocation3 + $0x271] sm:$0xff] }
 0x7e1   :  { %18223 = vmatmul.mubr.msk.f32.gmra.mrb[56].mxu1 %vm6786_vm4, %v23518_v61  ;;  %v24115_v61 = vld [vmem:[#allocation3 + $0x279] sm:$0xff] }
 0x7e2   :  { %18225 = vmatprep.mubr.msk.f32.mxu1 %vm6786_vm4, %v23522_v55  ;;  %v24119_v55 = vld [vmem:[#allocation3 + $0x289] sm:$0xff] }
 0x7e5   :  { %18226 = vmatmul.mubr.msk.f32.gmra.mrb[58].mxu1 %vm6786_vm4, %v26511_v29  ;;  %v24131_v29 = vld [vmem:[#allocation3 + $0x2a9] sm:$0xff] }
 0x7e6   :  { %18228 = vmatprep.mubr.msk.f32.mxu1 %vm6786_vm4, %v26512_v0  ;;  %26515 = vst [vmem:[#allocation59_spill] sm:$0xff] %v24131_v29  ;;  %v24135_v0 = vld [vmem:[#allocation3 + $0x2b9] sm:$0xff] }
 0x7e7   :  { %26516 = vst [vmem:[#allocation60_spill] sm:$0xff] %v24135_v0 }
 0x7e9   :  { %18229 = vmatmul.mubr.msk.f32.gmra.mrb[60].mxu1 %vm6786_vm4, %v26513_v8  ;;  %v24139_v8 = vld [vmem:[#allocation3 + $0x2c1] sm:$0xff] }
 0x7ea   :  { %18231 = vmatprep.mubr.msk.f32.mxu1 %vm6786_vm4, %v23924_v42  ;;  %26517 = vst [vmem:[#allocation61_spill] sm:$0xff] %v24139_v8 }
 0x7ed   :  { %18232 = vmatmul.mubr.msk.f32.gmra.mrb[62].mxu1 %vm6786_vm4, %v23928_v40 }
 0x7ee   :  { %18236 = vmatprep.mubr.msk.f32.mxu1 %vm6786_vm4, %v10463_v4  ;;  %v24143_v4 = vld [vmem:[#allocation3 + $0x2d1] sm:$0xff] }
 0x7ef   :  { %26518 = vst [vmem:[#allocation62_spill] sm:$0xff] %v24143_v4 }
 0x7f1   :  { %18237 = vmatmul.mubr.msk.f32.vlgmr.msra.gmra.mrb[0].mxu1 %vm6786_vm4, %v10464_v54  ;;  %v24147_v54 = vld [vmem:[#allocation3 + $0x2d9] sm:$0xff] }
 0x7f2   :  { %18333 = vmatpush3.msra.mxu1 %v23794_v15  ;;  %18239 = vmatprep.mubr.msk.f32.mxu1 %vm6786_vm4, %v23939_v52  ;;  %v24127_v15 = vld [vmem:[#allocation3 + $0x2a1] sm:$0xff]  ;;  %26519 = vst [vmem:[#allocation63_spill] sm:$0xff] %v24147_v54 }
 0x7f3   :  { %18430 = vmatprep.subr.mxu1 %v23936_v43  ;;  %26514 = vst [vmem:[#allocation58_spill] sm:$0xff] %v24127_v15 }
 0x7f5   :  { %18240 = vmatmul.mubr.msk.f32.gmra.mrb[2].mxu1 %vm6786_vm4, %v23945_v41 }
 0x7f6   :  { %18242 = vmatprep.mubr.msk.f32.mxu1 %vm6786_vm4, %v23949_v59 }
 0x7f9   :  { %18243 = vmatmul.mubr.msk.f32.gmra.mrb[4].mxu1 %vm6786_vm4, %v23953_v23 }
 0x7fa   :  { %18245 = vmatprep.mubr.msk.f32.mxu1 %vm6786_vm4, %v23957_v24 }
 0x7fd   :  { %18246 = vmatmul.mubr.msk.f32.gmra.mrb[6].mxu1 %vm6786_vm4, %v23961_v2 }
 0x7fe   :  { %18248 = vmatprep.mubr.msk.f32.mxu1 %vm6786_vm4, %v23965_v26 }
 0x801   :  { %18249 = vmatmul.mubr.msk.f32.gmra.mrb[8].mxu1 %vm6786_vm4, %v23969_v46 }
 0x802   :  { %18251 = vmatprep.mubr.msk.f32.mxu1 %vm6786_vm4, %v23973_v17 }
 0x805   :  { %18252 = vmatmul.mubr.msk.f32.gmra.mrb[10].mxu1 %vm6786_vm4, %v23977_v62 }
 0x806   :  { %18254 = vmatprep.mubr.msk.f32.mxu1 %vm6786_vm4, %v23981_v18 }
 0x809   :  { %18255 = vmatmul.mubr.msk.f32.gmra.mrb[12].mxu1 %vm6786_vm4, %v23985_v21 }
 0x80a   :  { %18257 = vmatprep.mubr.msk.f32.mxu1 %vm6786_vm4, %v23989_v63 }
 0x80d   :  { %18258 = vmatmul.mubr.msk.f32.gmra.mrb[14].mxu1 %vm6786_vm4, %v23993_v47 }
 0x80e   :  { %18260 = vmatprep.mubr.msk.f32.mxu1 %vm6786_vm4, %v23997_v48 }
 0x811   :  { %18261 = vmatmul.mubr.msk.f32.gmra.mrb[16].mxu1 %vm6786_vm4, %v24001_v13 }
 0x812   :  { %18263 = vmatprep.mubr.msk.f32.mxu1 %vm6786_vm4, %v24005_v35 }
 0x815   :  { %18264 = vmatmul.mubr.msk.f32.gmra.mrb[18].mxu1 %vm6786_vm4, %v24009_v33 }
 0x816   :  { %18266 = vmatprep.mubr.msk.f32.mxu1 %vm6786_vm4, %v24013_v32 }
 0x819   :  { %18267 = vmatmul.mubr.msk.f32.gmra.mrb[20].mxu1 %vm6786_vm4, %v24017_v60 }
 0x81a   :  { %18269 = vmatprep.mubr.msk.f32.mxu1 %vm6786_vm4, %v24021_v45 }
 0x81d   :  { %18270 = vmatmul.mubr.msk.f32.gmra.mrb[22].mxu1 %vm6786_vm4, %v24025_v1 }
 0x81e   :  { %18272 = vmatprep.mubr.msk.f32.mxu1 %vm6786_vm4, %v24029_v9 }
 0x821   :  { %18273 = vmatmul.mubr.msk.f32.gmra.mrb[24].mxu1 %vm6786_vm4, %v24033_v12 }
 0x822   :  { %18275 = vmatprep.mubr.msk.f32.mxu1 %vm6786_vm4, %v24037_v53 }
 0x825   :  { %18276 = vmatmul.mubr.msk.f32.gmra.mrb[26].mxu1 %vm6786_vm4, %v24041_v10 }
 0x826   :  { %18278 = vmatprep.mubr.msk.f32.mxu1 %vm6786_vm4, %v24045_v28 }
 0x829   :  { %18279 = vmatmul.mubr.msk.f32.gmra.mrb[28].mxu1 %vm6786_vm4, %v24049_v25 }
 0x82a   :  { %18281 = vmatprep.mubr.msk.f32.mxu1 %vm6786_vm4, %v24053_v11 }
 0x82d   :  { %18282 = vmatmul.mubr.msk.f32.gmra.mrb[30].mxu1 %vm6786_vm4, %v24057_v37 }
 0x82e   :  { %18284 = vmatprep.mubr.msk.f32.mxu1 %vm6786_vm4, %v10495_v22  ;;  %v24151_v22 = vld [vmem:[#allocation3 + $0x2e9] sm:$0xff] }
 0x82f   :  { %26520 = vst [vmem:[#allocation64_spill] sm:$0xff] %v24151_v22 }
 0x831   :  { %18285 = vmatmul.mubr.msk.f32.gmra.mrb[32].mxu1 %vm6786_vm4, %v10496_v27  ;;  %v24155_v27 = vld [vmem:[#allocation3 + $0x2f1] sm:$0xff] }
 0x832   :  { %18287 = vmatprep.mubr.msk.f32.mxu1 %vm6786_vm4, %v24063_v50  ;;  %26521 = vst [vmem:[#allocation65_spill] sm:$0xff] %v24155_v27 }
 0x835   :  { %18288 = vmatmul.mubr.msk.f32.gmra.mrb[34].mxu1 %vm6786_vm4, %v24067_v7 }
 0x836   :  { %18290 = vmatprep.mubr.msk.f32.mxu1 %vm6786_vm4, %v24071_v49 }
 0x839   :  { %18291 = vmatmul.mubr.msk.f32.gmra.mrb[36].mxu1 %vm6786_vm4, %v24075_v38 }
 0x83a   :  { %18293 = vmatprep.mubr.msk.f32.mxu1 %vm6786_vm4, %v24079_v16 }
 0x83d   :  { %18294 = vmatmul.mubr.msk.f32.gmra.mrb[38].mxu1 %vm6786_vm4, %v24083_v20 }
 0x83e   :  { %18296 = vmatprep.mubr.msk.f32.mxu1 %vm6786_vm4, %v24087_v36 }
 0x841   :  { %18297 = vmatmul.mubr.msk.f32.gmra.mrb[40].mxu1 %vm6786_vm4, %v24091_v58 }
 0x842   :  { %18299 = vmatprep.mubr.msk.f32.mxu1 %vm6786_vm4, %v24095_v30 }
 0x845   :  { %18300 = vmatmul.mubr.msk.f32.gmra.mrb[42].mxu1 %vm6786_vm4, %v24099_v6 }
 0x846   :  { %18302 = vmatprep.mubr.msk.f32.mxu1 %vm6786_vm4, %v24103_v3 }
 0x849   :  { %18303 = vmatmul.mubr.msk.f32.gmra.mrb[44].mxu1 %vm6786_vm4, %v24107_v39 }
 0x84a   :  { %18305 = vmatprep.mubr.msk.f32.mxu1 %vm6786_vm4, %v24111_v31 }
 0x84d   :  { %18306 = vmatmul.mubr.msk.f32.gmra.mrb[46].mxu1 %vm6786_vm4, %v24115_v61 }
 0x84e   :  { %18308 = vmatprep.mubr.msk.f32.mxu1 %vm6786_vm4, %v24119_v55 }
 0x851   :  { %18309 = vmatmul.mubr.msk.f32.gmra.mrb[48].mxu1 %vm6786_vm4, %v24123_v14 }
 0x852   :  { %18311 = vmatprep.mubr.msk.f32.mxu1 %vm6786_vm4, %v24127_v15  ;;  %v26538_v15 = vld [vmem:[#allocation12_spill] sm:$0xff] }
 0x855   :  { %18312 = vmatmul.mubr.msk.f32.gmra.mrb[50].mxu1 %vm6786_vm4, %v24131_v29  ;;  %v26534_v29 = vld [vmem:[#allocation70_spill] sm:$0xff] }
 0x856   :  { %18314 = vmatprep.mubr.msk.f32.mxu1 %vm6786_vm4, %v24135_v0  ;;  %v26529_v0 = vld [vmem:[#allocation10_spill] sm:$0xff] }
 0x859   :  { %18315 = vmatmul.mubr.msk.f32.gmra.mrb[52].mxu1 %vm6786_vm4, %v24139_v8  ;;  %v24159_v8 = vld [vmem:[#allocation3 + $0x301] sm:$0xff] }
 0x85a   :  { %18317 = vmatprep.mubr.msk.f32.mxu1 %vm6786_vm4, %v24143_v4  ;;  %26522 = vst [vmem:[#allocation4_spill] sm:$0xff] %v24159_v8  ;;  %v24163_v4 = vld [vmem:[#allocation3 + $0x309] sm:$0xff] }
 0x85b   :  { %26523 = vst [vmem:[#allocation5_spill] sm:$0xff] %v24163_v4 }
 0x85d   :  { %18318 = vmatmul.mubr.msk.f32.gmra.mrb[54].mxu1 %vm6786_vm4, %v24147_v54  ;;  %v24167_v54 = vld [vmem:[#allocation3 + $0x319] sm:$0xff] }
 0x85e   :  { %18320 = vmatprep.mubr.msk.f32.mxu1 %vm6786_vm4, %v24151_v22  ;;  %26524 = vst [vmem:[#allocation6_spill] sm:$0xff] %v24167_v54  ;;  %v24171_v22 = vld [vmem:[#allocation3 + $0x321] sm:$0xff] }
 0x85f   :  { %26525 = vst [vmem:[#allocation7_spill] sm:$0xff] %v24171_v22 }
 0x861   :  { %18321 = vmatmul.mubr.msk.f32.gmra.mrb[56].mxu1 %vm6786_vm4, %v24155_v27  ;;  %v24175_v27 = vld [vmem:[#allocation3 + $0x331] sm:$0xff] }
 0x862   :  { %18323 = vmatprep.mubr.msk.f32.mxu1 %vm6786_vm4, %v24159_v8  ;;  %26526 = vst [vmem:[#allocation8_spill] sm:$0xff] %v24175_v27  ;;  %v24179_v8 = vld [vmem:[#allocation3 + $0x339] sm:$0xff] }
 0x863   :  { %26527 = vst [vmem:[#allocation73_spill] sm:$0xff] %v24179_v8 }
 0x865   :  { %18324 = vmatmul.mubr.msk.f32.gmra.mrb[58].mxu1 %vm6786_vm4, %v24163_v4  ;;  %v26528_v4 = vld [vmem:[#allocation9_spill] sm:$0xff] }
 0x866   :  { %18326 = vmatprep.mubr.msk.f32.mxu1 %vm6786_vm4, %v24167_v54  ;;  %v24188_v54 = vld [vmem:[%s25897_s4 + $0x38] sm:$0xff] }
 0x869   :  { %18327 = vmatmul.mubr.msk.f32.gmra.mrb[60].mxu1 %vm6786_vm4, %v24171_v22  ;;  %v26530_v22 = vld [vmem:[#allocation66_spill] sm:$0xff] }
 0x86a   :  { %18329 = vmatprep.mubr.msk.f32.mxu1 %vm6786_vm4, %v24175_v27  ;;  %v26531_v27 = vld [vmem:[#allocation67_spill] sm:$0xff] }
 0x86d   :  { %18330 = vmatmul.mubr.msk.f32.gmra.mrb[62].mxu1 %vm6786_vm4, %v24179_v8  ;;  %v26532_v8 = vld [vmem:[#allocation68_spill] sm:$0xff] }
 0x86e   :  { %18334 = vmatprep.mubr.msk.f32.mxu1 %vm6786_vm4, %v26528_v4  ;;  %v26533_v4 = vld [vmem:[#allocation69_spill] sm:$0xff] }
 0x871   :  { %18335 = vmatmul.mubr.msk.f32.vlgmr.msra.gmra.mrb[0].mxu1 %vm6786_vm4, %v26529_v0  ;;  %v26535_v0 = vld [vmem:[#allocation71_spill] sm:$0xff] }
 0x872   :  { %18431 = vmatpush3.msra.mxu1 %v23936_v43  ;;  %18337 = vmatprep.mubr.msk.f32.mxu1 %vm6786_vm4, %v26530_v22  ;;  %v26536_v43 = vld [vmem:[#allocation72_spill] sm:$0xff]  ;;  %v26537_v22 = vld [vmem:[#allocation11_spill] sm:$0xff] }
 0x873   :  { %18528 = vmatprep.subr.mxu1 %v24188_v54 }
 0x875   :  { %18338 = vmatmul.mubr.msk.f32.gmra.mrb[2].mxu1 %vm6786_vm4, %v26531_v27  ;;  %v26539_v27 = vld [vmem:[#allocation14_spill] sm:$0xff] }
 0x876   :  { %18340 = vmatprep.mubr.msk.f32.mxu1 %vm6786_vm4, %v26532_v8  ;;  %v26540_v8 = vld [vmem:[#allocation13_spill] sm:$0xff] }
 0x879   :  { %18341 = vmatmul.mubr.msk.f32.gmra.mrb[4].mxu1 %vm6786_vm4, %v26533_v4  ;;  %v26541_v4 = vld [vmem:[#allocation16_spill] sm:$0xff] }
 0x87a   :  { %18343 = vmatprep.mubr.msk.f32.mxu1 %vm6786_vm4, %v26534_v29  ;;  %v26542_v29 = vld [vmem:[#allocation15_spill] sm:$0xff] }
 0x87d   :  { %18344 = vmatmul.mubr.msk.f32.gmra.mrb[6].mxu1 %vm6786_vm4, %v26535_v0  ;;  %v26543_v0 = vld [vmem:[#allocation18_spill] sm:$0xff] }
 0x87e   :  { %18346 = vmatprep.mubr.msk.f32.mxu1 %vm6786_vm4, %v26536_v43  ;;  %v26544_v43 = vld [vmem:[#allocation17_spill] sm:$0xff] }
 0x881   :  { %18347 = vmatmul.mubr.msk.f32.gmra.mrb[8].mxu1 %vm6786_vm4, %v26537_v22  ;;  %v26545_v22 = vld [vmem:[#allocation20_spill] sm:$0xff] }
 0x882   :  { %18349 = vmatprep.mubr.msk.f32.mxu1 %vm6786_vm4, %v26538_v15  ;;  %v26546_v15 = vld [vmem:[#allocation19_spill] sm:$0xff] }
 0x885   :  { %18350 = vmatmul.mubr.msk.f32.gmra.mrb[10].mxu1 %vm6786_vm4, %v26539_v27  ;;  %v26547_v27 = vld [vmem:[#allocation22_spill] sm:$0xff] }
 0x886   :  { %18352 = vmatprep.mubr.msk.f32.mxu1 %vm6786_vm4, %v26540_v8  ;;  %v26548_v8 = vld [vmem:[#allocation21_spill] sm:$0xff] }
 0x889   :  { %18353 = vmatmul.mubr.msk.f32.gmra.mrb[12].mxu1 %vm6786_vm4, %v26541_v4  ;;  %v26549_v4 = vld [vmem:[#allocation24_spill] sm:$0xff] }
 0x88a   :  { %18355 = vmatprep.mubr.msk.f32.mxu1 %vm6786_vm4, %v26542_v29  ;;  %v26550_v29 = vld [vmem:[#allocation23_spill] sm:$0xff] }
 0x88d   :  { %18356 = vmatmul.mubr.msk.f32.gmra.mrb[14].mxu1 %vm6786_vm4, %v26543_v0  ;;  %v26551_v0 = vld [vmem:[#allocation26_spill] sm:$0xff] }
 0x88e   :  { %18358 = vmatprep.mubr.msk.f32.mxu1 %vm6786_vm4, %v26544_v43  ;;  %v26552_v43 = vld [vmem:[#allocation25_spill] sm:$0xff] }
 0x891   :  { %18359 = vmatmul.mubr.msk.f32.gmra.mrb[16].mxu1 %vm6786_vm4, %v26545_v22  ;;  %v26553_v22 = vld [vmem:[#allocation28_spill] sm:$0xff] }
 0x892   :  { %18361 = vmatprep.mubr.msk.f32.mxu1 %vm6786_vm4, %v26546_v15  ;;  %v26554_v15 = vld [vmem:[#allocation27_spill] sm:$0xff] }
 0x895   :  { %18362 = vmatmul.mubr.msk.f32.gmra.mrb[18].mxu1 %vm6786_vm4, %v26547_v27  ;;  %v26555_v27 = vld [vmem:[#allocation30_spill] sm:$0xff] }
 0x896   :  { %18364 = vmatprep.mubr.msk.f32.mxu1 %vm6786_vm4, %v26548_v8  ;;  %v26556_v8 = vld [vmem:[#allocation29_spill] sm:$0xff] }
 0x899   :  { %18365 = vmatmul.mubr.msk.f32.gmra.mrb[20].mxu1 %vm6786_vm4, %v26549_v4  ;;  %v26557_v4 = vld [vmem:[#allocation32_spill] sm:$0xff] }
 0x89a   :  { %18367 = vmatprep.mubr.msk.f32.mxu1 %vm6786_vm4, %v26550_v29  ;;  %v24250_v29 = vld [vmem:[#allocation3 + $0x182] sm:$0xff] }
 0x89d   :  { %18368 = vmatmul.mubr.msk.f32.gmra.mrb[22].mxu1 %vm6786_vm4, %v26551_v0  ;;  %v24254_v0 = vld [vmem:[#allocation3 + $0x18a] sm:$0xff] }
 0x89e   :  { %18370 = vmatprep.mubr.msk.f32.mxu1 %vm6786_vm4, %v26552_v43  ;;  %26558 = vst [vmem:[#allocation9_spill] sm:$0xff] %v24254_v0  ;;  %v26559_v43 = vld [vmem:[#allocation31_spill] sm:$0xff] }
 0x8a1   :  { %18371 = vmatmul.mubr.msk.f32.gmra.mrb[24].mxu1 %vm6786_vm4, %v26553_v22  ;;  %v26560_v22 = vld [vmem:[#allocation34_spill] sm:$0xff] }
 0x8a2   :  { %18373 = vmatprep.mubr.msk.f32.mxu1 %vm6786_vm4, %v26554_v15  ;;  %v26561_v15 = vld [vmem:[#allocation33_spill] sm:$0xff] }
 0x8a5   :  { %18374 = vmatmul.mubr.msk.f32.gmra.mrb[26].mxu1 %vm6786_vm4, %v26555_v27  ;;  %v26562_v27 = vld [vmem:[#allocation36_spill] sm:$0xff] }
 0x8a6   :  { %18376 = vmatprep.mubr.msk.f32.mxu1 %vm6786_vm4, %v26556_v8  ;;  %v26563_v8 = vld [vmem:[#allocation37_spill] sm:$0xff] }
 0x8a9   :  { %18377 = vmatmul.mubr.msk.f32.gmra.mrb[28].mxu1 %vm6786_vm4, %v26557_v4  ;;  %v26564_v4 = vld [vmem:[#allocation38_spill] sm:$0xff] }
 0x8aa   :  { %18379 = vmatprep.mubr.msk.f32.mxu1 %vm6786_vm4, %v24250_v29 }
 0x8ad   :  { %18380 = vmatmul.mubr.msk.f32.gmra.mrb[30].mxu1 %vm6786_vm4, %v24254_v0  ;;  %v26565_v0 = vld [vmem:[#allocation39_spill] sm:$0xff] }
 0x8ae   :  { %18382 = vmatprep.mubr.msk.f32.mxu1 %vm6786_vm4, %v23669_v51  ;;  %v26566_v51 = vld [vmem:[#allocation40_spill] sm:$0xff] }
 0x8b1   :  { %18383 = vmatmul.mubr.msk.f32.gmra.mrb[32].mxu1 %vm6786_vm4, %v26559_v43  ;;  %v26567_v43 = vld [vmem:[#allocation41_spill] sm:$0xff] }
 0x8b2   :  { %18385 = vmatprep.mubr.msk.f32.mxu1 %vm6786_vm4, %v26560_v22  ;;  %v26568_v22 = vld [vmem:[#allocation42_spill] sm:$0xff] }
 0x8b5   :  { %18386 = vmatmul.mubr.msk.f32.gmra.mrb[34].mxu1 %vm6786_vm4, %v26561_v15  ;;  %v26569_v15 = vld [vmem:[#allocation51_spill] sm:$0xff] }
 0x8b6   :  { %18388 = vmatprep.mubr.msk.f32.mxu1 %vm6786_vm4, %v26562_v27  ;;  %v26570_v27 = vld [vmem:[#allocation53_spill] sm:$0xff] }
 0x8b9   :  { %18389 = vmatmul.mubr.msk.f32.gmra.mrb[36].mxu1 %vm6786_vm4, %v26563_v8  ;;  %v26571_v8 = vld [vmem:[#allocation54_spill] sm:$0xff] }
 0x8ba   :  { %18391 = vmatprep.mubr.msk.f32.mxu1 %vm6786_vm4, %v26564_v4  ;;  %v26572_v4 = vld [vmem:[#allocation55_spill] sm:$0xff] }
 0x8bd   :  { %18392 = vmatmul.mubr.msk.f32.gmra.mrb[38].mxu1 %vm6786_vm4, %v26565_v0  ;;  %v26573_v0 = vld [vmem:[#allocation56_spill] sm:$0xff] }
 0x8be   :  { %18394 = vmatprep.mubr.msk.f32.mxu1 %vm6786_vm4, %v26566_v51  ;;  %v26574_v51 = vld [vmem:[#allocation57_spill] sm:$0xff] }
 0x8c1   :  { %18395 = vmatmul.mubr.msk.f32.gmra.mrb[40].mxu1 %vm6786_vm4, %v26567_v43  ;;  %v26575_v43 = vld [vmem:[#allocation43_spill] sm:$0xff] }
 0x8c2   :  { %18397 = vmatprep.mubr.msk.f32.mxu1 %vm6786_vm4, %v26568_v22  ;;  %v26576_v22 = vld [vmem:[#allocation44_spill] sm:$0xff] }
 0x8c5   :  { %18398 = vmatmul.mubr.msk.f32.gmra.mrb[42].mxu1 %vm6786_vm4, %v26569_v15  ;;  %v26577_v15 = vld [vmem:[#allocation45_spill] sm:$0xff] }
 0x8c6   :  { %18400 = vmatprep.mubr.msk.f32.mxu1 %vm6786_vm4, %v26570_v27  ;;  %v26578_v27 = vld [vmem:[#allocation46_spill] sm:$0xff] }
 0x8c9   :  { %18401 = vmatmul.mubr.msk.f32.gmra.mrb[44].mxu1 %vm6786_vm4, %v26571_v8  ;;  %v26579_v8 = vld [vmem:[#allocation47_spill] sm:$0xff] }
 0x8ca   :  { %18403 = vmatprep.mubr.msk.f32.mxu1 %vm6786_vm4, %v26572_v4  ;;  %v26580_v4 = vld [vmem:[#allocation48_spill] sm:$0xff] }
 0x8cd   :  { %18404 = vmatmul.mubr.msk.f32.gmra.mrb[46].mxu1 %vm6786_vm4, %v26573_v0  ;;  %v26581_v0 = vld [vmem:[#allocation49_spill] sm:$0xff] }
 0x8ce   :  { %18406 = vmatprep.mubr.msk.f32.mxu1 %vm6786_vm4, %v26574_v51  ;;  %v26582_v51 = vld [vmem:[#allocation50_spill] sm:$0xff] }
 0x8d1   :  { %18407 = vmatmul.mubr.msk.f32.gmra.mrb[48].mxu1 %vm6786_vm4, %v26575_v43  ;;  %v26583_v43 = vld [vmem:[#allocation52_spill] sm:$0xff] }
 0x8d2   :  { %18409 = vmatprep.mubr.msk.f32.mxu1 %vm6786_vm4, %v26576_v22  ;;  %v24318_v22 = vld [vmem:[#allocation3 + $0x332] sm:$0xff] }
 0x8d5   :  { %18410 = vmatmul.mubr.msk.f32.gmra.mrb[50].mxu1 %vm6786_vm4, %v26577_v15  ;;  %v24322_v15 = vld [vmem:[#allocation3 + $0x33a] sm:$0xff] }
 0x8d6   :  { %18412 = vmatprep.mubr.msk.f32.mxu1 %vm6786_vm4, %v26578_v27  ;;  %v11881_v27 = vld [vmem:[#allocation3 + $0x50] sm:$0xff] }
 0x8d9   :  { %18413 = vmatmul.mubr.msk.f32.gmra.mrb[52].mxu1 %vm6786_vm4, %v26579_v8  ;;  %v11882_v8 = vld [vmem:[#allocation3 + $0x60] sm:$0xff] }
 0x8da   :  { %18415 = vmatprep.mubr.msk.f32.mxu1 %vm6786_vm4, %v26580_v4  ;;  %v11883_v4 = vld [vmem:[#allocation3 + $0x68] sm:$0xff] }
 0x8dd   :  { %18416 = vmatmul.mubr.msk.f32.gmra.mrb[54].mxu1 %vm6786_vm4, %v26581_v0  ;;  %v11884_v0 = vld [vmem:[#allocation3 + $0x78] sm:$0xff] }
 0x8de   :  { %18418 = vmatprep.mubr.msk.f32.mxu1 %vm6786_vm4, %v26582_v51  ;;  %v11885_v51 = vld [vmem:[#allocation3 + $0x80] sm:$0xff] }
 0x8e1   :  { %18419 = vmatmul.mubr.msk.f32.gmra.mrb[56].mxu1 %vm6786_vm4, %v23769_v34  ;;  %v11878_v34 = vld [vmem:[#allocation3 + $0x30] sm:$0xff] }
 0x8e2   :  { %18421 = vmatprep.mubr.msk.f32.mxu1 %vm6786_vm4, %v26583_v43  ;;  %v11887_v43 = vld [vmem:[#allocation3 + $0x98] sm:$0xff] }
 0x8e5   :  { %18422 = vmatmul.mubr.msk.f32.gmra.mrb[58].mxu1 %vm6786_vm4, %v23777_v44  ;;  %v11879_v44 = vld [vmem:[#allocation3 + $0x38] sm:$0xff] }
 0x8e6   :  { %18424 = vmatprep.mubr.msk.f32.mxu1 %vm6786_vm4, %v23781_v19  ;;  %v24330_v19 = vld [vmem:[%s25897_s4 + $0x40] sm:$0xff] }
 0x8e9   :  { %18425 = vmatmul.mubr.msk.f32.gmra.mrb[60].mxu1 %vm6786_vm4, %v23785_v56  ;;  %v11880_v56 = vld [vmem:[#allocation3 + $0x48] sm:$0xff] }
 0x8ea   :  { %18427 = vmatprep.mubr.msk.f32.mxu1 %vm6786_vm4, %v24318_v22 }
 0x8ed   :  { %18428 = vmatmul.mubr.msk.f32.gmra.mrb[62].mxu1 %vm6786_vm4, %v24322_v15 }
 0x8ee   :  { %18432 = vmatprep.mubr.msk.f32.mxu1 %vm6786_vm4, %v11878_v34  ;;  %v11888_v34 = vld [vmem:[#allocation3 + $0xa8] sm:$0xff] }
 0x8f1   :  { %18433 = vmatmul.mubr.msk.f32.vlgmr.msra.gmra.mrb[0].mxu1 %vm6786_vm4, %v11879_v44  ;;  %v11889_v44 = vld [vmem:[#allocation3 + $0xb0] sm:$0xff] }
 0x8f2   :  { %18529 = vmatpush3.msra.mxu1 %v24188_v54  ;;  %18435 = vmatprep.mubr.msk.f32.mxu1 %vm6786_vm4, %v11880_v56  ;;  %v11886_v54 = vld [vmem:[#allocation3 + $0x90] sm:$0xff]  ;;  %v11890_v56 = vld [vmem:[#allocation3 + $0xc0] sm:$0xff] }
 0x8f3   :  { %18626 = vmatprep.subr.mxu1 %v24330_v19 }
 0x8f5   :  { %18436 = vmatmul.mubr.msk.f32.gmra.mrb[2].mxu1 %vm6786_vm4, %v11881_v27  ;;  %v11891_v27 = vld [vmem:[#allocation3 + $0xc8] sm:$0xff] }
 0x8f6   :  { %18438 = vmatprep.mubr.msk.f32.mxu1 %vm6786_vm4, %v11882_v8  ;;  %v11892_v8 = vld [vmem:[#allocation3 + $0xd8] sm:$0xff] }
 0x8f9   :  { %18439 = vmatmul.mubr.msk.f32.gmra.mrb[4].mxu1 %vm6786_vm4, %v11883_v4  ;;  %v11893_v4 = vld [vmem:[#allocation3 + $0xe0] sm:$0xff] }
 0x8fa   :  { %18441 = vmatprep.mubr.msk.f32.mxu1 %vm6786_vm4, %v11884_v0  ;;  %v11894_v0 = vld [vmem:[#allocation3 + $0xf0] sm:$0xff] }
 0x8fd   :  { %18442 = vmatmul.mubr.msk.f32.gmra.mrb[6].mxu1 %vm6786_vm4, %v11885_v51  ;;  %v11895_v51 = vld [vmem:[#allocation3 + $0xf8] sm:$0xff] }
 0x8fe   :  { %18444 = vmatprep.mubr.msk.f32.mxu1 %vm6786_vm4, %v11886_v54  ;;  %v11896_v54 = vld [vmem:[#allocation3 + $0x108] sm:$0xff] }
 0x901   :  { %18445 = vmatmul.mubr.msk.f32.gmra.mrb[8].mxu1 %vm6786_vm4, %v11887_v43  ;;  %v11897_v43 = vld [vmem:[#allocation3 + $0x110] sm:$0xff] }
 0x902   :  { %18447 = vmatprep.mubr.msk.f32.mxu1 %vm6786_vm4, %v11888_v34  ;;  %v11898_v34 = vld [vmem:[#allocation3 + $0x120] sm:$0xff] }
 0x905   :  { %18448 = vmatmul.mubr.msk.f32.gmra.mrb[10].mxu1 %vm6786_vm4, %v11889_v44  ;;  %v11899_v44 = vld [vmem:[#allocation3 + $0x128] sm:$0xff] }
 0x906   :  { %18450 = vmatprep.mubr.msk.f32.mxu1 %vm6786_vm4, %v11890_v56  ;;  %v11900_v56 = vld [vmem:[#allocation3 + $0x138] sm:$0xff] }
 0x909   :  { %18451 = vmatmul.mubr.msk.f32.gmra.mrb[12].mxu1 %vm6786_vm4, %v11891_v27  ;;  %v11901_v27 = vld [vmem:[#allocation3 + $0x140] sm:$0xff] }
 0x90a   :  { %18453 = vmatprep.mubr.msk.f32.mxu1 %vm6786_vm4, %v11892_v8  ;;  %v11902_v8 = vld [vmem:[#allocation3 + $0x150] sm:$0xff] }
 0x90d   :  { %18454 = vmatmul.mubr.msk.f32.gmra.mrb[14].mxu1 %vm6786_vm4, %v11893_v4  ;;  %v11903_v4 = vld [vmem:[#allocation3 + $0x158] sm:$0xff] }
 0x90e   :  { %18456 = vmatprep.mubr.msk.f32.mxu1 %vm6786_vm4, %v11894_v0  ;;  %v11904_v0 = vld [vmem:[#allocation3 + $0x168] sm:$0xff] }
 0x911   :  { %18457 = vmatmul.mubr.msk.f32.gmra.mrb[16].mxu1 %vm6786_vm4, %v11895_v51  ;;  %v11905_v51 = vld [vmem:[#allocation3 + $0x170] sm:$0xff] }
 0x912   :  { %18459 = vmatprep.mubr.msk.f32.mxu1 %vm6786_vm4, %v11896_v54  ;;  %v11908_v54 = vld [vmem:[#allocation3 + $0x198] sm:$0xff] }
 0x915   :  { %18460 = vmatmul.mubr.msk.f32.gmra.mrb[18].mxu1 %vm6786_vm4, %v11897_v43  ;;  %v11909_v43 = vld [vmem:[#allocation3 + $0x1a0] sm:$0xff] }
 0x916   :  { %18462 = vmatprep.mubr.msk.f32.mxu1 %vm6786_vm4, %v11898_v34  ;;  %v11910_v34 = vld [vmem:[#allocation3 + $0x1e0] sm:$0xff] }
 0x919   :  { %18463 = vmatmul.mubr.msk.f32.gmra.mrb[20].mxu1 %vm6786_vm4, %v11899_v44  ;;  %v11911_v44 = vld [vmem:[#allocation3 + $0x1e8] sm:$0xff] }
 0x91a   :  { %18465 = vmatprep.mubr.msk.f32.mxu1 %vm6786_vm4, %v11900_v56  ;;  %v11912_v56 = vld [vmem:[#allocation3 + $0x1f8] sm:$0xff] }
 0x91d   :  { %18466 = vmatmul.mubr.msk.f32.gmra.mrb[22].mxu1 %vm6786_vm4, %v11901_v27  ;;  %v11913_v27 = vld [vmem:[#allocation3 + $0x200] sm:$0xff] }
 0x91e   :  { %18468 = vmatprep.mubr.msk.f32.mxu1 %vm6786_vm4, %v11902_v8  ;;  %v11916_v8 = vld [vmem:[#allocation3 + $0x228] sm:$0xff] }
 0x921   :  { %18469 = vmatmul.mubr.msk.f32.gmra.mrb[24].mxu1 %vm6786_vm4, %v11903_v4  ;;  %v11917_v4 = vld [vmem:[#allocation3 + $0x230] sm:$0xff] }
 0x922   :  { %18471 = vmatprep.mubr.msk.f32.mxu1 %vm6786_vm4, %v11904_v0  ;;  %v11918_v0 = vld [vmem:[#allocation3 + $0x240] sm:$0xff] }
 0x925   :  { %18472 = vmatmul.mubr.msk.f32.gmra.mrb[26].mxu1 %vm6786_vm4, %v11905_v51  ;;  %v11919_v51 = vld [vmem:[#allocation3 + $0x248] sm:$0xff] }
 0x926   :  { %18474 = vmatprep.mubr.msk.f32.mxu1 %vm6786_vm4, %v23856_v5  ;;  %v11914_v5 = vld [vmem:[#allocation3 + $0x210] sm:$0xff] }
 0x929   :  { %18475 = vmatmul.mubr.msk.f32.gmra.mrb[28].mxu1 %vm6786_vm4, %v23860_v57  ;;  %v11915_v57 = vld [vmem:[#allocation3 + $0x218] sm:$0xff] }
 0x92a   :  { %18477 = vmatprep.mubr.msk.f32.mxu1 %vm6786_vm4, %v11908_v54  ;;  %v11920_v54 = vld [vmem:[#allocation3 + $0x258] sm:$0xff] }
 0x92d   :  { %18478 = vmatmul.mubr.msk.f32.gmra.mrb[30].mxu1 %vm6786_vm4, %v11909_v43  ;;  %v11921_v43 = vld [vmem:[#allocation3 + $0x260] sm:$0xff] }
 0x92e   :  { %18480 = vmatprep.mubr.msk.f32.mxu1 %vm6786_vm4, %v11910_v34  ;;  %v11922_v34 = vld [vmem:[#allocation3 + $0x270] sm:$0xff] }
 0x931   :  { %18481 = vmatmul.mubr.msk.f32.gmra.mrb[32].mxu1 %vm6786_vm4, %v11911_v44  ;;  %v11923_v44 = vld [vmem:[#allocation3 + $0x278] sm:$0xff] }
 0x932   :  { %18483 = vmatprep.mubr.msk.f32.mxu1 %vm6786_vm4, %v11912_v56  ;;  %v11924_v56 = vld [vmem:[#allocation3 + $0x288] sm:$0xff] }
 0x935   :  { %18484 = vmatmul.mubr.msk.f32.gmra.mrb[34].mxu1 %vm6786_vm4, %v11913_v27  ;;  %v11925_v27 = vld [vmem:[#allocation3 + $0x290] sm:$0xff] }
 0x936   :  { %18486 = vmatprep.mubr.msk.f32.mxu1 %vm6786_vm4, %v11914_v5  ;;  %v11926_v5 = vld [vmem:[#allocation3 + $0x2a0] sm:$0xff] }
 0x939   :  { %18487 = vmatmul.mubr.msk.f32.gmra.mrb[36].mxu1 %vm6786_vm4, %v11915_v57  ;;  %v11927_v57 = vld [vmem:[#allocation3 + $0x2a8] sm:$0xff] }
 0x93a   :  { %18489 = vmatprep.mubr.msk.f32.mxu1 %vm6786_vm4, %v11916_v8  ;;  %v11928_v8 = vld [vmem:[#allocation3 + $0x2b8] sm:$0xff] }
 0x93d   :  { %18490 = vmatmul.mubr.msk.f32.gmra.mrb[38].mxu1 %vm6786_vm4, %v11917_v4  ;;  %v11929_v4 = vld [vmem:[#allocation3 + $0x2c0] sm:$0xff] }
 0x93e   :  { %18492 = vmatprep.mubr.msk.f32.mxu1 %vm6786_vm4, %v11918_v0  ;;  %v11930_v0 = vld [vmem:[#allocation3 + $0x2d0] sm:$0xff] }
 0x941   :  { %18493 = vmatmul.mubr.msk.f32.gmra.mrb[40].mxu1 %vm6786_vm4, %v11919_v51  ;;  %v11931_v51 = vld [vmem:[#allocation3 + $0x2d8] sm:$0xff] }
 0x942   :  { %18495 = vmatprep.mubr.msk.f32.mxu1 %vm6786_vm4, %v11920_v54  ;;  %v11932_v54 = vld [vmem:[#allocation3 + $0x2e8] sm:$0xff] }
 0x945   :  { %18496 = vmatmul.mubr.msk.f32.gmra.mrb[42].mxu1 %vm6786_vm4, %v11921_v43  ;;  %v11933_v43 = vld [vmem:[#allocation3 + $0x2f0] sm:$0xff] }
 0x946   :  { %18498 = vmatprep.mubr.msk.f32.mxu1 %vm6786_vm4, %v11922_v34  ;;  %v11934_v34 = vld [vmem:[#allocation3 + $0x300] sm:$0xff] }
 0x949   :  { %18499 = vmatmul.mubr.msk.f32.gmra.mrb[44].mxu1 %vm6786_vm4, %v11923_v44  ;;  %v11935_v44 = vld [vmem:[#allocation3 + $0x308] sm:$0xff] }
 0x94a   :  { %18501 = vmatprep.mubr.msk.f32.mxu1 %vm6786_vm4, %v11924_v56  ;;  %v11936_v56 = vld [vmem:[#allocation3 + $0x318] sm:$0xff] }
 0x94d   :  { %18502 = vmatmul.mubr.msk.f32.gmra.mrb[46].mxu1 %vm6786_vm4, %v11925_v27  ;;  %v11937_v27 = vld [vmem:[#allocation3 + $0x320] sm:$0xff] }
 0x94e   :  { %18504 = vmatprep.mubr.msk.f32.mxu1 %vm6786_vm4, %v11926_v5  ;;  %v11940_v5 = vld [vmem:[#allocation3 + $0x348] sm:$0xff] }
 0x951   :  { %18505 = vmatmul.mubr.msk.f32.gmra.mrb[48].mxu1 %vm6786_vm4, %v11927_v57  ;;  %v11941_v57 = vld [vmem:[#allocation3 + $0x350] sm:$0xff] }
 0x952   :  { %18507 = vmatprep.mubr.msk.f32.mxu1 %vm6786_vm4, %v11928_v8  ;;  %v13324_v8 = vld [vmem:[#allocation3 + $0x1e2] sm:$0xff] }
 0x955   :  { %18508 = vmatmul.mubr.msk.f32.gmra.mrb[50].mxu1 %vm6786_vm4, %v11929_v4  ;;  %v13325_v4 = vld [vmem:[#allocation3 + $0x1ea] sm:$0xff] }
 0x956   :  { %18510 = vmatprep.mubr.msk.f32.mxu1 %vm6786_vm4, %v11930_v0  ;;  %v13326_v0 = vld [vmem:[#allocation3 + $0x1fa] sm:$0xff] }
 0x959   :  { %18511 = vmatmul.mubr.msk.f32.gmra.mrb[52].mxu1 %vm6786_vm4, %v11931_v51  ;;  %v13327_v51 = vld [vmem:[#allocation3 + $0x202] sm:$0xff] }
 0x95a   :  { %18513 = vmatprep.mubr.msk.f32.mxu1 %vm6786_vm4, %v11932_v54  ;;  %v13329_v54 = vld [vmem:[#allocation3 + $0x21a] sm:$0xff] }
 0x95d   :  { %18514 = vmatmul.mubr.msk.f32.gmra.mrb[54].mxu1 %vm6786_vm4, %v11933_v43  ;;  %v13330_v43 = vld [vmem:[#allocation3 + $0x22a] sm:$0xff] }
 0x95e   :  { %18516 = vmatprep.mubr.msk.f32.mxu1 %vm6786_vm4, %v11934_v34  ;;  %v13331_v34 = vld [vmem:[#allocation3 + $0x232] sm:$0xff] }
 0x961   :  { %18517 = vmatmul.mubr.msk.f32.gmra.mrb[56].mxu1 %vm6786_vm4, %v11935_v44  ;;  %v13332_v44 = vld [vmem:[#allocation3 + $0x242] sm:$0xff] }
 0x962   :  { %18519 = vmatprep.mubr.msk.f32.mxu1 %vm6786_vm4, %v11936_v56  ;;  %v13333_v56 = vld [vmem:[#allocation3 + $0x24a] sm:$0xff] }
 0x965   :  { %18520 = vmatmul.mubr.msk.f32.gmra.mrb[58].mxu1 %vm6786_vm4, %v11937_v27  ;;  %v13334_v27 = vld [vmem:[#allocation3 + $0x25a] sm:$0xff] }
 0x966   :  { %18522 = vmatprep.mubr.msk.f32.mxu1 %vm6786_vm4, %v23924_v42  ;;  %v12615_v42 = vld [vmem:[#allocation3 + $0x199] sm:$0xff] }
 0x969   :  { %18523 = vmatmul.mubr.msk.f32.gmra.mrb[60].mxu1 %vm6786_vm4, %v23928_v40  ;;  %v12616_v40 = vld [vmem:[#allocation3 + $0x1a1] sm:$0xff] }
 0x96a   :  { %18525 = vmatprep.mubr.msk.f32.mxu1 %vm6786_vm4, %v11940_v5  ;;  %v13335_v5 = vld [vmem:[#allocation3 + $0x262] sm:$0xff] }
 0x96d   :  { %18526 = vmatmul.mubr.msk.f32.gmra.mrb[62].mxu1 %vm6786_vm4, %v11941_v57  ;;  %v13336_v57 = vld [vmem:[#allocation3 + $0x272] sm:$0xff] }
 0x96e   :  { %18530 = vmatprep.mubr.msk.f32.mxu1 %vm6786_vm4, %v23939_v52  ;;  %v26584_v52 = vld [vmem:[#allocation58_spill] sm:$0xff] }
 0x971   :  { %18531 = vmatmul.mubr.msk.f32.vlgmr.msra.gmra.mrb[0].mxu1 %vm6786_vm4, %v23945_v41  ;;  %v26585_v41 = vld [vmem:[#allocation59_spill] sm:$0xff] }
 0x972   :  { %18627 = vmatpush3.msra.mxu1 %v24330_v19  ;;  %18533 = vmatprep.mubr.msk.f32.mxu1 %vm6786_vm4, %v23949_v59  ;;  %v26586_v59 = vld [vmem:[#allocation60_spill] sm:$0xff] }
 0x973   :  { %v13323_v19 = vld [vmem:[#allocation3 + $0x1a2] sm:$0xff] }
 0x975   :  { %18534 = vmatmul.mubr.msk.f32.gmra.mrb[2].mxu1 %vm6786_vm4, %v23953_v23  ;;  %v26587_v23 = vld [vmem:[#allocation61_spill] sm:$0xff] }
 0x976   :  { %18536 = vmatprep.mubr.msk.f32.mxu1 %vm6786_vm4, %v23957_v24  ;;  %v26588_v24 = vld [vmem:[#allocation62_spill] sm:$0xff] }
 0x979   :  { %18537 = vmatmul.mubr.msk.f32.gmra.mrb[4].mxu1 %vm6786_vm4, %v23961_v2  ;;  %v26589_v2 = vld [vmem:[#allocation63_spill] sm:$0xff] }
 0x97a   :  { %18539 = vmatprep.mubr.msk.f32.mxu1 %vm6786_vm4, %v23965_v26  ;;  %v26590_v26 = vld [vmem:[#allocation64_spill] sm:$0xff] }
 0x97d   :  { %18540 = vmatmul.mubr.msk.f32.gmra.mrb[6].mxu1 %vm6786_vm4, %v23969_v46  ;;  %v26591_v46 = vld [vmem:[#allocation65_spill] sm:$0xff] }
 0x97e   :  { %18542 = vmatprep.mubr.msk.f32.mxu1 %vm6786_vm4, %v23973_v17  ;;  %v26592_v17 = vld [vmem:[#allocation4_spill] sm:$0xff] }
 0x981   :  { %18543 = vmatmul.mubr.msk.f32.gmra.mrb[8].mxu1 %vm6786_vm4, %v23977_v62  ;;  %v26593_v62 = vld [vmem:[#allocation5_spill] sm:$0xff] }
 0x982   :  { %18545 = vmatprep.mubr.msk.f32.mxu1 %vm6786_vm4, %v23981_v18  ;;  %v26594_v18 = vld [vmem:[#allocation6_spill] sm:$0xff] }
 0x985   :  { %18546 = vmatmul.mubr.msk.f32.gmra.mrb[10].mxu1 %vm6786_vm4, %v23985_v21  ;;  %v26595_v21 = vld [vmem:[#allocation7_spill] sm:$0xff] }
 0x986   :  { %18548 = vmatprep.mubr.msk.f32.mxu1 %vm6786_vm4, %v23989_v63  ;;  %v26596_v63 = vld [vmem:[#allocation8_spill] sm:$0xff] }
 0x989   :  { %18549 = vmatmul.mubr.msk.f32.gmra.mrb[12].mxu1 %vm6786_vm4, %v23993_v47  ;;  %v12647_v47 = vld [vmem:[#allocation3 + $0x349] sm:$0xff] }
 0x98a   :  { %18551 = vmatprep.mubr.msk.f32.mxu1 %vm6786_vm4, %v23997_v48  ;;  %v26597_v48 = vld [vmem:[#allocation73_spill] sm:$0xff] }
 0x98d   :  { %18552 = vmatmul.mubr.msk.f32.gmra.mrb[14].mxu1 %vm6786_vm4, %v24001_v13  ;;  %v12648_v13 = vld [vmem:[#allocation3 + $0x351] sm:$0xff] }
 0x98e   :  { %18554 = vmatprep.mubr.msk.f32.mxu1 %vm6786_vm4, %v24005_v35  ;;  %v13292_v35 = vld [vmem:[#allocation3 + $0x32] sm:$0xff] }
 0x991   :  { %18555 = vmatmul.mubr.msk.f32.gmra.mrb[16].mxu1 %vm6786_vm4, %v24009_v33  ;;  %v13293_v33 = vld [vmem:[#allocation3 + $0x3a] sm:$0xff] }
 0x992   :  { %18557 = vmatprep.mubr.msk.f32.mxu1 %vm6786_vm4, %v24013_v32  ;;  %v13294_v32 = vld [vmem:[#allocation3 + $0x4a] sm:$0xff] }
 0x995   :  { %18558 = vmatmul.mubr.msk.f32.gmra.mrb[18].mxu1 %vm6786_vm4, %v24017_v60  ;;  %v13295_v60 = vld [vmem:[#allocation3 + $0x52] sm:$0xff] }
 0x996   :  { %18560 = vmatprep.mubr.msk.f32.mxu1 %vm6786_vm4, %v24021_v45  ;;  %v13296_v45 = vld [vmem:[#allocation3 + $0x62] sm:$0xff] }
 0x999   :  { %18561 = vmatmul.mubr.msk.f32.gmra.mrb[20].mxu1 %vm6786_vm4, %v24025_v1  ;;  %v13297_v1 = vld [vmem:[#allocation3 + $0x6a] sm:$0xff] }
 0x99a   :  { %18563 = vmatprep.mubr.msk.f32.mxu1 %vm6786_vm4, %v24029_v9  ;;  %v13298_v9 = vld [vmem:[#allocation3 + $0x7a] sm:$0xff] }
 0x99d   :  { %18564 = vmatmul.mubr.msk.f32.gmra.mrb[22].mxu1 %vm6786_vm4, %v24033_v12  ;;  %v13299_v12 = vld [vmem:[#allocation3 + $0x82] sm:$0xff] }
 0x99e   :  { %18566 = vmatprep.mubr.msk.f32.mxu1 %vm6786_vm4, %v24037_v53  ;;  %v13300_v53 = vld [vmem:[#allocation3 + $0x92] sm:$0xff] }
 0x9a1   :  { %18567 = vmatmul.mubr.msk.f32.gmra.mrb[24].mxu1 %vm6786_vm4, %v24041_v10  ;;  %v13301_v10 = vld [vmem:[#allocation3 + $0x9a] sm:$0xff] }
 0x9a2   :  { %18569 = vmatprep.mubr.msk.f32.mxu1 %vm6786_vm4, %v24045_v28  ;;  %v13302_v28 = vld [vmem:[#allocation3 + $0xaa] sm:$0xff] }
 0x9a5   :  { %18570 = vmatmul.mubr.msk.f32.gmra.mrb[26].mxu1 %vm6786_vm4, %v24049_v25  ;;  %v13303_v25 = vld [vmem:[#allocation3 + $0xb2] sm:$0xff] }
 0x9a6   :  { %18572 = vmatprep.mubr.msk.f32.mxu1 %vm6786_vm4, %v24053_v11  ;;  %v13304_v11 = vld [vmem:[#allocation3 + $0xc2] sm:$0xff] }
 0x9a9   :  { %18573 = vmatmul.mubr.msk.f32.gmra.mrb[28].mxu1 %vm6786_vm4, %v24057_v37  ;;  %v13305_v37 = vld [vmem:[#allocation3 + $0xca] sm:$0xff] }
 0x9aa   :  { %18575 = vmatprep.mubr.msk.f32.mxu1 %vm6786_vm4, %v12615_v42  ;;  %v13337_v42 = vld [vmem:[#allocation3 + $0x27a] sm:$0xff] }
 0x9ad   :  { %18576 = vmatmul.mubr.msk.f32.gmra.mrb[30].mxu1 %vm6786_vm4, %v12616_v40  ;;  %v13338_v40 = vld [vmem:[#allocation3 + $0x28a] sm:$0xff] }
 0x9ae   :  { %18578 = vmatprep.mubr.msk.f32.mxu1 %vm6786_vm4, %v24063_v50  ;;  %v13306_v50 = vld [vmem:[#allocation3 + $0xda] sm:$0xff] }
 0x9b1   :  { %18579 = vmatmul.mubr.msk.f32.gmra.mrb[32].mxu1 %vm6786_vm4, %v24067_v7  ;;  %v13307_v7 = vld [vmem:[#allocation3 + $0xe2] sm:$0xff] }
 0x9b2   :  { %18581 = vmatprep.mubr.msk.f32.mxu1 %vm6786_vm4, %v24071_v49  ;;  %v13308_v49 = vld [vmem:[#allocation3 + $0xf2] sm:$0xff] }
 0x9b5   :  { %18582 = vmatmul.mubr.msk.f32.gmra.mrb[34].mxu1 %vm6786_vm4, %v24075_v38  ;;  %v13309_v38 = vld [vmem:[#allocation3 + $0xfa] sm:$0xff] }
 0x9b6   :  { %18584 = vmatprep.mubr.msk.f32.mxu1 %vm6786_vm4, %v24079_v16  ;;  %v13310_v16 = vld [vmem:[#allocation3 + $0x10a] sm:$0xff] }
 0x9b9   :  { %18585 = vmatmul.mubr.msk.f32.gmra.mrb[36].mxu1 %vm6786_vm4, %v24083_v20  ;;  %v13311_v20 = vld [vmem:[#allocation3 + $0x112] sm:$0xff] }
 0x9ba   :  { %18587 = vmatprep.mubr.msk.f32.mxu1 %vm6786_vm4, %v24087_v36  ;;  %v13312_v36 = vld [vmem:[#allocation3 + $0x122] sm:$0xff] }
 0x9bd   :  { %18588 = vmatmul.mubr.msk.f32.gmra.mrb[38].mxu1 %vm6786_vm4, %v24091_v58  ;;  %v13313_v58 = vld [vmem:[#allocation3 + $0x12a] sm:$0xff] }
 0x9be   :  { %18590 = vmatprep.mubr.msk.f32.mxu1 %vm6786_vm4, %v24095_v30  ;;  %v13314_v30 = vld [vmem:[#allocation3 + $0x13a] sm:$0xff] }
 0x9c1   :  { %18591 = vmatmul.mubr.msk.f32.gmra.mrb[40].mxu1 %vm6786_vm4, %v24099_v6  ;;  %v13315_v6 = vld [vmem:[#allocation3 + $0x142] sm:$0xff] }
 0x9c2   :  { %18593 = vmatprep.mubr.msk.f32.mxu1 %vm6786_vm4, %v24103_v3  ;;  %v13316_v3 = vld [vmem:[#allocation3 + $0x152] sm:$0xff] }
 0x9c5   :  { %18594 = vmatmul.mubr.msk.f32.gmra.mrb[42].mxu1 %vm6786_vm4, %v24107_v39  ;;  %v13317_v39 = vld [vmem:[#allocation3 + $0x15a] sm:$0xff] }
 0x9c6   :  { %18596 = vmatprep.mubr.msk.f32.mxu1 %vm6786_vm4, %v24111_v31  ;;  %v13318_v31 = vld [vmem:[#allocation3 + $0x16a] sm:$0xff] }
 0x9c9   :  { %18597 = vmatmul.mubr.msk.f32.gmra.mrb[44].mxu1 %vm6786_vm4, %v24115_v61  ;;  %v13319_v61 = vld [vmem:[#allocation3 + $0x172] sm:$0xff] }
 0x9ca   :  { %18599 = vmatprep.mubr.msk.f32.mxu1 %vm6786_vm4, %v24119_v55  ;;  %v13322_v55 = vld [vmem:[#allocation3 + $0x19a] sm:$0xff] }
 0x9cd   :  { %18600 = vmatmul.mubr.msk.f32.gmra.mrb[46].mxu1 %vm6786_vm4, %v24123_v14  ;;  %v26598_v14 = vld [vmem:[#allocation9_spill] sm:$0xff] }
 0x9ce   :  { %18602 = vmatprep.mubr.msk.f32.mxu1 %vm6786_vm4, %v26584_v52  ;;  %v13339_v52 = vld [vmem:[#allocation3 + $0x292] sm:$0xff] }
 0x9d1   :  { %18603 = vmatmul.mubr.msk.f32.gmra.mrb[48].mxu1 %vm6786_vm4, %v26585_v41  ;;  %v13340_v41 = vld [vmem:[#allocation3 + $0x2a2] sm:$0xff] }
 0x9d2   :  { %18605 = vmatprep.mubr.msk.f32.mxu1 %vm6786_vm4, %v26586_v59  ;;  %v13341_v59 = vld [vmem:[#allocation3 + $0x2aa] sm:$0xff] }
 0x9d5   :  { %18606 = vmatmul.mubr.msk.f32.gmra.mrb[50].mxu1 %vm6786_vm4, %v26587_v23  ;;  %v13342_v23 = vld [vmem:[#allocation3 + $0x2ba] sm:$0xff] }
 0x9d6   :  { %18608 = vmatprep.mubr.msk.f32.mxu1 %vm6786_vm4, %v26588_v24  ;;  %v13343_v24 = vld [vmem:[#allocation3 + $0x2c2] sm:$0xff] }
 0x9d9   :  { %18609 = vmatmul.mubr.msk.f32.gmra.mrb[52].mxu1 %vm6786_vm4, %v26589_v2  ;;  %v13344_v2 = vld [vmem:[#allocation3 + $0x2d2] sm:$0xff] }
 0x9da   :  { %18611 = vmatprep.mubr.msk.f32.mxu1 %vm6786_vm4, %v26590_v26  ;;  %v13345_v26 = vld [vmem:[#allocation3 + $0x2da] sm:$0xff] }
 0x9dd   :  { %18612 = vmatmul.mubr.msk.f32.gmra.mrb[54].mxu1 %vm6786_vm4, %v26591_v46  ;;  %v13346_v46 = vld [vmem:[#allocation3 + $0x2ea] sm:$0xff] }
 0x9de   :  { %18614 = vmatprep.mubr.msk.f32.mxu1 %vm6786_vm4, %v26592_v17  ;;  %v13347_v17 = vld [vmem:[#allocation3 + $0x2f2] sm:$0xff] }
 0x9e1   :  { %18615 = vmatmul.mubr.msk.f32.gmra.mrb[56].mxu1 %vm6786_vm4, %v26593_v62  ;;  %v13348_v62 = vld [vmem:[#allocation3 + $0x302] sm:$0xff] }
 0x9e2   :  { %18617 = vmatprep.mubr.msk.f32.mxu1 %vm6786_vm4, %v26594_v18  ;;  %v13349_v18 = vld [vmem:[#allocation3 + $0x30a] sm:$0xff] }
 0x9e5   :  { %18618 = vmatmul.mubr.msk.f32.gmra.mrb[58].mxu1 %vm6786_vm4, %v26595_v21  ;;  %v13350_v21 = vld [vmem:[#allocation3 + $0x31a] sm:$0xff] }
 0x9e6   :  { %18620 = vmatprep.mubr.msk.f32.mxu1 %vm6786_vm4, %v26596_v63  ;;  %v13351_v63 = vld [vmem:[#allocation3 + $0x322] sm:$0xff] }
 0x9e9   :  { %18621 = vmatmul.mubr.msk.f32.gmra.mrb[60].mxu1 %vm6786_vm4, %v26597_v48  ;;  %v13355_v48 = vld [vmem:[#allocation3 + $0x352] sm:$0xff] }
 0x9ea   :  { %18623 = vmatprep.mubr.msk.f32.mxu1 %vm6786_vm4, %v12647_v47  ;;  %v13354_v47 = vld [vmem:[#allocation3 + $0x34a] sm:$0xff] }
 0x9ed   :  { %18624 = vmatmul.mubr.msk.f32.gmra.mrb[62].mxu1 %vm6786_vm4, %v12648_v13 }
 0x9ee   :  { %18628 = vmatprep.mubr.msk.f32.mxu1 %vm6786_vm4, %v13292_v35 }
 0x9f1   :  { %18629 = vmatmul.mubr.msk.f32.vlgmr.msra.gmra.mrb[0].mxu1 %vm6786_vm4, %v13293_v33 }
 0x9f2   :  { %18631 = vmatprep.mubr.msk.f32.mxu1 %vm6786_vm4, %v13294_v32 }
 0x9f5   :  { %18632 = vmatmul.mubr.msk.f32.gmra.mrb[2].mxu1 %vm6786_vm4, %v13295_v60 }
 0x9f6   :  { %18634 = vmatprep.mubr.msk.f32.mxu1 %vm6786_vm4, %v13296_v45 }
 0x9f9   :  { %18635 = vmatmul.mubr.msk.f32.gmra.mrb[4].mxu1 %vm6786_vm4, %v13297_v1 }
 0x9fa   :  { %18637 = vmatprep.mubr.msk.f32.mxu1 %vm6786_vm4, %v13298_v9 }
 0x9fd   :  { %18638 = vmatmul.mubr.msk.f32.gmra.mrb[6].mxu1 %vm6786_vm4, %v13299_v12 }
 0x9fe   :  { %18640 = vmatprep.mubr.msk.f32.mxu1 %vm6786_vm4, %v13300_v53 }
 0xa01   :  { %18641 = vmatmul.mubr.msk.f32.gmra.mrb[8].mxu1 %vm6786_vm4, %v13301_v10 }
 0xa02   :  { %18643 = vmatprep.mubr.msk.f32.mxu1 %vm6786_vm4, %v13302_v28 }
 0xa05   :  { %18644 = vmatmul.mubr.msk.f32.gmra.mrb[10].mxu1 %vm6786_vm4, %v13303_v25 }
 0xa06   :  { %18646 = vmatprep.mubr.msk.f32.mxu1 %vm6786_vm4, %v13304_v11 }
 0xa09   :  { %18647 = vmatmul.mubr.msk.f32.gmra.mrb[12].mxu1 %vm6786_vm4, %v13305_v37 }
 0xa0a   :  { %18649 = vmatprep.mubr.msk.f32.mxu1 %vm6786_vm4, %v13306_v50 }
 0xa0d   :  { %18650 = vmatmul.mubr.msk.f32.gmra.mrb[14].mxu1 %vm6786_vm4, %v13307_v7 }
 0xa0e   :  { %18652 = vmatprep.mubr.msk.f32.mxu1 %vm6786_vm4, %v13308_v49 }
 0xa11   :  { %18653 = vmatmul.mubr.msk.f32.gmra.mrb[16].mxu1 %vm6786_vm4, %v13309_v38 }
 0xa12   :  { %18655 = vmatprep.mubr.msk.f32.mxu1 %vm6786_vm4, %v13310_v16 }
 0xa15   :  { %18656 = vmatmul.mubr.msk.f32.gmra.mrb[18].mxu1 %vm6786_vm4, %v13311_v20 }
 0xa16   :  { %18658 = vmatprep.mubr.msk.f32.mxu1 %vm6786_vm4, %v13312_v36 }
 0xa19   :  { %18659 = vmatmul.mubr.msk.f32.gmra.mrb[20].mxu1 %vm6786_vm4, %v13313_v58 }
 0xa1a   :  { %18661 = vmatprep.mubr.msk.f32.mxu1 %vm6786_vm4, %v13314_v30 }
 0xa1d   :  { %18662 = vmatmul.mubr.msk.f32.gmra.mrb[22].mxu1 %vm6786_vm4, %v13315_v6 }
 0xa1e   :  { %18664 = vmatprep.mubr.msk.f32.mxu1 %vm6786_vm4, %v13316_v3 }
 0xa21   :  { %18665 = vmatmul.mubr.msk.f32.gmra.mrb[24].mxu1 %vm6786_vm4, %v13317_v39 }
 0xa22   :  { %18667 = vmatprep.mubr.msk.f32.mxu1 %vm6786_vm4, %v13318_v31 }
 0xa25   :  { %18668 = vmatmul.mubr.msk.f32.gmra.mrb[26].mxu1 %vm6786_vm4, %v13319_v61 }
 0xa26   :  { %18670 = vmatprep.mubr.msk.f32.mxu1 %vm6786_vm4, %v24250_v29  ;;  %v13328_v29 = vld [vmem:[#allocation3 + $0x212] sm:$0xff] }
 0xa29   :  { %18671 = vmatmul.mubr.msk.f32.gmra.mrb[28].mxu1 %vm6786_vm4, %v26598_v14 }
 0xa2a   :  { %18673 = vmatprep.mubr.msk.f32.mxu1 %vm6786_vm4, %v13322_v55 }
 0xa2d   :  { %18674 = vmatmul.mubr.msk.f32.gmra.mrb[30].mxu1 %vm6786_vm4, %v13323_v19 }
 0xa2e   :  { %18676 = vmatprep.mubr.msk.f32.mxu1 %vm6786_vm4, %v13324_v8 }
 0xa31   :  { %18677 = vmatmul.mubr.msk.f32.gmra.mrb[32].mxu1 %vm6786_vm4, %v13325_v4 }
 0xa32   :  { %18679 = vmatprep.mubr.msk.f32.mxu1 %vm6786_vm4, %v13326_v0 }
 0xa35   :  { %18680 = vmatmul.mubr.msk.f32.gmra.mrb[34].mxu1 %vm6786_vm4, %v13327_v51 }
 0xa36   :  { %18682 = vmatprep.mubr.msk.f32.mxu1 %vm6786_vm4, %v13328_v29 }
 0xa39   :  { %18683 = vmatmul.mubr.msk.f32.gmra.mrb[36].mxu1 %vm6786_vm4, %v13329_v54 }
 0xa3a   :  { %18685 = vmatprep.mubr.msk.f32.mxu1 %vm6786_vm4, %v13330_v43 }
 0xa3d   :  { %18686 = vmatmul.mubr.msk.f32.gmra.mrb[38].mxu1 %vm6786_vm4, %v13331_v34 }
 0xa3e   :  { %18688 = vmatprep.mubr.msk.f32.mxu1 %vm6786_vm4, %v13332_v44 }
 0xa41   :  { %18689 = vmatmul.mubr.msk.f32.gmra.mrb[40].mxu1 %vm6786_vm4, %v13333_v56 }
 0xa42   :  { %18691 = vmatprep.mubr.msk.f32.mxu1 %vm6786_vm4, %v13334_v27 }
 0xa45   :  { %18692 = vmatmul.mubr.msk.f32.gmra.mrb[42].mxu1 %vm6786_vm4, %v13335_v5 }
 0xa46   :  { %18694 = vmatprep.mubr.msk.f32.mxu1 %vm6786_vm4, %v13336_v57 }
 0xa49   :  { %18695 = vmatmul.mubr.msk.f32.gmra.mrb[44].mxu1 %vm6786_vm4, %v13337_v42 }
 0xa4a   :  { %18697 = vmatprep.mubr.msk.f32.mxu1 %vm6786_vm4, %v13338_v40 }
 0xa4d   :  { %18698 = vmatmul.mubr.msk.f32.gmra.mrb[46].mxu1 %vm6786_vm4, %v13339_v52 }
 0xa4e   :  { %18700 = vmatprep.mubr.msk.f32.mxu1 %vm6786_vm4, %v13340_v41 }
 0xa51   :  { %18701 = vmatmul.mubr.msk.f32.gmra.mrb[48].mxu1 %vm6786_vm4, %v13341_v59 }
 0xa52   :  { %18703 = vmatprep.mubr.msk.f32.mxu1 %vm6786_vm4, %v13342_v23 }
 0xa55   :  { %18704 = vmatmul.mubr.msk.f32.gmra.mrb[50].mxu1 %vm6786_vm4, %v13343_v24 }
 0xa56   :  { %18706 = vmatprep.mubr.msk.f32.mxu1 %vm6786_vm4, %v13344_v2 }
 0xa59   :  { %18707 = vmatmul.mubr.msk.f32.gmra.mrb[52].mxu1 %vm6786_vm4, %v13345_v26 }
 0xa5a   :  { %18709 = vmatprep.mubr.msk.f32.mxu1 %vm6786_vm4, %v13346_v46 }
 0xa5d   :  { %18710 = vmatmul.mubr.msk.f32.gmra.mrb[54].mxu1 %vm6786_vm4, %v13347_v17 }
 0xa5e   :  { %18712 = vmatprep.mubr.msk.f32.mxu1 %vm6786_vm4, %v13348_v62 }
 0xa61   :  { %18713 = vmatmul.mubr.msk.f32.gmra.mrb[56].mxu1 %vm6786_vm4, %v13349_v18 }
 0xa62   :  { %18715 = vmatprep.mubr.msk.f32.mxu1 %vm6786_vm4, %v13350_v21 }
 0xa65   :  { %18716 = vmatmul.mubr.msk.f32.gmra.mrb[58].mxu1 %vm6786_vm4, %v13351_v63 }
 0xa66   :  { %18718 = vmatprep.mubr.msk.f32.mxu1 %vm6786_vm4, %v24318_v22 }
 0xa69   :  { %18719 = vmatmul.mubr.msk.f32.gmra.mrb[60].mxu1 %vm6786_vm4, %v24322_v15 }
 0xa6a   :  { %18721 = vmatprep.mubr.msk.f32.mxu1 %vm6786_vm4, %v13354_v47 }
 0xa6d   :  { %18722 = vmatmul.mubr.msk.f32.gmra.mrb[62].mxu1 %vm6786_vm4, %v13355_v48 }
 0xac4   :  { %v24594_v13 = vpop.f32.mrb[0].mxu1 }
 0xac5   :  { %v14000_v35 = vsel %vm6786_vm4, %v24594_v13, 0.0  ;;  %v14134_v33 = vmul.f32 %v24594_v13, %v24594_v13  ;;  %v24600_v32 = vpop.f32.mrb[1].mxu1 }
 0xac6   :  { %v13999_v22 = vsel %vm6786_vm4, %v24600_v32, 0.0  ;;  %v14133_v15 = vmul.f32 %v24600_v32, %v24600_v32 }
 0xac7   :  { %v14198_v60 = vsel %vm6786_vm4, %v14134_v33, 0.0  ;;  %v14001_v45 = vadd.f32 %v14000_v35, %v13999_v22 }
 0xac8   :  { %v14197_v1 = vsel %vm6786_vm4, %v14133_v15, 0.0  ;;  %v24608_v9 = vpop.f32.mrb[2].mxu1 }
 0xac9   :  { %v14199_v12 = vadd.f32 %v14198_v60, %v14197_v1  ;;  %v24610_v53 = vpop.f32.mrb[3].mxu1  ;;  %v14136_v10 = vmul.f32 %v24608_v9, %v24608_v9  ;;  %v14004_v37 = vsel %vm6786_vm4, %v24608_v9, 0.0 }
 0xaca   :  { %v14002_v28 = vsel %vm6786_vm4, %v24610_v53, 0.0  ;;  %v14135_v25 = vmul.f32 %v24610_v53, %v24610_v53 }
 0xacb   :  { %v14003_v11 = vadd.f32 %v14002_v28, %v14001_v45  ;;  %v14202_v20 = vsel %vm6786_vm4, %v14136_v10, 0.0 }
 0xacc   :  { %v14200_v50 = vsel %vm6786_vm4, %v14135_v25, 0.0  ;;  %v24621_v7 = vpop.f32.mrb[4].mxu1 }
 0xacd   :  { %v14005_v49 = vadd.f32 %v14004_v37, %v14003_v11  ;;  %v14201_v38 = vadd.f32 %v14200_v50, %v14199_v12  ;;  %v24623_v16 = vpop.f32.mrb[5].mxu1  ;;  %v14138_v36 = vmul.f32 %v24621_v7, %v24621_v7  ;;  %v14008_v39 = vsel %vm6786_vm4, %v24621_v7, 0.0 }
 0xace   :  { %v14006_v58 = vsel %vm6786_vm4, %v24623_v16, 0.0  ;;  %v14137_v30 = vmul.f32 %v24623_v16, %v24623_v16 }
 0xacf   :  { %v14203_v6 = vadd.f32 %v14202_v20, %v14201_v38  ;;  %v14007_v3 = vadd.f32 %v14006_v58, %v14005_v49  ;;  %v14206_v8 = vsel %vm6786_vm4, %v14138_v36, 0.0 }
 0xad0   :  { %v14204_v31 = vsel %vm6786_vm4, %v14137_v30, 0.0  ;;  %v24635_v61 = vpop.f32.mrb[6].mxu1 }
 0xad1   :  { %v14205_v55 = vadd.f32 %v14204_v31, %v14203_v6  ;;  %v24637_v14 = vpop.f32.mrb[7].mxu1  ;;  %v14009_v19 = vadd.f32 %v14008_v39, %v14007_v3  ;;  %v14140_v4 = vmul.f32 %v24635_v61, %v24635_v61  ;;  %v14012_v43 = vsel %vm6786_vm4, %v24635_v61, 0.0 }
 0xad2   :  { %v14010_v0 = vsel %vm6786_vm4, %v24637_v14, 0.0  ;;  %v14139_v51 = vmul.f32 %v24637_v14, %v24637_v14 }
 0xad3   :  { %v14011_v29 = vadd.f32 %v14010_v0, %v14009_v19  ;;  %v14207_v54 = vadd.f32 %v14206_v8, %v14205_v55  ;;  %v14210_v57 = vsel %vm6786_vm4, %v14140_v4, 0.0 }
 0xad4   :  { %v14208_v34 = vsel %vm6786_vm4, %v14139_v51, 0.0  ;;  %v24649_v44 = vpop.f32.mrb[8].mxu1 }
 0xad5   :  { %v14209_v56 = vadd.f32 %v14208_v34, %v14207_v54  ;;  %v24651_v27 = vpop.f32.mrb[9].mxu1  ;;  %v14013_v5 = vadd.f32 %v14012_v43, %v14011_v29  ;;  %v14142_v42 = vmul.f32 %v24649_v44, %v24649_v44  ;;  %v14016_v23 = vsel %vm6786_vm4, %v24649_v44, 0.0 }
 0xad6   :  { %v14014_v40 = vsel %vm6786_vm4, %v24651_v27, 0.0  ;;  %v14141_v52 = vmul.f32 %v24651_v27, %v24651_v27 }
 0xad7   :  { %v14015_v41 = vadd.f32 %v14014_v40, %v14013_v5  ;;  %v14211_v59 = vadd.f32 %v14210_v57, %v14209_v56  ;;  %v14214_v62 = vsel %vm6786_vm4, %v14142_v42, 0.0 }
 0xad8   :  { %v14212_v24 = vsel %vm6786_vm4, %v14141_v52, 0.0  ;;  %v24663_v2 = vpop.f32.mrb[10].mxu1 }
 0xad9   :  { %v14213_v26 = vadd.f32 %v14212_v24, %v14211_v59  ;;  %v24665_v46 = vpop.f32.mrb[11].mxu1  ;;  %v14017_v17 = vadd.f32 %v14016_v23, %v14015_v41  ;;  %v14144_v18 = vmul.f32 %v24663_v2, %v24663_v2  ;;  %v14020_v35 = vsel %vm6786_vm4, %v24663_v2, 0.0 }
 0xada   :  { %v14018_v21 = vsel %vm6786_vm4, %v24665_v46, 0.0  ;;  %v14143_v63 = vmul.f32 %v24665_v46, %v24665_v46 }
 0xadb   :  { %v14019_v47 = vadd.f32 %v14018_v21, %v14017_v17  ;;  %v14215_v48 = vadd.f32 %v14214_v62, %v14213_v26  ;;  %v14218_v1 = vsel %vm6786_vm4, %v14144_v18, 0.0 }
 0xadc   :  { %v14216_v33 = vsel %vm6786_vm4, %v14143_v63, 0.0  ;;  %v24677_v22 = vpop.f32.mrb[12].mxu1 }
 0xadd   :  { %v14217_v15 = vadd.f32 %v14216_v33, %v14215_v48  ;;  %v24679_v60 = vpop.f32.mrb[13].mxu1  ;;  %v14021_v45 = vadd.f32 %v14020_v35, %v14019_v47  ;;  %v14146_v12 = vmul.f32 %v24677_v22, %v24677_v22  ;;  %v14024_v37 = vsel %vm6786_vm4, %v24677_v22, 0.0 }
 0xade   :  { %v14022_v10 = vsel %vm6786_vm4, %v24679_v60, 0.0  ;;  %v14145_v28 = vmul.f32 %v24679_v60, %v24679_v60 }
 0xadf   :  { %v14023_v25 = vadd.f32 %v14022_v10, %v14021_v45  ;;  %v14219_v11 = vadd.f32 %v14218_v1, %v14217_v15  ;;  %v14222_v58 = vsel %vm6786_vm4, %v14146_v12, 0.0 }
 0xae0   :  { %v14220_v50 = vsel %vm6786_vm4, %v14145_v28, 0.0  ;;  %v24691_v49 = vpop.f32.mrb[14].mxu1 }
 0xae1   :  { %v14221_v38 = vadd.f32 %v14220_v50, %v14219_v11  ;;  %v24693_v20 = vpop.f32.mrb[15].mxu1  ;;  %v14025_v36 = vadd.f32 %v14024_v37, %v14023_v25  ;;  %v14148_v30 = vmul.f32 %v24691_v49, %v24691_v49  ;;  %v14028_v55 = vsel %vm6786_vm4, %v24691_v49, 0.0 }
 0xae2   :  { %v14026_v6 = vsel %vm6786_vm4, %v24693_v20, 0.0  ;;  %v14147_v3 = vmul.f32 %v24693_v20, %v24693_v20 }
 0xae3   :  { %v14027_v39 = vadd.f32 %v14026_v6, %v14025_v36  ;;  %v14223_v31 = vadd.f32 %v14222_v58, %v14221_v38  ;;  %v14226_v29 = vsel %vm6786_vm4, %v14148_v30, 0.0 }
 0xae4   :  { %v14224_v19 = vsel %vm6786_vm4, %v14147_v3, 0.0  ;;  %v24705_v8 = vpop.f32.mrb[16].mxu1 }
 0xae5   :  { %v14225_v4 = vadd.f32 %v14224_v19, %v14223_v31  ;;  %v24707_v0 = vpop.f32.mrb[17].mxu1  ;;  %v14029_v51 = vadd.f32 %v14028_v55, %v14027_v39  ;;  %v14150_v54 = vmul.f32 %v24705_v8, %v24705_v8  ;;  %v14032_v57 = vsel %vm6786_vm4, %v24705_v8, 0.0 }
 0xae6   :  { %v14030_v43 = vsel %vm6786_vm4, %v24707_v0, 0.0  ;;  %v14149_v34 = vmul.f32 %v24707_v0, %v24707_v0 }
 0xae7   :  { %v14031_v56 = vadd.f32 %v14030_v43, %v14029_v51  ;;  %v14227_v5 = vadd.f32 %v14226_v29, %v14225_v4  ;;  %v14230_v23 = vsel %vm6786_vm4, %v14150_v54, 0.0 }
 0xae8   :  { %v14228_v42 = vsel %vm6786_vm4, %v14149_v34, 0.0  ;;  %v24719_v40 = vpop.f32.mrb[18].mxu1 }
 0xae9   :  { %v14229_v52 = vadd.f32 %v14228_v42, %v14227_v5  ;;  %v24721_v41 = vpop.f32.mrb[19].mxu1  ;;  %v14033_v59 = vadd.f32 %v14032_v57, %v14031_v56  ;;  %v14152_v24 = vmul.f32 %v24719_v40, %v24719_v40  ;;  %v14036_v21 = vsel %vm6786_vm4, %v24719_v40, 0.0 }
 0xaea   :  { %v14034_v26 = vsel %vm6786_vm4, %v24721_v41, 0.0  ;;  %v14151_v17 = vmul.f32 %v24721_v41, %v24721_v41 }
 0xaeb   :  { %v14035_v62 = vadd.f32 %v14034_v26, %v14033_v59  ;;  %v14231_v18 = vadd.f32 %v14230_v23, %v14229_v52  ;;  %v14234_v15 = vsel %vm6786_vm4, %v14152_v24, 0.0 }
 0xaec   :  { %v14232_v63 = vsel %vm6786_vm4, %v14151_v17, 0.0  ;;  %v24733_v47 = vpop.f32.mrb[20].mxu1 }
 0xaed   :  { %v14233_v48 = vadd.f32 %v14232_v63, %v14231_v18  ;;  %v24735_v35 = vpop.f32.mrb[21].mxu1  ;;  %v14037_v33 = vadd.f32 %v14036_v21, %v14035_v62  ;;  %v14154_v45 = vmul.f32 %v24733_v47, %v24733_v47  ;;  %v14040_v25 = vsel %vm6786_vm4, %v24733_v47, 0.0 }
 0xaee   :  { %v14038_v1 = vsel %vm6786_vm4, %v24735_v35, 0.0  ;;  %v14153_v12 = vmul.f32 %v24735_v35, %v24735_v35 }
 0xaef   :  { %v14039_v10 = vadd.f32 %v14038_v1, %v14037_v33  ;;  %v14235_v28 = vadd.f32 %v14234_v15, %v14233_v48  ;;  %v14238_v58 = vsel %vm6786_vm4, %v14154_v45, 0.0 }
 0xaf0   :  { %v14236_v11 = vsel %vm6786_vm4, %v14153_v12, 0.0  ;;  %v24747_v37 = vpop.f32.mrb[22].mxu1 }
 0xaf1   :  { %v14237_v50 = vadd.f32 %v14236_v11, %v14235_v28  ;;  %v24749_v38 = vpop.f32.mrb[23].mxu1  ;;  %v14041_v36 = vadd.f32 %v14040_v25, %v14039_v10  ;;  %v14156_v30 = vmul.f32 %v24747_v37, %v24747_v37  ;;  %v14044_v55 = vsel %vm6786_vm4, %v24747_v37, 0.0 }
 0xaf2   :  { %v14042_v6 = vsel %vm6786_vm4, %v24749_v38, 0.0  ;;  %v14155_v3 = vmul.f32 %v24749_v38, %v24749_v38 }
 0xaf3   :  { %v14043_v39 = vadd.f32 %v14042_v6, %v14041_v36  ;;  %v14239_v31 = vadd.f32 %v14238_v58, %v14237_v50  ;;  %v14242_v43 = vsel %vm6786_vm4, %v14156_v30, 0.0 }
 0xaf4   :  { %v14240_v19 = vsel %vm6786_vm4, %v14155_v3, 0.0  ;;  %v24761_v4 = vpop.f32.mrb[24].mxu1 }
 0xaf5   :  { %v14241_v51 = vadd.f32 %v14240_v19, %v14239_v31  ;;  %v24763_v29 = vpop.f32.mrb[25].mxu1  ;;  %v14045_v54 = vadd.f32 %v14044_v55, %v14043_v39  ;;  %v14158_v34 = vmul.f32 %v24761_v4, %v24761_v4  ;;  %v14048_v52 = vsel %vm6786_vm4, %v24761_v4, 0.0 }
 0xaf6   :  { %v14046_v56 = vsel %vm6786_vm4, %v24763_v29, 0.0  ;;  %v14157_v5 = vmul.f32 %v24763_v29, %v24763_v29 }
 0xaf7   :  { %v14047_v57 = vadd.f32 %v14046_v56, %v14045_v54  ;;  %v14243_v42 = vadd.f32 %v14242_v43, %v14241_v51  ;;  %v14246_v62 = vsel %vm6786_vm4, %v14158_v34, 0.0 }
 0xaf8   :  { %v14244_v59 = vsel %vm6786_vm4, %v14157_v5, 0.0  ;;  %v24775_v23 = vpop.f32.mrb[26].mxu1 }
 0xaf9   :  { %v14245_v24 = vadd.f32 %v14244_v59, %v14243_v42  ;;  %v24777_v26 = vpop.f32.mrb[27].mxu1  ;;  %v14049_v17 = vadd.f32 %v14048_v52, %v14047_v57  ;;  %v14160_v18 = vmul.f32 %v24775_v23, %v24775_v23  ;;  %v14052_v15 = vsel %vm6786_vm4, %v24775_v23, 0.0 }
 0xafa   :  { %v14050_v21 = vsel %vm6786_vm4, %v24777_v26, 0.0  ;;  %v14159_v63 = vmul.f32 %v24777_v26, %v24777_v26 }
 0xafb   :  { %v14051_v48 = vadd.f32 %v14050_v21, %v14049_v17  ;;  %v14247_v33 = vadd.f32 %v14246_v62, %v14245_v24  ;;  %v14250_v25 = vsel %vm6786_vm4, %v14160_v18, 0.0 }
 0xafc   :  { %v14248_v45 = vsel %vm6786_vm4, %v14159_v63, 0.0  ;;  %v24789_v1 = vpop.f32.mrb[28].mxu1 }
 0xafd   :  { %v14249_v12 = vadd.f32 %v14248_v45, %v14247_v33  ;;  %v24791_v10 = vpop.f32.mrb[29].mxu1  ;;  %v14053_v28 = vadd.f32 %v14052_v15, %v14051_v48  ;;  %v14162_v11 = vmul.f32 %v24789_v1, %v24789_v1  ;;  %v14056_v6 = vsel %vm6786_vm4, %v24789_v1, 0.0 }
 0xafe   :  { %v14054_v50 = vsel %vm6786_vm4, %v24791_v10, 0.0  ;;  %v14161_v36 = vmul.f32 %v24791_v10, %v24791_v10 }
 0xaff   :  { %v14055_v58 = vadd.f32 %v14054_v50, %v14053_v28  ;;  %v14251_v30 = vadd.f32 %v14250_v25, %v14249_v12  ;;  %v14254_v51 = vsel %vm6786_vm4, %v14162_v11, 0.0 }
 0xb00   :  { %v14252_v3 = vsel %vm6786_vm4, %v14161_v36, 0.0  ;;  %v24803_v39 = vpop.f32.mrb[30].mxu1 }
 0xb01   :  { %v14253_v31 = vadd.f32 %v14252_v3, %v14251_v30  ;;  %v24805_v55 = vpop.f32.mrb[31].mxu1  ;;  %v14057_v19 = vadd.f32 %v14056_v6, %v14055_v58  ;;  %v14164_v54 = vmul.f32 %v24803_v39, %v24803_v39  ;;  %v14060_v57 = vsel %vm6786_vm4, %v24803_v39, 0.0 }
 0xb02   :  { %v14058_v43 = vsel %vm6786_vm4, %v24805_v55, 0.0  ;;  %v14163_v34 = vmul.f32 %v24805_v55, %v24805_v55 }
 0xb03   :  { %v14059_v56 = vadd.f32 %v14058_v43, %v14057_v19  ;;  %v14255_v5 = vadd.f32 %v14254_v51, %v14253_v31  ;;  %v14258_v62 = vsel %vm6786_vm4, %v14164_v54, 0.0 }
 0xb04   :  { %v14256_v42 = vsel %vm6786_vm4, %v14163_v34, 0.0  ;;  %v24817_v52 = vpop.f32.mrb[32].mxu1 }
 0xb05   :  { %v14257_v59 = vadd.f32 %v14256_v42, %v14255_v5  ;;  %v24819_v24 = vpop.f32.mrb[33].mxu1  ;;  %v14061_v17 = vadd.f32 %v14060_v57, %v14059_v56  ;;  %v14166_v18 = vmul.f32 %v24817_v52, %v24817_v52  ;;  %v14064_v15 = vsel %vm6786_vm4, %v24817_v52, 0.0 }
 0xb06   :  { %v14062_v21 = vsel %vm6786_vm4, %v24819_v24, 0.0  ;;  %v14165_v63 = vmul.f32 %v24819_v24, %v24819_v24 }
 0xb07   :  { %v14063_v48 = vadd.f32 %v14062_v21, %v14061_v17  ;;  %v14259_v33 = vadd.f32 %v14258_v62, %v14257_v59  ;;  %v14262_v50 = vsel %vm6786_vm4, %v14166_v18, 0.0 }
 0xb08   :  { %v14260_v45 = vsel %vm6786_vm4, %v14165_v63, 0.0  ;;  %v24831_v12 = vpop.f32.mrb[34].mxu1 }
 0xb09   :  { %v14261_v28 = vadd.f32 %v14260_v45, %v14259_v33  ;;  %v24833_v25 = vpop.f32.mrb[35].mxu1  ;;  %v14065_v11 = vadd.f32 %v14064_v15, %v14063_v48  ;;  %v14168_v36 = vmul.f32 %v24831_v12, %v24831_v12  ;;  %v14068_v31 = vsel %vm6786_vm4, %v24831_v12, 0.0 }
 0xb0a   :  { %v14066_v58 = vsel %vm6786_vm4, %v24833_v25, 0.0  ;;  %v14167_v30 = vmul.f32 %v24833_v25, %v24833_v25 }
 0xb0b   :  { %v14067_v6 = vadd.f32 %v14066_v58, %v14065_v11  ;;  %v14263_v3 = vadd.f32 %v14262_v50, %v14261_v28  ;;  %v14266_v56 = vsel %vm6786_vm4, %v14168_v36, 0.0 }
 0xb0c   :  { %v14264_v19 = vsel %vm6786_vm4, %v14167_v30, 0.0  ;;  %v24845_v51 = vpop.f32.mrb[36].mxu1 }
 0xb0d   :  { %v14265_v54 = vadd.f32 %v14264_v19, %v14263_v3  ;;  %v24847_v43 = vpop.f32.mrb[37].mxu1  ;;  %v14069_v34 = vadd.f32 %v14068_v31, %v14067_v6  ;;  %v14170_v5 = vmul.f32 %v24845_v51, %v24845_v51  ;;  %v14072_v62 = vsel %vm6786_vm4, %v24845_v51, 0.0 }
 0xb0e   :  { %v14070_v57 = vsel %vm6786_vm4, %v24847_v43, 0.0  ;;  %v14169_v42 = vmul.f32 %v24847_v43, %v24847_v43 }
 0xb0f   :  { %v14071_v59 = vadd.f32 %v14070_v57, %v14069_v34  ;;  %v14267_v17 = vadd.f32 %v14266_v56, %v14265_v54  ;;  %v14270_v15 = vsel %vm6786_vm4, %v14170_v5, 0.0 }
 0xb10   :  { %v14268_v18 = vsel %vm6786_vm4, %v14169_v42, 0.0  ;;  %v24859_v21 = vpop.f32.mrb[38].mxu1 }
 0xb11   :  { %v14269_v63 = vadd.f32 %v14268_v18, %v14267_v17  ;;  %v24861_v48 = vpop.f32.mrb[39].mxu1  ;;  %v14073_v33 = vadd.f32 %v14072_v62, %v14071_v59  ;;  %v14172_v45 = vmul.f32 %v24859_v21, %v24859_v21  ;;  %v14076_v58 = vsel %vm6786_vm4, %v24859_v21, 0.0 }
 0xb12   :  { %v14074_v28 = vsel %vm6786_vm4, %v24861_v48, 0.0  ;;  %v14171_v11 = vmul.f32 %v24861_v48, %v24861_v48 }
 0xb13   :  { %v14075_v50 = vadd.f32 %v14074_v28, %v14073_v33  ;;  %v14271_v36 = vadd.f32 %v14270_v15, %v14269_v63  ;;  %v14274_v54 = vsel %vm6786_vm4, %v14172_v45, 0.0 }
 0xb14   :  { %v14272_v30 = vsel %vm6786_vm4, %v14171_v11, 0.0  ;;  %v24873_v6 = vpop.f32.mrb[40].mxu1 }
 0xb15   :  { %26599 = vst [vmem:[#allocation10_spill] sm:$0xff] %v24873_v6  ;;  %v14273_v3 = vadd.f32 %v14272_v30, %v14271_v36  ;;  %v24875_v31 = vpop.f32.mrb[41].mxu1  ;;  %v14077_v19 = vadd.f32 %v14076_v58, %v14075_v50  ;;  %v14174_v34 = vmul.f32 %v24873_v6, %v24873_v6  ;;  %v14080_v59 = vsel %vm6786_vm4, %v24873_v6, 0.0 }
 0xb16   :  { %26600 = vst [vmem:[#allocation66_spill] sm:$0xff] %v24875_v31  ;;  %v14078_v56 = vsel %vm6786_vm4, %v24875_v31, 0.0  ;;  %v14173_v5 = vmul.f32 %v24875_v31, %v24875_v31 }
 0xb17   :  { %v14079_v57 = vadd.f32 %v14078_v56, %v14077_v19  ;;  %v14275_v42 = vadd.f32 %v14274_v54, %v14273_v3  ;;  %v14278_v15 = vsel %vm6786_vm4, %v14174_v34, 0.0 }
 0xb18   :  { %v14276_v17 = vsel %vm6786_vm4, %v14173_v5, 0.0  ;;  %v24887_v62 = vpop.f32.mrb[42].mxu1 }
 0xb19   :  { %26601 = vst [vmem:[#allocation67_spill] sm:$0xff] %v24887_v62  ;;  %v14277_v18 = vadd.f32 %v14276_v17, %v14275_v42  ;;  %v24889_v63 = vpop.f32.mrb[43].mxu1  ;;  %v14081_v33 = vadd.f32 %v14080_v59, %v14079_v57  ;;  %v14176_v45 = vmul.f32 %v24887_v62, %v24887_v62  ;;  %v14084_v58 = vsel %vm6786_vm4, %v24887_v62, 0.0 }
 0xb1a   :  { %26602 = vst [vmem:[#allocation68_spill] sm:$0xff] %v24889_v63  ;;  %v14082_v28 = vsel %vm6786_vm4, %v24889_v63, 0.0  ;;  %v14175_v11 = vmul.f32 %v24889_v63, %v24889_v63 }
 0xb1b   :  { %v14083_v50 = vadd.f32 %v14082_v28, %v14081_v33  ;;  %v14279_v36 = vadd.f32 %v14278_v15, %v14277_v18  ;;  %v14282_v56 = vsel %vm6786_vm4, %v14176_v45, 0.0 }
 0xb1c   :  { %v14280_v30 = vsel %vm6786_vm4, %v14175_v11, 0.0  ;;  %v24901_v3 = vpop.f32.mrb[44].mxu1 }
 0xb1d   :  { %26603 = vst [vmem:[#allocation69_spill] sm:$0xff] %v24901_v3  ;;  %v14281_v19 = vadd.f32 %v14280_v30, %v14279_v36  ;;  %v24903_v54 = vpop.f32.mrb[45].mxu1  ;;  %v14085_v34 = vadd.f32 %v14084_v58, %v14083_v50  ;;  %v14178_v5 = vmul.f32 %v24901_v3, %v24901_v3  ;;  %v14088_v18 = vsel %vm6786_vm4, %v24901_v3, 0.0 }
 0xb1e   :  { %26604 = vst [vmem:[#allocation70_spill] sm:$0xff] %v24903_v54  ;;  %v14086_v57 = vsel %vm6786_vm4, %v24903_v54, 0.0  ;;  %v14177_v42 = vmul.f32 %v24903_v54, %v24903_v54 }
 0xb1f   :  { %v14087_v59 = vadd.f32 %v14086_v57, %v14085_v34  ;;  %v14283_v17 = vadd.f32 %v14282_v56, %v14281_v19  ;;  %v14286_v50 = vsel %vm6786_vm4, %v14178_v5, 0.0 }
 0xb20   :  { %v14284_v33 = vsel %vm6786_vm4, %v14177_v42, 0.0  ;;  %v24915_v15 = vpop.f32.mrb[46].mxu1 }
 0xb21   :  { %26605 = vst [vmem:[#allocation71_spill] sm:$0xff] %v24915_v15  ;;  %v14285_v28 = vadd.f32 %v14284_v33, %v14283_v17  ;;  %v24917_v45 = vpop.f32.mrb[47].mxu1  ;;  %v14089_v11 = vadd.f32 %v14088_v18, %v14087_v59  ;;  %v14180_v36 = vmul.f32 %v24915_v15, %v24915_v15  ;;  %v14092_v56 = vsel %vm6786_vm4, %v24915_v15, 0.0 }
 0xb22   :  { %26606 = vst [vmem:[#allocation72_spill] sm:$0xff] %v24917_v45  ;;  %v14090_v58 = vsel %vm6786_vm4, %v24917_v45, 0.0  ;;  %v14179_v30 = vmul.f32 %v24917_v45, %v24917_v45 }
 0xb23   :  { %v14091_v19 = vadd.f32 %v14090_v58, %v14089_v11  ;;  %v14287_v34 = vadd.f32 %v14286_v50, %v14285_v28  ;;  %v14290_v18 = vsel %vm6786_vm4, %v14180_v36, 0.0 }
 0xb24   :  { %v14288_v57 = vsel %vm6786_vm4, %v14179_v30, 0.0  ;;  %v24929_v42 = vpop.f32.mrb[48].mxu1 }
 0xb25   :  { %26607 = vst [vmem:[#allocation11_spill] sm:$0xff] %v24929_v42  ;;  %v14289_v59 = vadd.f32 %v14288_v57, %v14287_v34  ;;  %v24931_v5 = vpop.f32.mrb[49].mxu1  ;;  %v14093_v17 = vadd.f32 %v14092_v56, %v14091_v19  ;;  %v14182_v33 = vmul.f32 %v24929_v42, %v24929_v42  ;;  %v14096_v30 = vsel %vm6786_vm4, %v24929_v42, 0.0 }
 0xb26   :  { %26608 = vst [vmem:[#allocation12_spill] sm:$0xff] %v24931_v5  ;;  %v14094_v11 = vsel %vm6786_vm4, %v24931_v5, 0.0  ;;  %v14181_v28 = vmul.f32 %v24931_v5, %v24931_v5 }
 0xb27   :  { %v14095_v50 = vadd.f32 %v14094_v11, %v14093_v17  ;;  %v14291_v58 = vadd.f32 %v14290_v18, %v14289_v59  ;;  %v14294_v15 = vsel %vm6786_vm4, %v14182_v33, 0.0 }
 0xb28   :  { %v14292_v34 = vsel %vm6786_vm4, %v14181_v28, 0.0  ;;  %v24943_v57 = vpop.f32.mrb[50].mxu1 }
 0xb29   :  { %26609 = vst [vmem:[#allocation14_spill] sm:$0xff] %v24943_v57  ;;  %v14293_v19 = vadd.f32 %v14292_v34, %v14291_v58  ;;  %v24945_v36 = vpop.f32.mrb[51].mxu1  ;;  %v14097_v56 = vadd.f32 %v14096_v30, %v14095_v50  ;;  %v14184_v45 = vmul.f32 %v24943_v57, %v24943_v57  ;;  %v14100_v28 = vsel %vm6786_vm4, %v24943_v57, 0.0 }
 0xb2a   :  { %26610 = vst [vmem:[#allocation13_spill] sm:$0xff] %v24945_v36  ;;  %v14098_v17 = vsel %vm6786_vm4, %v24945_v36, 0.0  ;;  %v14183_v59 = vmul.f32 %v24945_v36, %v24945_v36 }
 0xb2b   :  { %v14099_v18 = vadd.f32 %v14098_v17, %v14097_v56  ;;  %v14295_v11 = vadd.f32 %v14294_v15, %v14293_v19  ;;  %v14298_v42 = vsel %vm6786_vm4, %v14184_v45, 0.0 }
 0xb2c   :  { %v14296_v58 = vsel %vm6786_vm4, %v14183_v59, 0.0  ;;  %v24957_v34 = vpop.f32.mrb[52].mxu1 }
 0xb2d   :  { %26611 = vst [vmem:[#allocation16_spill] sm:$0xff] %v24957_v34  ;;  %v14297_v50 = vadd.f32 %v14296_v58, %v14295_v11  ;;  %v24959_v33 = vpop.f32.mrb[53].mxu1  ;;  %v14101_v30 = vadd.f32 %v14100_v28, %v14099_v18  ;;  %v14186_v5 = vmul.f32 %v24957_v34, %v24957_v34  ;;  %v14104_v59 = vsel %vm6786_vm4, %v24957_v34, 0.0 }
 0xb2e   :  { %26612 = vst [vmem:[#allocation15_spill] sm:$0xff] %v24959_v33  ;;  %v14102_v56 = vsel %vm6786_vm4, %v24959_v33, 0.0  ;;  %v14185_v15 = vmul.f32 %v24959_v33, %v24959_v33 }
 0xb2f   :  { %v14103_v19 = vadd.f32 %v14102_v56, %v14101_v30  ;;  %v14299_v17 = vadd.f32 %v14298_v42, %v14297_v50  ;;  %v14302_v57 = vsel %vm6786_vm4, %v14186_v5, 0.0 }
 0xb30   :  { %v14300_v11 = vsel %vm6786_vm4, %v14185_v15, 0.0  ;;  %v24971_v58 = vpop.f32.mrb[54].mxu1 }
 0xb31   :  { %26613 = vst [vmem:[#allocation18_spill] sm:$0xff] %v24971_v58  ;;  %v14301_v18 = vadd.f32 %v14300_v11, %v14299_v17  ;;  %v24973_v45 = vpop.f32.mrb[55].mxu1  ;;  %v14105_v28 = vadd.f32 %v14104_v59, %v14103_v19  ;;  %v14188_v36 = vmul.f32 %v24971_v58, %v24971_v58  ;;  %v14108_v15 = vsel %vm6786_vm4, %v24971_v58, 0.0 }
 0xb32   :  { %26614 = vst [vmem:[#allocation17_spill] sm:$0xff] %v24973_v45  ;;  %v14106_v30 = vsel %vm6786_vm4, %v24973_v45, 0.0  ;;  %v14187_v42 = vmul.f32 %v24973_v45, %v24973_v45 }
 0xb33   :  { %v14107_v50 = vadd.f32 %v14106_v30, %v14105_v28  ;;  %v14303_v56 = vadd.f32 %v14302_v57, %v14301_v18  ;;  %v14306_v34 = vsel %vm6786_vm4, %v14188_v36, 0.0 }
 0xb34   :  { %v14304_v17 = vsel %vm6786_vm4, %v14187_v42, 0.0  ;;  %v24985_v11 = vpop.f32.mrb[56].mxu1 }
 0xb35   :  { %26615 = vst [vmem:[#allocation20_spill] sm:$0xff] %v24985_v11  ;;  %v14305_v19 = vadd.f32 %v14304_v17, %v14303_v56  ;;  %v24987_v5 = vpop.f32.mrb[57].mxu1  ;;  %v14109_v59 = vadd.f32 %v14108_v15, %v14107_v50  ;;  %v14190_v33 = vmul.f32 %v24985_v11, %v24985_v11  ;;  %v14112_v42 = vsel %vm6786_vm4, %v24985_v11, 0.0 }
 0xb36   :  { %26616 = vst [vmem:[#allocation19_spill] sm:$0xff] %v24987_v5  ;;  %v14110_v28 = vsel %vm6786_vm4, %v24987_v5, 0.0  ;;  %v14189_v57 = vmul.f32 %v24987_v5, %v24987_v5 }
 0xb37   :  { %v14111_v18 = vadd.f32 %v14110_v28, %v14109_v59  ;;  %v14307_v30 = vadd.f32 %v14306_v34, %v14305_v19  ;;  %v14310_v58 = vsel %vm6786_vm4, %v14190_v33, 0.0 }
 0xb38   :  { %v14308_v56 = vsel %vm6786_vm4, %v14189_v57, 0.0  ;;  %v24999_v17 = vpop.f32.mrb[58].mxu1 }
 0xb39   :  { %26617 = vst [vmem:[#allocation22_spill] sm:$0xff] %v24999_v17  ;;  %v14309_v50 = vadd.f32 %v14308_v56, %v14307_v30  ;;  %v25001_v36 = vpop.f32.mrb[59].mxu1  ;;  %v14113_v15 = vadd.f32 %v14112_v42, %v14111_v18  ;;  %v14192_v45 = vmul.f32 %v24999_v17, %v24999_v17  ;;  %v14116_v57 = vsel %vm6786_vm4, %v24999_v17, 0.0 }
 0xb3a   :  { %26618 = vst [vmem:[#allocation21_spill] sm:$0xff] %v25001_v36  ;;  %v14114_v59 = vsel %vm6786_vm4, %v25001_v36, 0.0  ;;  %v14191_v34 = vmul.f32 %v25001_v36, %v25001_v36 }
 0xb3b   :  { %v14115_v19 = vadd.f32 %v14114_v59, %v14113_v15  ;;  %v14311_v28 = vadd.f32 %v14310_v58, %v14309_v50  ;;  %v14314_v11 = vsel %vm6786_vm4, %v14192_v45, 0.0 }
 0xb3c   :  { %v14312_v30 = vsel %vm6786_vm4, %v14191_v34, 0.0  ;;  %v25013_v56 = vpop.f32.mrb[60].mxu1 }
 0xb3d   :  { %26619 = vst [vmem:[#allocation24_spill] sm:$0xff] %v25013_v56  ;;  %v14313_v18 = vadd.f32 %v14312_v30, %v14311_v28  ;;  %v25015_v33 = vpop.f32.mrb[61].mxu1  ;;  %v14117_v42 = vadd.f32 %v14116_v57, %v14115_v19  ;;  %v14194_v5 = vmul.f32 %v25013_v56, %v25013_v56  ;;  %v14120_v34 = vsel %vm6786_vm4, %v25013_v56, 0.0 }
 0xb3e   :  { %26620 = vst [vmem:[#allocation23_spill] sm:$0xff] %v25015_v33  ;;  %v14118_v15 = vsel %vm6786_vm4, %v25015_v33, 0.0  ;;  %v14193_v58 = vmul.f32 %v25015_v33, %v25015_v33 }
 0xb3f   :  { %v14119_v50 = vadd.f32 %v14118_v15, %v14117_v42  ;;  %v14315_v59 = vadd.f32 %v14314_v11, %v14313_v18  ;;  %v14318_v17 = vsel %vm6786_vm4, %v14194_v5, 0.0 }
 0xb40   :  { %v14316_v28 = vsel %vm6786_vm4, %v14193_v58, 0.0  ;;  %v25027_v30 = vpop.f32.mrb[62].mxu1 }
 0xb41   :  { %26621 = vst [vmem:[#allocation26_spill] sm:$0xff] %v25027_v30  ;;  %v14317_v19 = vadd.f32 %v14316_v28, %v14315_v59  ;;  %v25029_v45 = vpop.f32.mrb[63].mxu1  ;;  %v14121_v57 = vadd.f32 %v14120_v34, %v14119_v50  ;;  %v14196_v36 = vmul.f32 %v25027_v30, %v25027_v30  ;;  %v14124_v58 = vsel %vm6786_vm4, %v25027_v30, 0.0 }
 0xb42   :  { %26622 = vst [vmem:[#allocation25_spill] sm:$0xff] %v25029_v45  ;;  %v14122_v42 = vsel %vm6786_vm4, %v25029_v45, 0.0  ;;  %v14195_v11 = vmul.f32 %v25029_v45, %v25029_v45 }
 0xb43   :  { %v14123_v18 = vadd.f32 %v14122_v42, %v14121_v57  ;;  %v14319_v15 = vadd.f32 %v14318_v17, %v14317_v19  ;;  %v14322_v5 = vsel %vm6786_vm4, %v14196_v36, 0.0  ;;  %v14334_v36 = vld [vmem:[%s25900_s5] sm:$0x1] }
 0xb44   :  { %v14320_v59 = vsel %vm6786_vm4, %v14195_v11, 0.0 }
 0xb45   :  { %v14125_v28 = vadd.f32 %v14124_v58, %v14123_v18  ;;  %v14321_v50 = vadd.f32 %v14320_v59, %v14319_v15 }
 0xb47   :  { %v14126_v34 = vrot.slane %v14125_v28, 4  ;;  %v14323_v56 = vadd.f32 %v14322_v5, %v14321_v50  ;;  %v26624_v50 = vld [vmem:[#allocation66_spill] sm:$0xff] }
 0xb48   :  { %v26625_v5 = vld [vmem:[#allocation10_spill] sm:$0xff] }
 0xb49   :  { %v14127_v33 = vadd.f32 %v14126_v34, %v14125_v28  ;;  %v14324_v3 = vrot.slane %v14323_v56, 4  ;;  %v26626_v34 = vld [vmem:[#allocation68_spill] sm:$0xff] }
 0xb4b   :  { %v14128_v54 = vrot.slane %v14127_v33, 2  ;;  %v14325_v62 = vadd.f32 %v14324_v3, %v14323_v56 }
 0xb4d   :  { %v14129_v63 = vadd.f32 %v14128_v54, %v14127_v33  ;;  %v14326_v6 = vrot.slane %v14325_v62, 2 }
 0xb4f   :  { %v14130_v45 = vrot.slane %v14129_v63, 1  ;;  %v14327_v57 = vadd.f32 %v14326_v6, %v14325_v62  ;;  %v25048_v6 = vld [vmem:[%s25901_s6] sm:$0x1] }
 0xb51   :  { %v14131_v17 = vadd.f32 %v14130_v45, %v14129_v63  ;;  %v14328_v19 = vrot.slane %v14327_v57, 1  ;;  %v26623_v63 = vld [vmem:[#allocation35_spill] sm:$0xff] }
 0xb53   :  { %v14132_v42 = vmul.f32 0.001953125, %v14131_v17  ;;  %v14329_v30 = vadd.f32 %v14328_v19, %v14327_v57  ;;  %v26627_v57 = vld [vmem:[#allocation67_spill] sm:$0xff]  ;;  %v26628_v17 = vld [vmem:[#allocation70_spill] sm:$0xff]  ;;  %v26629_v19 = vld [vmem:[#allocation69_spill] sm:$0xff] }
 0xb55   :  { %v14330_v31 = vmul.f32 0.001953125, %v14329_v30  ;;  %v14331_v11 = vmul.f32 %v14132_v42, %v14132_v42 }
 0xb57   :  { %v14332_v18 = vsub.f32 %v14330_v31, %v14331_v11  ;;  %v26630_v11 = vld [vmem:[#allocation72_spill] sm:$0xff]  ;;  %v26643_v31 = vld [vmem:[#allocation17_spill] sm:$0xff] }
 0xb59   :  { %v14333_v15 = vmax.f32 %v14332_v18, 0.0 }
 0xb5b   :  { %v14335_v58 = vadd.f32 1e-05, %v14333_v15  ;;  %v26631_v15 = vld [vmem:[#allocation71_spill] sm:$0xff] }
 0xb5d   :  { %19751 = vrsqrt.f32 %v14335_v58 }
 0xb67   :  { %v19752_v59 = vpop.eup %19751 }
 0xb68   :  { %v14337_v3 = vmul.f32 %v19752_v59, %v14334_v36  ;;  %v26632_v36 = vld [vmem:[#allocation12_spill] sm:$0xff] }
 0xb6a   :  { %v25050_v62 = vmul.f32 %v14337_v3, %v14132_v42  ;;  %v25053_v54 = vrot.slane %v14337_v3, %v26623_v63  ;;  %v26633_v3 = vld [vmem:[#allocation11_spill] sm:$0xff] }
 0xb6c   :  { %v25059_v56 = vmul.f32 %v25053_v54, %v24600_v32  ;;  %v25063_v33 = vmul.f32 %v24594_v13, %v25053_v54  ;;  %v25067_v30 = vmul.f32 %v25053_v54, %v24610_v53  ;;  %v25071_v45 = vmul.f32 %v24608_v9, %v25053_v54 }
 0xb6d   :  { %v25075_v28 = vmul.f32 %v25053_v54, %v24623_v16  ;;  %v25079_v32 = vmul.f32 %v24621_v7, %v25053_v54  ;;  %v25083_v13 = vmul.f32 %v25053_v54, %v24637_v14  ;;  %v25087_v53 = vmul.f32 %v24635_v61, %v25053_v54 }
 0xb6e   :  { %v25091_v9 = vmul.f32 %v25053_v54, %v24651_v27  ;;  %v25095_v16 = vmul.f32 %v24649_v44, %v25053_v54  ;;  %v25099_v7 = vmul.f32 %v25053_v54, %v24665_v46  ;;  %v25103_v14 = vmul.f32 %v24663_v2, %v25053_v54 }
 0xb6f   :  { %v25107_v61 = vmul.f32 %v25053_v54, %v24679_v60  ;;  %v25111_v27 = vmul.f32 %v24677_v22, %v25053_v54  ;;  %v25115_v44 = vmul.f32 %v25053_v54, %v24693_v20  ;;  %v25119_v46 = vmul.f32 %v24691_v49, %v25053_v54 }
 0xb70   :  { %v25123_v2 = vmul.f32 %v25053_v54, %v24707_v0  ;;  %v25127_v60 = vmul.f32 %v24705_v8, %v25053_v54  ;;  %v25131_v22 = vmul.f32 %v25053_v54, %v24721_v41  ;;  %v25135_v20 = vmul.f32 %v24719_v40, %v25053_v54 }
 0xb71   :  { %v25139_v49 = vmul.f32 %v25053_v54, %v24735_v35  ;;  %v25143_v0 = vmul.f32 %v24733_v47, %v25053_v54  ;;  %v25147_v8 = vmul.f32 %v25053_v54, %v24749_v38  ;;  %v25151_v41 = vmul.f32 %v24747_v37, %v25053_v54 }
 0xb72   :  { %v25155_v40 = vmul.f32 %v25053_v54, %v24763_v29  ;;  %v25159_v35 = vmul.f32 %v24761_v4, %v25053_v54  ;;  %v25163_v47 = vmul.f32 %v25053_v54, %v24777_v26  ;;  %v25167_v38 = vmul.f32 %v24775_v23, %v25053_v54 }
 0xb73   :  { %v25171_v37 = vmul.f32 %v25053_v54, %v24791_v10  ;;  %v25175_v29 = vmul.f32 %v24789_v1, %v25053_v54  ;;  %v25179_v4 = vmul.f32 %v25053_v54, %v24805_v55  ;;  %v25183_v26 = vmul.f32 %v24803_v39, %v25053_v54 }
 0xb74   :  { %v25187_v23 = vmul.f32 %v25053_v54, %v24819_v24  ;;  %v25191_v10 = vmul.f32 %v24817_v52, %v25053_v54  ;;  %v25195_v1 = vmul.f32 %v25053_v54, %v24833_v25  ;;  %v25199_v55 = vmul.f32 %v24831_v12, %v25053_v54 }
 0xb75   :  { %v25203_v39 = vmul.f32 %v25053_v54, %v24847_v43  ;;  %v25207_v24 = vmul.f32 %v24845_v51, %v25053_v54  ;;  %v25211_v52 = vmul.f32 %v25053_v54, %v24861_v48  ;;  %v25215_v25 = vmul.f32 %v24859_v21, %v25053_v54 }
 0xb76   :  { %v25219_v12 = vmul.f32 %v25053_v54, %v26624_v50  ;;  %v25223_v43 = vmul.f32 %v26625_v5, %v25053_v54  ;;  %v25227_v51 = vmul.f32 %v25053_v54, %v26626_v34  ;;  %v25231_v48 = vmul.f32 %v26627_v57, %v25053_v54  ;;  %v26635_v5 = vld [vmem:[#allocation13_spill] sm:$0xff]  ;;  %v26637_v57 = vld [vmem:[#allocation14_spill] sm:$0xff] }
 0xb77   :  { %v25235_v21 = vmul.f32 %v25053_v54, %v26628_v17  ;;  %v25239_v42 = vmul.f32 %v26629_v19, %v25053_v54  ;;  %v25243_v18 = vmul.f32 %v25053_v54, %v26630_v11  ;;  %v25247_v58 = vmul.f32 %v26631_v15, %v25053_v54  ;;  %v26639_v19 = vld [vmem:[#allocation15_spill] sm:$0xff]  ;;  %v26641_v15 = vld [vmem:[#allocation16_spill] sm:$0xff] }
 0xb78   :  { %v25251_v59 = vmul.f32 %v25053_v54, %v26632_v36  ;;  %v25255_v50 = vmul.f32 %v26633_v3, %v25053_v54  ;;  %v25259_v34 = vmul.f32 %v25053_v54, %v26635_v5  ;;  %v25263_v17 = vmul.f32 %v26637_v57, %v25053_v54 }
 0xb79   :  { %v25267_v11 = vmul.f32 %v25053_v54, %v26639_v19  ;;  %v25271_v36 = vmul.f32 %v26641_v15, %v25053_v54  ;;  %v25275_v3 = vmul.f32 %v25053_v54, %v26643_v31 }
 0xb7a   :  { %26634 = vst [vmem:[#allocation28_spill] sm:$0xff] %v25255_v50  ;;  %26636 = vst [vmem:[#allocation27_spill] sm:$0xff] %v25259_v34  ;;  %v26645_v50 = vld [vmem:[#allocation18_spill] sm:$0xff]  ;;  %v26647_v34 = vld [vmem:[#allocation19_spill] sm:$0xff] }
 0xb7b   :  { %26638 = vst [vmem:[#allocation30_spill] sm:$0xff] %v25263_v17  ;;  %26640 = vst [vmem:[#allocation29_spill] sm:$0xff] %v25267_v11  ;;  %v25279_v5 = vmul.f32 %v26645_v50, %v25053_v54  ;;  %v25283_v57 = vmul.f32 %v25053_v54, %v26647_v34  ;;  %v26649_v17 = vld [vmem:[#allocation20_spill] sm:$0xff]  ;;  %v26651_v11 = vld [vmem:[#allocation21_spill] sm:$0xff] }
 0xb7c   :  { %26642 = vst [vmem:[#allocation32_spill] sm:$0xff] %v25271_v36  ;;  %26644 = vst [vmem:[#allocation31_spill] sm:$0xff] %v25275_v3  ;;  %v25287_v19 = vmul.f32 %v26649_v17, %v25053_v54  ;;  %v25291_v15 = vmul.f32 %v25053_v54, %v26651_v11  ;;  %v26652_v36 = vld [vmem:[#allocation22_spill] sm:$0xff]  ;;  %v26654_v3 = vld [vmem:[#allocation23_spill] sm:$0xff] }
 0xb7d   :  { %26646 = vst [vmem:[#allocation34_spill] sm:$0xff] %v25279_v5  ;;  %26648 = vst [vmem:[#allocation33_spill] sm:$0xff] %v25283_v57  ;;  %v25295_v31 = vmul.f32 %v26652_v36, %v25053_v54  ;;  %v25299_v50 = vmul.f32 %v25053_v54, %v26654_v3  ;;  %v26655_v5 = vld [vmem:[#allocation24_spill] sm:$0xff]  ;;  %v26656_v57 = vld [vmem:[#allocation25_spill] sm:$0xff]  ;;  %v26658_v36 = vsub.f32 %v25048_v6, %v25050_v62 }
 0xb7e   :  { %26650 = vst [vmem:[#allocation36_spill] sm:$0xff] %v25287_v19  ;;  %v25303_v34 = vmul.f32 %v26655_v5, %v25053_v54  ;;  %v25307_v17 = vmul.f32 %v25053_v54, %v26656_v57  ;;  %v26657_v19 = vld [vmem:[#allocation26_spill] sm:$0xff] }
 0xb7f   :  { %26653 = vst [vmem:[#allocation37_spill] sm:$0xff] %v25295_v31  ;;  %v25311_v11 = vmul.f32 %v26657_v19, %v25053_v54  ;;  %v25317_v31 = vrot.slane %v26658_v36, %v26623_v63 }
 0xb81   :  { %v25321_v3 = vadd.f32 %v25317_v31, %v25059_v56  ;;  %v25325_v5 = vadd.f32 %v25317_v31, %v25063_v33  ;;  %v25329_v57 = vadd.f32 %v25317_v31, %v25067_v30  ;;  %v25333_v54 = vadd.f32 %v25317_v31, %v25071_v45 }
 0xb82   :  { %v25337_v6 = vadd.f32 %v25317_v31, %v25075_v28  ;;  %v25341_v62 = vadd.f32 %v25317_v31, %v25079_v32  ;;  %v25345_v63 = vadd.f32 %v25317_v31, %v25083_v13  ;;  %v25349_v56 = vadd.f32 %v25317_v31, %v25087_v53  ;;  %v26665_v19 = vld [vmem:[#allocation30_spill] sm:$0xff]  ;;  %v26667_v36 = vld [vmem:[#allocation29_spill] sm:$0xff] }
 0xb83   :  { %v25353_v33 = vadd.f32 %v25317_v31, %v25091_v9  ;;  %v25357_v30 = vadd.f32 %v25317_v31, %v25095_v16  ;;  %v25361_v45 = vadd.f32 %v25317_v31, %v25099_v7  ;;  %v25365_v28 = vadd.f32 %v25317_v31, %v25103_v14 }
 0xb84   :  { %v25369_v32 = vadd.f32 %v25317_v31, %v25107_v61  ;;  %v25373_v13 = vadd.f32 %v25317_v31, %v25111_v27  ;;  %v25377_v53 = vadd.f32 %v25317_v31, %v25115_v44  ;;  %v25381_v9 = vadd.f32 %v25317_v31, %v25119_v46 }
 0xb85   :  { %v25385_v16 = vadd.f32 %v25317_v31, %v25123_v2  ;;  %v25389_v7 = vadd.f32 %v25317_v31, %v25127_v60  ;;  %v25393_v14 = vadd.f32 %v25317_v31, %v25131_v22  ;;  %v25397_v61 = vadd.f32 %v25317_v31, %v25135_v20 }
 0xb86   :  { %v25401_v27 = vadd.f32 %v25317_v31, %v25139_v49  ;;  %v25405_v44 = vadd.f32 %v25317_v31, %v25143_v0  ;;  %v25409_v46 = vadd.f32 %v25317_v31, %v25147_v8  ;;  %v25413_v2 = vadd.f32 %v25317_v31, %v25151_v41 }
 0xb87   :  { %v25417_v60 = vadd.f32 %v25317_v31, %v25155_v40  ;;  %v25421_v22 = vadd.f32 %v25317_v31, %v25159_v35  ;;  %v25425_v20 = vadd.f32 %v25317_v31, %v25163_v47  ;;  %v25429_v49 = vadd.f32 %v25317_v31, %v25167_v38 }
 0xb88   :  { %v25433_v0 = vadd.f32 %v25317_v31, %v25171_v37  ;;  %v25437_v8 = vadd.f32 %v25317_v31, %v25175_v29  ;;  %v25441_v41 = vadd.f32 %v25317_v31, %v25179_v4  ;;  %v25445_v40 = vadd.f32 %v25317_v31, %v25183_v26 }
 0xb89   :  { %v25449_v35 = vadd.f32 %v25317_v31, %v25187_v23  ;;  %v25453_v47 = vadd.f32 %v25317_v31, %v25191_v10  ;;  %v25457_v38 = vadd.f32 %v25317_v31, %v25195_v1  ;;  %v25461_v37 = vadd.f32 %v25317_v31, %v25199_v55 }
 0xb8a   :  { %v25465_v29 = vadd.f32 %v25317_v31, %v25203_v39  ;;  %v25469_v4 = vadd.f32 %v25317_v31, %v25207_v24  ;;  %v25473_v26 = vadd.f32 %v25317_v31, %v25211_v52  ;;  %v25477_v23 = vadd.f32 %v25317_v31, %v25215_v25 }
 0xb8b   :  { %v25481_v10 = vadd.f32 %v25317_v31, %v25219_v12  ;;  %v25485_v1 = vadd.f32 %v25317_v31, %v25223_v43  ;;  %v25489_v55 = vadd.f32 %v25317_v31, %v25227_v51  ;;  %v25493_v39 = vadd.f32 %v25317_v31, %v25231_v48  ;;  %v26661_v51 = vld [vmem:[#allocation28_spill] sm:$0xff] }
 0xb8c   :  { %v25497_v24 = vadd.f32 %v25317_v31, %v25235_v21  ;;  %v25501_v52 = vadd.f32 %v25317_v31, %v25239_v42  ;;  %v25505_v25 = vadd.f32 %v25317_v31, %v25243_v18  ;;  %v25509_v12 = vadd.f32 %v25317_v31, %v25247_v58  ;;  %v26663_v21 = vld [vmem:[#allocation27_spill] sm:$0xff] }
 0xb8d   :  { %v25513_v43 = vadd.f32 %v25317_v31, %v25251_v59  ;;  %v25517_v48 = vadd.f32 %v25317_v31, %v26661_v51  ;;  %v25521_v42 = vadd.f32 %v25317_v31, %v26663_v21  ;;  %v25525_v18 = vadd.f32 %v25317_v31, %v26665_v19 }
 0xb8e   :  { %26659 = vst [vmem:[#allocation38_spill] sm:$0xff] %v25509_v12  ;;  %v25529_v58 = vadd.f32 %v25317_v31, %v26667_v36  ;;  %v26668_v12 = vld [vmem:[#allocation32_spill] sm:$0xff] }
 0xb8f   :  { %26660 = vst [vmem:[#allocation39_spill] sm:$0xff] %v25513_v43  ;;  %26662 = vst [vmem:[#allocation40_spill] sm:$0xff] %v25517_v48  ;;  %v25533_v59 = vadd.f32 %v25317_v31, %v26668_v12  ;;  %v26670_v43 = vld [vmem:[#allocation31_spill] sm:$0xff]  ;;  %v26671_v48 = vld [vmem:[#allocation34_spill] sm:$0xff]  ;;  %v25553_v12 = vadd.f32 %v25317_v31, %v25291_v15  ;;  %v25573_v15 = vadd.f32 %v25317_v31, %v25311_v11  ;;  %v14491_v11 = vmax.f32 %v25361_v45, 0.0 }
 0xb90   :  { %26664 = vst [vmem:[#allocation41_spill] sm:$0xff] %v25521_v42  ;;  %26666 = vst [vmem:[#allocation42_spill] sm:$0xff] %v25525_v18  ;;  %v25537_v51 = vadd.f32 %v25317_v31, %v26670_v43  ;;  %v25541_v21 = vadd.f32 %v25317_v31, %v26671_v48  ;;  %v26672_v42 = vld [vmem:[#allocation33_spill] sm:$0xff]  ;;  %v26673_v18 = vld [vmem:[#allocation36_spill] sm:$0xff]  ;;  %v25561_v48 = vadd.f32 %v25317_v31, %v25299_v50  ;;  %v14484_v50 = vmax.f32 %v25333_v54, 0.0 }
 0xb91   :  { %26669 = vst [vmem:[#allocation51_spill] sm:$0xff] %v25533_v59  ;;  %v25545_v19 = vadd.f32 %v25317_v31, %v26672_v42  ;;  %v25549_v36 = vadd.f32 %v25317_v31, %v26673_v18  ;;  %26674 = vst [vmem:[#allocation53_spill] sm:$0xff] %v25553_v12  ;;  %v26675_v59 = vld [vmem:[#allocation37_spill] sm:$0xff]  ;;  %v25565_v42 = vadd.f32 %v25317_v31, %v25303_v34  ;;  %v14481_v12 = vmax.f32 %v25321_v3, 0.0 }
 0xb92   :  { %v25557_v43 = vadd.f32 %v25317_v31, %v26675_v59  ;;  %26677 = vst [vmem:[#allocation55_spill] sm:$0xff] %v25561_v48  ;;  %v25569_v18 = vadd.f32 %v25317_v31, %v25307_v17  ;;  %v14482_v59 = vmax.f32 %v25325_v5, 0.0  ;;  %v14485_v48 = vmax.f32 %v25337_v6, 0.0  ;;  %14548 = vst.msk [vmem:[%s25902_s7 + $0x18] sm:$0xff] %vm6786_vm4, %v14484_v50 }
 0xb93   :  { %26678 = vst [vmem:[#allocation56_spill] sm:$0xff] %v25565_v42  ;;  %v14486_v34 = vmax.f32 %v25341_v62, 0.0  ;;  %v14487_v42 = vmax.f32 %v25345_v63, 0.0  ;;  %v14488_v17 = vmax.f32 %v25349_v56, 0.0  ;;  %v14490_v31 = vmax.f32 %v25357_v30, 0.0  ;;  %14545 = vst.msk [vmem:[%s25902_s7] sm:$0xff] %vm6786_vm4, %v14481_v12 }
 0xb94   :  { %26676 = vst [vmem:[#allocation54_spill] sm:$0xff] %v25557_v43  ;;  %26679 = vst [vmem:[#allocation57_spill] sm:$0xff] %v25569_v18  ;;  %v14483_v43 = vmax.f32 %v25329_v57, 0.0  ;;  %v14489_v18 = vmax.f32 %v25353_v33, 0.0  ;;  %v14492_v3 = vmax.f32 %v25365_v28, 0.0  ;;  %v14493_v5 = vmax.f32 %v25369_v32, 0.0 }
 0xb95   :  { %14546 = vst.msk [vmem:[%s25902_s7 + $0x8] sm:$0xff] %vm6786_vm4, %v14482_v59  ;;  %v14494_v57 = vmax.f32 %v25373_v13, 0.0  ;;  %v14495_v54 = vmax.f32 %v25377_v53, 0.0  ;;  %v14496_v6 = vmax.f32 %v25381_v9, 0.0  ;;  %14549 = vst.msk [vmem:[%s25902_s7 + $0x20] sm:$0xff] %vm6786_vm4, %v14485_v48  ;;  %v14497_v62 = vmax.f32 %v25385_v16, 0.0 }
 0xb96   :  { %14547 = vst.msk [vmem:[%s25902_s7 + $0x10] sm:$0xff] %vm6786_vm4, %v14483_v43  ;;  %14550 = vst.msk [vmem:[%s25902_s7 + $0x28] sm:$0xff] %vm6786_vm4, %v14486_v34  ;;  %v14498_v63 = vmax.f32 %v25389_v7, 0.0  ;;  %v14499_v56 = vmax.f32 %v25393_v14, 0.0  ;;  %v14500_v33 = vmax.f32 %v25397_v61, 0.0  ;;  %v14501_v30 = vmax.f32 %v25401_v27, 0.0 }
 0xb97   :  { %14551 = vst.msk [vmem:[%s25902_s7 + $0x30] sm:$0xff] %vm6786_vm4, %v14487_v42  ;;  %14552 = vst.msk [vmem:[%s25902_s7 + $0x38] sm:$0xff] %vm6786_vm4, %v14488_v17  ;;  %v14502_v45 = vmax.f32 %v25405_v44, 0.0  ;;  %v14503_v28 = vmax.f32 %v25409_v46, 0.0  ;;  %v14504_v32 = vmax.f32 %v25413_v2, 0.0  ;;  %v14505_v13 = vmax.f32 %v25417_v60, 0.0 }
 0xb98   :  { %14553 = vst.msk [vmem:[%s25902_s7 + $0x40] sm:$0xff] %vm6786_vm4, %v14489_v18  ;;  %14554 = vst.msk [vmem:[%s25902_s7 + $0x48] sm:$0xff] %vm6786_vm4, %v14490_v31  ;;  %v14506_v53 = vmax.f32 %v25421_v22, 0.0  ;;  %v14507_v9 = vmax.f32 %v25425_v20, 0.0  ;;  %v14508_v16 = vmax.f32 %v25429_v49, 0.0  ;;  %v14509_v7 = vmax.f32 %v25433_v0, 0.0 }
 0xb99   :  { %14555 = vst.msk [vmem:[%s25902_s7 + $0x50] sm:$0xff] %vm6786_vm4, %v14491_v11  ;;  %14556 = vst.msk [vmem:[%s25902_s7 + $0x58] sm:$0xff] %vm6786_vm4, %v14492_v3  ;;  %v14510_v14 = vmax.f32 %v25437_v8, 0.0  ;;  %v14511_v61 = vmax.f32 %v25441_v41, 0.0  ;;  %v14512_v27 = vmax.f32 %v25445_v40, 0.0  ;;  %v14513_v44 = vmax.f32 %v25449_v35, 0.0 }
 0xb9a   :  { %14557 = vst.msk [vmem:[%s25902_s7 + $0x60] sm:$0xff] %vm6786_vm4, %v14493_v5  ;;  %14558 = vst.msk [vmem:[%s25902_s7 + $0x68] sm:$0xff] %vm6786_vm4, %v14494_v57  ;;  %v14514_v46 = vmax.f32 %v25453_v47, 0.0  ;;  %v14515_v2 = vmax.f32 %v25457_v38, 0.0  ;;  %v14516_v60 = vmax.f32 %v25461_v37, 0.0  ;;  %v14517_v22 = vmax.f32 %v25465_v29, 0.0 }
 0xb9b   :  { %14559 = vst.msk [vmem:[%s25902_s7 + $0x70] sm:$0xff] %vm6786_vm4, %v14495_v54  ;;  %14560 = vst.msk [vmem:[%s25902_s7 + $0x78] sm:$0xff] %vm6786_vm4, %v14496_v6  ;;  %v14518_v20 = vmax.f32 %v25469_v4, 0.0  ;;  %v14519_v49 = vmax.f32 %v25473_v26, 0.0  ;;  %v14520_v0 = vmax.f32 %v25477_v23, 0.0  ;;  %v14521_v8 = vmax.f32 %v25481_v10, 0.0 }
 0xb9c   :  { %14561 = vst.msk [vmem:[%s25902_s7 + $0x80] sm:$0xff] %vm6786_vm4, %v14497_v62  ;;  %14562 = vst.msk [vmem:[%s25902_s7 + $0x88] sm:$0xff] %vm6786_vm4, %v14498_v63  ;;  %v14522_v41 = vmax.f32 %v25485_v1, 0.0  ;;  %v14523_v40 = vmax.f32 %v25489_v55, 0.0  ;;  %v14524_v35 = vmax.f32 %v25493_v39, 0.0  ;;  %v14525_v47 = vmax.f32 %v25497_v24, 0.0 }
 0xb9d   :  { %14563 = vst.msk [vmem:[%s25902_s7 + $0x90] sm:$0xff] %vm6786_vm4, %v14499_v56  ;;  %14564 = vst.msk [vmem:[%s25902_s7 + $0x98] sm:$0xff] %vm6786_vm4, %v14500_v33  ;;  %v14526_v38 = vmax.f32 %v25501_v52, 0.0  ;;  %v14527_v37 = vmax.f32 %v25505_v25, 0.0  ;;  %v26680_v29 = vld [vmem:[#allocation38_spill] sm:$0xff]  ;;  %v26681_v26 = vld [vmem:[#allocation39_spill] sm:$0xff] }
 0xb9e   :  { %14565 = vst.msk [vmem:[%s25902_s7 + $0xa0] sm:$0xff] %vm6786_vm4, %v14501_v30  ;;  %14566 = vst.msk [vmem:[%s25902_s7 + $0xa8] sm:$0xff] %vm6786_vm4, %v14502_v45  ;;  %v14528_v4 = vmax.f32 %v26680_v29, 0.0  ;;  %v14529_v23 = vmax.f32 %v26681_v26, 0.0  ;;  %v26682_v10 = vld [vmem:[#allocation40_spill] sm:$0xff]  ;;  %v26683_v55 = vld [vmem:[#allocation41_spill] sm:$0xff] }
 0xb9f   :  { %14567 = vst.msk [vmem:[%s25902_s7 + $0xb0] sm:$0xff] %vm6786_vm4, %v14503_v28  ;;  %14568 = vst.msk [vmem:[%s25902_s7 + $0xb8] sm:$0xff] %vm6786_vm4, %v14504_v32  ;;  %v14530_v1 = vmax.f32 %v26682_v10, 0.0  ;;  %v14531_v39 = vmax.f32 %v26683_v55, 0.0  ;;  %v26684_v24 = vld [vmem:[#allocation42_spill] sm:$0xff]  ;;  %v14533_v25 = vmax.f32 %v25529_v58, 0.0 }
 0xba0   :  { %14569 = vst.msk [vmem:[%s25902_s7 + $0xc0] sm:$0xff] %vm6786_vm4, %v14505_v13  ;;  %14570 = vst.msk [vmem:[%s25902_s7 + $0xc8] sm:$0xff] %vm6786_vm4, %v14506_v53  ;;  %v14532_v52 = vmax.f32 %v26684_v24, 0.0  ;;  %v26685_v12 = vld [vmem:[#allocation51_spill] sm:$0xff]  ;;  %v14535_v48 = vmax.f32 %v25537_v51, 0.0  ;;  %v14536_v42 = vmax.f32 %v25541_v21, 0.0 }
 0xba1   :  { %14571 = vst.msk [vmem:[%s25902_s7 + $0xd0] sm:$0xff] %vm6786_vm4, %v14507_v9  ;;  %14572 = vst.msk [vmem:[%s25902_s7 + $0xd8] sm:$0xff] %vm6786_vm4, %v14508_v16  ;;  %v14534_v43 = vmax.f32 %v26685_v12, 0.0  ;;  %v14537_v58 = vmax.f32 %v25545_v19, 0.0  ;;  %v14538_v51 = vmax.f32 %v25549_v36, 0.0  ;;  %v26686_v21 = vld [vmem:[#allocation53_spill] sm:$0xff] }
 0xba2   :  { %14573 = vst.msk [vmem:[%s25902_s7 + $0xe0] sm:$0xff] %vm6786_vm4, %v14509_v7  ;;  %14574 = vst.msk [vmem:[%s25902_s7 + $0xe8] sm:$0xff] %vm6786_vm4, %v14510_v14  ;;  %v14539_v18 = vmax.f32 %v26686_v21, 0.0  ;;  %v26687_v59 = vld [vmem:[#allocation54_spill] sm:$0xff]  ;;  %v26688_v19 = vld [vmem:[#allocation55_spill] sm:$0xff]  ;;  %v14544_v3 = vmax.f32 %v25573_v15, 0.0 }
 0xba3   :  { %14575 = vst.msk [vmem:[%s25902_s7 + $0xf0] sm:$0xff] %vm6786_vm4, %v14511_v61  ;;  %14576 = vst.msk [vmem:[%s25902_s7 + $0xf8] sm:$0xff] %vm6786_vm4, %v14512_v27  ;;  %v14540_v50 = vmax.f32 %v26687_v59, 0.0  ;;  %v14541_v36 = vmax.f32 %v26688_v19, 0.0  ;;  %v26689_v34 = vld [vmem:[#allocation56_spill] sm:$0xff]  ;;  %v26690_v31 = vld [vmem:[#allocation57_spill] sm:$0xff] }
 0xba4   :  { %14577 = vst.msk [vmem:[%s25902_s7 + $0x100] sm:$0xff] %vm6786_vm4, %v14513_v44  ;;  %14578 = vst.msk [vmem:[%s25902_s7 + $0x108] sm:$0xff] %vm6786_vm4, %v14514_v46  ;;  %v14542_v17 = vmax.f32 %v26689_v34, 0.0  ;;  %v14543_v11 = vmax.f32 %v26690_v31, 0.0 }
 0xba5   :  { %14579 = vst.msk [vmem:[%s25902_s7 + $0x110] sm:$0xff] %vm6786_vm4, %v14515_v2  ;;  %14580 = vst.msk [vmem:[%s25902_s7 + $0x118] sm:$0xff] %vm6786_vm4, %v14516_v60 }
 0xba6   :  { %14581 = vst.msk [vmem:[%s25902_s7 + $0x120] sm:$0xff] %vm6786_vm4, %v14517_v22  ;;  %14582 = vst.msk [vmem:[%s25902_s7 + $0x128] sm:$0xff] %vm6786_vm4, %v14518_v20 }
 0xba7   :  { %14583 = vst.msk [vmem:[%s25902_s7 + $0x130] sm:$0xff] %vm6786_vm4, %v14519_v49  ;;  %14584 = vst.msk [vmem:[%s25902_s7 + $0x138] sm:$0xff] %vm6786_vm4, %v14520_v0 }
 0xba8   :  { %14585 = vst.msk [vmem:[%s25902_s7 + $0x140] sm:$0xff] %vm6786_vm4, %v14521_v8  ;;  %14586 = vst.msk [vmem:[%s25902_s7 + $0x148] sm:$0xff] %vm6786_vm4, %v14522_v41 }
 0xba9   :  { %14587 = vst.msk [vmem:[%s25902_s7 + $0x150] sm:$0xff] %vm6786_vm4, %v14523_v40  ;;  %14588 = vst.msk [vmem:[%s25902_s7 + $0x158] sm:$0xff] %vm6786_vm4, %v14524_v35 }
 0xbaa   :  { %14589 = vst.msk [vmem:[%s25902_s7 + $0x160] sm:$0xff] %vm6786_vm4, %v14525_v47  ;;  %14590 = vst.msk [vmem:[%s25902_s7 + $0x168] sm:$0xff] %vm6786_vm4, %v14526_v38 }
 0xbab   :  { %14591 = vst.msk [vmem:[%s25902_s7 + $0x170] sm:$0xff] %vm6786_vm4, %v14527_v37  ;;  %14592 = vst.msk [vmem:[%s25902_s7 + $0x178] sm:$0xff] %vm6786_vm4, %v14528_v4 }
 0xbac   :  { %14593 = vst.msk [vmem:[%s25902_s7 + $0x180] sm:$0xff] %vm6786_vm4, %v14529_v23  ;;  %14594 = vst.msk [vmem:[%s25902_s7 + $0x188] sm:$0xff] %vm6786_vm4, %v14530_v1 }
 0xbad   :  { %14595 = vst.msk [vmem:[%s25902_s7 + $0x190] sm:$0xff] %vm6786_vm4, %v14531_v39  ;;  %14596 = vst.msk [vmem:[%s25902_s7 + $0x198] sm:$0xff] %vm6786_vm4, %v14532_v52 }
 0xbae   :  { %14597 = vst.msk [vmem:[%s25902_s7 + $0x1a0] sm:$0xff] %vm6786_vm4, %v14533_v25  ;;  %14598 = vst.msk [vmem:[%s25902_s7 + $0x1a8] sm:$0xff] %vm6786_vm4, %v14534_v43 }
 0xbaf   :  { %14599 = vst.msk [vmem:[%s25902_s7 + $0x1b0] sm:$0xff] %vm6786_vm4, %v14535_v48  ;;  %14600 = vst.msk [vmem:[%s25902_s7 + $0x1b8] sm:$0xff] %vm6786_vm4, %v14536_v42 }
 0xbb0   :  { %14601 = vst.msk [vmem:[%s25902_s7 + $0x1c0] sm:$0xff] %vm6786_vm4, %v14537_v58  ;;  %14602 = vst.msk [vmem:[%s25902_s7 + $0x1c8] sm:$0xff] %vm6786_vm4, %v14538_v51 }
 0xbb1   :  { %14603 = vst.msk [vmem:[%s25902_s7 + $0x1d0] sm:$0xff] %vm6786_vm4, %v14539_v18  ;;  %14604 = vst.msk [vmem:[%s25902_s7 + $0x1d8] sm:$0xff] %vm6786_vm4, %v14540_v50 }
 0xbb2   :  { %14605 = vst.msk [vmem:[%s25902_s7 + $0x1e0] sm:$0xff] %vm6786_vm4, %v14541_v36  ;;  %14606 = vst.msk [vmem:[%s25902_s7 + $0x1e8] sm:$0xff] %vm6786_vm4, %v14542_v17 }
 0xbb3   :  { %14607 = vst.msk [vmem:[%s25902_s7 + $0x1f0] sm:$0xff] %vm6786_vm4, %v14543_v11  ;;  %14608 = vst.msk [vmem:[%s25902_s7 + $0x1f8] sm:$0xff] %vm6786_vm4, %v14544_v3 }

</bundles_post_ra>
